<compile_context>
chip_gen: v5e
topology: v5e:2x2
jax: 0.10.0
libtpu: 0.0.40
codegen_flags: <defaults>
</compile_context>

<pallas_src>
import functools

import numpy as np

import jax
import jax.numpy as jnp
from jax.experimental import pallas as pl
from jax.experimental.pallas import tpu as pltpu


# (name, cin, cout, ksize, relu, pool_after) -- matches SmallEncoder4_16x_plus.vgg
_CFG = (
    ("conv0",   3,   3, 1, False, False),
    ("conv1_1", 3,  16, 3, True,  False),
    ("conv1_2", 16, 16, 3, True,  True),
    ("conv2_1", 16, 32, 3, True,  False),
    ("conv2_2", 32, 32, 3, True,  True),
    ("conv3_1", 32, 64, 3, True,  False),
    ("conv3_2", 64, 64, 3, True,  False),
    ("conv3_3", 64, 64, 3, True,  False),
    ("conv3_4", 64, 64, 3, True,  True),
    ("conv4_1", 64, 128, 3, True, False),
)


def init_params(key):
    """Synthetic parameters in PyTorch Conv2d layout: W (Cout,Cin,k,k), b (Cout,)."""
    params = []
    for (_, cin, cout, k, _, _) in _CFG:
        key, kw_, kb_ = jax.random.split(key, 3)
        fan_in = k * k * cin
        w = jax.random.normal(kw_, (cout, cin, k, k), jnp.float32) * (2.0 / fan_in) ** 0.5
        b = jax.random.normal(kb_, (cout,), jnp.float32) * 0.01
        params.append((w, b))
    return params


def _reflect_idx(q, n):
    """Source index (0..n-1) for padded position q (0..n+1), ReflectionPad2d(1)."""
    if q == 0:
        return 1
    if q == n + 1:
        return n - 2
    return q - 1


def pack_params(params, H0, W0):
    """Build the kernel operands (done once, wrapper side / numpy).

    Activation layout inside the kernel: y[h, w*C + c]  (row-major HWC).
    """
    ops, program = [], []
    H, W = H0, W0
    c_final = _CFG[-1][2]
    for (name, cin, cout, k, relu, pool), (w, b) in zip(_CFG, params):
        w = np.asarray(w, np.float32)
        b = np.asarray(b, np.float32)
        if k == 1:
            # 1x1 conv == block-diagonal channel matmul in the (H, W*C) layout.
            w0 = w[:, :, 0, 0]                                   # (cout, cin)
            bd = np.kron(np.eye(W, dtype=np.float32), w0.T)      # (W*cin, W*cout)
            ops += [jnp.asarray(bd, jnp.bfloat16),
                    jnp.asarray(np.tile(b, W)[None, :], jnp.float32)]
            program.append("conv1x1")
        else:
            # Per-kernel-row Toeplitz (taps j + W reflection folded in).
            K, Nn = W * cin, W * cout
            T = np.zeros((3, K, Nn), np.float32)
            for i in range(3):
                for j in range(3):
                    wij = w[:, :, i, j].T                        # (cin, cout)
                    for wo in range(W):
                        wi = _reflect_idx(wo + j, W)
                        T[i, wi * cin:(wi + 1) * cin,
                             wo * cout:(wo + 1) * cout] += wij
            # Row selection (kernel-row offset i + H reflection).
            S = np.zeros((3, H, H), np.float32)
            for i in range(3):
                for h in range(H):
                    S[i, h, _reflect_idx(h + i, H)] = 1.0
            ops += [jnp.asarray(T, jnp.bfloat16),
                    jnp.asarray(S, jnp.float32),
                    jnp.asarray(np.tile(b, W)[None, :], jnp.float32)]
            program.append("conv3x3")

        C = cout
        c_final = cout
        if pool:
            # MaxPool2d((2,2),(2,2),ceil_mode=True) as exact 0/1 selections
            # (odd edges handled by duplicating the last row/col: max(a,a)=a).
            Hc, Wc = (H + 1) // 2, (W + 1) // 2
            EO = np.zeros((2, Hc, H), np.float32)
            for h2 in range(Hc):
                EO[0, h2, 2 * h2] = 1.0
                EO[1, h2, min(2 * h2 + 1, H - 1)] = 1.0
            AB = np.zeros((2, W * C, Wc * C), np.float32)
            eye_c = np.eye(C, dtype=np.float32)
            for w2 in range(Wc):
                wa = 2 * w2
                wb = min(2 * w2 + 1, W - 1)
                AB[0, wa * C:(wa + 1) * C, w2 * C:(w2 + 1) * C] = eye_c
                AB[1, wb * C:(wb + 1) * C, w2 * C:(w2 + 1) * C] = eye_c
            ops += [jnp.asarray(EO, jnp.float32), jnp.asarray(AB, jnp.float32)]
            program.append("pool")
            H, W = Hc, Wc

    return ops, tuple(program), (H, W, c_final)


def _make_kernel(program):
    """Fused forward kernel: dots + maximum only (all layout work pre-baked)."""

    def kernel(x_ref, *refs):
        o_ref = refs[-1]
        ops = refs[:-1]
        idx = 0
        y = x_ref[0]                                   # (H0, W0*3) f32
        for step in program:
            if step == "conv1x1":
                wbd, b = ops[idx], ops[idx + 1]
                idx += 2
                y = jnp.dot(y.astype(jnp.bfloat16), wbd[...],
                            preferred_element_type=jnp.float32) + b[...]
            elif step == "conv3x3":
                T, S, b = ops[idx], ops[idx + 1], ops[idx + 2]
                idx += 3
                yb = y.astype(jnp.bfloat16)
                acc = None
                for i in range(3):                     # static unroll, 3 MXU dots
                    z = jnp.dot(yb, T[i], preferred_element_type=jnp.float32)
                    zi = jnp.dot(S[i], z, preferred_element_type=jnp.float32)
                    acc = zi if acc is None else acc + zi
                y = jnp.maximum(acc + b[...], 0.0)     # bias + ReLU in f32
            else:  # "pool"
                EO, AB = ops[idx], ops[idx + 1]
                idx += 2
                t = jnp.maximum(
                    jnp.dot(EO[0], y, preferred_element_type=jnp.float32),
                    jnp.dot(EO[1], y, preferred_element_type=jnp.float32))
                y = jnp.maximum(
                    jnp.dot(t, AB[0], preferred_element_type=jnp.float32),
                    jnp.dot(t, AB[1], preferred_element_type=jnp.float32))
        o_ref[0] = y.astype(o_ref.dtype)

    return kernel


def make_forward(program, out_dims):
    kernel = _make_kernel(program)
    Hf, Wf, Cf = out_dims

    @jax.jit
    def fwd(x_nchw, ops):
        N, C0, H0, W0 = x_nchw.shape
        # NCHW -> lane-dense (N, H, W*C) row-major-HWC (tiny wrapper-side permute).
        x = jnp.transpose(x_nchw, (0, 2, 3, 1)).reshape(N, H0, W0 * C0)

        in_specs = [pl.BlockSpec((1, H0, W0 * C0), lambda n: (n, 0, 0))]
        for a in ops:                                  # grid-invariant weights
            in_specs.append(
                pl.BlockSpec(a.shape, (lambda n, _nd=a.ndim: (0,) * _nd)))

        out = pl.pallas_call(
            kernel,
            out_shape=jax.ShapeDtypeStruct((N, Hf, Wf * Cf), jnp.float32),
            grid=(N,),
            in_specs=in_specs,
            out_specs=pl.BlockSpec((1, Hf, Wf * Cf), lambda n: (n, 0, 0)),
            compiler_params=pltpu.CompilerParams(
                dimension_semantics=("parallel",)),
        )(x, *ops)

        # (N, H, W*C) -> NCHW (4 KB tensor; negligible).
        return jnp.transpose(out.reshape(N, Hf, Wf, Cf), (0, 3, 1, 2))

    return fwd


def reference_forward(params, x_nchw):
    """Pure-XLA f32 reference mirroring the PyTorch module exactly."""
    x = jnp.transpose(x_nchw, (0, 2, 3, 1)).astype(jnp.float32)
    for (name, cin, cout, k, relu, pool), (w, b) in zip(_CFG, params):
        if k == 3:
            x = jnp.pad(x, ((0, 0), (1, 1), (1, 1), (0, 0)), mode="reflect")
        wh = jnp.transpose(w, (2, 3, 1, 0))            # -> (kh, kw, Cin, Cout)
        x = jax.lax.conv_general_dilated(
            x, wh, window_strides=(1, 1), padding="VALID",
            dimension_numbers=("NHWC", "HWIO", "NHWC"),
            precision=jax.lax.Precision.HIGHEST,
            preferred_element_type=jnp.float32)
        x = x + b
        if relu:
            x = jnp.maximum(x, 0.0)
        if pool:
            # ceil_mode=True; spatial dims are even for this workload.
            x = jax.lax.reduce_window(x, -jnp.inf, jax.lax.max,
                                      (1, 2, 2, 1), (1, 2, 2, 1), "VALID")
    return jnp.transpose(x, (0, 3, 1, 2))


if __name__ == "__main__":
    key = jax.random.PRNGKey(0)
    k_x, k_p = jax.random.split(key)
    x = jax.random.normal(k_x, (2, 3, 16, 16), jnp.float32)   # NCHW, like PyTorch
    params = init_params(k_p)

    ops, program, out_dims = pack_params(params, 16, 16)
    fwd = make_forward(program, out_dims)

    y = jax.block_until_ready(fwd(x, ops))
    assert y.shape == (2, 128, 2, 2), y.shape                 # 16 -> 8 -> 4 -> 2
    assert y.dtype == jnp.float32

    # Numerical check vs. f32 XLA reference (tolerance covers bf16 matmul operands).
    y_ref = jax.block_until_ready(reference_forward(params, x))
    err = float(jnp.max(jnp.abs(y - y_ref)))
    scale = float(jnp.max(jnp.abs(y_ref)))
    assert err <= 0.15 * scale + 0.05, ("mismatch vs reference", err, scale)

    print("KERNEL_OK")
</pallas_src>

<mosaic_0001>
module attributes {stable_mosaic.version = 11 : i64} {
  func.func @kernel(%arg0: i32, %arg1: memref<1x16x48xf32, #tpu.memory_space<vmem>>, %arg2: memref<48x48xbf16, #tpu.memory_space<vmem>>, %arg3: memref<1x48xf32, #tpu.memory_space<vmem>>, %arg4: memref<3x48x256xbf16, #tpu.memory_space<vmem>>, %arg5: memref<3x16x16xf32, #tpu.memory_space<vmem>>, %arg6: memref<1x256xf32, #tpu.memory_space<vmem>>, %arg7: memref<3x256x256xbf16, #tpu.memory_space<vmem>>, %arg8: memref<3x16x16xf32, #tpu.memory_space<vmem>>, %arg9: memref<1x256xf32, #tpu.memory_space<vmem>>, %arg10: memref<2x8x16xf32, #tpu.memory_space<vmem>>, %arg11: memref<2x256x128xf32, #tpu.memory_space<vmem>>, %arg12: memref<3x128x256xbf16, #tpu.memory_space<vmem>>, %arg13: memref<3x8x8xf32, #tpu.memory_space<vmem>>, %arg14: memref<1x256xf32, #tpu.memory_space<vmem>>, %arg15: memref<3x256x256xbf16, #tpu.memory_space<vmem>>, %arg16: memref<3x8x8xf32, #tpu.memory_space<vmem>>, %arg17: memref<1x256xf32, #tpu.memory_space<vmem>>, %arg18: memref<2x4x8xf32, #tpu.memory_space<vmem>>, %arg19: memref<2x256x128xf32, #tpu.memory_space<vmem>>, %arg20: memref<3x128x256xbf16, #tpu.memory_space<vmem>>, %arg21: memref<3x4x4xf32, #tpu.memory_space<vmem>>, %arg22: memref<1x256xf32, #tpu.memory_space<vmem>>, %arg23: memref<3x256x256xbf16, #tpu.memory_space<vmem>>, %arg24: memref<3x4x4xf32, #tpu.memory_space<vmem>>, %arg25: memref<1x256xf32, #tpu.memory_space<vmem>>, %arg26: memref<3x256x256xbf16, #tpu.memory_space<vmem>>, %arg27: memref<3x4x4xf32, #tpu.memory_space<vmem>>, %arg28: memref<1x256xf32, #tpu.memory_space<vmem>>, %arg29: memref<3x256x256xbf16, #tpu.memory_space<vmem>>, %arg30: memref<3x4x4xf32, #tpu.memory_space<vmem>>, %arg31: memref<1x256xf32, #tpu.memory_space<vmem>>, %arg32: memref<2x2x4xf32, #tpu.memory_space<vmem>>, %arg33: memref<2x256x128xf32, #tpu.memory_space<vmem>>, %arg34: memref<3x128x256xbf16, #tpu.memory_space<vmem>>, %arg35: memref<3x2x2xf32, #tpu.memory_space<vmem>>, %arg36: memref<1x256xf32, #tpu.memory_space<vmem>>, %arg37: memref<1x2x256xf32, #tpu.memory_space<vmem>>) attributes {dimension_semantics = [#tpu.dimension_semantics<parallel>], iteration_bounds = array<i64: 2>, scalar_prefetch = 0 : i64, scratch_operands = 0 : i64, tpu.core_type = #tpu.core_type<tc>, window_params = [{transform_indices = @transform_0, window_bounds = array<i64: 1, 16, 48>}, {pipeline_mode = #tpu.pipeline_mode<synchronous>, transform_indices = @transform_1, window_bounds = array<i64: 48, 48>}, {pipeline_mode = #tpu.pipeline_mode<synchronous>, transform_indices = @transform_2, window_bounds = array<i64: 1, 48>}, {pipeline_mode = #tpu.pipeline_mode<synchronous>, transform_indices = @transform_3, window_bounds = array<i64: 3, 48, 256>}, {pipeline_mode = #tpu.pipeline_mode<synchronous>, transform_indices = @transform_4, window_bounds = array<i64: 3, 16, 16>}, {pipeline_mode = #tpu.pipeline_mode<synchronous>, transform_indices = @transform_5, window_bounds = array<i64: 1, 256>}, {pipeline_mode = #tpu.pipeline_mode<synchronous>, transform_indices = @transform_6, window_bounds = array<i64: 3, 256, 256>}, {pipeline_mode = #tpu.pipeline_mode<synchronous>, transform_indices = @transform_7, window_bounds = array<i64: 3, 16, 16>}, {pipeline_mode = #tpu.pipeline_mode<synchronous>, transform_indices = @transform_8, window_bounds = array<i64: 1, 256>}, {pipeline_mode = #tpu.pipeline_mode<synchronous>, transform_indices = @transform_9, window_bounds = array<i64: 2, 8, 16>}, {pipeline_mode = #tpu.pipeline_mode<synchronous>, transform_indices = @transform_10, window_bounds = array<i64: 2, 256, 128>}, {pipeline_mode = #tpu.pipeline_mode<synchronous>, transform_indices = @transform_11, window_bounds = array<i64: 3, 128, 256>}, {pipeline_mode = #tpu.pipeline_mode<synchronous>, transform_indices = @transform_12, window_bounds = array<i64: 3, 8, 8>}, {pipeline_mode = #tpu.pipeline_mode<synchronous>, transform_indices = @transform_13, window_bounds = array<i64: 1, 256>}, {pipeline_mode = #tpu.pipeline_mode<synchronous>, transform_indices = @transform_14, window_bounds = array<i64: 3, 256, 256>}, {pipeline_mode = #tpu.pipeline_mode<synchronous>, transform_indices = @transform_15, window_bounds = array<i64: 3, 8, 8>}, {pipeline_mode = #tpu.pipeline_mode<synchronous>, transform_indices = @transform_16, window_bounds = array<i64: 1, 256>}, {pipeline_mode = #tpu.pipeline_mode<synchronous>, transform_indices = @transform_17, window_bounds = array<i64: 2, 4, 8>}, {pipeline_mode = #tpu.pipeline_mode<synchronous>, transform_indices = @transform_18, window_bounds = array<i64: 2, 256, 128>}, {pipeline_mode = #tpu.pipeline_mode<synchronous>, transform_indices = @transform_19, window_bounds = array<i64: 3, 128, 256>}, {pipeline_mode = #tpu.pipeline_mode<synchronous>, transform_indices = @transform_20, window_bounds = array<i64: 3, 4, 4>}, {pipeline_mode = #tpu.pipeline_mode<synchronous>, transform_indices = @transform_21, window_bounds = array<i64: 1, 256>}, {pipeline_mode = #tpu.pipeline_mode<synchronous>, transform_indices = @transform_22, window_bounds = array<i64: 3, 256, 256>}, {pipeline_mode = #tpu.pipeline_mode<synchronous>, transform_indices = @transform_23, window_bounds = array<i64: 3, 4, 4>}, {pipeline_mode = #tpu.pipeline_mode<synchronous>, transform_indices = @transform_24, window_bounds = array<i64: 1, 256>}, {pipeline_mode = #tpu.pipeline_mode<synchronous>, transform_indices = @transform_25, window_bounds = array<i64: 3, 256, 256>}, {pipeline_mode = #tpu.pipeline_mode<synchronous>, transform_indices = @transform_26, window_bounds = array<i64: 3, 4, 4>}, {pipeline_mode = #tpu.pipeline_mode<synchronous>, transform_indices = @transform_27, window_bounds = array<i64: 1, 256>}, {pipeline_mode = #tpu.pipeline_mode<synchronous>, transform_indices = @transform_28, window_bounds = array<i64: 3, 256, 256>}, {pipeline_mode = #tpu.pipeline_mode<synchronous>, transform_indices = @transform_29, window_bounds = array<i64: 3, 4, 4>}, {pipeline_mode = #tpu.pipeline_mode<synchronous>, transform_indices = @transform_30, window_bounds = array<i64: 1, 256>}, {pipeline_mode = #tpu.pipeline_mode<synchronous>, transform_indices = @transform_31, window_bounds = array<i64: 2, 2, 4>}, {pipeline_mode = #tpu.pipeline_mode<synchronous>, transform_indices = @transform_32, window_bounds = array<i64: 2, 256, 128>}, {pipeline_mode = #tpu.pipeline_mode<synchronous>, transform_indices = @transform_33, window_bounds = array<i64: 3, 128, 256>}, {pipeline_mode = #tpu.pipeline_mode<synchronous>, transform_indices = @transform_34, window_bounds = array<i64: 3, 2, 2>}, {pipeline_mode = #tpu.pipeline_mode<synchronous>, transform_indices = @transform_35, window_bounds = array<i64: 1, 256>}, {transform_indices = @transform_36, window_bounds = array<i64: 1, 2, 256>}]} {
    %c0 = arith.constant 0 : index
    %c0_0 = arith.constant 0 : index
    %c0_1 = arith.constant 0 : index
    %0 = vector.load %arg1[%c0, %c0_0, %c0_1] : memref<1x16x48xf32, #tpu.memory_space<vmem>>, vector<1x16x48xf32>
    %1 = vector.shape_cast %0 : vector<1x16x48xf32> to vector<16x48xf32>
    %2 = arith.truncf %1 : vector<16x48xf32> to vector<16x48xbf16>
    %c0_2 = arith.constant 0 : index
    %c0_3 = arith.constant 0 : index
    %3 = vector.load %arg2[%c0_2, %c0_3] : memref<48x48xbf16, #tpu.memory_space<vmem>>, vector<48x48xbf16>
    %cst = arith.constant dense<0.000000e+00> : vector<16x48xf32>
    %4 = tpu.matmul %2, %3, %cst {dimension_numbers = #tpu.dot_dimension_numbers<[1], [0], [0], [1], [0, 0, 1, 1], [], []>} : vector<16x48xbf16>, vector<48x48xbf16>, vector<16x48xf32> -> vector<16x48xf32>
    %c0_4 = arith.constant 0 : index
    %c0_5 = arith.constant 0 : index
    %5 = vector.load %arg3[%c0_4, %c0_5] : memref<1x48xf32, #tpu.memory_space<vmem>>, vector<1x48xf32>
    %6 = vector.broadcast %5 : vector<1x48xf32> to vector<16x48xf32>
    %7 = arith.addf %4, %6 : vector<16x48xf32>
    %8 = arith.truncf %7 : vector<16x48xf32> to vector<16x48xbf16>
    %c0_6 = arith.constant 0 : index
    %c0_7 = arith.constant 0 : index
    %c0_8 = arith.constant 0 : index
    %9 = vector.load %arg4[%c0_6, %c0_7, %c0_8] : memref<3x48x256xbf16, #tpu.memory_space<vmem>>, vector<1x48x256xbf16>
    %10 = vector.shape_cast %9 : vector<1x48x256xbf16> to vector<48x256xbf16>
    %cst_9 = arith.constant dense<0.000000e+00> : vector<16x256xf32>
    %11 = tpu.matmul %8, %10, %cst_9 {dimension_numbers = #tpu.dot_dimension_numbers<[1], [0], [0], [1], [0, 0, 1, 1], [], []>} : vector<16x48xbf16>, vector<48x256xbf16>, vector<16x256xf32> -> vector<16x256xf32>
    %c0_10 = arith.constant 0 : index
    %c0_11 = arith.constant 0 : index
    %c0_12 = arith.constant 0 : index
    %12 = vector.load %arg5[%c0_10, %c0_11, %c0_12] : memref<3x16x16xf32, #tpu.memory_space<vmem>>, vector<1x16x16xf32>
    %13 = vector.shape_cast %12 : vector<1x16x16xf32> to vector<16x16xf32>
    %cst_13 = arith.constant dense<0.000000e+00> : vector<16x256xf32>
    %14 = tpu.matmul %13, %11, %cst_13 {dimension_numbers = #tpu.dot_dimension_numbers<[1], [0], [0], [1], [0, 0, 1, 1], [], []>} : vector<16x16xf32>, vector<16x256xf32>, vector<16x256xf32> -> vector<16x256xf32>
    %c1 = arith.constant 1 : index
    %c0_14 = arith.constant 0 : index
    %c0_15 = arith.constant 0 : index
    %15 = vector.load %arg4[%c1, %c0_14, %c0_15] : memref<3x48x256xbf16, #tpu.memory_space<vmem>>, vector<1x48x256xbf16>
    %16 = vector.shape_cast %15 : vector<1x48x256xbf16> to vector<48x256xbf16>
    %cst_16 = arith.constant dense<0.000000e+00> : vector<16x256xf32>
    %17 = tpu.matmul %8, %16, %cst_16 {dimension_numbers = #tpu.dot_dimension_numbers<[1], [0], [0], [1], [0, 0, 1, 1], [], []>} : vector<16x48xbf16>, vector<48x256xbf16>, vector<16x256xf32> -> vector<16x256xf32>
    %c1_17 = arith.constant 1 : index
    %c0_18 = arith.constant 0 : index
    %c0_19 = arith.constant 0 : index
    %18 = vector.load %arg5[%c1_17, %c0_18, %c0_19] : memref<3x16x16xf32, #tpu.memory_space<vmem>>, vector<1x16x16xf32>
    %19 = vector.shape_cast %18 : vector<1x16x16xf32> to vector<16x16xf32>
    %cst_20 = arith.constant dense<0.000000e+00> : vector<16x256xf32>
    %20 = tpu.matmul %19, %17, %cst_20 {dimension_numbers = #tpu.dot_dimension_numbers<[1], [0], [0], [1], [0, 0, 1, 1], [], []>} : vector<16x16xf32>, vector<16x256xf32>, vector<16x256xf32> -> vector<16x256xf32>
    %21 = arith.addf %14, %20 : vector<16x256xf32>
    %c2 = arith.constant 2 : index
    %c0_21 = arith.constant 0 : index
    %c0_22 = arith.constant 0 : index
    %22 = vector.load %arg4[%c2, %c0_21, %c0_22] : memref<3x48x256xbf16, #tpu.memory_space<vmem>>, vector<1x48x256xbf16>
    %23 = vector.shape_cast %22 : vector<1x48x256xbf16> to vector<48x256xbf16>
    %cst_23 = arith.constant dense<0.000000e+00> : vector<16x256xf32>
    %24 = tpu.matmul %8, %23, %cst_23 {dimension_numbers = #tpu.dot_dimension_numbers<[1], [0], [0], [1], [0, 0, 1, 1], [], []>} : vector<16x48xbf16>, vector<48x256xbf16>, vector<16x256xf32> -> vector<16x256xf32>
    %c2_24 = arith.constant 2 : index
    %c0_25 = arith.constant 0 : index
    %c0_26 = arith.constant 0 : index
    %25 = vector.load %arg5[%c2_24, %c0_25, %c0_26] : memref<3x16x16xf32, #tpu.memory_space<vmem>>, vector<1x16x16xf32>
    %26 = vector.shape_cast %25 : vector<1x16x16xf32> to vector<16x16xf32>
    %cst_27 = arith.constant dense<0.000000e+00> : vector<16x256xf32>
    %27 = tpu.matmul %26, %24, %cst_27 {dimension_numbers = #tpu.dot_dimension_numbers<[1], [0], [0], [1], [0, 0, 1, 1], [], []>} : vector<16x16xf32>, vector<16x256xf32>, vector<16x256xf32> -> vector<16x256xf32>
    %28 = arith.addf %21, %27 : vector<16x256xf32>
    %c0_28 = arith.constant 0 : index
    %c0_29 = arith.constant 0 : index
    %29 = vector.load %arg6[%c0_28, %c0_29] : memref<1x256xf32, #tpu.memory_space<vmem>>, vector<1x256xf32>
    %30 = vector.broadcast %29 : vector<1x256xf32> to vector<16x256xf32>
    %31 = arith.addf %28, %30 : vector<16x256xf32>
    %cst_30 = arith.constant 0.000000e+00 : f32
    %32 = vector.broadcast %cst_30 : f32 to vector<16x256xf32>
    %33 = arith.maximumf %31, %32 : vector<16x256xf32>
    %34 = arith.truncf %33 : vector<16x256xf32> to vector<16x256xbf16>
    %c0_31 = arith.constant 0 : index
    %c0_32 = arith.constant 0 : index
    %c0_33 = arith.constant 0 : index
    %35 = vector.load %arg7[%c0_31, %c0_32, %c0_33] : memref<3x256x256xbf16, #tpu.memory_space<vmem>>, vector<1x256x256xbf16>
    %36 = vector.shape_cast %35 : vector<1x256x256xbf16> to vector<256x256xbf16>
    %cst_34 = arith.constant dense<0.000000e+00> : vector<16x256xf32>
    %37 = tpu.matmul %34, %36, %cst_34 {dimension_numbers = #tpu.dot_dimension_numbers<[1], [0], [0], [1], [0, 0, 1, 1], [], []>} : vector<16x256xbf16>, vector<256x256xbf16>, vector<16x256xf32> -> vector<16x256xf32>
    %c0_35 = arith.constant 0 : index
    %c0_36 = arith.constant 0 : index
    %c0_37 = arith.constant 0 : index
    %38 = vector.load %arg8[%c0_35, %c0_36, %c0_37] : memref<3x16x16xf32, #tpu.memory_space<vmem>>, vector<1x16x16xf32>
    %39 = vector.shape_cast %38 : vector<1x16x16xf32> to vector<16x16xf32>
    %cst_38 = arith.constant dense<0.000000e+00> : vector<16x256xf32>
    %40 = tpu.matmul %39, %37, %cst_38 {dimension_numbers = #tpu.dot_dimension_numbers<[1], [0], [0], [1], [0, 0, 1, 1], [], []>} : vector<16x16xf32>, vector<16x256xf32>, vector<16x256xf32> -> vector<16x256xf32>
    %c1_39 = arith.constant 1 : index
    %c0_40 = arith.constant 0 : index
    %c0_41 = arith.constant 0 : index
    %41 = vector.load %arg7[%c1_39, %c0_40, %c0_41] : memref<3x256x256xbf16, #tpu.memory_space<vmem>>, vector<1x256x256xbf16>
    %42 = vector.shape_cast %41 : vector<1x256x256xbf16> to vector<256x256xbf16>
    %cst_42 = arith.constant dense<0.000000e+00> : vector<16x256xf32>
    %43 = tpu.matmul %34, %42, %cst_42 {dimension_numbers = #tpu.dot_dimension_numbers<[1], [0], [0], [1], [0, 0, 1, 1], [], []>} : vector<16x256xbf16>, vector<256x256xbf16>, vector<16x256xf32> -> vector<16x256xf32>
    %c1_43 = arith.constant 1 : index
    %c0_44 = arith.constant 0 : index
    %c0_45 = arith.constant 0 : index
    %44 = vector.load %arg8[%c1_43, %c0_44, %c0_45] : memref<3x16x16xf32, #tpu.memory_space<vmem>>, vector<1x16x16xf32>
    %45 = vector.shape_cast %44 : vector<1x16x16xf32> to vector<16x16xf32>
    %cst_46 = arith.constant dense<0.000000e+00> : vector<16x256xf32>
    %46 = tpu.matmul %45, %43, %cst_46 {dimension_numbers = #tpu.dot_dimension_numbers<[1], [0], [0], [1], [0, 0, 1, 1], [], []>} : vector<16x16xf32>, vector<16x256xf32>, vector<16x256xf32> -> vector<16x256xf32>
    %47 = arith.addf %40, %46 : vector<16x256xf32>
    %c2_47 = arith.constant 2 : index
    %c0_48 = arith.constant 0 : index
    %c0_49 = arith.constant 0 : index
    %48 = vector.load %arg7[%c2_47, %c0_48, %c0_49] : memref<3x256x256xbf16, #tpu.memory_space<vmem>>, vector<1x256x256xbf16>
    %49 = vector.shape_cast %48 : vector<1x256x256xbf16> to vector<256x256xbf16>
    %cst_50 = arith.constant dense<0.000000e+00> : vector<16x256xf32>
    %50 = tpu.matmul %34, %49, %cst_50 {dimension_numbers = #tpu.dot_dimension_numbers<[1], [0], [0], [1], [0, 0, 1, 1], [], []>} : vector<16x256xbf16>, vector<256x256xbf16>, vector<16x256xf32> -> vector<16x256xf32>
    %c2_51 = arith.constant 2 : index
    %c0_52 = arith.constant 0 : index
    %c0_53 = arith.constant 0 : index
    %51 = vector.load %arg8[%c2_51, %c0_52, %c0_53] : memref<3x16x16xf32, #tpu.memory_space<vmem>>, vector<1x16x16xf32>
    %52 = vector.shape_cast %51 : vector<1x16x16xf32> to vector<16x16xf32>
    %cst_54 = arith.constant dense<0.000000e+00> : vector<16x256xf32>
    %53 = tpu.matmul %52, %50, %cst_54 {dimension_numbers = #tpu.dot_dimension_numbers<[1], [0], [0], [1], [0, 0, 1, 1], [], []>} : vector<16x16xf32>, vector<16x256xf32>, vector<16x256xf32> -> vector<16x256xf32>
    %54 = arith.addf %47, %53 : vector<16x256xf32>
    %c0_55 = arith.constant 0 : index
    %c0_56 = arith.constant 0 : index
    %55 = vector.load %arg9[%c0_55, %c0_56] : memref<1x256xf32, #tpu.memory_space<vmem>>, vector<1x256xf32>
    %56 = vector.broadcast %55 : vector<1x256xf32> to vector<16x256xf32>
    %57 = arith.addf %54, %56 : vector<16x256xf32>
    %cst_57 = arith.constant 0.000000e+00 : f32
    %58 = vector.broadcast %cst_57 : f32 to vector<16x256xf32>
    %59 = arith.maximumf %57, %58 : vector<16x256xf32>
    %c0_58 = arith.constant 0 : index
    %c0_59 = arith.constant 0 : index
    %c0_60 = arith.constant 0 : index
    %60 = vector.load %arg10[%c0_58, %c0_59, %c0_60] : memref<2x8x16xf32, #tpu.memory_space<vmem>>, vector<1x8x16xf32>
    %61 = vector.shape_cast %60 : vector<1x8x16xf32> to vector<8x16xf32>
    %cst_61 = arith.constant dense<0.000000e+00> : vector<8x256xf32>
    %62 = tpu.matmul %61, %59, %cst_61 {dimension_numbers = #tpu.dot_dimension_numbers<[1], [0], [0], [1], [0, 0, 1, 1], [], []>} : vector<8x16xf32>, vector<16x256xf32>, vector<8x256xf32> -> vector<8x256xf32>
    %c1_62 = arith.constant 1 : index
    %c0_63 = arith.constant 0 : index
    %c0_64 = arith.constant 0 : index
    %63 = vector.load %arg10[%c1_62, %c0_63, %c0_64] : memref<2x8x16xf32, #tpu.memory_space<vmem>>, vector<1x8x16xf32>
    %64 = vector.shape_cast %63 : vector<1x8x16xf32> to vector<8x16xf32>
    %cst_65 = arith.constant dense<0.000000e+00> : vector<8x256xf32>
    %65 = tpu.matmul %64, %59, %cst_65 {dimension_numbers = #tpu.dot_dimension_numbers<[1], [0], [0], [1], [0, 0, 1, 1], [], []>} : vector<8x16xf32>, vector<16x256xf32>, vector<8x256xf32> -> vector<8x256xf32>
    %66 = arith.maximumf %62, %65 : vector<8x256xf32>
    %c0_66 = arith.constant 0 : index
    %c0_67 = arith.constant 0 : index
    %c0_68 = arith.constant 0 : index
    %67 = vector.load %arg11[%c0_66, %c0_67, %c0_68] : memref<2x256x128xf32, #tpu.memory_space<vmem>>, vector<1x256x128xf32>
    %68 = vector.shape_cast %67 : vector<1x256x128xf32> to vector<256x128xf32>
    %cst_69 = arith.constant dense<0.000000e+00> : vector<8x128xf32>
    %69 = tpu.matmul %66, %68, %cst_69 {dimension_numbers = #tpu.dot_dimension_numbers<[1], [0], [0], [1], [0, 0, 1, 1], [], []>} : vector<8x256xf32>, vector<256x128xf32>, vector<8x128xf32> -> vector<8x128xf32>
    %c1_70 = arith.constant 1 : index
    %c0_71 = arith.constant 0 : index
    %c0_72 = arith.constant 0 : index
    %70 = vector.load %arg11[%c1_70, %c0_71, %c0_72] : memref<2x256x128xf32, #tpu.memory_space<vmem>>, vector<1x256x128xf32>
    %71 = vector.shape_cast %70 : vector<1x256x128xf32> to vector<256x128xf32>
    %cst_73 = arith.constant dense<0.000000e+00> : vector<8x128xf32>
    %72 = tpu.matmul %66, %71, %cst_73 {dimension_numbers = #tpu.dot_dimension_numbers<[1], [0], [0], [1], [0, 0, 1, 1], [], []>} : vector<8x256xf32>, vector<256x128xf32>, vector<8x128xf32> -> vector<8x128xf32>
    %73 = arith.maximumf %69, %72 : vector<8x128xf32>
    %74 = arith.truncf %73 : vector<8x128xf32> to vector<8x128xbf16>
    %c0_74 = arith.constant 0 : index
    %c0_75 = arith.constant 0 : index
    %c0_76 = arith.constant 0 : index
    %75 = vector.load %arg12[%c0_74, %c0_75, %c0_76] : memref<3x128x256xbf16, #tpu.memory_space<vmem>>, vector<1x128x256xbf16>
    %76 = vector.shape_cast %75 : vector<1x128x256xbf16> to vector<128x256xbf16>
    %cst_77 = arith.constant dense<0.000000e+00> : vector<8x256xf32>
    %77 = tpu.matmul %74, %76, %cst_77 {dimension_numbers = #tpu.dot_dimension_numbers<[1], [0], [0], [1], [0, 0, 1, 1], [], []>} : vector<8x128xbf16>, vector<128x256xbf16>, vector<8x256xf32> -> vector<8x256xf32>
    %c0_78 = arith.constant 0 : index
    %c0_79 = arith.constant 0 : index
    %c0_80 = arith.constant 0 : index
    %78 = vector.load %arg13[%c0_78, %c0_79, %c0_80] : memref<3x8x8xf32, #tpu.memory_space<vmem>>, vector<1x8x8xf32>
    %79 = vector.shape_cast %78 : vector<1x8x8xf32> to vector<8x8xf32>
    %cst_81 = arith.constant dense<0.000000e+00> : vector<8x256xf32>
    %80 = tpu.matmul %79, %77, %cst_81 {dimension_numbers = #tpu.dot_dimension_numbers<[1], [0], [0], [1], [0, 0, 1, 1], [], []>} : vector<8x8xf32>, vector<8x256xf32>, vector<8x256xf32> -> vector<8x256xf32>
    %c1_82 = arith.constant 1 : index
    %c0_83 = arith.constant 0 : index
    %c0_84 = arith.constant 0 : index
    %81 = vector.load %arg12[%c1_82, %c0_83, %c0_84] : memref<3x128x256xbf16, #tpu.memory_space<vmem>>, vector<1x128x256xbf16>
    %82 = vector.shape_cast %81 : vector<1x128x256xbf16> to vector<128x256xbf16>
    %cst_85 = arith.constant dense<0.000000e+00> : vector<8x256xf32>
    %83 = tpu.matmul %74, %82, %cst_85 {dimension_numbers = #tpu.dot_dimension_numbers<[1], [0], [0], [1], [0, 0, 1, 1], [], []>} : vector<8x128xbf16>, vector<128x256xbf16>, vector<8x256xf32> -> vector<8x256xf32>
    %c1_86 = arith.constant 1 : index
    %c0_87 = arith.constant 0 : index
    %c0_88 = arith.constant 0 : index
    %84 = vector.load %arg13[%c1_86, %c0_87, %c0_88] : memref<3x8x8xf32, #tpu.memory_space<vmem>>, vector<1x8x8xf32>
    %85 = vector.shape_cast %84 : vector<1x8x8xf32> to vector<8x8xf32>
    %cst_89 = arith.constant dense<0.000000e+00> : vector<8x256xf32>
    %86 = tpu.matmul %85, %83, %cst_89 {dimension_numbers = #tpu.dot_dimension_numbers<[1], [0], [0], [1], [0, 0, 1, 1], [], []>} : vector<8x8xf32>, vector<8x256xf32>, vector<8x256xf32> -> vector<8x256xf32>
    %87 = arith.addf %80, %86 : vector<8x256xf32>
    %c2_90 = arith.constant 2 : index
    %c0_91 = arith.constant 0 : index
    %c0_92 = arith.constant 0 : index
    %88 = vector.load %arg12[%c2_90, %c0_91, %c0_92] : memref<3x128x256xbf16, #tpu.memory_space<vmem>>, vector<1x128x256xbf16>
    %89 = vector.shape_cast %88 : vector<1x128x256xbf16> to vector<128x256xbf16>
    %cst_93 = arith.constant dense<0.000000e+00> : vector<8x256xf32>
    %90 = tpu.matmul %74, %89, %cst_93 {dimension_numbers = #tpu.dot_dimension_numbers<[1], [0], [0], [1], [0, 0, 1, 1], [], []>} : vector<8x128xbf16>, vector<128x256xbf16>, vector<8x256xf32> -> vector<8x256xf32>
    %c2_94 = arith.constant 2 : index
    %c0_95 = arith.constant 0 : index
    %c0_96 = arith.constant 0 : index
    %91 = vector.load %arg13[%c2_94, %c0_95, %c0_96] : memref<3x8x8xf32, #tpu.memory_space<vmem>>, vector<1x8x8xf32>
    %92 = vector.shape_cast %91 : vector<1x8x8xf32> to vector<8x8xf32>
    %cst_97 = arith.constant dense<0.000000e+00> : vector<8x256xf32>
    %93 = tpu.matmul %92, %90, %cst_97 {dimension_numbers = #tpu.dot_dimension_numbers<[1], [0], [0], [1], [0, 0, 1, 1], [], []>} : vector<8x8xf32>, vector<8x256xf32>, vector<8x256xf32> -> vector<8x256xf32>
    %94 = arith.addf %87, %93 : vector<8x256xf32>
    %c0_98 = arith.constant 0 : index
    %c0_99 = arith.constant 0 : index
    %95 = vector.load %arg14[%c0_98, %c0_99] : memref<1x256xf32, #tpu.memory_space<vmem>>, vector<1x256xf32>
    %96 = vector.broadcast %95 : vector<1x256xf32> to vector<8x256xf32>
    %97 = arith.addf %94, %96 : vector<8x256xf32>
    %cst_100 = arith.constant 0.000000e+00 : f32
    %98 = vector.broadcast %cst_100 : f32 to vector<8x256xf32>
    %99 = arith.maximumf %97, %98 : vector<8x256xf32>
    %100 = arith.truncf %99 : vector<8x256xf32> to vector<8x256xbf16>
    %c0_101 = arith.constant 0 : index
    %c0_102 = arith.constant 0 : index
    %c0_103 = arith.constant 0 : index
    %101 = vector.load %arg15[%c0_101, %c0_102, %c0_103] : memref<3x256x256xbf16, #tpu.memory_space<vmem>>, vector<1x256x256xbf16>
    %102 = vector.shape_cast %101 : vector<1x256x256xbf16> to vector<256x256xbf16>
    %cst_104 = arith.constant dense<0.000000e+00> : vector<8x256xf32>
    %103 = tpu.matmul %100, %102, %cst_104 {dimension_numbers = #tpu.dot_dimension_numbers<[1], [0], [0], [1], [0, 0, 1, 1], [], []>} : vector<8x256xbf16>, vector<256x256xbf16>, vector<8x256xf32> -> vector<8x256xf32>
    %c0_105 = arith.constant 0 : index
    %c0_106 = arith.constant 0 : index
    %c0_107 = arith.constant 0 : index
    %104 = vector.load %arg16[%c0_105, %c0_106, %c0_107] : memref<3x8x8xf32, #tpu.memory_space<vmem>>, vector<1x8x8xf32>
    %105 = vector.shape_cast %104 : vector<1x8x8xf32> to vector<8x8xf32>
    %cst_108 = arith.constant dense<0.000000e+00> : vector<8x256xf32>
    %106 = tpu.matmul %105, %103, %cst_108 {dimension_numbers = #tpu.dot_dimension_numbers<[1], [0], [0], [1], [0, 0, 1, 1], [], []>} : vector<8x8xf32>, vector<8x256xf32>, vector<8x256xf32> -> vector<8x256xf32>
    %c1_109 = arith.constant 1 : index
    %c0_110 = arith.constant 0 : index
    %c0_111 = arith.constant 0 : index
    %107 = vector.load %arg15[%c1_109, %c0_110, %c0_111] : memref<3x256x256xbf16, #tpu.memory_space<vmem>>, vector<1x256x256xbf16>
    %108 = vector.shape_cast %107 : vector<1x256x256xbf16> to vector<256x256xbf16>
    %cst_112 = arith.constant dense<0.000000e+00> : vector<8x256xf32>
    %109 = tpu.matmul %100, %108, %cst_112 {dimension_numbers = #tpu.dot_dimension_numbers<[1], [0], [0], [1], [0, 0, 1, 1], [], []>} : vector<8x256xbf16>, vector<256x256xbf16>, vector<8x256xf32> -> vector<8x256xf32>
    %c1_113 = arith.constant 1 : index
    %c0_114 = arith.constant 0 : index
    %c0_115 = arith.constant 0 : index
    %110 = vector.load %arg16[%c1_113, %c0_114, %c0_115] : memref<3x8x8xf32, #tpu.memory_space<vmem>>, vector<1x8x8xf32>
    %111 = vector.shape_cast %110 : vector<1x8x8xf32> to vector<8x8xf32>
    %cst_116 = arith.constant dense<0.000000e+00> : vector<8x256xf32>
    %112 = tpu.matmul %111, %109, %cst_116 {dimension_numbers = #tpu.dot_dimension_numbers<[1], [0], [0], [1], [0, 0, 1, 1], [], []>} : vector<8x8xf32>, vector<8x256xf32>, vector<8x256xf32> -> vector<8x256xf32>
    %113 = arith.addf %106, %112 : vector<8x256xf32>
    %c2_117 = arith.constant 2 : index
    %c0_118 = arith.constant 0 : index
    %c0_119 = arith.constant 0 : index
    %114 = vector.load %arg15[%c2_117, %c0_118, %c0_119] : memref<3x256x256xbf16, #tpu.memory_space<vmem>>, vector<1x256x256xbf16>
    %115 = vector.shape_cast %114 : vector<1x256x256xbf16> to vector<256x256xbf16>
    %cst_120 = arith.constant dense<0.000000e+00> : vector<8x256xf32>
    %116 = tpu.matmul %100, %115, %cst_120 {dimension_numbers = #tpu.dot_dimension_numbers<[1], [0], [0], [1], [0, 0, 1, 1], [], []>} : vector<8x256xbf16>, vector<256x256xbf16>, vector<8x256xf32> -> vector<8x256xf32>
    %c2_121 = arith.constant 2 : index
    %c0_122 = arith.constant 0 : index
    %c0_123 = arith.constant 0 : index
    %117 = vector.load %arg16[%c2_121, %c0_122, %c0_123] : memref<3x8x8xf32, #tpu.memory_space<vmem>>, vector<1x8x8xf32>
    %118 = vector.shape_cast %117 : vector<1x8x8xf32> to vector<8x8xf32>
    %cst_124 = arith.constant dense<0.000000e+00> : vector<8x256xf32>
    %119 = tpu.matmul %118, %116, %cst_124 {dimension_numbers = #tpu.dot_dimension_numbers<[1], [0], [0], [1], [0, 0, 1, 1], [], []>} : vector<8x8xf32>, vector<8x256xf32>, vector<8x256xf32> -> vector<8x256xf32>
    %120 = arith.addf %113, %119 : vector<8x256xf32>
    %c0_125 = arith.constant 0 : index
    %c0_126 = arith.constant 0 : index
    %121 = vector.load %arg17[%c0_125, %c0_126] : memref<1x256xf32, #tpu.memory_space<vmem>>, vector<1x256xf32>
    %122 = vector.broadcast %121 : vector<1x256xf32> to vector<8x256xf32>
    %123 = arith.addf %120, %122 : vector<8x256xf32>
    %cst_127 = arith.constant 0.000000e+00 : f32
    %124 = vector.broadcast %cst_127 : f32 to vector<8x256xf32>
    %125 = arith.maximumf %123, %124 : vector<8x256xf32>
    %c0_128 = arith.constant 0 : index
    %c0_129 = arith.constant 0 : index
    %c0_130 = arith.constant 0 : index
    %126 = vector.load %arg18[%c0_128, %c0_129, %c0_130] : memref<2x4x8xf32, #tpu.memory_space<vmem>>, vector<1x4x8xf32>
    %127 = vector.shape_cast %126 : vector<1x4x8xf32> to vector<4x8xf32>
    %cst_131 = arith.constant dense<0.000000e+00> : vector<4x256xf32>
    %128 = tpu.matmul %127, %125, %cst_131 {dimension_numbers = #tpu.dot_dimension_numbers<[1], [0], [0], [1], [0, 0, 1, 1], [], []>} : vector<4x8xf32>, vector<8x256xf32>, vector<4x256xf32> -> vector<4x256xf32>
    %c1_132 = arith.constant 1 : index
    %c0_133 = arith.constant 0 : index
    %c0_134 = arith.constant 0 : index
    %129 = vector.load %arg18[%c1_132, %c0_133, %c0_134] : memref<2x4x8xf32, #tpu.memory_space<vmem>>, vector<1x4x8xf32>
    %130 = vector.shape_cast %129 : vector<1x4x8xf32> to vector<4x8xf32>
    %cst_135 = arith.constant dense<0.000000e+00> : vector<4x256xf32>
    %131 = tpu.matmul %130, %125, %cst_135 {dimension_numbers = #tpu.dot_dimension_numbers<[1], [0], [0], [1], [0, 0, 1, 1], [], []>} : vector<4x8xf32>, vector<8x256xf32>, vector<4x256xf32> -> vector<4x256xf32>
    %132 = arith.maximumf %128, %131 : vector<4x256xf32>
    %c0_136 = arith.constant 0 : index
    %c0_137 = arith.constant 0 : index
    %c0_138 = arith.constant 0 : index
    %133 = vector.load %arg19[%c0_136, %c0_137, %c0_138] : memref<2x256x128xf32, #tpu.memory_space<vmem>>, vector<1x256x128xf32>
    %134 = vector.shape_cast %133 : vector<1x256x128xf32> to vector<256x128xf32>
    %cst_139 = arith.constant dense<0.000000e+00> : vector<4x128xf32>
    %135 = tpu.matmul %132, %134, %cst_139 {dimension_numbers = #tpu.dot_dimension_numbers<[1], [0], [0], [1], [0, 0, 1, 1], [], []>} : vector<4x256xf32>, vector<256x128xf32>, vector<4x128xf32> -> vector<4x128xf32>
    %c1_140 = arith.constant 1 : index
    %c0_141 = arith.constant 0 : index
    %c0_142 = arith.constant 0 : index
    %136 = vector.load %arg19[%c1_140, %c0_141, %c0_142] : memref<2x256x128xf32, #tpu.memory_space<vmem>>, vector<1x256x128xf32>
    %137 = vector.shape_cast %136 : vector<1x256x128xf32> to vector<256x128xf32>
    %cst_143 = arith.constant dense<0.000000e+00> : vector<4x128xf32>
    %138 = tpu.matmul %132, %137, %cst_143 {dimension_numbers = #tpu.dot_dimension_numbers<[1], [0], [0], [1], [0, 0, 1, 1], [], []>} : vector<4x256xf32>, vector<256x128xf32>, vector<4x128xf32> -> vector<4x128xf32>
    %139 = arith.maximumf %135, %138 : vector<4x128xf32>
    %140 = arith.truncf %139 : vector<4x128xf32> to vector<4x128xbf16>
    %c0_144 = arith.constant 0 : index
    %c0_145 = arith.constant 0 : index
    %c0_146 = arith.constant 0 : index
    %141 = vector.load %arg20[%c0_144, %c0_145, %c0_146] : memref<3x128x256xbf16, #tpu.memory_space<vmem>>, vector<1x128x256xbf16>
    %142 = vector.shape_cast %141 : vector<1x128x256xbf16> to vector<128x256xbf16>
    %cst_147 = arith.constant dense<0.000000e+00> : vector<4x256xf32>
    %143 = tpu.matmul %140, %142, %cst_147 {dimension_numbers = #tpu.dot_dimension_numbers<[1], [0], [0], [1], [0, 0, 1, 1], [], []>} : vector<4x128xbf16>, vector<128x256xbf16>, vector<4x256xf32> -> vector<4x256xf32>
    %c0_148 = arith.constant 0 : index
    %c0_149 = arith.constant 0 : index
    %c0_150 = arith.constant 0 : index
    %144 = vector.load %arg21[%c0_148, %c0_149, %c0_150] : memref<3x4x4xf32, #tpu.memory_space<vmem>>, vector<1x4x4xf32>
    %145 = vector.shape_cast %144 : vector<1x4x4xf32> to vector<4x4xf32>
    %cst_151 = arith.constant dense<0.000000e+00> : vector<4x256xf32>
    %146 = tpu.matmul %145, %143, %cst_151 {dimension_numbers = #tpu.dot_dimension_numbers<[1], [0], [0], [1], [0, 0, 1, 1], [], []>} : vector<4x4xf32>, vector<4x256xf32>, vector<4x256xf32> -> vector<4x256xf32>
    %c1_152 = arith.constant 1 : index
    %c0_153 = arith.constant 0 : index
    %c0_154 = arith.constant 0 : index
    %147 = vector.load %arg20[%c1_152, %c0_153, %c0_154] : memref<3x128x256xbf16, #tpu.memory_space<vmem>>, vector<1x128x256xbf16>
    %148 = vector.shape_cast %147 : vector<1x128x256xbf16> to vector<128x256xbf16>
    %cst_155 = arith.constant dense<0.000000e+00> : vector<4x256xf32>
    %149 = tpu.matmul %140, %148, %cst_155 {dimension_numbers = #tpu.dot_dimension_numbers<[1], [0], [0], [1], [0, 0, 1, 1], [], []>} : vector<4x128xbf16>, vector<128x256xbf16>, vector<4x256xf32> -> vector<4x256xf32>
    %c1_156 = arith.constant 1 : index
    %c0_157 = arith.constant 0 : index
    %c0_158 = arith.constant 0 : index
    %150 = vector.load %arg21[%c1_156, %c0_157, %c0_158] : memref<3x4x4xf32, #tpu.memory_space<vmem>>, vector<1x4x4xf32>
    %151 = vector.shape_cast %150 : vector<1x4x4xf32> to vector<4x4xf32>
    %cst_159 = arith.constant dense<0.000000e+00> : vector<4x256xf32>
    %152 = tpu.matmul %151, %149, %cst_159 {dimension_numbers = #tpu.dot_dimension_numbers<[1], [0], [0], [1], [0, 0, 1, 1], [], []>} : vector<4x4xf32>, vector<4x256xf32>, vector<4x256xf32> -> vector<4x256xf32>
    %153 = arith.addf %146, %152 : vector<4x256xf32>
    %c2_160 = arith.constant 2 : index
    %c0_161 = arith.constant 0 : index
    %c0_162 = arith.constant 0 : index
    %154 = vector.load %arg20[%c2_160, %c0_161, %c0_162] : memref<3x128x256xbf16, #tpu.memory_space<vmem>>, vector<1x128x256xbf16>
    %155 = vector.shape_cast %154 : vector<1x128x256xbf16> to vector<128x256xbf16>
    %cst_163 = arith.constant dense<0.000000e+00> : vector<4x256xf32>
    %156 = tpu.matmul %140, %155, %cst_163 {dimension_numbers = #tpu.dot_dimension_numbers<[1], [0], [0], [1], [0, 0, 1, 1], [], []>} : vector<4x128xbf16>, vector<128x256xbf16>, vector<4x256xf32> -> vector<4x256xf32>
    %c2_164 = arith.constant 2 : index
    %c0_165 = arith.constant 0 : index
    %c0_166 = arith.constant 0 : index
    %157 = vector.load %arg21[%c2_164, %c0_165, %c0_166] : memref<3x4x4xf32, #tpu.memory_space<vmem>>, vector<1x4x4xf32>
    %158 = vector.shape_cast %157 : vector<1x4x4xf32> to vector<4x4xf32>
    %cst_167 = arith.constant dense<0.000000e+00> : vector<4x256xf32>
    %159 = tpu.matmul %158, %156, %cst_167 {dimension_numbers = #tpu.dot_dimension_numbers<[1], [0], [0], [1], [0, 0, 1, 1], [], []>} : vector<4x4xf32>, vector<4x256xf32>, vector<4x256xf32> -> vector<4x256xf32>
    %160 = arith.addf %153, %159 : vector<4x256xf32>
    %c0_168 = arith.constant 0 : index
    %c0_169 = arith.constant 0 : index
    %161 = vector.load %arg22[%c0_168, %c0_169] : memref<1x256xf32, #tpu.memory_space<vmem>>, vector<1x256xf32>
    %162 = vector.broadcast %161 : vector<1x256xf32> to vector<4x256xf32>
    %163 = arith.addf %160, %162 : vector<4x256xf32>
    %cst_170 = arith.constant 0.000000e+00 : f32
    %164 = vector.broadcast %cst_170 : f32 to vector<4x256xf32>
    %165 = arith.maximumf %163, %164 : vector<4x256xf32>
    %166 = arith.truncf %165 : vector<4x256xf32> to vector<4x256xbf16>
    %c0_171 = arith.constant 0 : index
    %c0_172 = arith.constant 0 : index
    %c0_173 = arith.constant 0 : index
    %167 = vector.load %arg23[%c0_171, %c0_172, %c0_173] : memref<3x256x256xbf16, #tpu.memory_space<vmem>>, vector<1x256x256xbf16>
    %168 = vector.shape_cast %167 : vector<1x256x256xbf16> to vector<256x256xbf16>
    %cst_174 = arith.constant dense<0.000000e+00> : vector<4x256xf32>
    %169 = tpu.matmul %166, %168, %cst_174 {dimension_numbers = #tpu.dot_dimension_numbers<[1], [0], [0], [1], [0, 0, 1, 1], [], []>} : vector<4x256xbf16>, vector<256x256xbf16>, vector<4x256xf32> -> vector<4x256xf32>
    %c0_175 = arith.constant 0 : index
    %c0_176 = arith.constant 0 : index
    %c0_177 = arith.constant 0 : index
    %170 = vector.load %arg24[%c0_175, %c0_176, %c0_177] : memref<3x4x4xf32, #tpu.memory_space<vmem>>, vector<1x4x4xf32>
    %171 = vector.shape_cast %170 : vector<1x4x4xf32> to vector<4x4xf32>
    %cst_178 = arith.constant dense<0.000000e+00> : vector<4x256xf32>
    %172 = tpu.matmul %171, %169, %cst_178 {dimension_numbers = #tpu.dot_dimension_numbers<[1], [0], [0], [1], [0, 0, 1, 1], [], []>} : vector<4x4xf32>, vector<4x256xf32>, vector<4x256xf32> -> vector<4x256xf32>
    %c1_179 = arith.constant 1 : index
    %c0_180 = arith.constant 0 : index
    %c0_181 = arith.constant 0 : index
    %173 = vector.load %arg23[%c1_179, %c0_180, %c0_181] : memref<3x256x256xbf16, #tpu.memory_space<vmem>>, vector<1x256x256xbf16>
    %174 = vector.shape_cast %173 : vector<1x256x256xbf16> to vector<256x256xbf16>
    %cst_182 = arith.constant dense<0.000000e+00> : vector<4x256xf32>
    %175 = tpu.matmul %166, %174, %cst_182 {dimension_numbers = #tpu.dot_dimension_numbers<[1], [0], [0], [1], [0, 0, 1, 1], [], []>} : vector<4x256xbf16>, vector<256x256xbf16>, vector<4x256xf32> -> vector<4x256xf32>
    %c1_183 = arith.constant 1 : index
    %c0_184 = arith.constant 0 : index
    %c0_185 = arith.constant 0 : index
    %176 = vector.load %arg24[%c1_183, %c0_184, %c0_185] : memref<3x4x4xf32, #tpu.memory_space<vmem>>, vector<1x4x4xf32>
    %177 = vector.shape_cast %176 : vector<1x4x4xf32> to vector<4x4xf32>
    %cst_186 = arith.constant dense<0.000000e+00> : vector<4x256xf32>
    %178 = tpu.matmul %177, %175, %cst_186 {dimension_numbers = #tpu.dot_dimension_numbers<[1], [0], [0], [1], [0, 0, 1, 1], [], []>} : vector<4x4xf32>, vector<4x256xf32>, vector<4x256xf32> -> vector<4x256xf32>
    %179 = arith.addf %172, %178 : vector<4x256xf32>
    %c2_187 = arith.constant 2 : index
    %c0_188 = arith.constant 0 : index
    %c0_189 = arith.constant 0 : index
    %180 = vector.load %arg23[%c2_187, %c0_188, %c0_189] : memref<3x256x256xbf16, #tpu.memory_space<vmem>>, vector<1x256x256xbf16>
    %181 = vector.shape_cast %180 : vector<1x256x256xbf16> to vector<256x256xbf16>
    %cst_190 = arith.constant dense<0.000000e+00> : vector<4x256xf32>
    %182 = tpu.matmul %166, %181, %cst_190 {dimension_numbers = #tpu.dot_dimension_numbers<[1], [0], [0], [1], [0, 0, 1, 1], [], []>} : vector<4x256xbf16>, vector<256x256xbf16>, vector<4x256xf32> -> vector<4x256xf32>
    %c2_191 = arith.constant 2 : index
    %c0_192 = arith.constant 0 : index
    %c0_193 = arith.constant 0 : index
    %183 = vector.load %arg24[%c2_191, %c0_192, %c0_193] : memref<3x4x4xf32, #tpu.memory_space<vmem>>, vector<1x4x4xf32>
    %184 = vector.shape_cast %183 : vector<1x4x4xf32> to vector<4x4xf32>
    %cst_194 = arith.constant dense<0.000000e+00> : vector<4x256xf32>
    %185 = tpu.matmul %184, %182, %cst_194 {dimension_numbers = #tpu.dot_dimension_numbers<[1], [0], [0], [1], [0, 0, 1, 1], [], []>} : vector<4x4xf32>, vector<4x256xf32>, vector<4x256xf32> -> vector<4x256xf32>
    %186 = arith.addf %179, %185 : vector<4x256xf32>
    %c0_195 = arith.constant 0 : index
    %c0_196 = arith.constant 0 : index
    %187 = vector.load %arg25[%c0_195, %c0_196] : memref<1x256xf32, #tpu.memory_space<vmem>>, vector<1x256xf32>
    %188 = vector.broadcast %187 : vector<1x256xf32> to vector<4x256xf32>
    %189 = arith.addf %186, %188 : vector<4x256xf32>
    %cst_197 = arith.constant 0.000000e+00 : f32
    %190 = vector.broadcast %cst_197 : f32 to vector<4x256xf32>
    %191 = arith.maximumf %189, %190 : vector<4x256xf32>
    %192 = arith.truncf %191 : vector<4x256xf32> to vector<4x256xbf16>
    %c0_198 = arith.constant 0 : index
    %c0_199 = arith.constant 0 : index
    %c0_200 = arith.constant 0 : index
    %193 = vector.load %arg26[%c0_198, %c0_199, %c0_200] : memref<3x256x256xbf16, #tpu.memory_space<vmem>>, vector<1x256x256xbf16>
    %194 = vector.shape_cast %193 : vector<1x256x256xbf16> to vector<256x256xbf16>
    %cst_201 = arith.constant dense<0.000000e+00> : vector<4x256xf32>
    %195 = tpu.matmul %192, %194, %cst_201 {dimension_numbers = #tpu.dot_dimension_numbers<[1], [0], [0], [1], [0, 0, 1, 1], [], []>} : vector<4x256xbf16>, vector<256x256xbf16>, vector<4x256xf32> -> vector<4x256xf32>
    %c0_202 = arith.constant 0 : index
    %c0_203 = arith.constant 0 : index
    %c0_204 = arith.constant 0 : index
    %196 = vector.load %arg27[%c0_202, %c0_203, %c0_204] : memref<3x4x4xf32, #tpu.memory_space<vmem>>, vector<1x4x4xf32>
    %197 = vector.shape_cast %196 : vector<1x4x4xf32> to vector<4x4xf32>
    %cst_205 = arith.constant dense<0.000000e+00> : vector<4x256xf32>
    %198 = tpu.matmul %197, %195, %cst_205 {dimension_numbers = #tpu.dot_dimension_numbers<[1], [0], [0], [1], [0, 0, 1, 1], [], []>} : vector<4x4xf32>, vector<4x256xf32>, vector<4x256xf32> -> vector<4x256xf32>
    %c1_206 = arith.constant 1 : index
    %c0_207 = arith.constant 0 : index
    %c0_208 = arith.constant 0 : index
    %199 = vector.load %arg26[%c1_206, %c0_207, %c0_208] : memref<3x256x256xbf16, #tpu.memory_space<vmem>>, vector<1x256x256xbf16>
    %200 = vector.shape_cast %199 : vector<1x256x256xbf16> to vector<256x256xbf16>
    %cst_209 = arith.constant dense<0.000000e+00> : vector<4x256xf32>
    %201 = tpu.matmul %192, %200, %cst_209 {dimension_numbers = #tpu.dot_dimension_numbers<[1], [0], [0], [1], [0, 0, 1, 1], [], []>} : vector<4x256xbf16>, vector<256x256xbf16>, vector<4x256xf32> -> vector<4x256xf32>
    %c1_210 = arith.constant 1 : index
    %c0_211 = arith.constant 0 : index
    %c0_212 = arith.constant 0 : index
    %202 = vector.load %arg27[%c1_210, %c0_211, %c0_212] : memref<3x4x4xf32, #tpu.memory_space<vmem>>, vector<1x4x4xf32>
    %203 = vector.shape_cast %202 : vector<1x4x4xf32> to vector<4x4xf32>
    %cst_213 = arith.constant dense<0.000000e+00> : vector<4x256xf32>
    %204 = tpu.matmul %203, %201, %cst_213 {dimension_numbers = #tpu.dot_dimension_numbers<[1], [0], [0], [1], [0, 0, 1, 1], [], []>} : vector<4x4xf32>, vector<4x256xf32>, vector<4x256xf32> -> vector<4x256xf32>
    %205 = arith.addf %198, %204 : vector<4x256xf32>
    %c2_214 = arith.constant 2 : index
    %c0_215 = arith.constant 0 : index
    %c0_216 = arith.constant 0 : index
    %206 = vector.load %arg26[%c2_214, %c0_215, %c0_216] : memref<3x256x256xbf16, #tpu.memory_space<vmem>>, vector<1x256x256xbf16>
    %207 = vector.shape_cast %206 : vector<1x256x256xbf16> to vector<256x256xbf16>
    %cst_217 = arith.constant dense<0.000000e+00> : vector<4x256xf32>
    %208 = tpu.matmul %192, %207, %cst_217 {dimension_numbers = #tpu.dot_dimension_numbers<[1], [0], [0], [1], [0, 0, 1, 1], [], []>} : vector<4x256xbf16>, vector<256x256xbf16>, vector<4x256xf32> -> vector<4x256xf32>
    %c2_218 = arith.constant 2 : index
    %c0_219 = arith.constant 0 : index
    %c0_220 = arith.constant 0 : index
    %209 = vector.load %arg27[%c2_218, %c0_219, %c0_220] : memref<3x4x4xf32, #tpu.memory_space<vmem>>, vector<1x4x4xf32>
    %210 = vector.shape_cast %209 : vector<1x4x4xf32> to vector<4x4xf32>
    %cst_221 = arith.constant dense<0.000000e+00> : vector<4x256xf32>
    %211 = tpu.matmul %210, %208, %cst_221 {dimension_numbers = #tpu.dot_dimension_numbers<[1], [0], [0], [1], [0, 0, 1, 1], [], []>} : vector<4x4xf32>, vector<4x256xf32>, vector<4x256xf32> -> vector<4x256xf32>
    %212 = arith.addf %205, %211 : vector<4x256xf32>
    %c0_222 = arith.constant 0 : index
    %c0_223 = arith.constant 0 : index
    %213 = vector.load %arg28[%c0_222, %c0_223] : memref<1x256xf32, #tpu.memory_space<vmem>>, vector<1x256xf32>
    %214 = vector.broadcast %213 : vector<1x256xf32> to vector<4x256xf32>
    %215 = arith.addf %212, %214 : vector<4x256xf32>
    %cst_224 = arith.constant 0.000000e+00 : f32
    %216 = vector.broadcast %cst_224 : f32 to vector<4x256xf32>
    %217 = arith.maximumf %215, %216 : vector<4x256xf32>
    %218 = arith.truncf %217 : vector<4x256xf32> to vector<4x256xbf16>
    %c0_225 = arith.constant 0 : index
    %c0_226 = arith.constant 0 : index
    %c0_227 = arith.constant 0 : index
    %219 = vector.load %arg29[%c0_225, %c0_226, %c0_227] : memref<3x256x256xbf16, #tpu.memory_space<vmem>>, vector<1x256x256xbf16>
    %220 = vector.shape_cast %219 : vector<1x256x256xbf16> to vector<256x256xbf16>
    %cst_228 = arith.constant dense<0.000000e+00> : vector<4x256xf32>
    %221 = tpu.matmul %218, %220, %cst_228 {dimension_numbers = #tpu.dot_dimension_numbers<[1], [0], [0], [1], [0, 0, 1, 1], [], []>} : vector<4x256xbf16>, vector<256x256xbf16>, vector<4x256xf32> -> vector<4x256xf32>
    %c0_229 = arith.constant 0 : index
    %c0_230 = arith.constant 0 : index
    %c0_231 = arith.constant 0 : index
    %222 = vector.load %arg30[%c0_229, %c0_230, %c0_231] : memref<3x4x4xf32, #tpu.memory_space<vmem>>, vector<1x4x4xf32>
    %223 = vector.shape_cast %222 : vector<1x4x4xf32> to vector<4x4xf32>
    %cst_232 = arith.constant dense<0.000000e+00> : vector<4x256xf32>
    %224 = tpu.matmul %223, %221, %cst_232 {dimension_numbers = #tpu.dot_dimension_numbers<[1], [0], [0], [1], [0, 0, 1, 1], [], []>} : vector<4x4xf32>, vector<4x256xf32>, vector<4x256xf32> -> vector<4x256xf32>
    %c1_233 = arith.constant 1 : index
    %c0_234 = arith.constant 0 : index
    %c0_235 = arith.constant 0 : index
    %225 = vector.load %arg29[%c1_233, %c0_234, %c0_235] : memref<3x256x256xbf16, #tpu.memory_space<vmem>>, vector<1x256x256xbf16>
    %226 = vector.shape_cast %225 : vector<1x256x256xbf16> to vector<256x256xbf16>
    %cst_236 = arith.constant dense<0.000000e+00> : vector<4x256xf32>
    %227 = tpu.matmul %218, %226, %cst_236 {dimension_numbers = #tpu.dot_dimension_numbers<[1], [0], [0], [1], [0, 0, 1, 1], [], []>} : vector<4x256xbf16>, vector<256x256xbf16>, vector<4x256xf32> -> vector<4x256xf32>
    %c1_237 = arith.constant 1 : index
    %c0_238 = arith.constant 0 : index
    %c0_239 = arith.constant 0 : index
    %228 = vector.load %arg30[%c1_237, %c0_238, %c0_239] : memref<3x4x4xf32, #tpu.memory_space<vmem>>, vector<1x4x4xf32>
    %229 = vector.shape_cast %228 : vector<1x4x4xf32> to vector<4x4xf32>
    %cst_240 = arith.constant dense<0.000000e+00> : vector<4x256xf32>
    %230 = tpu.matmul %229, %227, %cst_240 {dimension_numbers = #tpu.dot_dimension_numbers<[1], [0], [0], [1], [0, 0, 1, 1], [], []>} : vector<4x4xf32>, vector<4x256xf32>, vector<4x256xf32> -> vector<4x256xf32>
    %231 = arith.addf %224, %230 : vector<4x256xf32>
    %c2_241 = arith.constant 2 : index
    %c0_242 = arith.constant 0 : index
    %c0_243 = arith.constant 0 : index
    %232 = vector.load %arg29[%c2_241, %c0_242, %c0_243] : memref<3x256x256xbf16, #tpu.memory_space<vmem>>, vector<1x256x256xbf16>
    %233 = vector.shape_cast %232 : vector<1x256x256xbf16> to vector<256x256xbf16>
    %cst_244 = arith.constant dense<0.000000e+00> : vector<4x256xf32>
    %234 = tpu.matmul %218, %233, %cst_244 {dimension_numbers = #tpu.dot_dimension_numbers<[1], [0], [0], [1], [0, 0, 1, 1], [], []>} : vector<4x256xbf16>, vector<256x256xbf16>, vector<4x256xf32> -> vector<4x256xf32>
    %c2_245 = arith.constant 2 : index
    %c0_246 = arith.constant 0 : index
    %c0_247 = arith.constant 0 : index
    %235 = vector.load %arg30[%c2_245, %c0_246, %c0_247] : memref<3x4x4xf32, #tpu.memory_space<vmem>>, vector<1x4x4xf32>
    %236 = vector.shape_cast %235 : vector<1x4x4xf32> to vector<4x4xf32>
    %cst_248 = arith.constant dense<0.000000e+00> : vector<4x256xf32>
    %237 = tpu.matmul %236, %234, %cst_248 {dimension_numbers = #tpu.dot_dimension_numbers<[1], [0], [0], [1], [0, 0, 1, 1], [], []>} : vector<4x4xf32>, vector<4x256xf32>, vector<4x256xf32> -> vector<4x256xf32>
    %238 = arith.addf %231, %237 : vector<4x256xf32>
    %c0_249 = arith.constant 0 : index
    %c0_250 = arith.constant 0 : index
    %239 = vector.load %arg31[%c0_249, %c0_250] : memref<1x256xf32, #tpu.memory_space<vmem>>, vector<1x256xf32>
    %240 = vector.broadcast %239 : vector<1x256xf32> to vector<4x256xf32>
    %241 = arith.addf %238, %240 : vector<4x256xf32>
    %cst_251 = arith.constant 0.000000e+00 : f32
    %242 = vector.broadcast %cst_251 : f32 to vector<4x256xf32>
    %243 = arith.maximumf %241, %242 : vector<4x256xf32>
    %c0_252 = arith.constant 0 : index
    %c0_253 = arith.constant 0 : index
    %c0_254 = arith.constant 0 : index
    %244 = vector.load %arg32[%c0_252, %c0_253, %c0_254] : memref<2x2x4xf32, #tpu.memory_space<vmem>>, vector<1x2x4xf32>
    %245 = vector.shape_cast %244 : vector<1x2x4xf32> to vector<2x4xf32>
    %cst_255 = arith.constant dense<0.000000e+00> : vector<2x256xf32>
    %246 = tpu.matmul %245, %243, %cst_255 {dimension_numbers = #tpu.dot_dimension_numbers<[1], [0], [0], [1], [0, 0, 1, 1], [], []>} : vector<2x4xf32>, vector<4x256xf32>, vector<2x256xf32> -> vector<2x256xf32>
    %c1_256 = arith.constant 1 : index
    %c0_257 = arith.constant 0 : index
    %c0_258 = arith.constant 0 : index
    %247 = vector.load %arg32[%c1_256, %c0_257, %c0_258] : memref<2x2x4xf32, #tpu.memory_space<vmem>>, vector<1x2x4xf32>
    %248 = vector.shape_cast %247 : vector<1x2x4xf32> to vector<2x4xf32>
    %cst_259 = arith.constant dense<0.000000e+00> : vector<2x256xf32>
    %249 = tpu.matmul %248, %243, %cst_259 {dimension_numbers = #tpu.dot_dimension_numbers<[1], [0], [0], [1], [0, 0, 1, 1], [], []>} : vector<2x4xf32>, vector<4x256xf32>, vector<2x256xf32> -> vector<2x256xf32>
    %250 = arith.maximumf %246, %249 : vector<2x256xf32>
    %c0_260 = arith.constant 0 : index
    %c0_261 = arith.constant 0 : index
    %c0_262 = arith.constant 0 : index
    %251 = vector.load %arg33[%c0_260, %c0_261, %c0_262] : memref<2x256x128xf32, #tpu.memory_space<vmem>>, vector<1x256x128xf32>
    %252 = vector.shape_cast %251 : vector<1x256x128xf32> to vector<256x128xf32>
    %cst_263 = arith.constant dense<0.000000e+00> : vector<2x128xf32>
    %253 = tpu.matmul %250, %252, %cst_263 {dimension_numbers = #tpu.dot_dimension_numbers<[1], [0], [0], [1], [0, 0, 1, 1], [], []>} : vector<2x256xf32>, vector<256x128xf32>, vector<2x128xf32> -> vector<2x128xf32>
    %c1_264 = arith.constant 1 : index
    %c0_265 = arith.constant 0 : index
    %c0_266 = arith.constant 0 : index
    %254 = vector.load %arg33[%c1_264, %c0_265, %c0_266] : memref<2x256x128xf32, #tpu.memory_space<vmem>>, vector<1x256x128xf32>
    %255 = vector.shape_cast %254 : vector<1x256x128xf32> to vector<256x128xf32>
    %cst_267 = arith.constant dense<0.000000e+00> : vector<2x128xf32>
    %256 = tpu.matmul %250, %255, %cst_267 {dimension_numbers = #tpu.dot_dimension_numbers<[1], [0], [0], [1], [0, 0, 1, 1], [], []>} : vector<2x256xf32>, vector<256x128xf32>, vector<2x128xf32> -> vector<2x128xf32>
    %257 = arith.maximumf %253, %256 : vector<2x128xf32>
    %258 = arith.truncf %257 : vector<2x128xf32> to vector<2x128xbf16>
    %c0_268 = arith.constant 0 : index
    %c0_269 = arith.constant 0 : index
    %c0_270 = arith.constant 0 : index
    %259 = vector.load %arg34[%c0_268, %c0_269, %c0_270] : memref<3x128x256xbf16, #tpu.memory_space<vmem>>, vector<1x128x256xbf16>
    %260 = vector.shape_cast %259 : vector<1x128x256xbf16> to vector<128x256xbf16>
    %cst_271 = arith.constant dense<0.000000e+00> : vector<2x256xf32>
    %261 = tpu.matmul %258, %260, %cst_271 {dimension_numbers = #tpu.dot_dimension_numbers<[1], [0], [0], [1], [0, 0, 1, 1], [], []>} : vector<2x128xbf16>, vector<128x256xbf16>, vector<2x256xf32> -> vector<2x256xf32>
    %c0_272 = arith.constant 0 : index
    %c0_273 = arith.constant 0 : index
    %c0_274 = arith.constant 0 : index
    %262 = vector.load %arg35[%c0_272, %c0_273, %c0_274] : memref<3x2x2xf32, #tpu.memory_space<vmem>>, vector<1x2x2xf32>
    %263 = vector.shape_cast %262 : vector<1x2x2xf32> to vector<2x2xf32>
    %cst_275 = arith.constant dense<0.000000e+00> : vector<2x256xf32>
    %264 = tpu.matmul %263, %261, %cst_275 {dimension_numbers = #tpu.dot_dimension_numbers<[1], [0], [0], [1], [0, 0, 1, 1], [], []>} : vector<2x2xf32>, vector<2x256xf32>, vector<2x256xf32> -> vector<2x256xf32>
    %c1_276 = arith.constant 1 : index
    %c0_277 = arith.constant 0 : index
    %c0_278 = arith.constant 0 : index
    %265 = vector.load %arg34[%c1_276, %c0_277, %c0_278] : memref<3x128x256xbf16, #tpu.memory_space<vmem>>, vector<1x128x256xbf16>
    %266 = vector.shape_cast %265 : vector<1x128x256xbf16> to vector<128x256xbf16>
    %cst_279 = arith.constant dense<0.000000e+00> : vector<2x256xf32>
    %267 = tpu.matmul %258, %266, %cst_279 {dimension_numbers = #tpu.dot_dimension_numbers<[1], [0], [0], [1], [0, 0, 1, 1], [], []>} : vector<2x128xbf16>, vector<128x256xbf16>, vector<2x256xf32> -> vector<2x256xf32>
    %c1_280 = arith.constant 1 : index
    %c0_281 = arith.constant 0 : index
    %c0_282 = arith.constant 0 : index
    %268 = vector.load %arg35[%c1_280, %c0_281, %c0_282] : memref<3x2x2xf32, #tpu.memory_space<vmem>>, vector<1x2x2xf32>
    %269 = vector.shape_cast %268 : vector<1x2x2xf32> to vector<2x2xf32>
    %cst_283 = arith.constant dense<0.000000e+00> : vector<2x256xf32>
    %270 = tpu.matmul %269, %267, %cst_283 {dimension_numbers = #tpu.dot_dimension_numbers<[1], [0], [0], [1], [0, 0, 1, 1], [], []>} : vector<2x2xf32>, vector<2x256xf32>, vector<2x256xf32> -> vector<2x256xf32>
    %271 = arith.addf %264, %270 : vector<2x256xf32>
    %c2_284 = arith.constant 2 : index
    %c0_285 = arith.constant 0 : index
    %c0_286 = arith.constant 0 : index
    %272 = vector.load %arg34[%c2_284, %c0_285, %c0_286] : memref<3x128x256xbf16, #tpu.memory_space<vmem>>, vector<1x128x256xbf16>
    %273 = vector.shape_cast %272 : vector<1x128x256xbf16> to vector<128x256xbf16>
    %cst_287 = arith.constant dense<0.000000e+00> : vector<2x256xf32>
    %274 = tpu.matmul %258, %273, %cst_287 {dimension_numbers = #tpu.dot_dimension_numbers<[1], [0], [0], [1], [0, 0, 1, 1], [], []>} : vector<2x128xbf16>, vector<128x256xbf16>, vector<2x256xf32> -> vector<2x256xf32>
    %c2_288 = arith.constant 2 : index
    %c0_289 = arith.constant 0 : index
    %c0_290 = arith.constant 0 : index
    %275 = vector.load %arg35[%c2_288, %c0_289, %c0_290] : memref<3x2x2xf32, #tpu.memory_space<vmem>>, vector<1x2x2xf32>
    %276 = vector.shape_cast %275 : vector<1x2x2xf32> to vector<2x2xf32>
    %cst_291 = arith.constant dense<0.000000e+00> : vector<2x256xf32>
    %277 = tpu.matmul %276, %274, %cst_291 {dimension_numbers = #tpu.dot_dimension_numbers<[1], [0], [0], [1], [0, 0, 1, 1], [], []>} : vector<2x2xf32>, vector<2x256xf32>, vector<2x256xf32> -> vector<2x256xf32>
    %278 = arith.addf %271, %277 : vector<2x256xf32>
    %c0_292 = arith.constant 0 : index
    %c0_293 = arith.constant 0 : index
    %279 = vector.load %arg36[%c0_292, %c0_293] : memref<1x256xf32, #tpu.memory_space<vmem>>, vector<1x256xf32>
    %280 = vector.broadcast %279 : vector<1x256xf32> to vector<2x256xf32>
    %281 = arith.addf %278, %280 : vector<2x256xf32>
    %cst_294 = arith.constant 0.000000e+00 : f32
    %282 = vector.broadcast %cst_294 : f32 to vector<2x256xf32>
    %283 = arith.maximumf %281, %282 : vector<2x256xf32>
    %c0_295 = arith.constant 0 : index
    %c0_296 = arith.constant 0 : index
    %c0_297 = arith.constant 0 : index
    %284 = vector.load %arg37[%c0_295, %c0_296, %c0_297] : memref<1x2x256xf32, #tpu.memory_space<vmem>>, vector<1x2x256xf32>
    %285 = vector.shape_cast %284 : vector<1x2x256xf32> to vector<2x256xf32>
    %286 = vector.shape_cast %283 : vector<2x256xf32> to vector<1x2x256xf32>
    tpu.vector_store %arg37[%c0_295, %c0_296, %c0_297], %286 {strides = array<i32>} : memref<1x2x256xf32, #tpu.memory_space<vmem>>, vector<1x2x256xf32>,
    return
  }
  func.func @transform_0(%arg0: i32) -> (i32, i32, i32) {
    %c0_i32 = arith.constant 0 : i32
    %c0_i32_0 = arith.constant 0 : i32
    %c0_i32_1 = arith.constant 0 : i32
    return %arg0, %c0_i32, %c0_i32_0 : i32, i32, i32
  }
  func.func @transform_1(%arg0: i32) -> (i32, i32) {
    %c0_i32 = arith.constant 0 : i32
    %c0_i32_0 = arith.constant 0 : i32
    %c0_i32_1 = arith.constant 0 : i32
    return %c0_i32, %c0_i32_0 : i32, i32
  }
  func.func @transform_2(%arg0: i32) -> (i32, i32) {
    %c0_i32 = arith.constant 0 : i32
    %c0_i32_0 = arith.constant 0 : i32
    %c0_i32_1 = arith.constant 0 : i32
    return %c0_i32, %c0_i32_0 : i32, i32
  }
  func.func @transform_3(%arg0: i32) -> (i32, i32, i32) {
    %c0_i32 = arith.constant 0 : i32
    %c0_i32_0 = arith.constant 0 : i32
    %c0_i32_1 = arith.constant 0 : i32
    %c0_i32_2 = arith.constant 0 : i32
    return %c0_i32, %c0_i32_0, %c0_i32_1 : i32, i32, i32
  }
  func.func @transform_4(%arg0: i32) -> (i32, i32, i32) {
    %c0_i32 = arith.constant 0 : i32
    %c0_i32_0 = arith.constant 0 : i32
    %c0_i32_1 = arith.constant 0 : i32
    %c0_i32_2 = arith.constant 0 : i32
    return %c0_i32, %c0_i32_0, %c0_i32_1 : i32, i32, i32
  }
  func.func @transform_5(%arg0: i32) -> (i32, i32) {
    %c0_i32 = arith.constant 0 : i32
    %c0_i32_0 = arith.constant 0 : i32
    %c0_i32_1 = arith.constant 0 : i32
    return %c0_i32, %c0_i32_0 : i32, i32
  }
  func.func @transform_6(%arg0: i32) -> (i32, i32, i32) {
    %c0_i32 = arith.constant 0 : i32
    %c0_i32_0 = arith.constant 0 : i32
    %c0_i32_1 = arith.constant 0 : i32
    %c0_i32_2 = arith.constant 0 : i32
    return %c0_i32, %c0_i32_0, %c0_i32_1 : i32, i32, i32
  }
  func.func @transform_7(%arg0: i32) -> (i32, i32, i32) {
    %c0_i32 = arith.constant 0 : i32
    %c0_i32_0 = arith.constant 0 : i32
    %c0_i32_1 = arith.constant 0 : i32
    %c0_i32_2 = arith.constant 0 : i32
    return %c0_i32, %c0_i32_0, %c0_i32_1 : i32, i32, i32
  }
  func.func @transform_8(%arg0: i32) -> (i32, i32) {
    %c0_i32 = arith.constant 0 : i32
    %c0_i32_0 = arith.constant 0 : i32
    %c0_i32_1 = arith.constant 0 : i32
    return %c0_i32, %c0_i32_0 : i32, i32
  }
  func.func @transform_9(%arg0: i32) -> (i32, i32, i32) {
    %c0_i32 = arith.constant 0 : i32
    %c0_i32_0 = arith.constant 0 : i32
    %c0_i32_1 = arith.constant 0 : i32
    %c0_i32_2 = arith.constant 0 : i32
    return %c0_i32, %c0_i32_0, %c0_i32_1 : i32, i32, i32
  }
  func.func @transform_10(%arg0: i32) -> (i32, i32, i32) {
    %c0_i32 = arith.constant 0 : i32
    %c0_i32_0 = arith.constant 0 : i32
    %c0_i32_1 = arith.constant 0 : i32
    %c0_i32_2 = arith.constant 0 : i32
    return %c0_i32, %c0_i32_0, %c0_i32_1 : i32, i32, i32
  }
  func.func @transform_11(%arg0: i32) -> (i32, i32, i32) {
    %c0_i32 = arith.constant 0 : i32
    %c0_i32_0 = arith.constant 0 : i32
    %c0_i32_1 = arith.constant 0 : i32
    %c0_i32_2 = arith.constant 0 : i32
    return %c0_i32, %c0_i32_0, %c0_i32_1 : i32, i32, i32
  }
  func.func @transform_12(%arg0: i32) -> (i32, i32, i32) {
    %c0_i32 = arith.constant 0 : i32
    %c0_i32_0 = arith.constant 0 : i32
    %c0_i32_1 = arith.constant 0 : i32
    %c0_i32_2 = arith.constant 0 : i32
    return %c0_i32, %c0_i32_0, %c0_i32_1 : i32, i32, i32
  }
  func.func @transform_13(%arg0: i32) -> (i32, i32) {
    %c0_i32 = arith.constant 0 : i32
    %c0_i32_0 = arith.constant 0 : i32
    %c0_i32_1 = arith.constant 0 : i32
    return %c0_i32, %c0_i32_0 : i32, i32
  }
  func.func @transform_14(%arg0: i32) -> (i32, i32, i32) {
    %c0_i32 = arith.constant 0 : i32
    %c0_i32_0 = arith.constant 0 : i32
    %c0_i32_1 = arith.constant 0 : i32
    %c0_i32_2 = arith.constant 0 : i32
    return %c0_i32, %c0_i32_0, %c0_i32_1 : i32, i32, i32
  }
  func.func @transform_15(%arg0: i32) -> (i32, i32, i32) {
    %c0_i32 = arith.constant 0 : i32
    %c0_i32_0 = arith.constant 0 : i32
    %c0_i32_1 = arith.constant 0 : i32
    %c0_i32_2 = arith.constant 0 : i32
    return %c0_i32, %c0_i32_0, %c0_i32_1 : i32, i32, i32
  }
  func.func @transform_16(%arg0: i32) -> (i32, i32) {
    %c0_i32 = arith.constant 0 : i32
    %c0_i32_0 = arith.constant 0 : i32
    %c0_i32_1 = arith.constant 0 : i32
    return %c0_i32, %c0_i32_0 : i32, i32
  }
  func.func @transform_17(%arg0: i32) -> (i32, i32, i32) {
    %c0_i32 = arith.constant 0 : i32
    %c0_i32_0 = arith.constant 0 : i32
    %c0_i32_1 = arith.constant 0 : i32
    %c0_i32_2 = arith.constant 0 : i32
    return %c0_i32, %c0_i32_0, %c0_i32_1 : i32, i32, i32
  }
  func.func @transform_18(%arg0: i32) -> (i32, i32, i32) {
    %c0_i32 = arith.constant 0 : i32
    %c0_i32_0 = arith.constant 0 : i32
    %c0_i32_1 = arith.constant 0 : i32
    %c0_i32_2 = arith.constant 0 : i32
    return %c0_i32, %c0_i32_0, %c0_i32_1 : i32, i32, i32
  }
  func.func @transform_19(%arg0: i32) -> (i32, i32, i32) {
    %c0_i32 = arith.constant 0 : i32
    %c0_i32_0 = arith.constant 0 : i32
    %c0_i32_1 = arith.constant 0 : i32
    %c0_i32_2 = arith.constant 0 : i32
    return %c0_i32, %c0_i32_0, %c0_i32_1 : i32, i32, i32
  }
  func.func @transform_20(%arg0: i32) -> (i32, i32, i32) {
    %c0_i32 = arith.constant 0 : i32
    %c0_i32_0 = arith.constant 0 : i32
    %c0_i32_1 = arith.constant 0 : i32
    %c0_i32_2 = arith.constant 0 : i32
    return %c0_i32, %c0_i32_0, %c0_i32_1 : i32, i32, i32
  }
  func.func @transform_21(%arg0: i32) -> (i32, i32) {
    %c0_i32 = arith.constant 0 : i32
    %c0_i32_0 = arith.constant 0 : i32
    %c0_i32_1 = arith.constant 0 : i32
    return %c0_i32, %c0_i32_0 : i32, i32
  }
  func.func @transform_22(%arg0: i32) -> (i32, i32, i32) {
    %c0_i32 = arith.constant 0 : i32
    %c0_i32_0 = arith.constant 0 : i32
    %c0_i32_1 = arith.constant 0 : i32
    %c0_i32_2 = arith.constant 0 : i32
    return %c0_i32, %c0_i32_0, %c0_i32_1 : i32, i32, i32
  }
  func.func @transform_23(%arg0: i32) -> (i32, i32, i32) {
    %c0_i32 = arith.constant 0 : i32
    %c0_i32_0 = arith.constant 0 : i32
    %c0_i32_1 = arith.constant 0 : i32
    %c0_i32_2 = arith.constant 0 : i32
    return %c0_i32, %c0_i32_0, %c0_i32_1 : i32, i32, i32
  }
  func.func @transform_24(%arg0: i32) -> (i32, i32) {
    %c0_i32 = arith.constant 0 : i32
    %c0_i32_0 = arith.constant 0 : i32
    %c0_i32_1 = arith.constant 0 : i32
    return %c0_i32, %c0_i32_0 : i32, i32
  }
  func.func @transform_25(%arg0: i32) -> (i32, i32, i32) {
    %c0_i32 = arith.constant 0 : i32
    %c0_i32_0 = arith.constant 0 : i32
    %c0_i32_1 = arith.constant 0 : i32
    %c0_i32_2 = arith.constant 0 : i32
    return %c0_i32, %c0_i32_0, %c0_i32_1 : i32, i32, i32
  }
  func.func @transform_26(%arg0: i32) -> (i32, i32, i32) {
    %c0_i32 = arith.constant 0 : i32
    %c0_i32_0 = arith.constant 0 : i32
    %c0_i32_1 = arith.constant 0 : i32
    %c0_i32_2 = arith.constant 0 : i32
    return %c0_i32, %c0_i32_0, %c0_i32_1 : i32, i32, i32
  }
  func.func @transform_27(%arg0: i32) -> (i32, i32) {
    %c0_i32 = arith.constant 0 : i32
    %c0_i32_0 = arith.constant 0 : i32
    %c0_i32_1 = arith.constant 0 : i32
    return %c0_i32, %c0_i32_0 : i32, i32
  }
  func.func @transform_28(%arg0: i32) -> (i32, i32, i32) {
    %c0_i32 = arith.constant 0 : i32
    %c0_i32_0 = arith.constant 0 : i32
    %c0_i32_1 = arith.constant 0 : i32
    %c0_i32_2 = arith.constant 0 : i32
    return %c0_i32, %c0_i32_0, %c0_i32_1 : i32, i32, i32
  }
  func.func @transform_29(%arg0: i32) -> (i32, i32, i32) {
    %c0_i32 = arith.constant 0 : i32
    %c0_i32_0 = arith.constant 0 : i32
    %c0_i32_1 = arith.constant 0 : i32
    %c0_i32_2 = arith.constant 0 : i32
    return %c0_i32, %c0_i32_0, %c0_i32_1 : i32, i32, i32
  }
  func.func @transform_30(%arg0: i32) -> (i32, i32) {
    %c0_i32 = arith.constant 0 : i32
    %c0_i32_0 = arith.constant 0 : i32
    %c0_i32_1 = arith.constant 0 : i32
    return %c0_i32, %c0_i32_0 : i32, i32
  }
  func.func @transform_31(%arg0: i32) -> (i32, i32, i32) {
    %c0_i32 = arith.constant 0 : i32
    %c0_i32_0 = arith.constant 0 : i32
    %c0_i32_1 = arith.constant 0 : i32
    %c0_i32_2 = arith.constant 0 : i32
    return %c0_i32, %c0_i32_0, %c0_i32_1 : i32, i32, i32
  }
  func.func @transform_32(%arg0: i32) -> (i32, i32, i32) {
    %c0_i32 = arith.constant 0 : i32
    %c0_i32_0 = arith.constant 0 : i32
    %c0_i32_1 = arith.constant 0 : i32
    %c0_i32_2 = arith.constant 0 : i32
    return %c0_i32, %c0_i32_0, %c0_i32_1 : i32, i32, i32
  }
  func.func @transform_33(%arg0: i32) -> (i32, i32, i32) {
    %c0_i32 = arith.constant 0 : i32
    %c0_i32_0 = arith.constant 0 : i32
    %c0_i32_1 = arith.constant 0 : i32
    %c0_i32_2 = arith.constant 0 : i32
    return %c0_i32, %c0_i32_0, %c0_i32_1 : i32, i32, i32
  }
  func.func @transform_34(%arg0: i32) -> (i32, i32, i32) {
    %c0_i32 = arith.constant 0 : i32
    %c0_i32_0 = arith.constant 0 : i32
    %c0_i32_1 = arith.constant 0 : i32
    %c0_i32_2 = arith.constant 0 : i32
    return %c0_i32, %c0_i32_0, %c0_i32_1 : i32, i32, i32
  }
  func.func @transform_35(%arg0: i32) -> (i32, i32) {
    %c0_i32 = arith.constant 0 : i32
    %c0_i32_0 = arith.constant 0 : i32
    %c0_i32_1 = arith.constant 0 : i32
    return %c0_i32, %c0_i32_0 : i32, i32
  }
  func.func @transform_36(%arg0: i32) -> (i32, i32, i32) {
    %c0_i32 = arith.constant 0 : i32
    %c0_i32_0 = arith.constant 0 : i32
    %c0_i32_1 = arith.constant 0 : i32
    return %arg0, %c0_i32, %c0_i32_0 : i32, i32, i32
  }
}

</mosaic_0001>

<bundles_post_ra>
// kernel: fwd.1
= control target key start
LH: loop header
LB: loop body
LE: loop exit
PB: predicated region body
PF: predicated region fallthrough
CT: control target
= control target key end

     0   :  { %s13313_s6 = smov 1   ;;  %s13314_s10 = smov 2   ;;  %s14312_s0 = inlined_call_operand.smem [shape: u32[37], index: -1, kind: input, shape index: {}] }
   0x1   :  { %s13385_s5 = sld [smem:[%s14312_s0]]   ;;  %s13315_s14 = smov 3  }
   0x2   :  { %s13390_s9 = sld [smem:[%s14312_s0 + %s13313_s6]]   ;;  %s13316_s18 = smov 4  }
   0x3   :  { %s13395_s13 = sld [smem:[%s14312_s0 + %s13314_s10]]   ;;  %s13317_s22 = smov 5  }
   0x4   :  { %s13400_s17 = sld [smem:[%s14312_s0 + %s13315_s14]]   ;;  %s13318_s26 = smov 6  }
   0x5   :  { %s13405_s21 = sld [smem:[%s14312_s0 + %s13316_s18]]   ;;  %s13319_s30 = smov 7  }
   0x6   :  { %s13410_s25 = sld [smem:[%s14312_s0 + %s13317_s22]]   ;;  %s13320_s4 = smov 8  }
   0x7   :  { %14343 = sst [smem:[#allocation48_spill]] %s13385_s5  ;;  %s13321_s10 = smov 9  }
   0x8   :  { %14344 = sst [smem:[#allocation49_spill]] %s13390_s9  ;;  %s13322_s15 = smov 10  }
   0x9   :  { %14345 = sst [smem:[#allocation50_spill]] %s13395_s13  ;;  %s13323_s20 = smov 11  }
   0xa   :  { %14346 = sst [smem:[#allocation51_spill]] %s13400_s17  ;;  %s13325_s1 = smov 13  }
   0xb   :  { %14347 = sst [smem:[#allocation52_spill]] %s13405_s21  ;;  %s13326_s7 = smov 14  }
   0xc   :  { %14348 = sst [smem:[#allocation53_spill]] %s13410_s25  ;;  %s13328_s22 = smov 16  }
   0xd   :  { %s13415_s29 = sld [smem:[%s14312_s0 + %s13318_s26]]   ;;  %s13324_s26 = smov 12  }
   0xe   :  { %s13420_s3 = sld [smem:[%s14312_s0 + %s13319_s30]]   ;;  %s13329_s28 = smov 17  }
   0xf   :  { %s13425_s8 = sld [smem:[%s14312_s0 + %s13320_s4]]  }
  0x10   :  { %s13430_s14 = sld [smem:[%s14312_s0 + %s13321_s10]]  }
  0x11   :  { %s13435_s19 = sld [smem:[%s14312_s0 + %s13322_s15]]   ;;  %s13327_s15 = smov 15  }
  0x12   :  { %s13440_s24 = sld [smem:[%s14312_s0 + %s13323_s20]]  }
  0x13   :  { %14349 = sst [smem:[#allocation54_spill]] %s13415_s29 }
  0x14   :  { %14350 = sst [smem:[#allocation55_spill]] %s13420_s3 }
  0x15   :  { %14351 = sst [smem:[#allocation56_spill]] %s13425_s8 }
  0x16   :  { %s13445_s30 = sld [smem:[%s14312_s0 + %s13324_s26]]  }
  0x17   :  { %s13450_s6 = sld [smem:[%s14312_s0 + %s13325_s1]]  }
  0x18   :  { %s13455_s12 = sld [smem:[%s14312_s0 + %s13326_s7]]   ;;  %s13330_s7 = smov 18  }
  0x19   :  { %s13460_s20 = sld [smem:[%s14312_s0 + %s13327_s15]]   ;;  %s13331_s15 = smov 19  }
  0x1a   :  { %s13465_s27 = sld [smem:[%s14312_s0 + %s13328_s22]]   ;;  %s13332_s22 = smov 20  }
  0x1b   :  { %s13470_s4 = sld [smem:[%s14312_s0 + %s13329_s28]]   ;;  %s13333_s28 = smov 21  }
  0x1c   :  { %14352 = sst [smem:[#allocation57_spill]] %s13445_s30 }
  0x1d   :  { %14353 = sst [smem:[#allocation58_spill]] %s13450_s6 }
  0x1e   :  { %14354 = sst [smem:[#allocation59_spill]] %s13455_s12 }
  0x1f   :  { %14355 = sst [smem:[#allocation60_spill]] %s13460_s20 }
  0x20   :  { %14356 = sst [smem:[#allocation61_spill]] %s13465_s27 }
  0x21   :  { %14357 = sst [smem:[#allocation62_spill]] %s13470_s4 }
  0x22   :  { %s13475_s6 = sld [smem:[%s14312_s0 + %s13330_s7]]   ;;  %s13334_s7 = smov 22  }
  0x23   :  { %s13480_s20 = sld [smem:[%s14312_s0 + %s13331_s15]]   ;;  %s13335_s15 = smov 23  }
  0x24   :  { %s13485_s27 = sld [smem:[%s14312_s0 + %s13332_s22]]   ;;  %s13336_s22 = smov 24  }
  0x25   :  { %s13490_s4 = sld [smem:[%s14312_s0 + %s13333_s28]]   ;;  %s13337_s28 = smov 25  }
  0x26   :  { %s13495_s30 = sld [smem:[%s14312_s0 + %s13334_s7]]   ;;  %s13338_s7 = smov 26  }
  0x27   :  { %s13500_s3 = sld [smem:[%s14312_s0 + %s13335_s15]]   ;;  %s13339_s15 = smov 27  }
  0x28   :  { %14358 = sst [smem:[#allocation63_spill]] %s13475_s6 }
  0x29   :  { %14359 = sst [smem:[#allocation64_spill]] %s13480_s20 }
  0x2a   :  { %14360 = sst [smem:[#allocation65_spill]] %s13485_s27 }
  0x2b   :  { %14361 = sst [smem:[#allocation66_spill]] %s13490_s4 }
  0x2c   :  { %14362 = sst [smem:[#allocation67_spill]] %s13495_s30 }
  0x2d   :  { %14363 = sst [smem:[#allocation68_spill]] %s13500_s3 }
  0x2e   :  { %s13505_s27 = sld [smem:[%s14312_s0 + %s13336_s22]]   ;;  %s13340_s22 = smov 28  }
  0x2f   :  { %s13510_s25 = sld [smem:[%s14312_s0 + %s13337_s28]]   ;;  %s13341_s28 = smov 29  }
  0x30   :  { %s13515_s21 = sld [smem:[%s14312_s0 + %s13338_s7]]   ;;  %s13342_s7 = smov 30  }
  0x31   :  { %s13520_s3 = sld [smem:[%s14312_s0 + %s13339_s15]]   ;;  %s13343_s15 = smov 31  }
  0x32   :  { %s13525_s17 = sld [smem:[%s14312_s0 + %s13340_s22]]   ;;  %s13344_s22 = smov 32  }
  0x33   :  { %s13530_s5 = sld [smem:[%s14312_s0 + %s13341_s28]]   ;;  %s13345_s28 = smov 33  }
  0x34   :  { %s13535_s9 = sld [smem:[%s14312_s0 + %s13342_s7]]   ;;  %s13346_s7 = smov 34  }
  0x35   :  { %14364 = sst [smem:[#allocation69_spill]] %s13510_s25 }
  0x36   :  { %s13545_s25 = sld [smem:[%s14312_s0 + %s13344_s22]]   ;;  %s13348_s22 = smov 36  }
  0x37   :  { %14365 = sst [smem:[#allocation70_spill]] %s13520_s3 }
  0x38   :  { %s13540_s3 = sld [smem:[%s14312_s0 + %s13343_s15]]   ;;  %s13347_s15 = smov 35  }
  0x39   :  { %14366 = sst [smem:[#allocation71_spill]] %s13530_s5 }
  0x3a   :  { %14367 = sst [smem:[#allocation72_spill]] %s13535_s9 }
  0x3b   :  { %s13550_s5 = sld [smem:[%s14312_s0 + %s13345_s28]]  }
  0x3c   :  { %s13555_s30 = sld [smem:[%s14312_s0 + %s13346_s7]]  }
  0x3d   :  { %s13565_s20 = sld [smem:[%s14312_s0 + %s13348_s22]]  }
  0x3e   :  { %14368 = sst [smem:[#allocation73_spill]] %s13540_s3 }
  0x3f   :  { %s13560_s3 = sld [smem:[%s14312_s0 + %s13347_s15]]  }
  0x40   :  { %78 = vsyncpa [#allocation3], 0 }
  0x41   :  { %79 = vsyncpa [#allocation5], 0 }
  0x42   :  { %80 = vsyncpa [#allocation8], 0 }
  0x43   :  { %81 = vsyncpa [#allocation11], 0 }
  0x44   :  { %82 = vsyncpa [#allocation14], 0 }
  0x45   :  { %83 = vsyncpa [#allocation17], 0 }
  0x46   :  { %84 = vsyncpa [#allocation20], 0 }
  0x47   :  { %85 = vsyncpa [#allocation23], 0 }
  0x48   :  { %86 = vsyncpa [#allocation26], 0 }
  0x49   :  { %87 = vsyncpa [#allocation29], 0 }
  0x4a   :  { %88 = vsyncpa [#allocation32], 0 }
  0x4b   :  { %89 = vsyncpa [#allocation35], 0  ;;  %s13567_s28 = smov 0  }
  0x4c LB: > { %s14369_s13 = sld [smem:[#allocation50_spill]]  ;;  %s13573_s0 = sadd.s32 4294967295, %s13311_s28   ;;  %s13311_s28 = sphi %s13567_s28, %s95_s28  }
  0x4d   : > { %s14370_s12 = sld [smem:[#allocation59_spill]]  ;;  %p9006_p0 = scmp.ge.s32.totalorder %s13311_s28, 1 }
  0x4e   : > { %s14371_s9 = sld [smem:[#allocation72_spill]]  ;;  %p887_p1 = scmp.lt.s32.totalorder %s13311_s28, 3 }
  0x4f   : > { %s14372_s8 = sld [smem:[#allocation56_spill]] }
  0x50   : > { %s14373_s6 = sld [smem:[#allocation63_spill]]  ;;  %p13577_p2 = pnand %p9006_p0, %p887_p1 }
  0x51   : > { %s14374_s4 = sld [smem:[#allocation66_spill]]  ;;  %p12524_p3 = scmp.eq.s32.totalorder (!%p13577_p2), %s13573_s0, 0 }
  0x52   : > { %s14375_s29 = sld [smem:[#allocation54_spill]]  ;;  %891 = sbr.rel (%p13577_p2) target bundleno = 379 (0x17b), region = 12 }
  0x53   : > { %s13349_s7 = smov (!%p13577_p2), [#allocation4]  }
  0x54   : > { %s924_s10 = sshll.u32 (!%p13577_p2), %s13349_s7, 4  ;;  %s925_s10 = int_to_ptr.vmem [resolvable:$true] %s924_s10 }
  0x58   : > { %s922_s2 = sshll.u32 %s14375_s29, 4  ;;  %s12647_s16 = scalar_lea.hbm %s14375_s29, 768  ;;  %s923_s2 = int_to_ptr.hbm [resolvable:$true] %s922_s2 }
  0x59   : > { %s12641_s11 = sshra.s32 %s923_s2, 4  ;;  %s12642_s11 = int_to_ptr.hbm [resolvable:$true] %s12641_s11 }
  0x5a   : > { %s12643_s15 = scalar_lea.hbm %s12642_s11, 768  ;;  %p12648_p7 = scmp.lt.s32.totalorder %s12642_s11, %s14375_s29 }
  0x5b   : > { %p12644_p4 = scmp.ne.s32.totalorder %s12642_s11, %s12643_s15  ;;  %p12649_p8 = scmp.lt.s32.totalorder %s12647_s16, %s12643_s15 }
  0x5d   : > { %p12645_p5 = pnand %p12644_p4, %p12524_p3  ;;  %p12650_p9 = por %p12649_p8, %p12648_p7 }
  0x5f   : > { %p12646_p6 = pneg %p12645_p5 }
  0x61   : > { %p12651_p10 = pnand %p12650_p9, %p12646_p6 }
  0x63   : > { %12654 = shalt.err (!%p12651_p10)
}
  0x64   : > { %s14329_s18 = smov 128   ;;  %s14331_s22 = smov 8  }
  0x65   : > { %12439 = dma.hbm_to_vmem [thread:$0]  (%p12524_p3), %s923_s2, 12288, %s925_s10, [#allocation5], %s14329_s18, %s14329_s18, %s14331_s22  }
  0x66   : > { %s951_s23 = sshll.u32 %s13430_s14, 4  ;;  %s13352_s26 = smov [#allocation7]   ;;  %s952_s23 = int_to_ptr.hbm [resolvable:$true] %s951_s23 }
  0x67   : > { %s953_s7 = sshll.u32 %s13352_s26, 4  ;;  %s979_s11 = sshll.u32 %s13440_s24, 4  ;;  %s954_s7 = int_to_ptr.vmem [resolvable:$true] %s953_s7  ;;  %s980_s11 = int_to_ptr.hbm [resolvable:$true] %s979_s11 }
  0x68   : > { %s12669_s15 = sshra.s32 %s952_s23, 4  ;;  %s12675_s29 = scalar_lea.hbm %s13430_s14, 16  ;;  %s12670_s15 = int_to_ptr.hbm [resolvable:$true] %s12669_s15 }
  0x69   : > { %s12671_s16 = scalar_lea.hbm %s12670_s15, 16  ;;  %p12676_p0 = scmp.lt.s32.totalorder %s12670_s15, %s13430_s14 }
  0x6a   : > { %p12672_p11 = scmp.ne.s32.totalorder %s12670_s15, %s12671_s16  ;;  %p12677_p1 = scmp.lt.s32.totalorder %s12675_s29, %s12671_s16 }
  0x6c   : > { %p12673_p12 = pnand %p12672_p11, %p12524_p3  ;;  %p12678_p4 = por %p12677_p1, %p12676_p0 }
  0x6e   : > { %p12674_p13 = pneg %p12673_p12 }
  0x70   : > { %p12679_p5 = pnand %p12678_p4, %p12674_p13 }
  0x72   : > { %12682 = shalt.err (!%p12679_p5)
}
  0x73   : > { %12443 = dma.hbm_to_vmem [thread:$0]  (%p12524_p3), %s952_s23, 256, %s954_s7, [#allocation8], %s14329_s18, %s14329_s18, %s14331_s22  }
  0x74   : > { %s13353_s2 = smov [#allocation10]   ;;  %s1022_s26 = sshll.u32 %s14373_s6, 4  ;;  %s13606_s26 = int_to_ptr.hbm [resolvable:$true] %s1022_s26 }
  0x75   : > { %s981_s10 = sshll.u32 %s13353_s2, 4  ;;  %s12697_s29 = sshra.s32 %s980_s11, 4  ;;  %s982_s10 = int_to_ptr.vmem [resolvable:$true] %s981_s10  ;;  %s12698_s29 = int_to_ptr.hbm [resolvable:$true] %s12697_s29 }
  0x76   : > { %s12699_s15 = scalar_lea.hbm %s12698_s29, 384  ;;  %s12703_s16 = scalar_lea.hbm %s13440_s24, 384 }
  0x77   : > { %p12700_p6 = scmp.ne.s32.totalorder %s12698_s29, %s12699_s15  ;;  %p12704_p9 = scmp.lt.s32.totalorder %s12698_s29, %s13440_s24 }
  0x78   : > { %p12705_p10 = scmp.lt.s32.totalorder %s12703_s16, %s12699_s15 }
  0x79   : > { %p12701_p7 = pnand %p12700_p6, %p12524_p3 }
  0x7a   : > { %p12706_p11 = por %p12705_p10, %p12704_p9 }
  0x7b   : > { %p12702_p8 = pneg %p12701_p7 }
  0x7d   : > { %p12707_p12 = pnand %p12706_p11, %p12702_p8 }
  0x7f   : > { %12710 = shalt.err (!%p12707_p12)
}
  0x80   : > { %12447 = dma.hbm_to_vmem [thread:$0]  (%p12524_p3), %s980_s11, 6144, %s982_s10, [#allocation11], %s14329_s18, %s14329_s18, %s14331_s22  }
  0x81   : > { %s1054_s23 = sshll.u32 %s14374_s4, 4  ;;  %s13354_s7 = smov [#allocation13]   ;;  %s13618_s23 = int_to_ptr.hbm [resolvable:$true] %s1054_s23 }
  0x82   : > { %s1024_s2 = sshll.u32 %s13354_s7, 4  ;;  %s12725_s29 = sshra.s32 %s13606_s26, 4  ;;  %s1025_s2 = int_to_ptr.vmem [resolvable:$true] %s1024_s2  ;;  %s12726_s29 = int_to_ptr.hbm [resolvable:$true] %s12725_s29 }
  0x83   : > { %s12727_s15 = scalar_lea.hbm %s12726_s29, 512  ;;  %s12731_s16 = scalar_lea.hbm %s14373_s6, 512 }
  0x84   : > { %p12728_p13 = scmp.ne.s32.totalorder %s12726_s29, %s12727_s15  ;;  %p12732_p4 = scmp.lt.s32.totalorder %s12726_s29, %s14373_s6 }
  0x85   : > { %p12733_p5 = scmp.lt.s32.totalorder %s12731_s16, %s12727_s15 }
  0x86   : > { %p12729_p0 = pnand %p12728_p13, %p12524_p3 }
  0x87   : > { %p12734_p6 = por %p12733_p5, %p12732_p4 }
  0x88   : > { %p12730_p1 = pneg %p12729_p0 }
  0x8a   : > { %p12735_p7 = pnand %p12734_p6, %p12730_p1 }
  0x8c   : > { %12738 = shalt.err (!%p12735_p7)
}
  0x8d   : > { %12451 = dma.hbm_to_vmem [thread:$0]  (%p12524_p3), %s13606_s26, 8192, %s1025_s2, [#allocation14], %s14329_s18, %s14329_s18, %s14331_s22  }
  0x8e   : > { %s13355_s11 = smov [#allocation16]   ;;  %s1083_s7 = sshll.u32 %s13505_s27, 4  ;;  %s13632_s7 = int_to_ptr.hbm [resolvable:$true] %s1083_s7 }
  0x8f   : > { %s1056_s10 = sshll.u32 %s13355_s11, 4  ;;  %s12753_s29 = sshra.s32 %s13618_s23, 4  ;;  %s1057_s10 = int_to_ptr.vmem [resolvable:$true] %s1056_s10  ;;  %s12754_s29 = int_to_ptr.hbm [resolvable:$true] %s12753_s29 }
  0x90   : > { %s12755_s15 = scalar_lea.hbm %s12754_s29, 2  ;;  %s12759_s16 = scalar_lea.hbm %s14374_s4, 2 }
  0x91   : > { %p12756_p8 = scmp.ne.s32.totalorder %s12754_s29, %s12755_s15  ;;  %p12760_p11 = scmp.lt.s32.totalorder %s12754_s29, %s14374_s4 }
  0x92   : > { %p12761_p12 = scmp.lt.s32.totalorder %s12759_s16, %s12755_s15 }
  0x93   : > { %p12757_p9 = pnand %p12756_p8, %p12524_p3 }
  0x94   : > { %p12762_p13 = por %p12761_p12, %p12760_p11 }
  0x95   : > { %p12758_p10 = pneg %p12757_p9 }
  0x97   : > { %p12763_p0 = pnand %p12762_p13, %p12758_p10 }
  0x99   : > { %12766 = shalt.err (!%p12763_p0)
}
  0x9a   : > { %12455 = dma.hbm_to_vmem [thread:$0]  (%p12524_p3), %s13618_s23, 32, %s1057_s10, [#allocation17]  }
  0x9b   : > { %s1108_s26 = sshll.u32 %s13515_s21, 4  ;;  %s13356_s2 = smov [#allocation19]   ;;  %s13643_s26 = int_to_ptr.hbm [resolvable:$true] %s1108_s26 }
  0x9c   : > { %s1085_s11 = sshll.u32 %s13356_s2, 4  ;;  %s12781_s29 = sshra.s32 %s13632_s7, 4  ;;  %s1086_s11 = int_to_ptr.vmem [resolvable:$true] %s1085_s11  ;;  %s12782_s29 = int_to_ptr.hbm [resolvable:$true] %s12781_s29 }
  0x9d   : > { %s12783_s15 = scalar_lea.hbm %s12782_s29, 2  ;;  %s12787_s16 = scalar_lea.hbm %s13505_s27, 2 }
  0x9e   : > { %p12784_p1 = scmp.ne.s32.totalorder %s12782_s29, %s12783_s15  ;;  %p12788_p6 = scmp.lt.s32.totalorder %s12782_s29, %s13505_s27 }
  0x9f   : > { %p12789_p7 = scmp.lt.s32.totalorder %s12787_s16, %s12783_s15 }
  0xa0   : > { %p12785_p4 = pnand %p12784_p1, %p12524_p3 }
  0xa1   : > { %p12790_p8 = por %p12789_p7, %p12788_p6 }
  0xa2   : > { %p12786_p5 = pneg %p12785_p4 }
  0xa4   : > { %p12791_p9 = pnand %p12790_p8, %p12786_p5 }
  0xa6   : > { %12794 = shalt.err (!%p12791_p9)
}
  0xa7   : > { %12459 = dma.hbm_to_vmem [thread:$0]  (%p12524_p3), %s13632_s7, 32, %s1086_s11, [#allocation20]  }
  0xa8   : > { %s13357_s23 = smov [#allocation22]   ;;  %s12809_s2 = sshra.s32 %s13643_s26, 4  ;;  %s12810_s2 = int_to_ptr.hbm [resolvable:$true] %s12809_s2 }
  0xa9   : > { %s1110_s10 = sshll.u32 %s13357_s23, 4  ;;  %s12811_s18 = scalar_lea.hbm %s12810_s2, 12  ;;  %s1111_s10 = int_to_ptr.vmem [resolvable:$true] %s1110_s10 }
  0xaa   : > { %p12812_p10 = scmp.ne.s32.totalorder %s12810_s2, %s12811_s18  ;;  %s12815_s29 = scalar_lea.hbm %s13515_s21, 12 }
  0xab   : > { %p12816_p13 = scmp.lt.s32.totalorder %s12810_s2, %s13515_s21  ;;  %p12817_p0 = scmp.lt.s32.totalorder %s12815_s29, %s12811_s18 }
  0xac   : > { %p12813_p11 = pnand %p12812_p10, %p12524_p3 }
  0xad   : > { %p12818_p1 = por %p12817_p0, %p12816_p13 }
  0xae   : > { %p12814_p12 = pneg %p12813_p11 }
  0xb0   : > { %p12819_p4 = pnand %p12818_p1, %p12814_p12 }
  0xb2   : > { %12822 = shalt.err (!%p12819_p4)
}
  0xb3   : > { %s14333_s15 = smov 64   ;;  %s14334_s7 = smov 4  }
  0xb4   : > { %12463 = dma.hbm_to_vmem [thread:$0]  (%p12524_p3), %s13643_s26, 192, %s1111_s10, [#allocation23], %s14333_s15, %s14333_s15, %s14334_s7  }
  0xb5   : > { %s1134_s11 = sshll.u32 %s13525_s17, 4  ;;  %s13360_s18 = smov [#allocation25]   ;;  %s1135_s11 = int_to_ptr.hbm [resolvable:$true] %s1134_s11 }
  0xb6   : > { %s1136_s16 = sshll.u32 %s13360_s18, 4  ;;  %s1163_s23 = sshll.u32 %s14371_s9, 4  ;;  %s1137_s16 = int_to_ptr.vmem [resolvable:$true] %s1136_s16  ;;  %s1164_s23 = int_to_ptr.hbm [resolvable:$true] %s1163_s23 }
  0xb7   : > { %s12837_s2 = sshra.s32 %s1135_s11, 4  ;;  %s12843_s22 = scalar_lea.hbm %s13525_s17, 768  ;;  %s12838_s2 = int_to_ptr.hbm [resolvable:$true] %s12837_s2 }
  0xb8   : > { %s12839_s29 = scalar_lea.hbm %s12838_s2, 768  ;;  %p12844_p8 = scmp.lt.s32.totalorder %s12838_s2, %s13525_s17 }
  0xb9   : > { %p12840_p5 = scmp.ne.s32.totalorder %s12838_s2, %s12839_s29  ;;  %p12845_p9 = scmp.lt.s32.totalorder %s12843_s22, %s12839_s29 }
  0xbb   : > { %p12841_p6 = pnand %p12840_p5, %p12524_p3  ;;  %p12846_p10 = por %p12845_p9, %p12844_p8 }
  0xbd   : > { %p12842_p7 = pneg %p12841_p6 }
  0xbf   : > { %p12847_p11 = pnand %p12846_p10, %p12842_p7 }
  0xc1   : > { %12850 = shalt.err (!%p12847_p11)
}
  0xc2   : > { %s14377_s26 = smov 8   ;;  %s14378_s10 = smov 128  }
  0xc3   : > { %12467 = dma.hbm_to_vmem [thread:$0]  (%p12524_p3), %s1135_s11, 12288, %s1137_s16, [#allocation26], %s14378_s10, %s14378_s10, %s14377_s26  }
  0xc4   : > { %s13361_s18 = smov [#allocation28]   ;;  %s1188_s7 = sshll.u32 %s13545_s25, 4  ;;  %s13676_s7 = int_to_ptr.hbm [resolvable:$true] %s1188_s7 }
  0xc5   : > { %s1165_s15 = sshll.u32 %s13361_s18, 4  ;;  %s12865_s22 = sshra.s32 %s1164_s23, 4  ;;  %s1166_s15 = int_to_ptr.vmem [resolvable:$true] %s1165_s15  ;;  %s12866_s22 = int_to_ptr.hbm [resolvable:$true] %s12865_s22 }
  0xc6   : > { %s12867_s2 = scalar_lea.hbm %s12866_s22, 2  ;;  %s12871_s29 = scalar_lea.hbm %s14371_s9, 2 }
  0xc7   : > { %p12868_p12 = scmp.ne.s32.totalorder %s12866_s22, %s12867_s2  ;;  %p12872_p1 = scmp.lt.s32.totalorder %s12866_s22, %s14371_s9 }
  0xc8   : > { %p12873_p4 = scmp.lt.s32.totalorder %s12871_s29, %s12867_s2 }
  0xc9   : > { %p12869_p13 = pnand %p12868_p12, %p12524_p3 }
  0xca   : > { %p12874_p5 = por %p12873_p4, %p12872_p1 }
  0xcb   : > { %p12870_p0 = pneg %p12869_p13 }
  0xcd   : > { %p12875_p6 = pnand %p12874_p5, %p12870_p0 }
  0xcf   : > { %12878 = shalt.err (!%p12875_p6)
}
  0xd0   : > { %12471 = dma.hbm_to_vmem [thread:$0]  (%p12524_p3), %s1164_s23, 32, %s1166_s15, [#allocation29]  }
  0xd1   : > { %s13362_s11 = smov [#allocation31]   ;;  %s902_s18 = sshll.u32 %s14369_s13, 4  ;;  %s13685_s18 = int_to_ptr.hbm [resolvable:$true] %s902_s18 }
  0xd2   : > { %s1190_s16 = sshll.u32 %s13362_s11, 4  ;;  %s12893_s4 = sshra.s32 %s13676_s7, 4  ;;  %s1191_s16 = int_to_ptr.vmem [resolvable:$true] %s1190_s16  ;;  %s12894_s4 = int_to_ptr.hbm [resolvable:$true] %s12893_s4 }
  0xd3   : > { %s12895_s22 = scalar_lea.hbm %s12894_s4, 512  ;;  %s12899_s2 = scalar_lea.hbm %s13545_s25, 512 }
  0xd4   : > { %p12896_p7 = scmp.ne.s32.totalorder %s12894_s4, %s12895_s22  ;;  %p12900_p10 = scmp.lt.s32.totalorder %s12894_s4, %s13545_s25 }
  0xd5   : > { %p12901_p11 = scmp.lt.s32.totalorder %s12899_s2, %s12895_s22 }
  0xd6   : > { %p12897_p8 = pnand %p12896_p7, %p12524_p3 }
  0xd7   : > { %p12902_p12 = por %p12901_p11, %p12900_p10 }
  0xd8   : > { %p12898_p9 = pneg %p12897_p8 }
  0xda   : > { %p12903_p13 = pnand %p12902_p12, %p12898_p9 }
  0xdc   : > { %12906 = shalt.err (!%p12903_p13)
}
  0xdd   : > { %12475 = dma.hbm_to_vmem [thread:$0]  (%p12524_p3), %s13676_s7, 8192, %s1191_s16, [#allocation32], %s14378_s10, %s14378_s10, %s14377_s26  }
  0xde   : > { %s940_s15 = sshll.u32 %s14372_s8, 4  ;;  %s13363_s23 = smov [#allocation2]   ;;  %s13699_s15 = int_to_ptr.hbm [resolvable:$true] %s940_s15 }
  0xdf   : > { %s904_s29 = sshll.u32 %s13363_s23, 4  ;;  %s12921_s4 = sshra.s32 %s13685_s18, 4  ;;  %s905_s29 = int_to_ptr.vmem [resolvable:$true] %s904_s29  ;;  %s12922_s4 = int_to_ptr.hbm [resolvable:$true] %s12921_s4 }
  0xe0   : > { %s12923_s11 = scalar_lea.hbm %s12922_s4, 1  ;;  %s12927_s22 = scalar_lea.hbm %s14369_s13, 1 }
  0xe1   : > { %p12924_p0 = scmp.ne.s32.totalorder %s12922_s4, %s12923_s11  ;;  %p12928_p5 = scmp.lt.s32.totalorder %s12922_s4, %s14369_s13 }
  0xe2   : > { %p12929_p6 = scmp.lt.s32.totalorder %s12927_s22, %s12923_s11 }
  0xe3   : > { %p12925_p1 = pnand %p12924_p0, %p12524_p3 }
  0xe4   : > { %p12930_p7 = por %p12929_p6, %p12928_p5 }
  0xe5   : > { %p12926_p4 = pneg %p12925_p1 }
  0xe7   : > { %p12931_p8 = pnand %p12930_p7, %p12926_p4 }
  0xe9   : > { %12934 = shalt.err (!%p12931_p8)
}
  0xea   : > { %12437 = dma.hbm_to_vmem [thread:$0]  (%p12524_p3), %s13685_s18, 16, %s905_s29, [#allocation3]  }
  0xeb   : > { %s13364_s7 = smov [#allocation6]   ;;  %s965_s2 = sshll.u32 %s13435_s19, 4  ;;  %s13710_s2 = int_to_ptr.hbm [resolvable:$true] %s965_s2 }
  0xec   : > { %s942_s16 = sshll.u32 %s13364_s7, 4  ;;  %s12949_s23 = sshra.s32 %s13699_s15, 4  ;;  %s943_s16 = int_to_ptr.vmem [resolvable:$true] %s942_s16  ;;  %s12950_s23 = int_to_ptr.hbm [resolvable:$true] %s12949_s23 }
  0xed   : > { %s12951_s4 = scalar_lea.hbm %s12950_s23, 2  ;;  %s12955_s11 = scalar_lea.hbm %s14372_s8, 2 }
  0xee   : > { %p12952_p9 = scmp.ne.s32.totalorder %s12950_s23, %s12951_s4  ;;  %p12956_p12 = scmp.lt.s32.totalorder %s12950_s23, %s14372_s8 }
  0xef   : > { %p12957_p13 = scmp.lt.s32.totalorder %s12955_s11, %s12951_s4 }
  0xf0   : > { %p12953_p10 = pnand %p12952_p9, %p12524_p3 }
  0xf1   : > { %p12958_p0 = por %p12957_p13, %p12956_p12 }
  0xf2   : > { %p12954_p11 = pneg %p12953_p10 }
  0xf4   : > { %p12959_p1 = pnand %p12958_p0, %p12954_p11 }
  0xf6   : > { %12962 = shalt.err (!%p12959_p1)
}
  0xf7   : > { %12441 = dma.hbm_to_vmem [thread:$0]  (%p12524_p3), %s13699_s15, 32, %s943_s16, [#allocation5]  }
  0xf8   : > { %s999_s18 = sshll.u32 %s14370_s12, 4  ;;  %s13365_s29 = smov [#allocation9]   ;;  %s13721_s18 = int_to_ptr.hbm [resolvable:$true] %s999_s18 }
  0xf9   : > { %s967_s22 = sshll.u32 %s13365_s29, 4  ;;  %s12977_s7 = sshra.s32 %s13710_s2, 4  ;;  %s968_s22 = int_to_ptr.vmem [resolvable:$true] %s967_s22  ;;  %s12978_s7 = int_to_ptr.hbm [resolvable:$true] %s12977_s7 }
  0xfa   : > { %s12979_s23 = scalar_lea.hbm %s12978_s7, 512  ;;  %s12983_s4 = scalar_lea.hbm %s13435_s19, 512 }
  0xfb   : > { %p12980_p4 = scmp.ne.s32.totalorder %s12978_s7, %s12979_s23  ;;  %p12984_p7 = scmp.lt.s32.totalorder %s12978_s7, %s13435_s19 }
  0xfc   : > { %p12985_p8 = scmp.lt.s32.totalorder %s12983_s4, %s12979_s23 }
  0xfd   : > { %p12981_p5 = pnand %p12980_p4, %p12524_p3 }
  0xfe   : > { %p12986_p9 = por %p12985_p8, %p12984_p7 }
  0xff   : > { %p12982_p6 = pneg %p12981_p5 }
 0x101   : > { %p12987_p10 = pnand %p12986_p9, %p12982_p6 }
 0x103   : > { %12990 = shalt.err (!%p12987_p10)
}
 0x104   : > { %s14379_s15 = sld [smem:[#allocation64_spill]]  ;;  %s13366_s16 = smov [#allocation12]  }
 0x105   : > { %12445 = dma.hbm_to_vmem [thread:$0]  (%p12524_p3), %s13710_s2, 8192, %s968_s22, [#allocation8], %s14378_s10, %s14378_s10, %s14377_s26  }
 0x106   : > { %s1001_s11 = sshll.u32 %s13366_s16, 4  ;;  %s13005_s7 = sshra.s32 %s13721_s18, 4  ;;  %s1002_s11 = int_to_ptr.vmem [resolvable:$true] %s1001_s11  ;;  %s13006_s7 = int_to_ptr.hbm [resolvable:$true] %s13005_s7 }
 0x107   : > { %s13007_s23 = scalar_lea.hbm %s13006_s7, 768  ;;  %s13011_s4 = scalar_lea.hbm %s14370_s12, 768 }
 0x108   : > { %p13008_p11 = scmp.ne.s32.totalorder %s13006_s7, %s13007_s23  ;;  %p13012_p0 = scmp.lt.s32.totalorder %s13006_s7, %s14370_s12 }
 0x109   : > { %p13013_p1 = scmp.lt.s32.totalorder %s13011_s4, %s13007_s23 }
 0x10a   : > { %s1036_s29 = sshll.u32 %s14379_s15, 4  ;;  %p13009_p12 = pnand %p13008_p11, %p12524_p3  ;;  %s13735_s29 = int_to_ptr.hbm [resolvable:$true] %s1036_s29 }
 0x10b   : > { %p13014_p4 = por %p13013_p1, %p13012_p0 }
 0x10c   : > { %p13010_p13 = pneg %p13009_p12 }
 0x10e   : > { %p13015_p5 = pnand %p13014_p4, %p13010_p13 }
 0x110   : > { %13018 = shalt.err (!%p13015_p5)
}
 0x111   : > { %s14380_s2 = sld [smem:[#allocation67_spill]]  ;;  %s13367_s16 = smov [#allocation15]  }
 0x112   : > { %12449 = dma.hbm_to_vmem [thread:$0]  (%p12524_p3), %s13721_s18, 12288, %s1002_s11, [#allocation11], %s14378_s10, %s14378_s10, %s14377_s26  }
 0x113   : > { %s1038_s6 = sshll.u32 %s13367_s16, 4  ;;  %s13033_s7 = sshra.s32 %s13735_s29, 4  ;;  %s1039_s6 = int_to_ptr.vmem [resolvable:$true] %s1038_s6  ;;  %s13034_s7 = int_to_ptr.hbm [resolvable:$true] %s13033_s7 }
 0x114   : > { %s13035_s23 = scalar_lea.hbm %s13034_s7, 384  ;;  %s13039_s4 = scalar_lea.hbm %s14379_s15, 384 }
 0x115   : > { %p13036_p6 = scmp.ne.s32.totalorder %s13034_s7, %s13035_s23  ;;  %p13040_p9 = scmp.lt.s32.totalorder %s13034_s7, %s14379_s15 }
 0x116   : > { %p13041_p10 = scmp.lt.s32.totalorder %s13039_s4, %s13035_s23 }
 0x117   : > { %s1065_s22 = sshll.u32 %s14380_s2, 4  ;;  %p13037_p7 = pnand %p13036_p6, %p12524_p3  ;;  %s13749_s22 = int_to_ptr.hbm [resolvable:$true] %s1065_s22 }
 0x118   : > { %p13042_p11 = por %p13041_p10, %p13040_p9 }
 0x119   : > { %p13038_p8 = pneg %p13037_p7 }
 0x11b   : > { %p13043_p12 = pnand %p13042_p11, %p13038_p8 }
 0x11d   : > { %13046 = shalt.err (!%p13043_p12)
}
 0x11e   : > { %s14381_s18 = sld [smem:[#allocation69_spill]]  ;;  %s13368_s11 = smov [#allocation18]  }
 0x11f   : > { %12453 = dma.hbm_to_vmem [thread:$0]  (%p12524_p3), %s13735_s29, 6144, %s1039_s6, [#allocation14], %s14378_s10, %s14378_s10, %s14377_s26  }
 0x120   : > { %s1067_s16 = sshll.u32 %s13368_s11, 4  ;;  %s13061_s7 = sshra.s32 %s13749_s22, 4  ;;  %s1068_s16 = int_to_ptr.vmem [resolvable:$true] %s1067_s16  ;;  %s13062_s7 = int_to_ptr.hbm [resolvable:$true] %s13061_s7 }
 0x121   : > { %s13063_s23 = scalar_lea.hbm %s13062_s7, 768  ;;  %s13067_s4 = scalar_lea.hbm %s14380_s2, 768 }
 0x122   : > { %p13064_p13 = scmp.ne.s32.totalorder %s13062_s7, %s13063_s23  ;;  %p13068_p4 = scmp.lt.s32.totalorder %s13062_s7, %s14380_s2 }
 0x123   : > { %p13069_p5 = scmp.lt.s32.totalorder %s13067_s4, %s13063_s23 }
 0x124   : > { %s1094_s8 = sshll.u32 %s14381_s18, 4  ;;  %p13065_p0 = pnand %p13064_p13, %p12524_p3  ;;  %s13763_s8 = int_to_ptr.hbm [resolvable:$true] %s1094_s8 }
 0x125   : > { %p13070_p6 = por %p13069_p5, %p13068_p4 }
 0x126   : > { %p13066_p1 = pneg %p13065_p0 }
 0x128   : > { %p13071_p7 = pnand %p13070_p6, %p13066_p1 }
 0x12a   : > { %13074 = shalt.err (!%p13071_p7)
}
 0x12b   : > { %s14382_s6 = sld [smem:[#allocation70_spill]]  ;;  %s13369_s11 = smov [#allocation21]  }
 0x12c   : > { %12457 = dma.hbm_to_vmem [thread:$0]  (%p12524_p3), %s13749_s22, 12288, %s1068_s16, [#allocation17], %s14378_s10, %s14378_s10, %s14377_s26  }
 0x12d   : > { %s1096_s9 = sshll.u32 %s13369_s11, 4  ;;  %s13089_s7 = sshra.s32 %s13763_s8, 4  ;;  %s1097_s9 = int_to_ptr.vmem [resolvable:$true] %s1096_s9  ;;  %s13090_s7 = int_to_ptr.hbm [resolvable:$true] %s13089_s7 }
 0x12e   : > { %s13091_s23 = scalar_lea.hbm %s13090_s7, 768  ;;  %s13095_s4 = scalar_lea.hbm %s14381_s18, 768 }
 0x12f   : > { %p13092_p8 = scmp.ne.s32.totalorder %s13090_s7, %s13091_s23  ;;  %p13096_p11 = scmp.lt.s32.totalorder %s13090_s7, %s14381_s18 }
 0x130   : > { %p13097_p12 = scmp.lt.s32.totalorder %s13095_s4, %s13091_s23 }
 0x131   : > { %s1123_s29 = sshll.u32 %s14382_s6, 4  ;;  %p13093_p9 = pnand %p13092_p8, %p12524_p3  ;;  %s13777_s29 = int_to_ptr.hbm [resolvable:$true] %s1123_s29 }
 0x132   : > { %p13098_p13 = por %p13097_p12, %p13096_p11 }
 0x133   : > { %p13094_p10 = pneg %p13093_p9 }
 0x135   : > { %p13099_p0 = pnand %p13098_p13, %p13094_p10 }
 0x137   : > { %13102 = shalt.err (!%p13099_p0)
}
 0x138   : > { %s14383_s22 = sld [smem:[#allocation71_spill]]  ;;  %s13370_s16 = smov [#allocation24]  }
 0x139   : > { %12461 = dma.hbm_to_vmem [thread:$0]  (%p12524_p3), %s13763_s8, 12288, %s1097_s9, [#allocation20], %s14378_s10, %s14378_s10, %s14377_s26  }
 0x13a   : > { %s1125_s11 = sshll.u32 %s13370_s16, 4  ;;  %s13117_s7 = sshra.s32 %s13777_s29, 4  ;;  %s1126_s11 = int_to_ptr.vmem [resolvable:$true] %s1125_s11  ;;  %s13118_s7 = int_to_ptr.hbm [resolvable:$true] %s13117_s7 }
 0x13b   : > { %s13119_s23 = scalar_lea.hbm %s13118_s7, 2  ;;  %s13123_s4 = scalar_lea.hbm %s14382_s6, 2 }
 0x13c   : > { %p13120_p1 = scmp.ne.s32.totalorder %s13118_s7, %s13119_s23  ;;  %p13124_p6 = scmp.lt.s32.totalorder %s13118_s7, %s14382_s6 }
 0x13d   : > { %p13125_p7 = scmp.lt.s32.totalorder %s13123_s4, %s13119_s23 }
 0x13e   : > { %s1148_s2 = sshll.u32 %s14383_s22, 4  ;;  %p13121_p4 = pnand %p13120_p1, %p12524_p3  ;;  %s13791_s2 = int_to_ptr.hbm [resolvable:$true] %s1148_s2 }
 0x13f   : > { %p13126_p8 = por %p13125_p7, %p13124_p6 }
 0x140   : > { %p13122_p5 = pneg %p13121_p4 }
 0x142   : > { %p13127_p9 = pnand %p13126_p8, %p13122_p5 }
 0x144   : > { %13130 = shalt.err (!%p13127_p9)
}
 0x145   : > { %s14384_s9 = sld [smem:[#allocation73_spill]]  ;;  %s13371_s16 = smov [#allocation27]  }
 0x146   : > { %12465 = dma.hbm_to_vmem [thread:$0]  (%p12524_p3), %s13777_s29, 32, %s1126_s11, [#allocation23]  }
 0x147   : > { %s1150_s12 = sshll.u32 %s13371_s16, 4  ;;  %s13145_s7 = sshra.s32 %s13791_s2, 4  ;;  %s1151_s12 = int_to_ptr.vmem [resolvable:$true] %s1150_s12  ;;  %s13146_s7 = int_to_ptr.hbm [resolvable:$true] %s13145_s7 }
 0x148   : > { %s13147_s23 = scalar_lea.hbm %s13146_s7, 12  ;;  %s13151_s4 = scalar_lea.hbm %s14383_s22, 12 }
 0x149   : > { %p13148_p10 = scmp.ne.s32.totalorder %s13146_s7, %s13147_s23  ;;  %p13152_p13 = scmp.lt.s32.totalorder %s13146_s7, %s14383_s22 }
 0x14a   : > { %p13153_p0 = scmp.lt.s32.totalorder %s13151_s4, %s13147_s23 }
 0x14b   : > { %s1174_s8 = sshll.u32 %s14384_s9, 4  ;;  %p13149_p11 = pnand %p13148_p10, %p12524_p3  ;;  %s13802_s8 = int_to_ptr.hbm [resolvable:$true] %s1174_s8 }
 0x14c   : > { %p13154_p1 = por %p13153_p0, %p13152_p13 }
 0x14d   : > { %p13150_p12 = pneg %p13149_p11 }
 0x14f   : > { %p13155_p4 = pnand %p13154_p1, %p13150_p12 }
 0x151   : > { %13158 = shalt.err (!%p13155_p4)
}
 0x152   : > { %s14385_s29 = smov 4   ;;  %s14386_s11 = smov 64  }
 0x153   : > { %12469 = dma.hbm_to_vmem [thread:$0]  (%p12524_p3), %s13791_s2, 192, %s1151_s12, [#allocation26], %s14386_s11, %s14386_s11, %s14385_s29  }
 0x154   : > { %s13372_s16 = smov [#allocation30]   ;;  %s13173_s13 = sshra.s32 %s13802_s8, 4  ;;  %s13174_s13 = int_to_ptr.hbm [resolvable:$true] %s13173_s13 }
 0x155   : > { %s1176_s6 = sshll.u32 %s13372_s16, 4  ;;  %s13175_s7 = scalar_lea.hbm %s13174_s13, 4  ;;  %s1177_s6 = int_to_ptr.vmem [resolvable:$true] %s1176_s6 }
 0x156   : > { %p13176_p5 = scmp.ne.s32.totalorder %s13174_s13, %s13175_s7  ;;  %s13179_s23 = scalar_lea.hbm %s14384_s9, 4 }
 0x157   : > { %p13180_p8 = scmp.lt.s32.totalorder %s13174_s13, %s14384_s9  ;;  %p13181_p9 = scmp.lt.s32.totalorder %s13179_s23, %s13175_s7 }
 0x158   : > { %p13177_p6 = pnand %p13176_p5, %p12524_p3 }
 0x159   : > { %p13182_p10 = por %p13181_p9, %p13180_p8 }
 0x15a   : > { %p13178_p7 = pneg %p13177_p6 }
 0x15c   : > { %p13183_p11 = pnand %p13182_p10, %p13178_p7 }
 0x15e   : > { %13186 = shalt.err (!%p13183_p11)
}
 0x15f   : > { %s13373_s4 = smov 32   ;;  %s13374_s12 = smov 2  }
 0x160   : > { %12473 = dma.hbm_to_vmem [thread:$0]  (%p12524_p3), %s13802_s8, 64, %s1177_s6, [#allocation29], %s13373_s4, %s13373_s4, %s13374_s12  }
 0x161   : > { %s1202_s2 = sshll.u32 %s13550_s5, 4  ;;  %s13375_s29 = smov [#allocation33]   ;;  %s1203_s2 = int_to_ptr.hbm [resolvable:$true] %s1202_s2 }
 0x162   : > { %s1204_s11 = sshll.u32 %s13375_s29, 4  ;;  %s1220_s13 = sshll.u32 %s13560_s3, 4  ;;  %s1205_s11 = int_to_ptr.vmem [resolvable:$true] %s1204_s11  ;;  %s1221_s13 = int_to_ptr.hbm [resolvable:$true] %s1220_s13 }
 0x163   : > { %s13201_s16 = sshra.s32 %s1203_s2, 4  ;;  %s13207_s23 = scalar_lea.hbm %s13550_s5, 384  ;;  %s13202_s16 = int_to_ptr.hbm [resolvable:$true] %s13201_s16 }
 0x164   : > { %s13203_s7 = scalar_lea.hbm %s13202_s16, 384  ;;  %p13208_p1 = scmp.lt.s32.totalorder %s13202_s16, %s13550_s5 }
 0x165   : > { %p13204_p12 = scmp.ne.s32.totalorder %s13202_s16, %s13203_s7  ;;  %p13209_p4 = scmp.lt.s32.totalorder %s13207_s23, %s13203_s7 }
 0x167   : > { %p13205_p13 = pnand %p13204_p12, %p12524_p3  ;;  %p13210_p5 = por %p13209_p4, %p13208_p1 }
 0x169   : > { %p13206_p0 = pneg %p13205_p13 }
 0x16b   : > { %p13211_p6 = pnand %p13210_p5, %p13206_p0 }
 0x16d   : > { %13214 = shalt.err (!%p13211_p6)
}
 0x16e   : > { %12477 = dma.hbm_to_vmem [thread:$0]  (%p12524_p3), %s1203_s2, 6144, %s1205_s11, [#allocation32], %s14378_s10, %s14378_s10, %s14377_s26  }
 0x16f   : > { %s13376_s6 = smov [#allocation34]   ;;  %s13229_s4 = sshra.s32 %s1221_s13, 4  ;;  %s13230_s4 = int_to_ptr.hbm [resolvable:$true] %s13229_s4 }
 0x170   : > { %s1222_s8 = sshll.u32 %s13376_s6, 4  ;;  %s13231_s12 = scalar_lea.hbm %s13230_s4, 2  ;;  %s1223_s8 = int_to_ptr.vmem [resolvable:$true] %s1222_s8 }
 0x171   : > { %p13232_p7 = scmp.ne.s32.totalorder %s13230_s4, %s13231_s12  ;;  %s13235_s29 = scalar_lea.hbm %s13560_s3, 2 }
 0x172   : > { %p13236_p10 = scmp.lt.s32.totalorder %s13230_s4, %s13560_s3  ;;  %p13237_p11 = scmp.lt.s32.totalorder %s13235_s29, %s13231_s12 }
 0x173   : > { %p13233_p8 = pnand %p13232_p7, %p12524_p3 }
 0x174   : > { %p13238_p12 = por %p13237_p11, %p13236_p10 }
 0x175   : > { %p13234_p9 = pneg %p13233_p8 }
 0x177   : > { %p13239_p13 = pnand %p13238_p12, %p13234_p9 }
 0x179   : > { %13242 = shalt.err (!%p13239_p13)
}
 0x17a   : > { %12479 = dma.hbm_to_vmem [thread:$0]  (%p12524_p3), %s1221_s13, 32, %s1223_s8, [#allocation35]  }
 0x17b PF: > { %1243 = sbr.rel (%p13577_p2) target bundleno = 5403 (0x151b), region = 164  ;;  %p12546_p0 = scmp.eq.s32.totalorder (!%p13577_p2), %s13573_s0, 0 }
 0x180   : > { %13262 = dma.done.wait (%p12546_p0), [#allocation3], 16  }
 0x181   : > { %13264 = vsyncadd (%p12546_p0), [#allocation3], 4294967280 }
 0x182   : > { %13266 = dma.done.wait (%p12546_p0), [#allocation5], 12320  }
 0x183   : > { %13268 = vsyncadd (%p12546_p0), [#allocation5], 4294954976 }
 0x184   : > { %13270 = dma.done.wait (%p12546_p0), [#allocation8], 8448  }
 0x185   : > { %13272 = vsyncadd (%p12546_p0), [#allocation8], 4294958848 }
 0x186   : > { %13274 = dma.done.wait (%p12546_p0), [#allocation11], 18432  }
 0x187   : > { %13276 = vsyncadd (%p12546_p0), [#allocation11], 4294948864 }
 0x188   : > { %13278 = dma.done.wait (%p12546_p0), [#allocation14], 14336  }
 0x189   : > { %13280 = vsyncadd (%p12546_p0), [#allocation14], 4294952960 }
 0x18a   : > { %13282 = dma.done.wait (%p12546_p0), [#allocation17], 12320  }
 0x18b   : > { %13284 = vsyncadd (%p12546_p0), [#allocation17], 4294954976 }
 0x18c   : > { %13286 = dma.done.wait (%p12546_p0), [#allocation20], 12320  }
 0x18d   : > { %13288 = vsyncadd (%p12546_p0), [#allocation20], 4294954976 }
 0x18e   : > { %13290 = dma.done.wait (%p12546_p0), [#allocation23], 224  }
 0x18f   : > { %13292 = vsyncadd (%p12546_p0), [#allocation23], 4294967072 }
 0x190   : > { %13294 = dma.done.wait (%p12546_p0), [#allocation26], 12480  }
 0x191   : > { %13296 = vsyncadd (%p12546_p0), [#allocation26], 4294954816 }
 0x192   : > { %13298 = dma.done.wait (%p12546_p0), [#allocation29], 96  }
 0x193   : > { %13300 = vsyncadd (%p12546_p0), [#allocation29], 4294967200 }
 0x194   : > { %13302 = dma.done.wait (%p12546_p0), [#allocation32], 14336  }
 0x195   : > { %13304 = vsyncadd (%p12546_p0), [#allocation32], 4294952960 }
 0x196   : > { %13306 = dma.done.wait (%p12546_p0), [#allocation35], 32  }
 0x197   : > { %13308 = vsyncadd (%p12546_p0), [#allocation35], 4294967264  ;;  %s14387_s1 = sld [smem:[#allocation49_spill]]  ;;  %p1439_p2 = scmp.lt.s32.totalorder %s13573_s0, 1  ;;  %vm1481_vm0 = vcmask 392192   ;;  %vm1637_vm1 = vcmask 130048  }
 0x198   : > { %s14388_s26 = sld [smem:[#allocation48_spill]]  ;;  %v12640_v43 = vld [vmem:[#allocation2] ss:$0 sm:$0xff]  ;;  %vm3296_vm2 = vcmask 64512   ;;  %vm4935_vm3 = vcmask 1043456   ;;  %vm4931_vm4 = vcmask 31744  }
 0x199   : > { %s14389_s10 = sld [smem:[#allocation51_spill]]  ;;  %s14401_s0 = smov (!%p1439_p2, %s13573_s0), 1  ;;  %vm8413_vm5 = vcmask 1041408   ;;  %vm8409_vm6 = vcmask 15360  }
 0x19a   : > { %s11789_s2 = sshll.u32 %s14401_s0, 4  ;;  %s14390_s13 = sld [smem:[#allocation52_spill]] }
 0x19b   : > { %s14391_s16 = sld [smem:[#allocation53_spill]] }
 0x19c   : > { %s14392_s7 = sld [smem:[#allocation55_spill]] }
 0x19d   : > { %v11793_v0 = vld [vmem:[%s14387_s1 + $0x10] sm:$0xff]  ;;  %v11792_v1 = vld [vmem:[%s14387_s1 + $0x8] sm:$0xff]  ;;  %v11791_v2 = vld [vmem:[%s14387_s1] sm:$0xff]  ;;  %s14393_s23 = sld [smem:[#allocation57_spill]] }
 0x19e   : > { %1490 = vmatpush.bf16.msra.mxu0 %v11793_v0  ;;  %s1443_s11 = scalar_lea.vmem %s14388_s26, %s11789_s2  ;;  %s14394_s6 = sld [smem:[#allocation58_spill]] }
 0x19f   : > { %v1450_v3 = vld [vmem:[%s1443_s11] sm:$0xff]  ;;  %v1451_v4 = vld [vmem:[%s1443_s11 + $0x8] sm:$0xff]  ;;  %v9120_v11 = vld [vmem:[%s14389_s10 + $0x50] sm:$0xf]  ;;  %s14395_s8 = sld [smem:[#allocation60_spill]]  ;;  %s11790_s2 = sshll.u32 %s14401_s0, 2 }
 0x1a0   : > { %v1452_v5 = vpack.c.bf16 %v1451_v4, %v1450_v3  ;;  %v9088_v6 = vld [vmem:[%s14389_s10 + $0x20] sm:$0xf]  ;;  %v11799_v7 = vld [vmem:[%s14389_s10 + $0x24] sm:$0xf0]  ;;  %v11798_v8 = vld [vmem:[%s14389_s10 + $0x24] sm:$0xf]  ;;  %s1448_s11 = scalar_lea.vmem %s13565_s20, %s11790_s2 }
 0x1a1   : > { %v9089_v9 = vor.u32 %v11799_v7, %v9088_v6  ;;  %v9090_v10 = vld [vmem:[%s14389_s10 + $0x28] sm:$0xf0]  ;;  %v11805_v12 = vld [vmem:[%s14389_s10 + $0x54] sm:$0xf0]  ;;  %v11804_v15 = vld [vmem:[%s14389_s10 + $0x54] sm:$0xf] }
 0x1a2   : > { %1491 = vmatpush.bf16.msra.mxu0 %v11792_v1  ;;  %v9093_v13 = vor.u32 %v11798_v8, %v9090_v10  ;;  %v9121_v14 = vor.u32 %v11805_v12, %v9120_v11  ;;  %v9122_v16 = vld [vmem:[%s14389_s10 + $0x58] sm:$0xf0]  ;;  %v9080_v17 = vld [vmem:[%s14389_s10 + $0x10] sm:$0xf]  ;;  %v11797_v19 = vld [vmem:[%s14389_s10 + $0x14] sm:$0xf0] }
 0x1a3   : > { %1544 = vmatpush.bf16.msra.mxu1 %v9089_v9  ;;  %v9125_v18 = vor.u32 %v11804_v15, %v9122_v16  ;;  %v11796_v20 = vld [vmem:[%s14389_s10 + $0x14] sm:$0xf]  ;;  %v9082_v21 = vld [vmem:[%s14389_s10 + $0x18] sm:$0xf0]  ;;  %v9081_v22 = vor.u32 %v11797_v19, %v9080_v17  ;;  %v9112_v24 = vld [vmem:[%s14389_s10 + $0x40] sm:$0xf] }
 0x1a4   : > { %1558 = vmatpush.bf16.msra.mxu2 %v9093_v13  ;;  %1611 = vmatpush.bf16.msra.mxu3 %v9121_v14  ;;  %v9085_v23 = vor.u32 %v11796_v20, %v9082_v21  ;;  %v11803_v25 = vld [vmem:[%s14389_s10 + $0x44] sm:$0xf0]  ;;  %v11802_v26 = vld [vmem:[%s14389_s10 + $0x44] sm:$0xf]  ;;  %v9114_v28 = vld [vmem:[%s14389_s10 + $0x48] sm:$0xf0] }
 0x1a5   : > { %v9113_v27 = vor.u32 %v11803_v25, %v9112_v24  ;;  %v9117_v29 = vor.u32 %v11802_v26, %v9114_v28  ;;  %v9072_v30 = vld [vmem:[%s14389_s10] sm:$0xf]  ;;  %v11795_v31 = vld [vmem:[%s14389_s10 + $0x4] sm:$0xf0]  ;;  %v11794_v32 = vld [vmem:[%s14389_s10 + $0x4] sm:$0xf] }
 0x1a6   : > { %1492 = vmatpush.bf16.msra.mxu0 %v11791_v2  ;;  %v9073_v33 = vor.u32 %v11795_v31, %v9072_v30  ;;  %v9074_v34 = vld [vmem:[%s14389_s10 + $0x8] sm:$0xf0]  ;;  %v9104_v35 = vld [vmem:[%s14389_s10 + $0x30] sm:$0xf]  ;;  %v11801_v36 = vld [vmem:[%s14389_s10 + $0x34] sm:$0xf0] }
 0x1a7   : > { %1545 = vmatpush.bf16.msra.mxu1 %v9081_v22  ;;  %v9077_v37 = vor.u32 %v11794_v32, %v9074_v34  ;;  %v9105_v38 = vor.u32 %v11801_v36, %v9104_v35  ;;  %v11800_v39 = vld [vmem:[%s14389_s10 + $0x34] sm:$0xf]  ;;  %v9106_v40 = vld [vmem:[%s14389_s10 + $0x38] sm:$0xf0]  ;;  %v11810_v52 = vld [vmem:[%s14389_s10 + $0x84] sm:$0xf] }
 0x1a8   : > { %1559 = vmatpush.bf16.msra.mxu2 %v9085_v23  ;;  %1612 = vmatpush.bf16.msra.mxu3 %v9113_v27  ;;  %v9109_v41 = vor.u32 %v11800_v39, %v9106_v40  ;;  %v9164_v53 = vld [vmem:[%s14389_s10 + $0x88] sm:$0xf0]  ;;  %v1567_v56 = vld [vmem:[%s14390_s13] sm:$0xff]  ;;  %v9128_v57 = vld [vmem:[%s14390_s13 + $0x10] sm:$0xff]  ;;  %s14396_s4 = sld [smem:[#allocation61_spill]] }
 0x1a9   : > { %9069 = vmatmul.msk.bf16.vlgmr.msra.gmra.mxu0 %vm1481_vm0, %v1452_v5  ;;  %v9167_v58 = vor.u32 %v11810_v52, %v9164_v53  ;;  %v11808_v59 = vld [vmem:[%s14389_s10 + $0x74] sm:$0xf]  ;;  %v9156_v60 = vld [vmem:[%s14389_s10 + $0x78] sm:$0xf0]  ;;  %v9162_v61 = vld [vmem:[%s14389_s10 + $0x80] sm:$0xf] }
 0x1aa   : > { %1625 = vmatpush.bf16.msrb.mxu0 %v9125_v18  ;;  %v11811_v62 = vld [vmem:[%s14389_s10 + $0x84] sm:$0xf0]  ;;  %v9159_v0 = vor.u32 %v11808_v59, %v9156_v60  ;;  %v11806_v2 = vld [vmem:[%s14389_s10 + $0x64] sm:$0xf]  ;;  %v9148_v3 = vld [vmem:[%s14389_s10 + $0x68] sm:$0xf0] }
 0x1ab   : > { %1546 = vmatpush.bf16.msra.mxu1 %v9073_v33  ;;  %v9163_v4 = vor.u32 %v11811_v62, %v9162_v61  ;;  %v1568_v5 = vld [vmem:[%s14390_s13 + $0x8] sm:$0xff]  ;;  %v9154_v6 = vld [vmem:[%s14389_s10 + $0x70] sm:$0xf]  ;;  %v11809_v7 = vld [vmem:[%s14389_s10 + $0x74] sm:$0xf0]  ;;  %v9151_v9 = vor.u32 %v11806_v2, %v9148_v3  ;;  %s14397_s12 = sld [smem:[#allocation62_spill]] }
 0x1ac   : > { %1560 = vmatpush.bf16.msra.mxu2 %v9077_v37  ;;  %1613 = vmatpush.bf16.msra.mxu3 %v9105_v38  ;;  %v9129_v8 = vld [vmem:[%s14390_s13 + $0x18] sm:$0xff]  ;;  %v9155_v10 = vor.u32 %v11809_v7, %v9154_v6  ;;  %v9146_v11 = vld [vmem:[%s14389_s10 + $0x60] sm:$0xf]  ;;  %v11807_v12 = vld [vmem:[%s14389_s10 + $0x64] sm:$0xf0]  ;;  %s14398_s29 = sld [smem:[#allocation65_spill]] }
 0x1ad   : > { %v9147_v13 = vor.u32 %v11807_v12, %v9146_v11  ;;  %v9298_v16 = vld [vmem:[#allocation4 + $0xf0] sm:$0xf]  ;;  %v11843_v17 = vld [vmem:[#allocation4 + $0xf4] sm:$0xf0]  ;;  %v9290_v19 = vld [vmem:[#allocation4 + $0xe0] sm:$0xf] }
 0x1ae   : > { %1626 = vmatpush.bf16.msrb.mxu0 %v9117_v29  ;;  %v9299_v18 = vor.u32 %v11843_v17, %v9298_v16  ;;  %v11841_v20 = vld [vmem:[#allocation4 + $0xe4] sm:$0xf0]  ;;  %v9234_v21 = vld [vmem:[#allocation4 + $0x70] sm:$0xf]  ;;  %v11827_v23 = vld [vmem:[#allocation4 + $0x74] sm:$0xf0] }
 0x1af   : > { %v9291_v22 = vor.u32 %v11841_v20, %v9290_v19  ;;  %v9235_v26 = vor.u32 %v11827_v23, %v9234_v21  ;;  %v9282_v27 = vld [vmem:[#allocation4 + $0xd0] sm:$0xf]  ;;  %v11839_v28 = vld [vmem:[#allocation4 + $0xd4] sm:$0xf0]  ;;  %v9226_v29 = vld [vmem:[#allocation4 + $0x60] sm:$0xf] }
 0x1b0   : > { %v11825_v30 = vld [vmem:[#allocation4 + $0x64] sm:$0xf0]  ;;  %v9283_v32 = vor.u32 %v11839_v28, %v9282_v27  ;;  %v9274_v33 = vld [vmem:[#allocation4 + $0xc0] sm:$0xf]  ;;  %v9218_v35 = vld [vmem:[#allocation4 + $0x50] sm:$0xf] }
 0x1b1   : > { %v9227_v31 = vor.u32 %v11825_v30, %v9226_v29  ;;  %v11837_v34 = vld [vmem:[#allocation4 + $0xc4] sm:$0xf0]  ;;  %v11823_v36 = vld [vmem:[#allocation4 + $0x54] sm:$0xf0]  ;;  %v9210_v39 = vld [vmem:[#allocation4 + $0x40] sm:$0xf] }
 0x1b2   : > { %1627 = vmatpush.bf16.msrb.mxu0 %v9109_v41  ;;  %v9219_v37 = vor.u32 %v11823_v36, %v9218_v35  ;;  %v9275_v38 = vor.u32 %v11837_v34, %v9274_v33  ;;  %v11821_v40 = vld [vmem:[#allocation4 + $0x44] sm:$0xf0]  ;;  %v9236_v52 = vld [vmem:[#allocation4 + $0x78] sm:$0xf0]  ;;  %v9258_v53 = vld [vmem:[#allocation4 + $0xa0] sm:$0xf] }
 0x1b3   : > { %v9170_v60 = vld [vmem:[%s14390_s13 + $0x20] sm:$0xff]  ;;  %v9228_v2 = vld [vmem:[#allocation4 + $0x68] sm:$0xf0]  ;;  %v11831_v6 = vld [vmem:[#allocation4 + $0x94] sm:$0xf0]  ;;  %s14399_s26 = sld [smem:[#allocation68_spill]] }
 0x1b4   : > { %v11840_v62 = vld [vmem:[#allocation4 + $0xe4] sm:$0xf]  ;;  %v11822_v11 = vld [vmem:[#allocation4 + $0x54] sm:$0xf]  ;;  %v9220_v12 = vld [vmem:[#allocation4 + $0x58] sm:$0xf0] }
 0x1b5   : > { %v9171_v16 = vld [vmem:[%s14390_s13 + $0x28] sm:$0xff]  ;;  %v9223_v19 = vor.u32 %v11822_v11, %v9220_v12  ;;  %v9268_v28 = vld [vmem:[#allocation4 + $0xb8] sm:$0xf0]  ;;  %v11818_v29 = vld [vmem:[#allocation4 + $0x34] sm:$0xf] }
 0x1b6   : > { %v9276_v20 = vld [vmem:[#allocation4 + $0xc8] sm:$0xf0]  ;;  %v11820_v21 = vld [vmem:[#allocation4 + $0x44] sm:$0xf]  ;;  %v9204_v30 = vld [vmem:[#allocation4 + $0x38] sm:$0xf0] }
 0x1b7   : > { %v9207_v33 = vor.u32 %v11818_v29, %v9204_v30  ;;  %v9260_v34 = vld [vmem:[#allocation4 + $0xa8] sm:$0xf0]  ;;  %v11816_v35 = vld [vmem:[#allocation4 + $0x24] sm:$0xf]  ;;  %v9364_v11 = vld [vmem:[#allocation4 + $0x178] sm:$0xf0] }
 0x1b8   : > { %v9196_v36 = vld [vmem:[#allocation4 + $0x28] sm:$0xf0]  ;;  %v9402_v30 = vld [vmem:[#allocation4 + $0x1c0] sm:$0xf] }
 0x226   : > { %v1494_v42 = vpop.f32.mrf.mxu0 }
 0x227   : > { %v1495_v45 = vadd.f32 %v12640_v43, %v1494_v42 }
 0x22e   : > { %v1496_v44 = vpop.f32.mrf.mxu0 }
 0x22f   : > { %v1497_v46 = vadd.f32 %v12640_v43, %v1496_v44  ;;  %v9266_v43 = vld [vmem:[#allocation4 + $0xb0] sm:$0xf]  ;;  %v11835_v44 = vld [vmem:[#allocation4 + $0xb4] sm:$0xf0] }
 0x231   : > { %v1499_v47 = vpack.c.bf16 %v1497_v46, %v1495_v45  ;;  %v9211_v45 = vor.u32 %v11821_v40, %v9210_v39  ;;  %v9267_v46 = vor.u32 %v11835_v44, %v9266_v43  ;;  %v11830_v39 = vld [vmem:[#allocation4 + $0x94] sm:$0xf]  ;;  %v9252_v40 = vld [vmem:[#allocation4 + $0x98] sm:$0xf0]  ;;  %v11829_v43 = vld [vmem:[#allocation4 + $0x84] sm:$0xf0] }
 0x232   : > { %v11828_v44 = vld [vmem:[#allocation4 + $0x84] sm:$0xf] }
 0x233   : > { %9094 = vmatmul.msk.bf16.vlgmr.msra.gmra.mxu1 %vm1481_vm0, %v1499_v47  ;;  %9095 = vmatmul.msk.bf16.vlgmr.msra.gmra.mxu2 %vm1481_vm0, %v1499_v47 }
 0x234   : > { %9126 = vmatmul.msk.bf16.vlgmr.msra.gmra.mxu3 %vm1481_vm0, %v1499_v47  ;;  %9127 = vmatmul.msk.bf16.vlgmr.msrb.gmra.mxu0 %vm1481_vm0, %v1499_v47 }
 0x2b0   : > { %v1548_v48 = vpop.f32.mrf.mxu1 }
 0x2b1   : > { %v1629_v49 = vpop.f32.mrf.mxu0 }
 0x2b6   : > { %v1562_v50 = vpop.f32.mrf.mxu2 }
 0x2b7   : > { %v1615_v51 = vpop.f32.mrf.mxu3 }
 0x2b8   : > { %v1550_v54 = vpop.f32.mrf.mxu1 }
 0x2b9   : > { %v1631_v55 = vpop.f32.mrf.mxu0  ;;  %1710 = vmatpush.msrb.mxu3 %v1550_v54 }
 0x2ba   : > { %1681 = vmatpush.msrb.mxu2 %v1631_v55  ;;  %v11833_v55 = vld [vmem:[#allocation4 + $0xa4] sm:$0xf0] }
 0x2bb   : > { %1711 = vmatpush.msrb.mxu3 %v1548_v48  ;;  %v11819_v48 = vld [vmem:[#allocation4 + $0x34] sm:$0xf0]  ;;  %v9259_v3 = vor.u32 %v11833_v55, %v9258_v53 }
 0x2bc   : > { %1682 = vmatpush.msrb.mxu2 %v1629_v49  ;;  %9134 = vmatmul.msk.f32.vlgmr.msrb.gmra.mxu3 %vm1637_vm1, %v1567_v56  ;;  %v11842_v49 = vld [vmem:[#allocation4 + $0xf4] sm:$0xf]  ;;  %v11815_v55 = vld [vmem:[#allocation4 + $0x14] sm:$0xf0] }
 0x2bd   : > { %9132 = vmatmul.msk.f32.vlgmr.msrb.gmra.mxu2 %vm1637_vm1, %v9128_v57 }
 0x2be   : > { %v1564_v63 = vpop.f32.mrf.mxu2  ;;  %1798 = vmatpush.bf16.msra.mxu2 %v9167_v58 }
 0x2bf   : > { %v1617_v1 = vpop.f32.mrf.mxu3  ;;  %1733 = vmatpush.msra.mxu0 %v1564_v63 }
 0x2c0   : > { %1658 = vmatpush.msrb.mxu1 %v1617_v1  ;;  %v11824_v1 = vld [vmem:[#allocation4 + $0x64] sm:$0xf] }
 0x2c1   : > { %1734 = vmatpush.msra.mxu0 %v1562_v50  ;;  %v9300_v50 = vld [vmem:[#allocation4 + $0xf8] sm:$0xf0] }
 0x2c2   : > { %1659 = vmatpush.msrb.mxu1 %v1615_v51  ;;  %1799 = vmatpush.bf16.msra.mxu2 %v9159_v0  ;;  %v11826_v51 = vld [vmem:[#allocation4 + $0x74] sm:$0xf]  ;;  %v9303_v61 = vor.u32 %v11842_v49, %v9300_v50  ;;  %v9292_v0 = vld [vmem:[#allocation4 + $0xe8] sm:$0xf0] }
 0x2c3   : > { %9130 = vmatmul.msk.f32.vlgmr.msrb.gmra.mxu1 %vm1637_vm1, %v9128_v57  ;;  %9136 = vmatmul.msk.f32.vlgmr.msra.gmra.mxu0 %vm1637_vm1, %v1567_v56  ;;  %v9194_v56 = vld [vmem:[#allocation4 + $0x20] sm:$0xf]  ;;  %v11817_v57 = vld [vmem:[#allocation4 + $0x24] sm:$0xf0]  ;;  %v9239_v63 = vor.u32 %v11826_v51, %v9236_v52  ;;  %v9295_v7 = vor.u32 %v11840_v62, %v9292_v0  ;;  %v11874_v51 = vld [vmem:[#allocation4 + $0x1f4] sm:$0xf] }
 0x2c4   : > { %9135 = vmatmul.msk.f32.gmra.mxu3 %vm1637_vm1, %v1568_v5  ;;  %1784 = vmatpush.bf16.msra.mxu1 %v9163_v4  ;;  %v9195_v4 = vor.u32 %v11817_v57, %v9194_v56  ;;  %v9428_v52 = vld [vmem:[#allocation4 + $0x1f8] sm:$0xf0]  ;;  %v11814_v57 = vld [vmem:[#allocation4 + $0x14] sm:$0xf]  ;;  %v11872_v62 = vld [vmem:[#allocation4 + $0x1e4] sm:$0xf] }
 0x2c5   : > { %9133 = vmatmul.msk.f32.gmra.mxu2 %vm1637_vm1, %v9129_v8  ;;  %v9431_v53 = vor.u32 %v11874_v51, %v9428_v52  ;;  %v9420_v0 = vld [vmem:[#allocation4 + $0x1e8] sm:$0xf0]  ;;  %v11852_v51 = vld [vmem:[#allocation4 + $0x144] sm:$0xf] }
 0x2c6   : > { %1800 = vmatpush.bf16.msra.mxu2 %v9151_v9  ;;  %v9231_v9 = vor.u32 %v11824_v1, %v9228_v2  ;;  %v9178_v1 = vld [vmem:[#allocation4] sm:$0xf]  ;;  %v11813_v2 = vld [vmem:[#allocation4 + $0x4] sm:$0xf0] }
 0x2c8   : > { %1785 = vmatpush.bf16.msra.mxu1 %v9155_v10  ;;  %v9284_v10 = vld [vmem:[#allocation4 + $0xd8] sm:$0xf0] }
 0x2ca   : > { %2088 = vmatpush.bf16.msrb.mxu2 %v9299_v18  ;;  %v11836_v18 = vld [vmem:[#allocation4 + $0xc4] sm:$0xf] }
 0x2cb   : > { %9131 = vmatmul.msk.f32.gmra.mxu1 %vm1637_vm1, %v9129_v8  ;;  %9137 = vmatmul.msk.f32.gmra.mxu0 %vm1637_vm1, %v1568_v5  ;;  %v9250_v5 = vld [vmem:[#allocation4 + $0x90] sm:$0xf]  ;;  %v11838_v8 = vld [vmem:[#allocation4 + $0xd4] sm:$0xf]  ;;  %v9279_v23 = vor.u32 %v11836_v18, %v9276_v20  ;;  %v9412_v20 = vld [vmem:[#allocation4 + $0x1d8] sm:$0xf0] }
 0x2cc   : > { %1786 = vmatpush.bf16.msra.mxu1 %v9147_v13  ;;  %v9251_v13 = vor.u32 %v11831_v6, %v9250_v5  ;;  %v9287_v17 = vor.u32 %v11838_v8, %v9284_v10  ;;  %v11812_v5 = vld [vmem:[#allocation4 + $0x4] sm:$0xf]  ;;  %v9180_v6 = vld [vmem:[#allocation4 + $0x8] sm:$0xf0]  ;;  %v11858_v10 = vld [vmem:[#allocation4 + $0x174] sm:$0xf] }
 0x2cd   : > { %9169 = vmatmul.msk.bf16.vlgmr.msra.gmra.mxu2 %vm1481_vm0, %v1499_v47  ;;  %v9183_v8 = vor.u32 %v11812_v5, %v9180_v6  ;;  %v11863_v5 = vld [vmem:[#allocation4 + $0x194] sm:$0xf0]  ;;  %v11862_v6 = vld [vmem:[#allocation4 + $0x194] sm:$0xf] }
 0x2ce   : > { %2089 = vmatpush.bf16.msrb.mxu2 %v9291_v22  ;;  %v9212_v22 = vld [vmem:[#allocation4 + $0x48] sm:$0xf0] }
 0x2cf   : > { %v9215_v27 = vor.u32 %v11820_v21, %v9212_v22  ;;  %v9354_v22 = vld [vmem:[#allocation4 + $0x160] sm:$0xf] }
 0x2d0   : > { %2074 = vmatpush.bf16.msrb.mxu1 %v9235_v26  ;;  %v11834_v26 = vld [vmem:[#allocation4 + $0xb4] sm:$0xf] }
 0x2d2   : > { %2090 = vmatpush.bf16.msrb.mxu2 %v9283_v32  ;;  %v11832_v32 = vld [vmem:[#allocation4 + $0xa4] sm:$0xf] }
 0x2d3   : > { %9168 = vmatmul.msk.bf16.vlgmr.msra.gmra.mxu1 %vm1481_vm0, %v1499_v47  ;;  %v9202_v47 = vld [vmem:[#allocation4 + $0x30] sm:$0xf] }
 0x2d4   : > { %2075 = vmatpush.bf16.msrb.mxu1 %v9227_v31  ;;  %v9203_v54 = vor.u32 %v11819_v48, %v9202_v47  ;;  %v9271_v31 = vor.u32 %v11834_v26, %v9268_v28  ;;  %v9426_v47 = vld [vmem:[#allocation4 + $0x1f0] sm:$0xf]  ;;  %v11875_v48 = vld [vmem:[#allocation4 + $0x1f4] sm:$0xf0]  ;;  %v11856_v26 = vld [vmem:[#allocation4 + $0x164] sm:$0xf] }
 0x2d5   : > { %v9427_v50 = vor.u32 %v11875_v48, %v9426_v47  ;;  %v9356_v28 = vld [vmem:[#allocation4 + $0x168] sm:$0xf0]  ;;  %v9396_v47 = vld [vmem:[#allocation4 + $0x1b8] sm:$0xf0] }
 0x2d6   : > { %2091 = vmatpush.bf16.msrb.mxu2 %v9275_v38  ;;  %v9199_v38 = vor.u32 %v11816_v35, %v9196_v36  ;;  %v9359_v29 = vor.u32 %v11856_v26, %v9356_v28  ;;  %v9346_v36 = vld [vmem:[#allocation4 + $0x150] sm:$0xf]  ;;  %v11847_v28 = vld [vmem:[#allocation4 + $0x114] sm:$0xf0] }
 0x2d8   : > { %2076 = vmatpush.bf16.msrb.mxu1 %v9219_v37  ;;  %v9263_v37 = vor.u32 %v11832_v32, %v9260_v34  ;;  %v11868_v32 = vld [vmem:[#allocation4 + $0x1c4] sm:$0xf]  ;;  %v9404_v34 = vld [vmem:[#allocation4 + $0x1c8] sm:$0xf0] }
 0x2d9   : > { %v9407_v35 = vor.u32 %v11868_v32, %v9404_v34 }
 0x2da   : > { %2092 = vmatpush.bf16.msrb.mxu2 %v9267_v46  ;;  %v9244_v46 = vld [vmem:[#allocation4 + $0x88] sm:$0xf0] }
 0x2db   : > { %v9247_v49 = vor.u32 %v11828_v44, %v9244_v46  ;;  %v11867_v44 = vld [vmem:[#allocation4 + $0x1b4] sm:$0xf0] }
 0x2dc   : > { %2077 = vmatpush.bf16.msrb.mxu1 %v9211_v45 }
 0x2de   : > { %2093 = vmatpush.bf16.msrb.mxu2 %v9259_v3  ;;  %v9423_v3 = vor.u32 %v11872_v62, %v9420_v0  ;;  %v9330_v62 = vld [vmem:[#allocation4 + $0x130] sm:$0xf]  ;;  %v11850_v0 = vld [vmem:[#allocation4 + $0x134] sm:$0xf] }
 0x2e0   : > { %2078 = vmatpush.bf16.msrb.mxu1 %v9203_v54  ;;  %v9186_v54 = vld [vmem:[#allocation4 + $0x10] sm:$0xf] }
 0x2e1   : > { %v9187_v56 = vor.u32 %v11815_v55, %v9186_v54  ;;  %v9386_v55 = vld [vmem:[#allocation4 + $0x1a0] sm:$0xf] }
 0x2e2   : > { %2094 = vmatpush.bf16.msrb.mxu2 %v9251_v13  ;;  %v9367_v13 = vor.u32 %v11858_v10, %v9364_v11  ;;  %v9322_v10 = vld [vmem:[#allocation4 + $0x120] sm:$0xf]  ;;  %v11849_v11 = vld [vmem:[#allocation4 + $0x124] sm:$0xf0] }
 0x2e4   : > { %2079 = vmatpush.bf16.msrb.mxu1 %v9195_v4  ;;  %v9179_v4 = vor.u32 %v11813_v2, %v9178_v1  ;;  %v9332_v2 = vld [vmem:[#allocation4 + $0x138] sm:$0xf0] }
 0x2e8   : > { %2080 = vmatpush.bf16.msrb.mxu1 %v9187_v56  ;;  %v11865_v56 = vld [vmem:[#allocation4 + $0x1a4] sm:$0xf0] }
 0x2ec   : > { %2081 = vmatpush.bf16.msrb.mxu1 %v9179_v4  ;;  %v9378_v4 = vld [vmem:[#allocation4 + $0x190] sm:$0xf] }
 0x340   : > { %v13955_v14 = vpop.f32.mrf.mxu1  ;;  %v13957_v15 = vpop.f32.mrf.mxu2 }
 0x348   : > { %v13959_v24 = vpop.f32.mrf.mxu1  ;;  %v13961_v25 = vpop.f32.mrf.mxu2 }
 0x350   : > { %v1788_v41 = vpop.f32.mrf.mxu1  ;;  %v1802_v42 = vpop.f32.mrf.mxu2 }
 0x358   : > { %v1790_v58 = vpop.f32.mrf.mxu1  ;;  %v1804_v59 = vpop.f32.mrf.mxu2 }
 0x359   : > { %1830 = vmatpush.msra.mxu3 %v1790_v58  ;;  %1853 = vmatpush.msrb.mxu0 %v1804_v59  ;;  %v9188_v58 = vld [vmem:[#allocation4 + $0x18] sm:$0xf0] }
 0x35a   : > { %v9191_v59 = vor.u32 %v11814_v57, %v9188_v58  ;;  %v11864_v57 = vld [vmem:[#allocation4 + $0x1a4] sm:$0xf]  ;;  %v13971_v58 = vpop.f32.mrf.mxu3 }
 0x35b   : > { %1831 = vmatpush.msra.mxu3 %v1788_v41  ;;  %1854 = vmatpush.msrb.mxu0 %v1802_v42  ;;  %v9255_v41 = vor.u32 %v11830_v39, %v9252_v40  ;;  %v9242_v42 = vld [vmem:[#allocation4 + $0x80] sm:$0xf]  ;;  %v13969_v39 = vpop.f32.mrf.mxu0 }
 0x35c   : > { %9172 = vmatmul.msk.f32.vlgmr.msra.gmra.mxu3 %vm1637_vm1, %v9170_v60  ;;  %9174 = vmatmul.msk.f32.vlgmr.msrb.gmra.mxu0 %vm1637_vm1, %v9170_v60  ;;  %v9243_v45 = vor.u32 %v11829_v43, %v9242_v42  ;;  %v9418_v60 = vld [vmem:[#allocation4 + $0x1e0] sm:$0xf]  ;;  %v9394_v43 = vld [vmem:[#allocation4 + $0x1b0] sm:$0xf] }
 0x35d   : > { %2116 = vmatpush.bf16.msra.mxu0 %v9303_v61  ;;  %2102 = vmatpush.bf16.msrb.mxu3 %v9239_v63  ;;  %v11873_v61 = vld [vmem:[#allocation4 + $0x1e4] sm:$0xf0]  ;;  %v9395_v46 = vor.u32 %v11867_v44, %v9394_v43 }
 0x35e   : > { %2095 = vmatpush.bf16.msrb.mxu2 %v9243_v45  ;;  %v9419_v63 = vor.u32 %v11873_v61, %v9418_v60  ;;  %v11866_v45 = vld [vmem:[#allocation4 + $0x1b4] sm:$0xf]  ;;  %v9388_v60 = vld [vmem:[#allocation4 + $0x1a8] sm:$0xf0] }
 0x35f   : > { %v9399_v48 = vor.u32 %v11866_v45, %v9396_v47  ;;  %v9391_v61 = vor.u32 %v11864_v57, %v9388_v60 }
 0x361   : > { %2117 = vmatpush.bf16.msra.mxu0 %v9295_v7  ;;  %2103 = vmatpush.bf16.msrb.mxu3 %v9231_v9  ;;  %v9362_v7 = vld [vmem:[#allocation4 + $0x170] sm:$0xf]  ;;  %v11859_v9 = vld [vmem:[#allocation4 + $0x174] sm:$0xf0] }
 0x362   : > { %2339 = vmatpush.bf16.msra.mxu2 %v9427_v50  ;;  %v9363_v12 = vor.u32 %v11859_v9, %v9362_v7  ;;  %v11853_v50 = vld [vmem:[#allocation4 + $0x144] sm:$0xf0]  ;;  %v9380_v9 = vld [vmem:[#allocation4 + $0x198] sm:$0xf0]  ;;  %v1716_v32 = vpop.f32.mrf.mxu3 }
 0x363   : > { %v1739_v7 = vpop.f32.mrf.mxu0 }
 0x364   : > { %9173 = vmatmul.msk.f32.gmra.mxu3 %vm1637_vm1, %v9171_v16  ;;  %9175 = vmatmul.msk.f32.gmra.mxu0 %vm1637_vm1, %v9171_v16  ;;  %v9410_v16 = vld [vmem:[#allocation4 + $0x1d0] sm:$0xf]  ;;  %v1740_v47 = vadd.f32 %v1739_v7, %v13961_v25 }
 0x365   : > { %2118 = vmatpush.bf16.msra.mxu0 %v9287_v17  ;;  %2104 = vmatpush.bf16.msrb.mxu3 %v9223_v19  ;;  %v11871_v17 = vld [vmem:[#allocation4 + $0x1d4] sm:$0xf0]  ;;  %v11870_v19 = vld [vmem:[#allocation4 + $0x1d4] sm:$0xf] }
 0x366   : > { %2340 = vmatpush.bf16.msra.mxu2 %v9419_v63  ;;  %v9411_v18 = vor.u32 %v11871_v17, %v9410_v16  ;;  %2325 = vmatpush.bf16.msra.mxu1 %v9363_v12  ;;  %v9415_v21 = vor.u32 %v11870_v19, %v9412_v20  ;;  %v11851_v63 = vld [vmem:[#allocation4 + $0x134] sm:$0xf0]  ;;  %v9383_v12 = vor.u32 %v11862_v6, %v9380_v9  ;;  %v11848_v16 = vld [vmem:[#allocation4 + $0x124] sm:$0xf]  ;;  %v9324_v17 = vld [vmem:[#allocation4 + $0x128] sm:$0xf0] }
 0x367   : > { %v9331_v1 = vor.u32 %v11851_v63, %v9330_v62  ;;  %v9327_v19 = vor.u32 %v11848_v16, %v9324_v17  ;;  %v11861_v20 = vld [vmem:[#allocation4 + $0x184] sm:$0xf0]  ;;  %v11888_v9 = vld [vmem:[#allocation4 + $0x264] sm:$0xf] }
 0x369   : > { %2119 = vmatpush.bf16.msra.mxu0 %v9279_v23  ;;  %2105 = vmatpush.bf16.msrb.mxu3 %v9215_v27  ;;  %v11857_v23 = vld [vmem:[#allocation4 + $0x164] sm:$0xf0] }
 0x36a   : > { %2341 = vmatpush.bf16.msra.mxu2 %v9411_v18  ;;  %v9355_v27 = vor.u32 %v11857_v23, %v9354_v22  ;;  %v9370_v18 = vld [vmem:[#allocation4 + $0x180] sm:$0xf]  ;;  %v9372_v22 = vld [vmem:[#allocation4 + $0x188] sm:$0xf0] }
 0x36b   : > { %v9371_v23 = vor.u32 %v11861_v20, %v9370_v18  ;;  %v9486_v20 = vld [vmem:[#allocation4 + $0x258] sm:$0xf0] }
 0x36c   : > { %2326 = vmatpush.bf16.msra.mxu1 %v9355_v27  ;;  %v9314_v27 = vld [vmem:[#allocation4 + $0x110] sm:$0xf] }
 0x36d   : > { %2120 = vmatpush.bf16.msra.mxu0 %v9271_v31  ;;  %2106 = vmatpush.bf16.msrb.mxu3 %v9207_v33  ;;  %v11869_v31 = vld [vmem:[#allocation4 + $0x1c4] sm:$0xf0] }
 0x36e   : > { %v9403_v33 = vor.u32 %v11869_v31, %v9402_v30  ;;  %v9316_v30 = vld [vmem:[#allocation4 + $0x118] sm:$0xf0]  ;;  %v9315_v31 = vor.u32 %v11847_v28, %v9314_v27  ;;  %v11904_v27 = vld [vmem:[#allocation4 + $0x2e4] sm:$0xf]  ;;  %v9558_v28 = vld [vmem:[#allocation4 + $0x2e8] sm:$0xf0] }
 0x370   : > { %2342 = vmatpush.bf16.msra.mxu2 %v9403_v33 }
 0x371   : > { %2121 = vmatpush.bf16.msra.mxu0 %v9263_v37  ;;  %2107 = vmatpush.bf16.msrb.mxu3 %v9199_v38  ;;  %v11855_v37 = vld [vmem:[#allocation4 + $0x154] sm:$0xf0]  ;;  %v11854_v38 = vld [vmem:[#allocation4 + $0x154] sm:$0xf] }
 0x372   : > { %v9347_v40 = vor.u32 %v11855_v37, %v9346_v36  ;;  %v11845_v36 = vld [vmem:[#allocation4 + $0x104] sm:$0xf0]  ;;  %v11844_v37 = vld [vmem:[#allocation4 + $0x104] sm:$0xf] }
 0x374   : > { %2327 = vmatpush.bf16.msra.mxu1 %v9347_v40  ;;  %2343 = vmatpush.bf16.msra.mxu2 %v9395_v46 }
 0x375   : > { %2122 = vmatpush.bf16.msra.mxu0 %v9255_v41  ;;  %2108 = vmatpush.bf16.msrb.mxu3 %v9191_v59  ;;  %v9348_v41 = vld [vmem:[#allocation4 + $0x158] sm:$0xf0]  ;;  %v9387_v59 = vor.u32 %v11865_v56, %v9386_v55  ;;  %v1717_v55 = vadd.f32 %v1716_v32, %v13959_v24 }
 0x376   : > { %v9351_v42 = vor.u32 %v11854_v38, %v9348_v41  ;;  %v1866_v38 = vld [vmem:[%s14391_s16] sm:$0x3]  ;;  %v9308_v41 = vld [vmem:[#allocation4 + $0x108] sm:$0xf0] }
 0x377   : > { %v9311_v43 = vor.u32 %v11844_v37, %v9308_v41  ;;  %v1869_v45 = vperm.slane %v1866_v38, 1  ;;  %v11891_v41 = vld [vmem:[#allocation4 + $0x274] sm:$0xf0] }
 0x378   : > { %2344 = vmatpush.bf16.msra.mxu2 %v9387_v59 }
 0x379   : > { %2123 = vmatpush.bf16.msra.mxu0 %v9247_v49  ;;  %2109 = vmatpush.bf16.msrb.mxu3 %v9183_v8  ;;  %v9338_v49 = vld [vmem:[#allocation4 + $0x140] sm:$0xf]  ;;  %v9379_v8 = vor.u32 %v11863_v5, %v9378_v4 }
 0x37a   : > { %v9339_v52 = vor.u32 %v11853_v50, %v9338_v49  ;;  %v1714_v49 = vadd.f32 %v13971_v58, %v13955_v14 }
 0x37c   : > { %2328 = vmatpush.bf16.msra.mxu1 %v9339_v52  ;;  %2345 = vmatpush.bf16.msra.mxu2 %v9379_v8 }
 0x37d   : > { %2367 = vmatpush.bf16.msrb.mxu0 %v9431_v53  ;;  %2353 = vmatpush.bf16.msra.mxu3 %v9367_v13  ;;  %v9340_v53 = vld [vmem:[#allocation4 + $0x148] sm:$0xf0]  ;;  %v9323_v13 = vor.u32 %v11849_v11, %v9322_v10  ;;  %v2130_v11 = vld [vmem:[%s14392_s7] sm:$0xff] }
 0x37e   : > { %v9343_v54 = vor.u32 %v11852_v51, %v9340_v53  ;;  %v1868_v53 = vperm.slane %v1866_v38, 0  ;;  %v9494_v10 = vld [vmem:[#allocation4 + $0x268] sm:$0xf0] }
 0x37f   : > { %v9497_v17 = vor.u32 %v11888_v9, %v9494_v10  ;;  %v11905_v9 = vld [vmem:[#allocation4 + $0x2e4] sm:$0xf0]  ;;  %v11896_v10 = vld [vmem:[#allocation4 + $0x2a4] sm:$0xf] }
 0x380   : > { %2329 = vmatpush.bf16.msra.mxu1 %v9331_v1  ;;  %2346 = vmatpush.bf16.msra.mxu2 %v9371_v23  ;;  %v11890_v1 = vld [vmem:[#allocation4 + $0x274] sm:$0xf] }
 0x381   : > { %2368 = vmatpush.bf16.msrb.mxu0 %v9423_v3  ;;  %2354 = vmatpush.bf16.msra.mxu3 %v9359_v29  ;;  %v9335_v3 = vor.u32 %v11850_v0, %v9332_v2  ;;  %v11846_v29 = vld [vmem:[#allocation4 + $0x114] sm:$0xf]  ;;  %v9502_v2 = vld [vmem:[#allocation4 + $0x278] sm:$0xf0] }
 0x382   : > { %v9319_v33 = vor.u32 %v11846_v29, %v9316_v30  ;;  %v9505_v7 = vor.u32 %v11890_v1, %v9502_v2  ;;  %v11884_v30 = vld [vmem:[#allocation4 + $0x244] sm:$0xf]  ;;  %v11887_v2 = vld [vmem:[#allocation4 + $0x254] sm:$0xf0] }
 0x384   : > { %2330 = vmatpush.bf16.msra.mxu1 %v9323_v13  ;;  %v9566_v13 = vld [vmem:[#allocation4 + $0x2f8] sm:$0xf0] }
 0x385   : > { %2369 = vmatpush.bf16.msrb.mxu0 %v9415_v21  ;;  %2355 = vmatpush.bf16.msra.mxu3 %v9351_v42  ;;  %v11860_v21 = vld [vmem:[#allocation4 + $0x184] sm:$0xf]  ;;  %v1737_v42 = vadd.f32 %v13969_v39, %v13957_v15 }
 0x386   : > { %v9375_v26 = vor.u32 %v11860_v21, %v9372_v22 }
 0x388   : > { %2331 = vmatpush.bf16.msra.mxu1 %v9315_v31  ;;  %v9478_v31 = vld [vmem:[#allocation4 + $0x248] sm:$0xf0] }
 0x389   : > { %2370 = vmatpush.bf16.msrb.mxu0 %v9407_v35  ;;  %2356 = vmatpush.bf16.msra.mxu3 %v9343_v54  ;;  %v9306_v35 = vld [vmem:[#allocation4 + $0x100] sm:$0xf]  ;;  %v9481_v38 = vor.u32 %v11884_v30, %v9478_v31  ;;  %v9468_v31 = vld [vmem:[#allocation4 + $0x230] sm:$0xf] }
 0x38a   : > { %v9307_v40 = vor.u32 %v11845_v36, %v9306_v35  ;;  %v11902_v35 = vld [vmem:[#allocation4 + $0x2d4] sm:$0xf]  ;;  %v9550_v36 = vld [vmem:[#allocation4 + $0x2d8] sm:$0xf0] }
 0x38c   : > { %2332 = vmatpush.bf16.msra.mxu1 %v9307_v40  ;;  %v9500_v40 = vld [vmem:[#allocation4 + $0x270] sm:$0xf] }
 0x38d   : > { %2371 = vmatpush.bf16.msrb.mxu0 %v9399_v48  ;;  %2357 = vmatpush.bf16.msra.mxu3 %v9335_v3 }
 0x391   : > { %2372 = vmatpush.bf16.msrb.mxu0 %v9391_v61  ;;  %2358 = vmatpush.bf16.msra.mxu3 %v9327_v19  ;;  %v11886_v19 = vld [vmem:[#allocation4 + $0x254] sm:$0xf] }
 0x392   : > { %v9489_v29 = vor.u32 %v11886_v19, %v9486_v20  ;;  %v9446_v19 = vld [vmem:[#allocation4 + $0x208] sm:$0xf0] }
 0x395   : > { %2373 = vmatpush.bf16.msrb.mxu0 %v9383_v12  ;;  %2359 = vmatpush.bf16.msra.mxu3 %v9319_v33  ;;  %v11906_v12 = vld [vmem:[#allocation4 + $0x2f4] sm:$0xf]  ;;  %v9561_v33 = vor.u32 %v11904_v27, %v9558_v28  ;;  %v9518_v28 = vld [vmem:[#allocation4 + $0x298] sm:$0xf0] }
 0x396   : > { %v9569_v23 = vor.u32 %v11906_v12, %v9566_v13  ;;  %v11894_v27 = vld [vmem:[#allocation4 + $0x294] sm:$0xf] }
 0x399   : > { %2374 = vmatpush.bf16.msrb.mxu0 %v9375_v26  ;;  %2360 = vmatpush.bf16.msra.mxu3 %v9311_v43  ;;  %v9470_v43 = vld [vmem:[#allocation4 + $0x238] sm:$0xf0] }
 0x3d9   : > { %v1856_v34 = vpop.f32.mrf.mxu0 }
 0x3da   : > { %v1863_v44 = vadd.f32 %v1856_v34, %v1737_v42  ;;  %v2131_v34 = vld [vmem:[%s14392_s7 + $0x8] sm:$0xff]  ;;  %v11882_v42 = vld [vmem:[#allocation4 + $0x234] sm:$0xf] }
 0x3dc   : > { %v1873_v50 = vadd.f32 %v1869_v45, %v1863_v44 }
 0x3de   : > { %v1877_v15 = vmax.f32 %v1873_v50, 0.0  ;;  %v9501_v50 = vor.u32 %v11891_v41, %v9500_v40  ;;  %v9460_v41 = vld [vmem:[#allocation4 + $0x220] sm:$0xf] }
 0x3df   : > { %v1833_v46 = vpop.f32.mrf.mxu3 }
 0x3e0   : > { %v1862_v52 = vadd.f32 %v1833_v46, %v1714_v49  ;;  %v9553_v46 = vor.u32 %v11902_v35, %v9550_v36  ;;  %v9542_v49 = vld [vmem:[#allocation4 + $0x2c8] sm:$0xf0]  ;;  %v9540_v35 = vld [vmem:[#allocation4 + $0x2c0] sm:$0xf]  ;;  %v11901_v36 = vld [vmem:[#allocation4 + $0x2c4] sm:$0xf0] }
 0x3e1   : > { %v1859_v48 = vpop.f32.mrf.mxu0 }
 0x3e2   : > { %v1865_v51 = vadd.f32 %v1859_v48, %v1740_v47  ;;  %v1872_v57 = vadd.f32 %v1868_v53, %v1862_v52  ;;  %v11900_v48 = vld [vmem:[#allocation4 + $0x2c4] sm:$0xf]  ;;  %v9492_v52 = vld [vmem:[#allocation4 + $0x260] sm:$0xf] }
 0x3e4   : > { %v1875_v54 = vadd.f32 %v1869_v45, %v1865_v51  ;;  %v1876_v14 = vmax.f32 %v1872_v57, 0.0  ;;  %v9473_v51 = vor.u32 %v11882_v42, %v9470_v43  ;;  %v9432_v57 = vld [vmem:[%s14392_s7 + $0x10] sm:$0xff]  ;;  %v11881_v42 = vld [vmem:[#allocation4 + $0x224] sm:$0xf0]  ;;  %v9541_v43 = vor.u32 %v11901_v36, %v9540_v35 }
 0x3e5   : > { %v2913_v35 = vld [vmem:[#allocation9 + $0x60] sm:$0xff] }
 0x3e6   : > { %v1879_v39 = vmax.f32 %v1875_v54, 0.0  ;;  %v11889_v54 = vld [vmem:[#allocation4 + $0x264] sm:$0xf0] }
 0x3e7   : > { %v1836_v56 = vpop.f32.mrf.mxu3 }
 0x3e8   : > { %v13980_v59 = vpack.c.bf16 %v1879_v39, %v1877_v15  ;;  %v1864_v60 = vadd.f32 %v1836_v56, %v1717_v55  ;;  %v11880_v55 = vld [vmem:[#allocation4 + $0x224] sm:$0xf]  ;;  %v9462_v15 = vld [vmem:[#allocation4 + $0x228] sm:$0xf0]  ;;  %v9545_v39 = vor.u32 %v11900_v48, %v9542_v49  ;;  %v9564_v56 = vld [vmem:[#allocation4 + $0x2f0] sm:$0xf] }
 0x3e9   : > { %v9452_v48 = vld [vmem:[#allocation4 + $0x210] sm:$0xf]  ;;  %v11879_v49 = vld [vmem:[#allocation4 + $0x214] sm:$0xf0] }
 0x3ea   : > { %v1874_v61 = vadd.f32 %v1868_v53, %v1864_v60  ;;  %2096 = vmatmul.bf16.vlgmr.msrb.gmra.mxu2 %v13980_v59  ;;  %2124 = vmatmul.bf16.vlgmr.msra.gmra.mxu0 %v13980_v59  ;;  %v11907_v60 = vld [vmem:[#allocation4 + $0x2f4] sm:$0xf0] }
 0x3ec   : > { %v1878_v25 = vmax.f32 %v1874_v61, 0.0  ;;  %v11898_v61 = vld [vmem:[#allocation4 + $0x2b4] sm:$0xf] }
 0x3ee   : > { %v13984_v58 = vpack.c.bf16 %v1878_v25, %v1876_v14  ;;  %v9534_v14 = vld [vmem:[#allocation4 + $0x2b8] sm:$0xf0] }
 0x3f0   : > { %2082 = vmatmul.bf16.vlgmr.msrb.gmra.mxu1 %v13984_v58  ;;  %2110 = vmatmul.bf16.vlgmr.msrb.gmra.mxu3 %v13984_v58 }
 0x3fa   : > { %2347 = vmatmul.bf16.vlgmr.msra.gmra.mxu2 %v13980_v59  ;;  %2375 = vmatmul.bf16.vlgmr.msrb.gmra.mxu0 %v13980_v59 }
 0x400   : > { %2333 = vmatmul.bf16.vlgmr.msra.gmra.mxu1 %v13984_v58  ;;  %2361 = vmatmul.bf16.vlgmr.msra.gmra.mxu3 %v13984_v58 }
 0x467   : > { %v2125_v24 = vpop.f32.mrf.mxu0 }
 0x46d   : > { %v2083_v62 = vpop.f32.mrf.mxu1  ;;  %v2097_v63 = vpop.f32.mrf.mxu2 }
 0x46e   : > { %v2098_v8 = vadd.f32 %v2097_v63, %v2083_v62  ;;  %v9493_v62 = vor.u32 %v11889_v54, %v9492_v52  ;;  %v9465_v63 = vor.u32 %v11880_v55, %v9462_v15  ;;  %v11897_v52 = vld [vmem:[#allocation4 + $0x2a4] sm:$0xf0]  ;;  %v9444_v54 = vld [vmem:[#allocation4 + $0x200] sm:$0xf] }
 0x46f   : > { %v2127_v6 = vpop.f32.mrf.mxu0  ;;  %v11877_v55 = vld [vmem:[#allocation4 + $0x204] sm:$0xf0] }
 0x473   : > { %v2111_v0 = vpop.f32.mrf.mxu3 }
 0x474   : > { %v2126_v26 = vadd.f32 %v2125_v24, %v2111_v0  ;;  %v9484_v0 = vld [vmem:[#allocation4 + $0x250] sm:$0xf] }
 0x475   : > { %v2085_v3 = vpop.f32.mrf.mxu1  ;;  %v2099_v4 = vpop.f32.mrf.mxu2  ;;  %v9485_v12 = vor.u32 %v11887_v2, %v9484_v0 }
 0x476   : > { %v2100_v5 = vadd.f32 %v2099_v4, %v2085_v3  ;;  %v11878_v3 = vld [vmem:[#allocation4 + $0x214] sm:$0xf]  ;;  %v9454_v4 = vld [vmem:[#allocation4 + $0x218] sm:$0xf0] }
 0x477   : > { %v2376_v32 = vpop.f32.mrf.mxu0  ;;  %v9457_v13 = vor.u32 %v11878_v3, %v9454_v4 }
 0x478   : > { %2456 = vmatpush.msrb.mxu3 %v2100_v5  ;;  %v9565_v5 = vor.u32 %v11907_v60, %v9564_v56  ;;  %v11895_v56 = vld [vmem:[#allocation4 + $0x294] sm:$0xf0] }
 0x47a   : > { %2457 = vmatpush.msrb.mxu3 %v2098_v8 }
 0x47b   : > { %v2113_v16 = vpop.f32.mrf.mxu3  ;;  %9438 = vmatmul.msk.f32.vlgmr.msrb.gmra.mxu3 %vm1637_vm1, %v2130_v11 }
 0x47c   : > { %2709 = vmatpush.bf16.msra.mxu3 %v9505_v7  ;;  %v2128_v18 = vadd.f32 %v2127_v6, %v2113_v16  ;;  %v9537_v6 = vor.u32 %v11898_v61, %v9534_v14  ;;  %v9556_v7 = vld [vmem:[#allocation4 + $0x2e0] sm:$0xf]  ;;  %v11893_v14 = vld [vmem:[#allocation4 + $0x284] sm:$0xf0] }
 0x47d   : > { %v2334_v21 = vpop.f32.mrf.mxu1  ;;  %v2348_v22 = vpop.f32.mrf.mxu2  ;;  %v9476_v16 = vld [vmem:[#allocation4 + $0x240] sm:$0xf]  ;;  %v9557_v20 = vor.u32 %v11905_v9, %v9556_v7 }
 0x47e   : > { %2479 = vmatpush.msra.mxu0 %v2128_v18  ;;  %v2349_v53 = vadd.f32 %v2348_v22, %v2334_v21  ;;  %v11876_v18 = vld [vmem:[#allocation4 + $0x204] sm:$0xf]  ;;  %v9548_v22 = vld [vmem:[#allocation4 + $0x2d0] sm:$0xf]  ;;  %v9508_v61 = vld [vmem:[#allocation4 + $0x280] sm:$0xf] }
 0x47f   : > { %v2378_v25 = vpop.f32.mrf.mxu0  ;;  %v9449_v30 = vor.u32 %v11876_v18, %v9446_v19 }
 0x480   : > { %2710 = vmatpush.bf16.msra.mxu3 %v9497_v17  ;;  %2480 = vmatpush.msra.mxu0 %v2126_v26  ;;  %v11885_v17 = vld [vmem:[#allocation4 + $0x244] sm:$0xf0]  ;;  %v11903_v26 = vld [vmem:[#allocation4 + $0x2d4] sm:$0xf0] }
 0x481   : > { %9440 = vmatmul.msk.f32.vlgmr.msra.gmra.mxu0 %vm1637_vm1, %v2130_v11  ;;  %v9526_v11 = vld [vmem:[#allocation4 + $0x2a8] sm:$0xf0] }
 0x482   : > { %2723 = vmatpush.bf16.msrb.mxu0 %v9569_v23  ;;  %v9529_v21 = vor.u32 %v11896_v10, %v9526_v11  ;;  %v9433_v23 = vld [vmem:[%s14392_s7 + $0x18] sm:$0xff]  ;;  %v9571_v11 = vld [vmem:[%s14392_s7 + $0x28] sm:$0xff] }
 0x483   : > { %v2362_v37 = vpop.f32.mrf.mxu3  ;;  %9439 = vmatmul.msk.f32.gmra.mxu3 %vm1637_vm1, %v2131_v34 }
 0x484   : > { %2711 = vmatpush.bf16.msra.mxu3 %v9489_v29  ;;  %v2377_v8 = vadd.f32 %v2376_v32, %v2362_v37  ;;  %v9477_v29 = vor.u32 %v11885_v17, %v9476_v16  ;;  %v11883_v32 = vld [vmem:[#allocation4 + $0x234] sm:$0xf0]  ;;  %v11892_v37 = vld [vmem:[#allocation4 + $0x284] sm:$0xf] }
 0x485   : > { %v2336_v44 = vpop.f32.mrf.mxu1  ;;  %v2350_v45 = vpop.f32.mrf.mxu2  ;;  %v9469_v40 = vor.u32 %v11883_v32, %v9468_v31 }
 0x486   : > { %2724 = vmatpush.bf16.msrb.mxu0 %v9561_v33  ;;  %v2351_v47 = vadd.f32 %v2350_v45, %v2336_v44  ;;  %v9549_v33 = vor.u32 %v11903_v26, %v9548_v22  ;;  %v9532_v45 = vld [vmem:[#allocation4 + $0x2b0] sm:$0xf] }
 0x488   : > { %2712 = vmatpush.bf16.msra.mxu3 %v9481_v38  ;;  %2404 = vmatpush.msrb.mxu1 %v2351_v47  ;;  %v9510_v38 = vld [vmem:[#allocation4 + $0x288] sm:$0xf0]  ;;  %v9461_v47 = vor.u32 %v11881_v42, %v9460_v41  ;;  %v2911_v42 = vld [vmem:[#allocation9 + $0x50] sm:$0xff] }
 0x489   : > { %9441 = vmatmul.msk.f32.gmra.mxu0 %vm1637_vm1, %v2131_v34  ;;  %v9521_v34 = vor.u32 %v11894_v27, %v9518_v28  ;;  %v9513_v44 = vor.u32 %v11892_v37, %v9510_v38  ;;  %v2912_v38 = vld [vmem:[#allocation9 + $0x58] sm:$0xff] }
 0x48a   : > { %2725 = vmatpush.bf16.msrb.mxu0 %v9553_v46  ;;  %2405 = vmatpush.msrb.mxu1 %v2349_v53  ;;  %v11899_v46 = vld [vmem:[#allocation4 + $0x2b4] sm:$0xf0]  ;;  %v9453_v53 = vor.u32 %v11879_v49, %v9452_v48  ;;  %v2855_v41 = vld [vmem:[#allocation7 + $0x8] sm:$0xff] }
 0x48b   : > { %v2364_v24 = vpop.f32.mrf.mxu3  ;;  %9434 = vmatmul.msk.f32.vlgmr.msrb.gmra.mxu1 %vm1637_vm1, %v9432_v57  ;;  %v3002_v48 = vld [vmem:[#allocation9 + $0x1e0] sm:$0xff] }
 0x48c   : > { %2681 = vmatpush.bf16.msra.mxu1 %v9501_v50  ;;  %2713 = vmatpush.bf16.msra.mxu3 %v9473_v51  ;;  %v2379_v1 = vadd.f32 %v2378_v25, %v2364_v24  ;;  %v9533_v50 = vor.u32 %v11899_v46, %v9532_v45  ;;  %v9524_v51 = vld [vmem:[#allocation4 + $0x2a0] sm:$0xf]  ;;  %v9509_v25 = vor.u32 %v11893_v14, %v9508_v61 }
 0x48d   : > { %v9525_v15 = vor.u32 %v11897_v52, %v9524_v51  ;;  %v3003_v45 = vld [vmem:[#allocation9 + $0x1e8] sm:$0xff] }
 0x48e   : > { %2726 = vmatpush.bf16.msrb.mxu0 %v9545_v39  ;;  %2427 = vmatpush.msrb.mxu2 %v2379_v1  ;;  %v9516_v39 = vld [vmem:[#allocation4 + $0x290] sm:$0xf]  ;;  %v2906_v61 = vld [vmem:[#allocation9 + $0x28] sm:$0xff] }
 0x48f   : > { %v9517_v60 = vor.u32 %v11895_v56, %v9516_v39  ;;  %v3000_v39 = vld [vmem:[#allocation9 + $0x1d0] sm:$0xff]  ;;  %v2999_v14 = vld [vmem:[#allocation9 + $0x1c8] sm:$0xff] }
 0x490   : > { %2682 = vmatpush.bf16.msra.mxu1 %v9493_v62  ;;  %2714 = vmatpush.bf16.msra.mxu3 %v9465_v63 }
 0x491   : > { %2428 = vmatpush.msrb.mxu2 %v2377_v8 }
 0x492   : > { %2727 = vmatpush.bf16.msrb.mxu0 %v9537_v6  ;;  %9436 = vmatmul.msk.f32.vlgmr.msrb.gmra.mxu2 %vm1637_vm1, %v9432_v57  ;;  %v9445_v57 = vor.u32 %v11877_v55, %v9444_v54  ;;  %v3001_v54 = vld [vmem:[#allocation9 + $0x1d8] sm:$0xff] }
 0x493   : > { %2695 = vmatpush.bf16.msra.mxu2 %v9565_v5  ;;  %9435 = vmatmul.msk.f32.gmra.mxu1 %vm1637_vm1, %v9433_v23 }
 0x494   : > { %2683 = vmatpush.bf16.msra.mxu1 %v9485_v12  ;;  %2715 = vmatpush.bf16.msra.mxu3 %v9457_v13 }
 0x496   : > { %2728 = vmatpush.bf16.msrb.mxu0 %v9529_v21  ;;  %v2796_v21 = vld [vmem:[#allocation6] sm:$0x3] }
 0x497   : > { %2696 = vmatpush.bf16.msra.mxu2 %v9557_v20  ;;  %v2799_v26 = vperm.slane %v2796_v21, 1  ;;  %v2798_v51 = vperm.slane %v2796_v21, 0  ;;  %v2925_v21 = vld [vmem:[#allocation9 + $0xc0] sm:$0xff] }
 0x498   : > { %2684 = vmatpush.bf16.msra.mxu1 %v9477_v29  ;;  %2716 = vmatpush.bf16.msra.mxu3 %v9449_v30  ;;  %v2916_v29 = vld [vmem:[#allocation9 + $0x78] sm:$0xff]  ;;  %v2915_v30 = vld [vmem:[#allocation9 + $0x70] sm:$0xff] }
 0x49a   : > { %2729 = vmatpush.bf16.msrb.mxu0 %v9521_v34  ;;  %9437 = vmatmul.msk.f32.gmra.mxu2 %vm1637_vm1, %v9433_v23 }
 0x49b   : > { %2697 = vmatpush.bf16.msra.mxu2 %v9549_v33  ;;  %2717 = vmatmul.bf16.vlgmr.msra.gmra.mxu3 %v13984_v58  ;;  %v2914_v33 = vld [vmem:[#allocation9 + $0x68] sm:$0xff] }
 0x49c   : > { %2685 = vmatpush.bf16.msra.mxu1 %v9469_v40  ;;  %v3005_v40 = vld [vmem:[#allocation9 + $0x1f8] sm:$0xff] }
 0x49e   : > { %2730 = vmatpush.bf16.msrb.mxu0 %v9513_v44  ;;  %v2910_v44 = vld [vmem:[#allocation9 + $0x48] sm:$0xff] }
 0x49f   : > { %2698 = vmatpush.bf16.msra.mxu2 %v9541_v43  ;;  %v3004_v43 = vld [vmem:[#allocation9 + $0x1f0] sm:$0xff] }
 0x4a0   : > { %2686 = vmatpush.bf16.msra.mxu1 %v9461_v47  ;;  %v2909_v47 = vld [vmem:[#allocation9 + $0x40] sm:$0xff] }
 0x4a1   : > { %2731 = vmatmul.bf16.vlgmr.msrb.gmra.mxu0 %v13980_v59 }
 0x4a3   : > { %2699 = vmatpush.bf16.msra.mxu2 %v9533_v50 }
 0x4a4   : > { %2687 = vmatpush.bf16.msra.mxu1 %v9453_v53  ;;  %v2908_v53 = vld [vmem:[#allocation9 + $0x38] sm:$0xff] }
 0x4a7   : > { %2700 = vmatpush.bf16.msra.mxu2 %v9525_v15  ;;  %v2907_v15 = vld [vmem:[#allocation9 + $0x30] sm:$0xff] }
 0x4a8   : > { %2688 = vmatpush.bf16.msra.mxu1 %v9445_v57 }
 0x4ab   : > { %2701 = vmatpush.bf16.msra.mxu2 %v9517_v60  ;;  %2689 = vmatmul.bf16.vlgmr.msra.gmra.mxu1 %v13984_v58 }
 0x4af   : > { %2702 = vmatpush.bf16.msra.mxu2 %v9509_v25 }
 0x4b2   : > { %2703 = vmatmul.bf16.vlgmr.msra.gmra.mxu2 %v13980_v59  ;;  %v9570_v59 = vld [vmem:[%s14392_s7 + $0x20] sm:$0xff] }
 0x4fe   : > { %v14008_v24 = vpop.f32.mrf.mxu3  ;;  %v2482_v62 = vpop.f32.mrf.mxu0 }
 0x506   : > { %v14010_v63 = vpop.f32.mrf.mxu3  ;;  %v2485_v0 = vpop.f32.mrf.mxu0 }
 0x508   : > { %v2407_v2 = vpop.f32.mrf.mxu1 }
 0x509   : > { %v2460_v46 = vadd.f32 %v14008_v24, %v2407_v2  ;;  %v2810_v24 = vld [vmem:[#allocation7] sm:$0xff]  ;;  %v2932_v2 = vld [vmem:[#allocation9 + $0xf8] sm:$0xff] }
 0x510   : > { %v2410_v9 = vpop.f32.mrf.mxu1 }
 0x511   : > { %v2463_v49 = vadd.f32 %v14010_v63, %v2410_v9  ;;  %v2905_v63 = vld [vmem:[#allocation9 + $0x20] sm:$0xff]  ;;  %v2985_v9 = vld [vmem:[#allocation9 + $0x158] sm:$0xff] }
 0x515   : > { %v2430_v1 = vpop.f32.mrf.mxu2 }
 0x516   : > { %v2483_v22 = vadd.f32 %v2482_v62, %v2430_v1  ;;  %v2989_v62 = vld [vmem:[#allocation9 + $0x178] sm:$0xff]  ;;  %v2988_v1 = vld [vmem:[#allocation9 + $0x170] sm:$0xff] }
 0x51d   : > { %v2433_v5 = vpop.f32.mrf.mxu2 }
 0x51e   : > { %v2718_v3 = vpop.f32.mrf.mxu3  ;;  %v2732_v4 = vpop.f32.mrf.mxu0  ;;  %v2486_v6 = vadd.f32 %v2485_v0, %v2433_v5  ;;  %v2998_v0 = vld [vmem:[#allocation9 + $0x1c0] sm:$0xff]  ;;  %v2997_v5 = vld [vmem:[#allocation9 + $0x1b8] sm:$0xff] }
 0x51f   : > { %v2733_v10 = vadd.f32 %v2732_v4, %v2718_v3  ;;  %v2904_v3 = vld [vmem:[#allocation9 + $0x18] sm:$0xff]  ;;  %v2987_v4 = vld [vmem:[#allocation9 + $0x168] sm:$0xff] }
 0x526   : > { %v2720_v7 = vpop.f32.mrf.mxu3  ;;  %v2734_v8 = vpop.f32.mrf.mxu0 }
 0x527   : > { %v2735_v58 = vadd.f32 %v2734_v8, %v2720_v7  ;;  %v2903_v7 = vld [vmem:[#allocation9 + $0x10] sm:$0xff]  ;;  %v2986_v8 = vld [vmem:[#allocation9 + $0x160] sm:$0xff] }
 0x528   : > { %v2690_v12 = vpop.f32.mrf.mxu1 }
 0x529   : > { %2783 = vmatpush.msrb.mxu2 %v2735_v58  ;;  %v2996_v58 = vld [vmem:[#allocation9 + $0x1b0] sm:$0xff] }
 0x52b   : > { %2784 = vmatpush.msrb.mxu2 %v2733_v10  ;;  %v2930_v10 = vld [vmem:[#allocation9 + $0xe8] sm:$0xff] }
 0x52c   : > { %9574 = vmatmul.msk.f32.vlgmr.msrb.gmra.mxu2 %vm1637_vm1, %v9570_v59 }
 0x52d   : > { %2933 = vmatpush.msra.mxu2 %v2916_v29  ;;  %v2976_v29 = vld [vmem:[#allocation9 + $0x110] sm:$0xff] }
 0x52f   : > { %2934 = vmatpush.msra.mxu2 %v2915_v30  ;;  %v2902_v30 = vld [vmem:[#allocation9 + $0x8] sm:$0xff] }
 0x530   : > { %v2692_v16 = vpop.f32.mrf.mxu1 }
 0x531   : > { %2935 = vmatpush.msra.mxu2 %v2914_v33  ;;  %v2995_v33 = vld [vmem:[#allocation9 + $0x1a8] sm:$0xff] }
 0x533   : > { %2936 = vmatpush.msra.mxu2 %v2913_v35  ;;  %v2921_v35 = vld [vmem:[#allocation9 + $0xa0] sm:$0xff] }
 0x534   : > { %9575 = vmatmul.msk.f32.gmra.mxu2 %vm1637_vm1, %v9571_v11 }
 0x535   : > { %v2704_v13 = vpop.f32.mrf.mxu2  ;;  %2937 = vmatpush.msra.mxu2 %v2912_v38  ;;  %v2920_v38 = vld [vmem:[#allocation9 + $0x98] sm:$0xff] }
 0x536   : > { %v2705_v19 = vadd.f32 %v2704_v13, %v2690_v12  ;;  %v2983_v12 = vld [vmem:[#allocation9 + $0x148] sm:$0xff]  ;;  %v2928_v13 = vld [vmem:[#allocation9 + $0xd8] sm:$0xff] }
 0x537   : > { %2938 = vmatpush.msra.mxu2 %v2911_v42  ;;  %v2992_v42 = vld [vmem:[#allocation9 + $0x190] sm:$0xff] }
 0x539   : > { %2939 = vmatpush.msra.mxu2 %v2910_v44  ;;  %v2991_v44 = vld [vmem:[#allocation9 + $0x188] sm:$0xff] }
 0x53b   : > { %2940 = vmatpush.msra.mxu2 %v2909_v47  ;;  %v11938_v47 = vld [vmem:[#allocation10 + $0xf4] sm:$0xf] }
 0x53d   : > { %v2706_v17 = vpop.f32.mrf.mxu2  ;;  %2941 = vmatpush.msra.mxu2 %v2908_v53  ;;  %v9638_v53 = vld [vmem:[#allocation10 + $0x70] sm:$0xf] }
 0x53e   : > { %v2707_v18 = vadd.f32 %v2706_v17, %v2692_v16  ;;  %v2982_v16 = vld [vmem:[#allocation9 + $0x140] sm:$0xff]  ;;  %v2927_v17 = vld [vmem:[#allocation9 + $0xd0] sm:$0xff] }
 0x53f   : > { %2942 = vmatpush.msra.mxu2 %v2907_v15  ;;  %v11922_v15 = vld [vmem:[#allocation10 + $0x74] sm:$0xf] }
 0x540   : > { %2760 = vmatpush.msrb.mxu1 %v2707_v18  ;;  %v2981_v18 = vld [vmem:[#allocation9 + $0x138] sm:$0xff] }
 0x541   : > { %2943 = vmatpush.msra.mxu2 %v2906_v61  ;;  %v9702_v61 = vld [vmem:[#allocation10 + $0xf0] sm:$0xf] }
 0x542   : > { %2761 = vmatpush.msrb.mxu1 %v2705_v19  ;;  %v2926_v19 = vld [vmem:[#allocation9 + $0xc8] sm:$0xff] }
 0x543   : > { %9572 = vmatmul.msk.f32.vlgmr.msrb.gmra.mxu1 %vm1637_vm1, %v9570_v59  ;;  %2944 = vmatpush.msra.mxu2 %v2905_v63  ;;  %v2984_v59 = vld [vmem:[#allocation9 + $0x150] sm:$0xff] }
 0x545   : > { %2945 = vmatpush.msra.mxu2 %v2904_v3 }
 0x547   : > { %2946 = vmatpush.msra.mxu2 %v2903_v7  ;;  %v11937_v7 = vld [vmem:[#allocation10 + $0xe4] sm:$0xf0] }
 0x549   : > { %2947 = vmatpush.msra.mxu2 %v2902_v30 }
 0x54b   : > { %9573 = vmatmul.msk.f32.gmra.mxu1 %vm1637_vm1, %v9571_v11  ;;  %v2929_v11 = vld [vmem:[#allocation9 + $0xe0] sm:$0xff] }
 0x5af   : > { %v2786_v20 = vpop.f32.mrf.mxu2 }
 0x5b0   : > { %v2793_v23 = vadd.f32 %v2786_v20, %v2483_v22  ;;  %v2980_v20 = vld [vmem:[#allocation9 + $0x130] sm:$0xff]  ;;  %v2979_v22 = vld [vmem:[#allocation9 + $0x128] sm:$0xff] }
 0x5b2   : > { %v14018_v31 = vadd.f32 %v2799_v26, %v2793_v23  ;;  %v2924_v23 = vld [vmem:[#allocation9 + $0xb8] sm:$0xff] }
 0x5b4   : > { %v2807_v36 = vmax.f32 %v14018_v31, 0.0  ;;  %v2922_v31 = vld [vmem:[#allocation9 + $0xa8] sm:$0xff] }
 0x5b7   : > { %v2789_v27 = vpop.f32.mrf.mxu2 }
 0x5b8   : > { %v2795_v28 = vadd.f32 %v2789_v27, %v2486_v6  ;;  %v2931_v6 = vld [vmem:[#allocation9 + $0xf0] sm:$0xff] }
 0x5b9   : > { %v2923_v27 = vld [vmem:[#allocation9 + $0xb0] sm:$0xff] }
 0x5ba   : > { %v14020_v32 = vadd.f32 %v2799_v26, %v2795_v28  ;;  %v2978_v26 = vld [vmem:[#allocation9 + $0x120] sm:$0xff]  ;;  %v2977_v28 = vld [vmem:[#allocation9 + $0x118] sm:$0xff] }
 0x5bc   : > { %v2809_v34 = vmax.f32 %v14020_v32, 0.0  ;;  %v2975_v32 = vld [vmem:[#allocation9 + $0x108] sm:$0xff] }
 0x5be   : > { %2893 = vmatpush.msra.mxu1 %v2809_v34 }
 0x5c0   : > { %v2763_v37 = vpop.f32.mrf.mxu1  ;;  %2894 = vmatpush.msra.mxu1 %v2807_v36 }
 0x5c1   : > { %9579 = vmatmul.msk.f32.vlgmr.msra.gmra.mxu1 %vm1637_vm1, %v2855_v41  ;;  %v2792_v50 = vadd.f32 %v2763_v37, %v2460_v46  ;;  %v2994_v37 = vld [vmem:[#allocation9 + $0x1a0] sm:$0xff] }
 0x5c2   : > { %3026 = vmatpush.msrb.mxu1 %v3005_v40  ;;  %v2993_v40 = vld [vmem:[#allocation9 + $0x198] sm:$0xff]  ;;  %v2990_v46 = vld [vmem:[#allocation9 + $0x180] sm:$0xff] }
 0x5c3   : > { %v2802_v56 = vadd.f32 %v2798_v51, %v2792_v50 }
 0x5c4   : > { %3027 = vmatpush.msrb.mxu1 %v3004_v43  ;;  %v2918_v43 = vld [vmem:[#allocation9 + $0x88] sm:$0xff] }
 0x5c5   : > { %v2806_v25 = vmax.f32 %v2802_v56, 0.0  ;;  %v9688_v56 = vld [vmem:[#allocation10 + $0xd8] sm:$0xf0] }
 0x5c6   : > { %3028 = vmatpush.msrb.mxu1 %v3003_v45  ;;  %v2917_v45 = vld [vmem:[#allocation9 + $0x80] sm:$0xff] }
 0x5c8   : > { %v2766_v52 = vpop.f32.mrf.mxu1  ;;  %3029 = vmatpush.msrb.mxu1 %v3002_v48  ;;  %v9704_v48 = vld [vmem:[#allocation10 + $0xf8] sm:$0xf0] }
 0x5c9   : > { %v2794_v55 = vadd.f32 %v2766_v52, %v2463_v49  ;;  %v11936_v49 = vld [vmem:[#allocation10 + $0xe4] sm:$0xf]  ;;  %v9707_v50 = vor.u32 %v11938_v47, %v9704_v48  ;;  %v11934_v52 = vld [vmem:[#allocation10 + $0xd4] sm:$0xf]  ;;  %v9648_v47 = vld [vmem:[#allocation10 + $0x88] sm:$0xf0] }
 0x5ca   : > { %3030 = vmatpush.msrb.mxu1 %v3001_v54  ;;  %v9691_v3 = vor.u32 %v11934_v52, %v9688_v56  ;;  %v9771_v56 = vld [vmem:[#allocation10 + $0x170] sm:$0xf] }
 0x5cb   : > { %v2804_v57 = vadd.f32 %v2798_v51, %v2794_v55  ;;  %v9696_v51 = vld [vmem:[#allocation10 + $0xe8] sm:$0xf0]  ;;  %v11923_v55 = vld [vmem:[#allocation10 + $0x74] sm:$0xf0] }
 0x5cc   : > { %3031 = vmatpush.msrb.mxu1 %v3000_v39  ;;  %v9699_v54 = vor.u32 %v11936_v49, %v9696_v51  ;;  %v9640_v39 = vld [vmem:[#allocation10 + $0x78] sm:$0xf0]  ;;  %v9606_v49 = vld [vmem:[#allocation10 + $0x30] sm:$0xf]  ;;  %v11914_v51 = vld [vmem:[#allocation10 + $0x34] sm:$0xf] }
 0x5cd   : > { %v2808_v60 = vmax.f32 %v2804_v57, 0.0  ;;  %v9639_v57 = vor.u32 %v11923_v55, %v9638_v53  ;;  %v9608_v53 = vld [vmem:[#allocation10 + $0x38] sm:$0xf0]  ;;  %v11931_v55 = vld [vmem:[#allocation10 + $0xb4] sm:$0xf0] }
 0x5ce   : > { %3032 = vmatpush.msrb.mxu1 %v2999_v14  ;;  %v11939_v14 = vld [vmem:[#allocation10 + $0xf4] sm:$0xf0] }
 0x5cf   : > { %2828 = vmatpush.msrb.mxu3 %v2808_v60  ;;  %2873 = vmatpush.msra.mxu0 %v2808_v60  ;;  %v9643_v60 = vor.u32 %v11922_v15, %v9640_v39  ;;  %v9611_v15 = vor.u32 %v11914_v51, %v9608_v53  ;;  %v11954_v53 = vld [vmem:[#allocation10 + $0x174] sm:$0xf] }
 0x5d0   : > { %3033 = vmatpush.msrb.mxu1 %v2998_v0  ;;  %v11920_v0 = vld [vmem:[#allocation10 + $0x64] sm:$0xf] }
 0x5d1   : > { %2829 = vmatpush.msrb.mxu3 %v2806_v25  ;;  %2874 = vmatpush.msra.mxu0 %v2806_v25  ;;  %v9703_v25 = vor.u32 %v11939_v14, %v9702_v61  ;;  %v9598_v61 = vld [vmem:[#allocation10 + $0x20] sm:$0xf]  ;;  %v11913_v14 = vld [vmem:[#allocation10 + $0x24] sm:$0xf0] }
 0x5d2   : > { %9576 = vmatmul.msk.f32.vlgmr.msrb.gmra.mxu3 %vm1637_vm1, %v2810_v24  ;;  %9578 = vmatmul.msk.f32.vlgmr.msra.gmra.mxu0 %vm1637_vm1, %v2855_v41  ;;  %v2919_v41 = vld [vmem:[#allocation9 + $0x90] sm:$0xff] }
 0x5d3   : > { %2848 = vmatpush.msra.mxu3 %v2809_v34  ;;  %3006 = vmatpush.msrb.mxu0 %v2989_v62  ;;  %v2901_v34 = vld [vmem:[#allocation9] sm:$0xff]  ;;  %v11921_v62 = vld [vmem:[#allocation10 + $0x64] sm:$0xf0] }
 0x5d4   : > { %3034 = vmatpush.msrb.mxu1 %v2997_v5  ;;  %2948 = vmatpush.msra.mxu2 %v2901_v34  ;;  %v9680_v5 = vld [vmem:[#allocation10 + $0xc8] sm:$0xf0]  ;;  %v9656_v34 = vld [vmem:[#allocation10 + $0x98] sm:$0xf0] }
 0x5d5   : > { %2849 = vmatpush.msra.mxu3 %v2807_v36  ;;  %3007 = vmatpush.msrb.mxu0 %v2988_v1  ;;  %v2974_v36 = vld [vmem:[#allocation9 + $0x100] sm:$0xff]  ;;  %v9632_v1 = vld [vmem:[#allocation10 + $0x68] sm:$0xf0] }
 0x5d6   : > { %3035 = vmatpush.msrb.mxu1 %v2996_v58  ;;  %3144 = vmatpush.bf16.msrb.mxu2 %v9639_v57  ;;  %v9622_v58 = vld [vmem:[#allocation10 + $0x50] sm:$0xf]  ;;  %v11955_v57 = vld [vmem:[#allocation10 + $0x174] sm:$0xf0] }
 0x5d7   : > { %2953 = vmatpush.msrb.mxu3 %v2932_v2  ;;  %3008 = vmatpush.msrb.mxu0 %v2987_v4  ;;  %v9694_v2 = vld [vmem:[#allocation10 + $0xe0] sm:$0xf]  ;;  %v11932_v4 = vld [vmem:[#allocation10 + $0xc4] sm:$0xf] }
 0x5d8   : > { %3036 = vmatpush.msrb.mxu1 %v2995_v33  ;;  %v11926_v33 = vld [vmem:[#allocation10 + $0x94] sm:$0xf] }
 0x5d9   : > { %2954 = vmatpush.msrb.mxu3 %v2931_v6  ;;  %3009 = vmatpush.msrb.mxu0 %v2986_v8  ;;  %v9635_v6 = vor.u32 %v11920_v0, %v9632_v1  ;;  %v9695_v8 = vor.u32 %v11937_v7, %v9694_v2  ;;  %v11929_v0 = vld [vmem:[#allocation10 + $0xa4] sm:$0xf0]  ;;  %v11911_v7 = vld [vmem:[#allocation10 + $0x14] sm:$0xf0] }
 0x5da   : > { %9577 = vmatmul.msk.f32.vlgmr.msra.gmra.mxu3 %vm1637_vm1, %v2810_v24  ;;  %3037 = vmatpush.msrb.mxu1 %v2994_v37  ;;  %v9630_v24 = vld [vmem:[#allocation10 + $0x60] sm:$0xf]  ;;  %v11917_v37 = vld [vmem:[#allocation10 + $0x44] sm:$0xf0] }
 0x5db   : > { %3010 = vmatpush.msrb.mxu0 %v2985_v9  ;;  %2955 = vmatpush.msrb.mxu3 %v2930_v10  ;;  %v9631_v63 = vor.u32 %v11921_v62, %v9630_v24  ;;  %v11919_v9 = vld [vmem:[#allocation10 + $0x54] sm:$0xf0]  ;;  %v11918_v10 = vld [vmem:[#allocation10 + $0x54] sm:$0xf]  ;;  %v9599_v24 = vor.u32 %v11913_v14, %v9598_v61  ;;  %v9600_v62 = vld [vmem:[#allocation10 + $0x28] sm:$0xf0] }
 0x5dc   : > { %3038 = vmatpush.msrb.mxu1 %v2993_v40  ;;  %v11970_v61 = vld [vmem:[#allocation12 + $0x74] sm:$0xf]  ;;  %v9840_v14 = vld [vmem:[#allocation12 + $0x78] sm:$0xf0] }
 0x5dd   : > { %3011 = vmatpush.msrb.mxu0 %v2984_v59  ;;  %2956 = vmatpush.msrb.mxu3 %v2929_v11  ;;  %v9624_v59 = vld [vmem:[#allocation10 + $0x58] sm:$0xf0]  ;;  %v9686_v11 = vld [vmem:[#allocation10 + $0xd0] sm:$0xf] }
 0x5de   : > { %3039 = vmatpush.msrb.mxu1 %v2992_v42  ;;  %3145 = vmatpush.bf16.msrb.mxu2 %v9631_v63  ;;  %v9678_v42 = vld [vmem:[#allocation10 + $0xc0] sm:$0xf] }
 0x5df   : > { %3012 = vmatpush.msrb.mxu0 %v2983_v12  ;;  %2957 = vmatpush.msrb.mxu3 %v2928_v13  ;;  %v11935_v12 = vld [vmem:[#allocation10 + $0xd4] sm:$0xf0]  ;;  %v9623_v13 = vor.u32 %v11919_v9, %v9622_v58  ;;  %v9662_v63 = vld [vmem:[#allocation10 + $0xa0] sm:$0xf]  ;;  %v9592_v9 = vld [vmem:[#allocation10 + $0x18] sm:$0xf0] }
 0x5e0   : > { %3040 = vmatpush.msrb.mxu1 %v2991_v44  ;;  %v9663_v2 = vor.u32 %v11929_v0, %v9662_v63  ;;  %v9843_v63 = vor.u32 %v11970_v61, %v9840_v14  ;;  %v11963_v61 = vld [vmem:[#allocation12 + $0x34] sm:$0xf0]  ;;  %v11956_v14 = vld [vmem:[#allocation12 + $0x4] sm:$0xf] }
 0x5e1   : > { %3013 = vmatpush.msrb.mxu0 %v2982_v16  ;;  %2958 = vmatpush.msrb.mxu3 %v2927_v17  ;;  %v9627_v16 = vor.u32 %v11918_v10, %v9624_v59  ;;  %v9683_v17 = vor.u32 %v11932_v4, %v9680_v5  ;;  %v11953_v4 = vld [vmem:[#allocation10 + $0x164] sm:$0xf0]  ;;  %v9654_v10 = vld [vmem:[#allocation10 + $0x90] sm:$0xf]  ;;  %v11927_v59 = vld [vmem:[#allocation10 + $0x94] sm:$0xf0] }
 0x5e2   : > { %3041 = vmatpush.msrb.mxu1 %v2990_v46  ;;  %3146 = vmatpush.bf16.msrb.mxu2 %v9623_v13  ;;  %v11924_v46 = vld [vmem:[#allocation10 + $0x84] sm:$0xf]  ;;  %v9755_v13 = vld [vmem:[#allocation10 + $0x150] sm:$0xf] }
 0x5e3   : > { %3014 = vmatpush.msrb.mxu0 %v2981_v18  ;;  %2959 = vmatpush.msrb.mxu3 %v2926_v19  ;;  %v9687_v18 = vor.u32 %v11935_v12, %v9686_v11  ;;  %v11930_v19 = vld [vmem:[#allocation10 + $0xb4] sm:$0xf]  ;;  %v9651_v48 = vor.u32 %v11924_v46, %v9648_v47  ;;  %v9655_v12 = vor.u32 %v11927_v59, %v9654_v10  ;;  %v9824_v59 = vld [vmem:[#allocation12 + $0x58] sm:$0xf0] }
 0x5e4   : > { %3281 = vmatpush.bf16.msra.mxu1 %v9707_v50  ;;  %v11915_v50 = vld [vmem:[#allocation10 + $0x34] sm:$0xf0]  ;;  %v11966_v10 = vld [vmem:[#allocation12 + $0x54] sm:$0xf] }
 0x5e5   : > { %3015 = vmatpush.msrb.mxu0 %v2980_v20  ;;  %2960 = vmatpush.msrb.mxu3 %v2925_v21  ;;  %v9672_v20 = vld [vmem:[#allocation10 + $0xb8] sm:$0xf0]  ;;  %v9607_v52 = vor.u32 %v11915_v50, %v9606_v49 }
 0x5e6   : > { %v9675_v21 = vor.u32 %v11930_v19, %v9672_v20  ;;  %v11909_v19 = vld [vmem:[#allocation10 + $0x4] sm:$0xf0]  ;;  %v11908_v20 = vld [vmem:[#allocation10 + $0x4] sm:$0xf] }
 0x5e7   : > { %3016 = vmatpush.msrb.mxu0 %v2979_v22  ;;  %2961 = vmatpush.msrb.mxu3 %v2924_v23  ;;  %v11928_v22 = vld [vmem:[#allocation10 + $0xa4] sm:$0xf]  ;;  %v9664_v23 = vld [vmem:[#allocation10 + $0xa8] sm:$0xf0] }
 0x5e8   : > { %3282 = vmatpush.bf16.msra.mxu1 %v9699_v54  ;;  %v9670_v54 = vld [vmem:[#allocation10 + $0xb0] sm:$0xf] }
 0x5e9   : > { %3017 = vmatpush.msrb.mxu0 %v2978_v26  ;;  %2962 = vmatpush.msrb.mxu3 %v2923_v27  ;;  %v9667_v27 = vor.u32 %v11928_v22, %v9664_v23  ;;  %v9671_v39 = vor.u32 %v11931_v55, %v9670_v54  ;;  %v9584_v22 = vld [vmem:[#allocation10 + $0x8] sm:$0xf0]  ;;  %v9646_v23 = vld [vmem:[#allocation10 + $0x80] sm:$0xf]  ;;  %v9773_v54 = vld [vmem:[#allocation10 + $0x178] sm:$0xf0] }
 0x5eb   : > { %3018 = vmatpush.msrb.mxu0 %v2977_v28  ;;  %2963 = vmatpush.msrb.mxu3 %v2922_v31 }
 0x5ec   : > { %3283 = vmatpush.bf16.msra.mxu1 %v9691_v3  ;;  %v9763_v3 = vld [vmem:[#allocation10 + $0x160] sm:$0xf] }
 0x5ed   : > { %3019 = vmatpush.msrb.mxu0 %v2976_v29  ;;  %2964 = vmatpush.msrb.mxu3 %v2921_v35  ;;  %v9659_v35 = vor.u32 %v11926_v33, %v9656_v34  ;;  %v9764_v5 = vor.u32 %v11953_v4, %v9763_v3  ;;  %v11947_v33 = vld [vmem:[#allocation10 + $0x134] sm:$0xf0]  ;;  %v11968_v3 = vld [vmem:[#allocation12 + $0x64] sm:$0xf]  ;;  %v9832_v4 = vld [vmem:[#allocation12 + $0x68] sm:$0xf0] }
 0x5ef   : > { %3020 = vmatpush.msrb.mxu0 %v2975_v32  ;;  %2965 = vmatpush.msrb.mxu3 %v2920_v38  ;;  %v11916_v38 = vld [vmem:[#allocation10 + $0x44] sm:$0xf] }
 0x5f0   : > { %3284 = vmatpush.bf16.msra.mxu1 %v9683_v17 }
 0x5f1   : > { %3021 = vmatpush.msrb.mxu0 %v2974_v36  ;;  %2966 = vmatpush.msrb.mxu3 %v2919_v41  ;;  %v9614_v36 = vld [vmem:[#allocation10 + $0x40] sm:$0xf]  ;;  %v9616_v41 = vld [vmem:[#allocation10 + $0x48] sm:$0xf0] }
 0x5f2   : > { %v9615_v40 = vor.u32 %v11917_v37, %v9614_v36  ;;  %v9619_v44 = vor.u32 %v11916_v38, %v9616_v41  ;;  %v11945_v36 = vld [vmem:[#allocation10 + $0x124] sm:$0xf0]  ;;  %v9723_v38 = vld [vmem:[#allocation10 + $0x110] sm:$0xf] }
 0x5f3   : > { %2967 = vmatpush.msrb.mxu3 %v2918_v43  ;;  %3268 = vmatpush.bf16.msra.mxu0 %v9703_v25  ;;  %v11933_v43 = vld [vmem:[#allocation10 + $0xc4] sm:$0xf0]  ;;  %v11912_v25 = vld [vmem:[#allocation10 + $0x24] sm:$0xf] }
 0x5f4   : > { %3285 = vmatpush.bf16.msra.mxu1 %v9675_v21  ;;  %3147 = vmatpush.bf16.msrb.mxu2 %v9615_v40  ;;  %v9603_v1 = vor.u32 %v11912_v25, %v9600_v62  ;;  %v11943_v40 = vld [vmem:[#allocation10 + $0x114] sm:$0xf0]  ;;  %v11950_v62 = vld [vmem:[#allocation10 + $0x154] sm:$0xf] }
 0x5f5   : > { %2968 = vmatpush.msrb.mxu3 %v2917_v45  ;;  %v9679_v45 = vor.u32 %v11933_v43, %v9678_v42  ;;  %v9724_v41 = vor.u32 %v11943_v40, %v9723_v38  ;;  %v9715_v42 = vld [vmem:[#allocation10 + $0x100] sm:$0xf]  ;;  %v11941_v43 = vld [vmem:[#allocation10 + $0x104] sm:$0xf0]  ;;  %v11942_v38 = vld [vmem:[#allocation10 + $0x114] sm:$0xf] }
 0x5f7   : > { %3157 = vmatpush.bf16.msra.mxu3 %v9643_v60  ;;  %3269 = vmatpush.bf16.msra.mxu0 %v9695_v8  ;;  %v9772_v60 = vor.u32 %v11955_v57, %v9771_v56  ;;  %v11910_v8 = vld [vmem:[#allocation10 + $0x14] sm:$0xf]  ;;  %v9776_v56 = vor.u32 %v11954_v53, %v9773_v54  ;;  %v11952_v57 = vld [vmem:[#allocation10 + $0x164] sm:$0xf]  ;;  %v11965_v53 = vld [vmem:[#allocation12 + $0x44] sm:$0xf0] }
 0x5f8   : > { %3286 = vmatpush.bf16.msra.mxu1 %v9667_v27  ;;  %3148 = vmatpush.bf16.msrb.mxu2 %v9607_v52  ;;  %v9595_v11 = vor.u32 %v11910_v8, %v9592_v9  ;;  %v9587_v27 = vor.u32 %v11908_v20, %v9584_v22  ;;  %v11948_v8 = vld [vmem:[#allocation10 + $0x144] sm:$0xf]  ;;  %v9749_v9 = vld [vmem:[#allocation10 + $0x148] sm:$0xf0]  ;;  %v9741_v20 = vld [vmem:[#allocation10 + $0x138] sm:$0xf0] }
 0x5f9   : > { %v9816_v22 = vld [vmem:[#allocation12 + $0x48] sm:$0xf0] }
 0x5fa   : > { %v9717_v54 = vld [vmem:[#allocation10 + $0x108] sm:$0xf0] }
 0x5fb   : > { %3158 = vmatpush.bf16.msra.mxu3 %v9635_v6  ;;  %3270 = vmatpush.bf16.msra.mxu0 %v9687_v18  ;;  %v9590_v6 = vld [vmem:[#allocation10 + $0x10] sm:$0xf]  ;;  %v9582_v18 = vld [vmem:[#allocation10] sm:$0xf] }
 0x5fc   : > { %3287 = vmatpush.bf16.msra.mxu1 %v9659_v35  ;;  %3149 = vmatpush.bf16.msrb.mxu2 %v9599_v24  ;;  %v9591_v58 = vor.u32 %v11911_v7, %v9590_v6  ;;  %v9583_v21 = vor.u32 %v11909_v19, %v9582_v18  ;;  %v9731_v35 = vld [vmem:[#allocation10 + $0x120] sm:$0xf]  ;;  %v3170_v24 = vld [vmem:[%s14393_s23] sm:$0xff] }
 0x5fd   : > { %v9732_v37 = vor.u32 %v11945_v36, %v9731_v35  ;;  %v9808_v35 = vld [vmem:[#allocation12 + $0x38] sm:$0xf0] }
 0x5ff   : > { %3159 = vmatpush.bf16.msra.mxu3 %v9627_v16  ;;  %3271 = vmatpush.bf16.msra.mxu0 %v9679_v45  ;;  %v11951_v16 = vld [vmem:[#allocation10 + $0x154] sm:$0xf0] }
 0x600   : > { %3288 = vmatpush.bf16.msra.mxu1 %v9651_v48  ;;  %3150 = vmatpush.bf16.msrb.mxu2 %v9591_v58  ;;  %v9756_v17 = vor.u32 %v11951_v16, %v9755_v13  ;;  %v9835_v58 = vor.u32 %v11968_v3, %v9832_v4  ;;  %v9827_v13 = vor.u32 %v11966_v10, %v9824_v59  ;;  %v9838_v16 = vld [vmem:[#allocation12 + $0x70] sm:$0xf]  ;;  %v11961_v3 = vld [vmem:[#allocation12 + $0x24] sm:$0xf0]  ;;  %v12000_v4 = vld [vmem:[#allocation12 + $0x164] sm:$0xf] }
 0x601   : > { %v9952_v59 = vld [vmem:[#allocation12 + $0x158] sm:$0xf0] }
 0x603   : > { %3160 = vmatpush.bf16.msra.mxu3 %v9619_v44  ;;  %3272 = vmatpush.bf16.msra.mxu0 %v9671_v39  ;;  %v9716_v44 = vor.u32 %v11941_v43, %v9715_v42  ;;  %v9708_v39 = vld [vmem:[%s14393_s23 + $0x8] sm:$0xff]  ;;  %v9725_v43 = vld [vmem:[#allocation10 + $0x118] sm:$0xf0] }
 0x604   : > { %3151 = vmatpush.bf16.msrb.mxu2 %v9583_v21  ;;  %v11964_v21 = vld [vmem:[#allocation12 + $0x44] sm:$0xf]  ;;  %v11967_v42 = vld [vmem:[#allocation12 + $0x54] sm:$0xf0] }
 0x607   : > { %3161 = vmatpush.bf16.msra.mxu3 %v9611_v15  ;;  %3273 = vmatpush.bf16.msra.mxu0 %v9663_v2  ;;  %v9757_v2 = vld [vmem:[#allocation10 + $0x158] sm:$0xf0] }
 0x608   : > { %v9760_v7 = vor.u32 %v11950_v62, %v9757_v2  ;;  %v9968_v62 = vld [vmem:[#allocation12 + $0x178] sm:$0xf0]  ;;  %v9798_v2 = vld [vmem:[#allocation12 + $0x20] sm:$0xf] }
 0x60b   : > { %3162 = vmatpush.bf16.msra.mxu3 %v9603_v1  ;;  %3274 = vmatpush.bf16.msra.mxu0 %v9655_v12  ;;  %v11946_v12 = vld [vmem:[#allocation10 + $0x134] sm:$0xf] }
 0x60f   : > { %3163 = vmatpush.bf16.msra.mxu3 %v9595_v11  ;;  %v9752_v11 = vor.u32 %v11948_v8, %v9749_v9  ;;  %v9790_v8 = vld [vmem:[#allocation12 + $0x10] sm:$0xf]  ;;  %v11998_v9 = vld [vmem:[#allocation12 + $0x154] sm:$0xf] }
 0x613   : > { %3164 = vmatpush.bf16.msra.mxu3 %v9587_v27 }
 0x63e   : > { %v2896_v30 = vpop.f32.mrf.mxu1 }
 0x64f   : > { %v2876_v26 = vpop.f32.mrf.mxu0 }
 0x655   : > { %v2831_v28 = vpop.f32.mrf.mxu3 }
 0x656   : > { %v2899_v29 = vmax.f32 %v2831_v28, %v2876_v26  ;;  %v11925_v26 = vld [vmem:[#allocation10 + $0x84] sm:$0xf0] }
 0x657   : > { %v9647_v28 = vor.u32 %v11925_v26, %v9646_v23  ;;  %v14048_v23 = vld [vmem:[%s14393_s23 + $0x10] sm:$0xff] }
 0x658   : > { %2949 = vmatmul.f32.vlgmr.msra.gmra.mxu2 %v2899_v29  ;;  %3022 = vmatmul.f32.vlgmr.msrb.gmra.mxu0 %v2899_v29  ;;  %v9747_v29 = vld [vmem:[#allocation10 + $0x140] sm:$0xf] }
 0x659   : > { %3275 = vmatpush.bf16.msra.mxu0 %v9647_v28  ;;  %v9744_v28 = vor.u32 %v11946_v12, %v9741_v20  ;;  %v9782_v12 = vld [vmem:[#allocation12] sm:$0xf] }
 0x65d   : > { %v2851_v31 = vpop.f32.mrf.mxu3 }
 0x65e   : > { %v2900_v32 = vmax.f32 %v2851_v31, %v2896_v30  ;;  %v11949_v30 = vld [vmem:[#allocation10 + $0x144] sm:$0xf0] }
 0x65f   : > { %v9748_v31 = vor.u32 %v11949_v30, %v9747_v29  ;;  %v11944_v29 = vld [vmem:[#allocation10 + $0x124] sm:$0xf]  ;;  %v9819_v30 = vor.u32 %v11964_v21, %v9816_v22  ;;  %v11994_v22 = vld [vmem:[#allocation12 + $0x134] sm:$0xf] }
 0x660   : > { %2969 = vmatmul.f32.vlgmr.msrb.gmra.mxu3 %v2900_v32  ;;  %3042 = vmatmul.f32.vlgmr.msrb.gmra.mxu1 %v2900_v32  ;;  %v9739_v32 = vld [vmem:[#allocation10 + $0x130] sm:$0xf] }
 0x661   : > { %3480 = vmatpush.bf16.msrb.mxu1 %v9772_v60  ;;  %v9740_v34 = vor.u32 %v11947_v33, %v9739_v32  ;;  %v9765_v60 = vld [vmem:[#allocation10 + $0x168] sm:$0xf0]  ;;  %v11969_v32 = vld [vmem:[#allocation12 + $0x64] sm:$0xf0] }
 0x662   : > { %v9768_v25 = vor.u32 %v11952_v57, %v9765_v60  ;;  %v9733_v33 = vld [vmem:[#allocation10 + $0x128] sm:$0xf0]  ;;  %v9806_v60 = vld [vmem:[#allocation12 + $0x30] sm:$0xf] }
 0x665   : > { %3481 = vmatpush.bf16.msrb.mxu1 %v9764_v5 }
 0x669   : > { %3482 = vmatpush.bf16.msrb.mxu1 %v9756_v17  ;;  %v11971_v17 = vld [vmem:[#allocation12 + $0x74] sm:$0xf0] }
 0x66a   : > { %v9839_v26 = vor.u32 %v11971_v17, %v9838_v16  ;;  %v9944_v17 = vld [vmem:[#allocation12 + $0x148] sm:$0xf0] }
 0x66d   : > { %3483 = vmatpush.bf16.msrb.mxu1 %v9748_v31  ;;  %v9830_v31 = vld [vmem:[#allocation12 + $0x60] sm:$0xf] }
 0x66e   : > { %v9831_v36 = vor.u32 %v11969_v32, %v9830_v31  ;;  %v11992_v31 = vld [vmem:[#allocation12 + $0x124] sm:$0xf]  ;;  %v9928_v32 = vld [vmem:[#allocation12 + $0x128] sm:$0xf0] }
 0x671   : > { %3484 = vmatpush.bf16.msrb.mxu1 %v9740_v34  ;;  %v11962_v34 = vld [vmem:[#allocation12 + $0x34] sm:$0xf] }
 0x672   : > { %v9811_v40 = vor.u32 %v11962_v34, %v9808_v35  ;;  %v9950_v34 = vld [vmem:[#allocation12 + $0x150] sm:$0xf]  ;;  %v11999_v35 = vld [vmem:[#allocation12 + $0x154] sm:$0xf0] }
 0x675   : > { %3485 = vmatpush.bf16.msrb.mxu1 %v9732_v37  ;;  %v9736_v37 = vor.u32 %v11944_v29, %v9733_v33  ;;  %v9931_v33 = vor.u32 %v11992_v31, %v9928_v32  ;;  %v9880_v31 = vld [vmem:[#allocation12 + $0xc8] sm:$0xf0]  ;;  %v9894_v32 = vld [vmem:[#allocation12 + $0xe0] sm:$0xf] }
 0x679   : > { %3486 = vmatpush.bf16.msrb.mxu1 %v9724_v41  ;;  %v9822_v41 = vld [vmem:[#allocation12 + $0x50] sm:$0xf] }
 0x67d   : > { %3487 = vmatpush.bf16.msrb.mxu1 %v9716_v44  ;;  %v11960_v44 = vld [vmem:[#allocation12 + $0x24] sm:$0xf] }
 0x6d5   : > { %v3023_v46 = vpop.f32.mrf.mxu0 }
 0x6db   : > { %v2950_v47 = vpop.f32.mrf.mxu2 }
 0x6dd   : > { %v3043_v45 = vpop.f32.mrf.mxu1 }
 0x6de   : > { %v3044_v49 = vadd.f32 %v3043_v45, %v3023_v46  ;;  %v9800_v45 = vld [vmem:[#allocation12 + $0x28] sm:$0xf0]  ;;  %v9823_v46 = vor.u32 %v11967_v42, %v9822_v41  ;;  %v9942_v41 = vld [vmem:[#allocation12 + $0x140] sm:$0xf]  ;;  %v11997_v42 = vld [vmem:[#allocation12 + $0x144] sm:$0xf0] }
 0x6e3   : > { %v2970_v48 = vpop.f32.mrf.mxu3 }
 0x6e4   : > { %v2971_v50 = vadd.f32 %v2970_v48, %v2950_v47  ;;  %v9728_v48 = vor.u32 %v11942_v38, %v9725_v43  ;;  %v9920_v38 = vld [vmem:[#allocation12 + $0x118] sm:$0xf0]  ;;  %v9943_v43 = vor.u32 %v11997_v42, %v9942_v41  ;;  %v9886_v42 = vld [vmem:[#allocation12 + $0xd0] sm:$0xf] }
 0x6e5   : > { %v9872_v41 = vld [vmem:[#allocation12 + $0xb8] sm:$0xf0] }
 0x6e6   : > { %v3046_v51 = vmax.f32 %v2971_v50, %v3044_v49  ;;  %v11940_v49 = vld [vmem:[#allocation10 + $0x104] sm:$0xf]  ;;  %v9803_v50 = vor.u32 %v11960_v44, %v9800_v45  ;;  %v9912_v45 = vld [vmem:[#allocation12 + $0x108] sm:$0xf0] }
 0x6e7   : > { %v11988_v44 = vld [vmem:[#allocation12 + $0x104] sm:$0xf] }
 0x6e8   : > { %v14034_v52 = vpack.c.bf16 %v3046_v51, %v3046_v51  ;;  %v9814_v51 = vld [vmem:[#allocation12 + $0x40] sm:$0xf] }
 0x6ea   : > { %3152 = vmatmul.bf16.vlgmr.msrb.gmra.mxu2 %v14034_v52  ;;  %3165 = vmatmul.bf16.vlgmr.msra.gmra.mxu3 %v14034_v52 }
 0x6eb   : > { %3276 = vmatmul.bf16.vlgmr.msra.gmra.mxu0 %v14034_v52  ;;  %3289 = vmatmul.bf16.vlgmr.msra.gmra.mxu1 %v14034_v52 }
 0x6ec   : > { %3783 = vmatpush.bf16.msra.mxu1 %v9843_v63  ;;  %v9807_v63 = vor.u32 %v11963_v61, %v9806_v60  ;;  %v14054_v61 = vld [vmem:[%s14394_s6] sm:$0x3] }
 0x6f0   : > { %3784 = vmatpush.bf16.msra.mxu1 %v9835_v58  ;;  %v11959_v58 = vld [vmem:[#allocation12 + $0x14] sm:$0xf0] }
 0x6f1   : > { %v9791_v10 = vor.u32 %v11959_v58, %v9790_v8  ;;  %v12033_v8 = vld [vmem:[#allocation12 + $0x264] sm:$0xf0]  ;;  %v11986_v58 = vld [vmem:[#allocation12 + $0xf4] sm:$0xf] }
 0x6f4   : > { %3785 = vmatpush.bf16.msra.mxu1 %v9827_v13  ;;  %v11996_v13 = vld [vmem:[#allocation12 + $0x144] sm:$0xf] }
 0x6f5   : > { %v9947_v20 = vor.u32 %v11996_v13, %v9944_v17  ;;  %v12031_v13 = vld [vmem:[#allocation12 + $0x254] sm:$0xf0]  ;;  %v11982_v17 = vld [vmem:[#allocation12 + $0xd4] sm:$0xf] }
 0x6f8   : > { %3786 = vmatpush.bf16.msra.mxu1 %v9819_v30 }
 0x6fb   : > { %3488 = vmatmul.bf16.vlgmr.msrb.gmra.mxu1 %v14034_v52 }
 0x6fc   : > { %3787 = vmatpush.bf16.msra.mxu1 %v9811_v40 }
 0x700   : > { %3788 = vmatpush.bf16.msra.mxu1 %v9803_v50  ;;  %v9926_v50 = vld [vmem:[#allocation12 + $0x120] sm:$0xf] }
 0x768   : > { %v3277_v55 = vpop.f32.mrf.mxu0  ;;  %v3290_v15 = vpop.f32.mrf.mxu1 }
 0x769   : > { %3315 = vmatpush.msra.mxu2 %v3277_v55  ;;  %v11958_v55 = vld [vmem:[#allocation12 + $0x14] sm:$0xf] }
 0x76a   : > { %9709 = vmatmul.msk.f32.vlgmr.msra.gmra.mxu2 %vm3296_vm2, %v9708_v39 }
 0x76b   : > { %3335 = vmatpush.msrb.mxu2 %v3290_v15  ;;  %v9792_v15 = vld [vmem:[#allocation12 + $0x18] sm:$0xf0] }
 0x76c   : > { %v9795_v57 = vor.u32 %v11958_v55, %v9792_v15  ;;  %v11991_v55 = vld [vmem:[#allocation12 + $0x114] sm:$0xf0] }
 0x76d   : > { %3493 = vmatpush.bf16.msra.mxu2 %v9776_v56  ;;  %v3153_v0 = vpop.f32.mrf.mxu2  ;;  %v3166_v1 = vpop.f32.mrf.mxu3  ;;  %v9720_v56 = vor.u32 %v11940_v49, %v9717_v54  ;;  %v9918_v54 = vld [vmem:[#allocation12 + $0x110] sm:$0xf] }
 0x76e   : > { %3358 = vmatpush.msrb.mxu3 %v3153_v0  ;;  %3378 = vmatpush.msrb.mxu0 %v3166_v1  ;;  %v9919_v15 = vor.u32 %v11991_v55, %v9918_v54  ;;  %v10051_v55 = vld [vmem:[#allocation12 + $0x210] sm:$0xf] }
 0x76f   : > { %9711 = vmatmul.msk.f32.vlgmr.msrb.gmra.mxu3 %vm3296_vm2, %v3170_v24  ;;  %9712 = vmatmul.msk.f32.vlgmr.msrb.gmra.mxu0 %vm3296_vm2, %v3170_v24  ;;  %v12002_v24 = vld [vmem:[#allocation12 + $0x174] sm:$0xf] }
 0x770   : > { %v3279_v5 = vpop.f32.mrf.mxu0  ;;  %v3292_v6 = vpop.f32.mrf.mxu1  ;;  %3789 = vmatpush.bf16.msra.mxu1 %v9795_v57  ;;  %v9971_v1 = vor.u32 %v12002_v24, %v9968_v62  ;;  %v3555_v24 = vperm.slane %v14054_v61, 0 }
 0x771   : > { %3494 = vmatpush.bf16.msra.mxu2 %v9768_v25  ;;  %v9784_v25 = vld [vmem:[#allocation12 + $0x8] sm:$0xf0]  ;;  %v9799_v5 = vor.u32 %v11961_v3, %v9798_v2  ;;  %v12035_v2 = vld [vmem:[#allocation12 + $0x274] sm:$0xf0] }
 0x772   : > { %9710 = vmatmul.msk.f32.vlgmr.msrb.gmra.mxu2 %vm3296_vm2, %v9708_v39  ;;  %v9815_v39 = vor.u32 %v11965_v53, %v9814_v51  ;;  %v9787_v0 = vor.u32 %v11956_v14, %v9784_v25  ;;  %v9960_v6 = vld [vmem:[#allocation12 + $0x168] sm:$0xf0]  ;;  %v11993_v51 = vld [vmem:[#allocation12 + $0x124] sm:$0xf0] }
 0x773   : > { %v9927_v53 = vor.u32 %v11993_v51, %v9926_v50  ;;  %v9864_v50 = vld [vmem:[#allocation12 + $0xa8] sm:$0xf0]  ;;  %v9878_v51 = vld [vmem:[#allocation12 + $0xc0] sm:$0xf] }
 0x774   : > { %3790 = vmatpush.bf16.msra.mxu1 %v9787_v0 }
 0x775   : > { %3495 = vmatpush.bf16.msra.mxu2 %v9760_v7  ;;  %v3155_v18 = vpop.f32.mrf.mxu2  ;;  %v3168_v19 = vpop.f32.mrf.mxu3  ;;  %v9963_v7 = vor.u32 %v12000_v4, %v9960_v6 }
 0x776   : > { %v9966_v18 = vld [vmem:[#allocation12 + $0x170] sm:$0xf]  ;;  %v12003_v19 = vld [vmem:[#allocation12 + $0x174] sm:$0xf0] }
 0x777   : > { %v9967_v21 = vor.u32 %v12003_v19, %v9966_v18  ;;  %v9888_v18 = vld [vmem:[#allocation12 + $0xd8] sm:$0xf0]  ;;  %v9902_v19 = vld [vmem:[#allocation12 + $0xf0] sm:$0xf] }
 0x778   : > { %v3489_v27 = vpop.f32.mrf.mxu1  ;;  %4029 = vmatpush.bf16.msrb.mxu1 %v9971_v1  ;;  %v10099_v1 = vld [vmem:[#allocation12 + $0x270] sm:$0xf] }
 0x779   : > { %3496 = vmatpush.bf16.msra.mxu2 %v9752_v11  ;;  %3526 = vmatpush.msra.mxu3 %v3489_v27  ;;  %v9955_v11 = vor.u32 %v11998_v9, %v9952_v59  ;;  %v9958_v27 = vld [vmem:[#allocation12 + $0x160] sm:$0xf]  ;;  %v10100_v4 = vor.u32 %v12035_v2, %v10099_v1  ;;  %v9904_v9 = vld [vmem:[#allocation12 + $0xf8] sm:$0xf0]  ;;  %v11972_v1 = vld [vmem:[#allocation12 + $0x84] sm:$0xf] }
 0x77a   : > { %9778 = vmatmul.msk.f32.vlgmr.msra.gmra.mxu3 %vm3296_vm2, %v14048_v23 }
 0x77b   : > { %3757 = vmatpush.bf16.msrb.mxu3 %v9839_v26  ;;  %v9936_v26 = vld [vmem:[#allocation12 + $0x138] sm:$0xf0] }
 0x77c   : > { %4030 = vmatpush.bf16.msrb.mxu1 %v9963_v7  ;;  %v9939_v29 = vor.u32 %v11994_v22, %v9936_v26  ;;  %v10091_v7 = vld [vmem:[#allocation12 + $0x260] sm:$0xf]  ;;  %v12029_v26 = vld [vmem:[#allocation12 + $0x244] sm:$0xf0] }
 0x77d   : > { %3497 = vmatpush.bf16.msra.mxu2 %v9744_v28  ;;  %v12001_v28 = vld [vmem:[#allocation12 + $0x164] sm:$0xf0]  ;;  %v10092_v59 = vor.u32 %v12033_v8, %v10091_v7  ;;  %v10075_v22 = vld [vmem:[#allocation12 + $0x240] sm:$0xf] }
 0x77e   : > { %v9959_v30 = vor.u32 %v12001_v28, %v9958_v27  ;;  %v9891_v27 = vor.u32 %v11982_v17, %v9888_v18  ;;  %v11980_v28 = vld [vmem:[#allocation12 + $0xc4] sm:$0xf]  ;;  %v11977_v7 = vld [vmem:[#allocation12 + $0xa4] sm:$0xf0] }
 0x77f   : > { %3758 = vmatpush.bf16.msrb.mxu3 %v9831_v36  ;;  %v9951_v36 = vor.u32 %v11999_v35, %v9950_v34  ;;  %v10076_v34 = vor.u32 %v12029_v26, %v10075_v22  ;;  %v10067_v35 = vld [vmem:[#allocation12 + $0x230] sm:$0xf]  ;;  %v9846_v22 = vld [vmem:[#allocation12 + $0x80] sm:$0xf]  ;;  %v11973_v26 = vld [vmem:[#allocation12 + $0x84] sm:$0xf0] }
 0x780   : > { %v3491_v47 = vpop.f32.mrf.mxu1  ;;  %4031 = vmatpush.bf16.msrb.mxu1 %v9955_v11  ;;  %v9907_v11 = vor.u32 %v11986_v58, %v9904_v9  ;;  %v12018_v58 = vld [vmem:[#allocation12 + $0x1f4] sm:$0xf]  ;;  %v10032_v9 = vld [vmem:[#allocation12 + $0x1f8] sm:$0xf0] }
 0x781   : > { %3498 = vmatpush.bf16.msra.mxu2 %v9736_v37  ;;  %v11990_v37 = vld [vmem:[#allocation12 + $0x114] sm:$0xf]  ;;  %v9934_v47 = vld [vmem:[#allocation12 + $0x130] sm:$0xf] }
 0x782   : > { %v9923_v40 = vor.u32 %v11990_v37, %v9920_v38  ;;  %v9883_v37 = vor.u32 %v11980_v28, %v9880_v31  ;;  %v11978_v38 = vld [vmem:[#allocation12 + $0xb4] sm:$0xf]  ;;  %v9847_v28 = vor.u32 %v11973_v26, %v9846_v22  ;;  %v12019_v31 = vld [vmem:[#allocation12 + $0x1f4] sm:$0xf0] }
 0x783   : > { %3759 = vmatpush.bf16.msrb.mxu3 %v9823_v46  ;;  %v9915_v46 = vor.u32 %v11988_v44, %v9912_v45  ;;  %v10059_v45 = vld [vmem:[#allocation12 + $0x220] sm:$0xf] }
 0x784   : > { %4032 = vmatpush.bf16.msrb.mxu1 %v9947_v20  ;;  %v11987_v20 = vld [vmem:[#allocation12 + $0xf4] sm:$0xf0] }
 0x785   : > { %3499 = vmatpush.bf16.msra.mxu2 %v9728_v48  ;;  %v11995_v48 = vld [vmem:[#allocation12 + $0x134] sm:$0xf0] }
 0x786   : > { %v9935_v49 = vor.u32 %v11995_v48, %v9934_v47  ;;  %v9875_v47 = vor.u32 %v11978_v38, %v9872_v41  ;;  %v11976_v48 = vld [vmem:[#allocation12 + $0xa4] sm:$0xf]  ;;  %v12017_v38 = vld [vmem:[#allocation12 + $0x1e4] sm:$0xf0] }
 0x787   : > { %3760 = vmatpush.bf16.msrb.mxu3 %v9815_v39  ;;  %v9910_v39 = vld [vmem:[#allocation12 + $0x100] sm:$0xf]  ;;  %v12008_v41 = vld [vmem:[#allocation12 + $0x1a4] sm:$0xf] }
 0x788   : > { %4033 = vmatpush.bf16.msrb.mxu1 %v9939_v29  ;;  %v9903_v29 = vor.u32 %v11987_v20, %v9902_v19  ;;  %v12014_v19 = vld [vmem:[#allocation12 + $0x1d4] sm:$0xf]  ;;  %v10016_v20 = vld [vmem:[#allocation12 + $0x1d8] sm:$0xf0] }
 0x789   : > { %3500 = vmatpush.bf16.msra.mxu2 %v9720_v56  ;;  %v11989_v56 = vld [vmem:[#allocation12 + $0x104] sm:$0xf0] }
 0x78a   : > { %v9911_v57 = vor.u32 %v11989_v56, %v9910_v39  ;;  %v9867_v39 = vor.u32 %v11976_v48, %v9864_v50  ;;  %v11974_v56 = vld [vmem:[#allocation12 + $0x94] sm:$0xf]  ;;  %v9984_v48 = vld [vmem:[#allocation12 + $0x198] sm:$0xf0]  ;;  %v12013_v50 = vld [vmem:[#allocation12 + $0x1c4] sm:$0xf0] }
 0x78b   : > { %3761 = vmatpush.bf16.msrb.mxu3 %v9807_v63 }
 0x78c   : > { %3501 = vmatmul.bf16.vlgmr.msra.gmra.mxu2 %v14034_v52  ;;  %v11957_v52 = vld [vmem:[#allocation12 + $0x4] sm:$0xf0]  ;;  %4034 = vmatpush.bf16.msrb.mxu1 %v9931_v33 }
 0x78d   : > { %v9783_v16 = vor.u32 %v11957_v52, %v9782_v12  ;;  %v9896_v12 = vld [vmem:[#allocation12 + $0xe8] sm:$0xf0]  ;;  %v10083_v52 = vld [vmem:[#allocation12 + $0x250] sm:$0xf]  ;;  %3796 = vmatpush.bf16.msrb.mxu2 %v9907_v11  ;;  %v11985_v33 = vld [vmem:[#allocation12 + $0xe4] sm:$0xf0]  ;;  %v10035_v11 = vor.u32 %v12018_v58, %v10032_v9 }
 0x78e   : > { %v3556_v58 = vperm.slane %v14054_v61, 1 }
 0x78f   : > { %3762 = vmatpush.bf16.msrb.mxu3 %v9799_v5 }
 0x790   : > { %4035 = vmatpush.bf16.msrb.mxu1 %v9923_v40  ;;  %v9895_v40 = vor.u32 %v11985_v33, %v9894_v32 }
 0x793   : > { %3763 = vmatpush.bf16.msrb.mxu3 %v9791_v10  ;;  %v11984_v10 = vld [vmem:[#allocation12 + $0xe4] sm:$0xf] }
 0x794   : > { %4036 = vmatpush.bf16.msrb.mxu1 %v9915_v46  ;;  %v12025_v46 = vld [vmem:[#allocation12 + $0x224] sm:$0xf0] }
 0x795   : > { %v10060_v54 = vor.u32 %v12025_v46, %v10059_v45  ;;  %v12015_v45 = vld [vmem:[#allocation12 + $0x1d4] sm:$0xf0] }
 0x797   : > { %3764 = vmatpush.bf16.msrb.mxu3 %v9783_v16  ;;  %v9899_v16 = vor.u32 %v11984_v10, %v9896_v12  ;;  %v9854_v12 = vld [vmem:[#allocation12 + $0x90] sm:$0xf] }
 0x799   : > { %3797 = vmatpush.bf16.msrb.mxu2 %v9899_v16  ;;  %v10024_v16 = vld [vmem:[#allocation12 + $0x1e8] sm:$0xf0] }
 0x79b   : > { %4003 = vmatpush.bf16.msra.mxu3 %v9967_v21  ;;  %v10084_v21 = vor.u32 %v12031_v13, %v10083_v52  ;;  %v11975_v52 = vld [vmem:[#allocation12 + $0x94] sm:$0xf0]  ;;  %v12016_v13 = vld [vmem:[#allocation12 + $0x1e4] sm:$0xf] }
 0x79c   : > { %v9855_v17 = vor.u32 %v11975_v52, %v9854_v12  ;;  %v10027_v18 = vor.u32 %v12016_v13, %v10024_v16  ;;  %v12051_v12 = vld [vmem:[#allocation12 + $0x2f4] sm:$0xf0] }
 0x79d   : > { %3798 = vmatpush.bf16.msrb.mxu2 %v9891_v27  ;;  %v12012_v27 = vld [vmem:[#allocation12 + $0x1c4] sm:$0xf] }
 0x79f   : > { %4004 = vmatpush.bf16.msra.mxu3 %v9959_v30 }
 0x7a1   : > { %3799 = vmatpush.bf16.msrb.mxu2 %v9883_v37  ;;  %v10022_v37 = vld [vmem:[#allocation12 + $0x1e0] sm:$0xf] }
 0x7a3   : > { %4005 = vmatpush.bf16.msra.mxu3 %v9951_v36  ;;  %v12027_v36 = vld [vmem:[#allocation12 + $0x234] sm:$0xf0] }
 0x7a4   : > { %v10068_v44 = vor.u32 %v12027_v36, %v10067_v35  ;;  %v10000_v35 = vld [vmem:[#allocation12 + $0x1b8] sm:$0xf0] }
 0x7a5   : > { %3800 = vmatpush.bf16.msrb.mxu2 %v9875_v47  ;;  %v12006_v47 = vld [vmem:[#allocation12 + $0x194] sm:$0xf] }
 0x7a7   : > { %4006 = vmatpush.bf16.msra.mxu3 %v9943_v43  ;;  %v11983_v43 = vld [vmem:[#allocation12 + $0xd4] sm:$0xf0] }
 0x7a9   : > { %3801 = vmatpush.bf16.msrb.mxu2 %v9867_v39  ;;  %v12011_v39 = vld [vmem:[#allocation12 + $0x1b4] sm:$0xf0] }
 0x7ab   : > { %4007 = vmatpush.bf16.msra.mxu3 %v9935_v49  ;;  %v9887_v49 = vor.u32 %v11983_v43, %v9886_v42  ;;  %v9992_v42 = vld [vmem:[#allocation12 + $0x1a8] sm:$0xf0] }
 0x7ac   : > { %v9995_v43 = vor.u32 %v12008_v41, %v9992_v42  ;;  %v12039_v41 = vld [vmem:[#allocation12 + $0x294] sm:$0xf0] }
 0x7af   : > { %4008 = vmatpush.bf16.msra.mxu3 %v9927_v53  ;;  %v11981_v53 = vld [vmem:[#allocation12 + $0xc4] sm:$0xf0] }
 0x7b3   : > { %4009 = vmatpush.bf16.msra.mxu3 %v9919_v15  ;;  %v12023_v15 = vld [vmem:[#allocation12 + $0x214] sm:$0xf0] }
 0x7b7   : > { %4010 = vmatpush.bf16.msra.mxu3 %v9911_v57  ;;  %v9879_v57 = vor.u32 %v11981_v53, %v9878_v51  ;;  %v12004_v53 = vld [vmem:[#allocation12 + $0x184] sm:$0xf] }
 0x7ed   : > { %v3317_v14 = vpop.f32.mrf.mxu2 }
 0x7f2   : > { %v3360_v60 = vpop.f32.mrf.mxu3 }
 0x7f3   : > { %v3361_v25 = vadd.f32 %v3360_v60, %v3317_v14  ;;  %v9856_v60 = vld [vmem:[#allocation12 + $0x98] sm:$0xf0]  ;;  %v9870_v14 = vld [vmem:[#allocation12 + $0xb0] sm:$0xf] }
 0x7f5   : > { %v14059_v6 = vpop.f32.mrf.mxu2 }
 0x7fd   : > { %v3528_v62 = vpop.f32.mrf.mxu3 }
 0x7fe   : > { %v3551_v63 = vadd.f32 %v3528_v62, %v3361_v25  ;;  %v11979_v25 = vld [vmem:[#allocation12 + $0xb4] sm:$0xf0]  ;;  %v10043_v62 = vld [vmem:[#allocation12 + $0x200] sm:$0xf] }
 0x7ff   : > { %v9871_v2 = vor.u32 %v11979_v25, %v9870_v14  ;;  %v9982_v25 = vld [vmem:[#allocation12 + $0x190] sm:$0xf] }
 0x800   : > { %v3559_v0 = vadd.f32 %v3555_v24, %v3551_v63  ;;  %v10052_v24 = vor.u32 %v12023_v15, %v10051_v55  ;;  %v12021_v63 = vld [vmem:[#allocation12 + $0x204] sm:$0xf0]  ;;  %v9998_v15 = vld [vmem:[#allocation12 + $0x1b0] sm:$0xf] }
 0x801   : > { %v10044_v8 = vor.u32 %v12021_v63, %v10043_v62  ;;  %v9974_v63 = vld [vmem:[#allocation12 + $0x180] sm:$0xf] }
 0x802   : > { %v3561_v3 = vmax.f32 %v3559_v0, 0.0  ;;  %v9859_v0 = vor.u32 %v11974_v56, %v9856_v60  ;;  %v9999_v56 = vor.u32 %v12011_v39, %v9998_v15  ;;  %v12009_v60 = vld [vmem:[#allocation12 + $0x1a4] sm:$0xf0] }
 0x804   : > { %v14057_v5 = vpack.c.bf16 %v3561_v3, %v3561_v3  ;;  %v9848_v3 = vld [vmem:[#allocation12 + $0x88] sm:$0xf0]  ;;  %3802 = vmatpush.bf16.msrb.mxu2 %v9859_v0  ;;  %v12005_v0 = vld [vmem:[#allocation12 + $0x184] sm:$0xf0] }
 0x805   : > { %v9851_v10 = vor.u32 %v11972_v1, %v9848_v3  ;;  %v9975_v1 = vor.u32 %v12005_v0, %v9974_v63  ;;  %v3380_v3 = vpop.f32.mrf.mxu0  ;;  %v12030_v63 = vld [vmem:[#allocation12 + $0x254] sm:$0xf]  ;;  %v10085_v0 = vld [vmem:[#allocation12 + $0x258] sm:$0xf0] }
 0x806   : > { %3765 = vmatmul.bf16.vlgmr.msrb.gmra.mxu3 %v14057_v5  ;;  %3791 = vmatmul.bf16.vlgmr.msra.gmra.mxu1 %v14057_v5 }
 0x807   : > { %4336 = vmatpush.bf16.msra.mxu1 %v10100_v4  ;;  %v9862_v4 = vld [vmem:[#allocation12 + $0xa0] sm:$0xf] }
 0x808   : > { %3803 = vmatpush.bf16.msrb.mxu2 %v9851_v10 }
 0x80b   : > { %4337 = vmatpush.bf16.msra.mxu1 %v10092_v59  ;;  %v9863_v59 = vor.u32 %v11977_v7, %v9862_v4 }
 0x80c   : > { %4042 = vmatpush.bf16.msra.mxu2 %v10035_v11  ;;  %v10163_v11 = vld [vmem:[#allocation12 + $0x2f0] sm:$0xf] }
 0x80f   : > { %v3502_v30 = vpop.f32.mrf.mxu2  ;;  %4338 = vmatpush.bf16.msra.mxu1 %v10084_v21  ;;  %v10019_v21 = vor.u32 %v12014_v19, %v10016_v20  ;;  %v10155_v19 = vld [vmem:[#allocation12 + $0x2e0] sm:$0xf]  ;;  %v12049_v20 = vld [vmem:[#allocation12 + $0x2e4] sm:$0xf0] }
 0x810   : > { %3546 = vmatpush.msra.mxu0 %v3502_v30  ;;  %4043 = vmatpush.bf16.msra.mxu2 %v10027_v18  ;;  %v10030_v30 = vld [vmem:[#allocation12 + $0x1f0] sm:$0xf]  ;;  %v10156_v61 = vor.u32 %v12049_v20, %v10155_v19  ;;  %v12044_v20 = vld [vmem:[#allocation12 + $0x2c4] sm:$0xf] }
 0x811   : > { %9779 = vmatmul.msk.f32.vlgmr.msra.gmra.mxu0 %vm3296_vm2, %v14048_v23  ;;  %v10031_v33 = vor.u32 %v12019_v31, %v10030_v30  ;;  %v10131_v31 = vld [vmem:[#allocation12 + $0x2b0] sm:$0xf] }
 0x812   : > { %3770 = vmatpush.bf16.msrb.mxu0 %v9903_v29  ;;  %v10008_v29 = vld [vmem:[#allocation12 + $0x1c8] sm:$0xf0] }
 0x813   : > { %4339 = vmatpush.bf16.msra.mxu1 %v10076_v34  ;;  %v10011_v32 = vor.u32 %v12012_v27, %v10008_v29  ;;  %v12010_v34 = vld [vmem:[#allocation12 + $0x1b4] sm:$0xf]  ;;  %v12045_v29 = vld [vmem:[#allocation12 + $0x2c4] sm:$0xf0] }
 0x814   : > { %4044 = vmatpush.bf16.msra.mxu2 %v10019_v21  ;;  %v10003_v36 = vor.u32 %v12010_v34, %v10000_v35  ;;  %v12047_v21 = vld [vmem:[#allocation12 + $0x2d4] sm:$0xf0] }
 0x816   : > { %3771 = vmatpush.bf16.msrb.mxu0 %v9895_v40  ;;  %4011 = vmatmul.bf16.vlgmr.msra.gmra.mxu3 %v14057_v5  ;;  %v10023_v40 = vor.u32 %v12017_v38, %v10022_v37  ;;  %v12041_v37 = vld [vmem:[#allocation12 + $0x2a4] sm:$0xf0] }
 0x817   : > { %v3504_v23 = vpop.f32.mrf.mxu2  ;;  %4037 = vmatmul.bf16.vlgmr.msrb.gmra.mxu1 %v14057_v5 }
 0x818   : > { %4340 = vmatpush.bf16.msra.mxu1 %v10068_v44  ;;  %4045 = vmatpush.bf16.msra.mxu2 %v10011_v32  ;;  %v10014_v44 = vld [vmem:[#allocation12 + $0x1d0] sm:$0xf]  ;;  %v10006_v23 = vld [vmem:[#allocation12 + $0x1c0] sm:$0xf]  ;;  %v12043_v32 = vld [vmem:[#allocation12 + $0x2b4] sm:$0xf0] }
 0x819   : > { %v10015_v46 = vor.u32 %v12015_v45, %v10014_v44  ;;  %v10007_v51 = vor.u32 %v12013_v50, %v10006_v23  ;;  %v10132_v35 = vor.u32 %v12043_v32, %v10131_v31  ;;  %v10107_v44 = vld [vmem:[#allocation12 + $0x280] sm:$0xf]  ;;  %v12037_v45 = vld [vmem:[#allocation12 + $0x284] sm:$0xf0]  ;;  %v12034_v50 = vld [vmem:[#allocation12 + $0x274] sm:$0xf] }
 0x81a   : > { %3772 = vmatpush.bf16.msrb.mxu0 %v9887_v49  ;;  %v9987_v49 = vor.u32 %v12006_v47, %v9984_v48  ;;  %v10169_v32 = vld [vmem:[%s14395_s8 + $0x10] sm:$0xff] }
 0x81c   : > { %4341 = vmatpush.bf16.msra.mxu1 %v10060_v54  ;;  %4046 = vmatpush.bf16.msra.mxu2 %v10003_v36  ;;  %v9976_v54 = vld [vmem:[#allocation12 + $0x188] sm:$0xf0]  ;;  %v10123_v36 = vld [vmem:[#allocation12 + $0x2a0] sm:$0xf] }
 0x81d   : > { %v9979_v55 = vor.u32 %v12004_v53, %v9976_v54  ;;  %v10124_v38 = vor.u32 %v12041_v37, %v10123_v36  ;;  %v12040_v37 = vld [vmem:[#allocation12 + $0x2a4] sm:$0xf] }
 0x81e   : > { %3773 = vmatpush.bf16.msrb.mxu0 %v9879_v57  ;;  %v9990_v57 = vld [vmem:[#allocation12 + $0x1a0] sm:$0xf] }
 0x81f   : > { %v9991_v14 = vor.u32 %v12009_v60, %v9990_v57  ;;  %v10093_v57 = vld [vmem:[#allocation12 + $0x268] sm:$0xf0]  ;;  %v12050_v60 = vld [vmem:[#allocation12 + $0x2f4] sm:$0xf] }
 0x820   : > { %4342 = vmatpush.bf16.msra.mxu1 %v10052_v24  ;;  %4047 = vmatpush.bf16.msra.mxu2 %v9995_v43  ;;  %v12007_v24 = vld [vmem:[#allocation12 + $0x194] sm:$0xf0] }
 0x821   : > { %v9983_v62 = vor.u32 %v12007_v24, %v9982_v25 }
 0x822   : > { %3774 = vmatpush.bf16.msrb.mxu0 %v9871_v2 }
 0x824   : > { %4343 = vmatpush.bf16.msra.mxu1 %v10044_v8  ;;  %4048 = vmatpush.bf16.msra.mxu2 %v9987_v49  ;;  %v3381_v8 = vadd.f32 %v3380_v3, %v14059_v6  ;;  %v10147_v6 = vld [vmem:[#allocation12 + $0x2d0] sm:$0xf] }
 0x825   : > { %v10148_v27 = vor.u32 %v12047_v21, %v10147_v6  ;;  %v12024_v21 = vld [vmem:[#allocation12 + $0x224] sm:$0xf] }
 0x826   : > { %3775 = vmatpush.bf16.msrb.mxu0 %v9863_v59 }
 0x827   : > { %4344 = vmatmul.bf16.vlgmr.msra.gmra.mxu1 %v14057_v5 }
 0x828   : > { %4049 = vmatpush.bf16.msra.mxu2 %v9979_v55  ;;  %v10036_v55 = vld [vmem:[%s14395_s8 + $0x8] sm:$0xff] }
 0x82a   : > { %3776 = vmatpush.bf16.msrb.mxu0 %v9855_v17  ;;  %v10164_v17 = vor.u32 %v12051_v12, %v10163_v11  ;;  %v12046_v12 = vld [vmem:[#allocation12 + $0x2d4] sm:$0xf] }
 0x82e   : > { %3777 = vmatpush.bf16.msrb.mxu0 %v9847_v28  ;;  %v10139_v28 = vld [vmem:[#allocation12 + $0x2c0] sm:$0xf] }
 0x82f   : > { %v10140_v30 = vor.u32 %v12045_v29, %v10139_v28  ;;  %v10133_v28 = vld [vmem:[#allocation12 + $0x2b8] sm:$0xf0] }
 0x832   : > { %4016 = vmatpush.bf16.msra.mxu0 %v10031_v33 }
 0x836   : > { %4017 = vmatpush.bf16.msra.mxu0 %v10023_v40  ;;  %v10115_v40 = vld [vmem:[#allocation12 + $0x290] sm:$0xf] }
 0x837   : > { %v10116_v43 = vor.u32 %v12039_v41, %v10115_v40  ;;  %v12020_v41 = vld [vmem:[#allocation12 + $0x204] sm:$0xf] }
 0x83a   : > { %4018 = vmatpush.bf16.msra.mxu0 %v10015_v46  ;;  %v10108_v46 = vor.u32 %v12037_v45, %v10107_v44  ;;  %v12038_v44 = vld [vmem:[#allocation12 + $0x294] sm:$0xf]  ;;  %v10117_v45 = vld [vmem:[#allocation12 + $0x298] sm:$0xf0] }
 0x83e   : > { %4019 = vmatpush.bf16.msra.mxu0 %v10007_v51  ;;  %v10101_v51 = vld [vmem:[#allocation12 + $0x278] sm:$0xf0] }
 0x83f   : > { %v10104_v15 = vor.u32 %v12034_v50, %v10101_v51 }
 0x842   : > { %4020 = vmatpush.bf16.msra.mxu0 %v9999_v56  ;;  %v12032_v56 = vld [vmem:[#allocation12 + $0x264] sm:$0xf] }
 0x843   : > { %v10096_v24 = vor.u32 %v12032_v56, %v10093_v57 }
 0x846   : > { %4021 = vmatpush.bf16.msra.mxu0 %v9991_v14  ;;  %v10165_v14 = vld [vmem:[#allocation12 + $0x2f8] sm:$0xf0] }
 0x847   : > { %v10168_v3 = vor.u32 %v12050_v60, %v10165_v14 }
 0x84a   : > { %4022 = vmatpush.bf16.msra.mxu0 %v9983_v62 }
 0x84e   : > { %4023 = vmatpush.bf16.msra.mxu0 %v9975_v1 }
 0x883   : > { %v14068_v2 = vpop.f32.mrf.mxu1 }
 0x889   : > { %v14070_v4 = vpop.f32.mrf.mxu3 }
 0x88b   : > { %v3794_v7 = vpop.f32.mrf.mxu1 }
 0x88c   : > { %v3809_v7 = vld [vmem:[%s14395_s8] sm:$0xff] }
 0x88e   : > { %v3548_v9 = vpop.f32.mrf.mxu0 }
 0x88f   : > { %v3552_v10 = vadd.f32 %v3548_v9, %v3381_v8  ;;  %v12048_v8 = vld [vmem:[#allocation12 + $0x2e4] sm:$0xf]  ;;  %v10088_v9 = vor.u32 %v12030_v63, %v10085_v0  ;;  %v14107_v63 = vld [vmem:[%s14397_s12] sm:$0xf]  ;;  %v14112_v0 = vld [vmem:[%s14397_s12 + $0x4] sm:$0xf] }
 0x891   : > { %v3560_v59 = vadd.f32 %v3556_v58, %v3552_v10  ;;  %v3768_v52 = vpop.f32.mrf.mxu3  ;;  %v10157_v58 = vld [vmem:[#allocation12 + $0x2e8] sm:$0xf0]  ;;  %v12028_v10 = vld [vmem:[#allocation12 + $0x244] sm:$0xf] }
 0x892   : > { %v10160_v11 = vor.u32 %v12048_v8, %v10157_v58  ;;  %v10149_v52 = vld [vmem:[#allocation12 + $0x2d8] sm:$0xf0]  ;;  %v4549_v8 = vld [vmem:[#allocation13 + $0x68] sm:$0xff] }
 0x893   : > { %v3562_v13 = vmax.f32 %v3560_v59, 0.0  ;;  %v10077_v59 = vld [vmem:[#allocation12 + $0x248] sm:$0xf0]  ;;  %v10152_v19 = vor.u32 %v12046_v12, %v10149_v52  ;;  %v4547_v52 = vld [vmem:[#allocation13 + $0x58] sm:$0xff] }
 0x894   : > { %v14074_v16 = vpop.f32.mrf.mxu1  ;;  %v4622_v58 = vld [vmem:[#allocation13 + $0x168] sm:$0xff] }
 0x895   : > { %v14076_v18 = vpack.c.bf16 %v3562_v13, %v3562_v13  ;;  %v4565_v12 = vld [vmem:[#allocation13 + $0xe8] sm:$0xff] }
 0x897   : > { %3778 = vmatmul.bf16.vlgmr.msrb.gmra.mxu0 %v14076_v18  ;;  %3804 = vmatmul.bf16.vlgmr.msrb.gmra.mxu2 %v14076_v18 }
 0x898   : > { %4349 = vmatpush.bf16.msrb.mxu2 %v10164_v17  ;;  %v10069_v17 = vld [vmem:[#allocation12 + $0x238] sm:$0xf0] }
 0x899   : > { %v4012_v22 = vpop.f32.mrf.mxu3 }
 0x89c   : > { %4350 = vmatpush.bf16.msrb.mxu2 %v10156_v61  ;;  %v4040_v26 = vpop.f32.mrf.mxu1  ;;  %v10141_v61 = vld [vmem:[#allocation12 + $0x2c8] sm:$0xf0] }
 0x89d   : > { %v10144_v26 = vor.u32 %v12044_v20, %v10141_v61  ;;  %v4545_v20 = vld [vmem:[#allocation13 + $0x48] sm:$0xff] }
 0x89e   : > { %v4618_v61 = vld [vmem:[#allocation13 + $0x148] sm:$0xff] }
 0x8a0   : > { %4351 = vmatpush.bf16.msrb.mxu2 %v10148_v27  ;;  %v12042_v27 = vld [vmem:[#allocation12 + $0x2b4] sm:$0xf] }
 0x8a1   : > { %v4014_v33 = vpop.f32.mrf.mxu3  ;;  %v10136_v36 = vor.u32 %v12042_v27, %v10133_v28  ;;  %v4616_v27 = vld [vmem:[#allocation13 + $0x138] sm:$0xff] }
 0x8a2   : > { %v12022_v33 = vld [vmem:[#allocation12 + $0x214] sm:$0xf] }
 0x8a4   : > { %4352 = vmatpush.bf16.msrb.mxu2 %v10140_v30  ;;  %v14080_v34 = vpop.f32.mrf.mxu1 }
 0x8a7   : > { %4024 = vmatmul.bf16.vlgmr.msra.gmra.mxu0 %v14076_v18  ;;  %4050 = vmatmul.bf16.vlgmr.msra.gmra.mxu2 %v14076_v18 }
 0x8a8   : > { %4353 = vmatpush.bf16.msrb.mxu2 %v10132_v35  ;;  %v10053_v35 = vld [vmem:[#allocation12 + $0x218] sm:$0xf0] }
 0x8a9   : > { %v10056_v40 = vor.u32 %v12022_v33, %v10053_v35 }
 0x8ac   : > { %4354 = vmatpush.bf16.msrb.mxu2 %v10124_v38  ;;  %v4347_v42 = vpop.f32.mrf.mxu1  ;;  %v10125_v38 = vld [vmem:[#allocation12 + $0x2a8] sm:$0xf0] }
 0x8ad   : > { %v10045_v42 = vld [vmem:[#allocation12 + $0x208] sm:$0xf0] }
 0x8b0   : > { %4355 = vmatpush.bf16.msrb.mxu2 %v10116_v43  ;;  %v10128_v43 = vor.u32 %v12040_v37, %v10125_v38  ;;  %v4640_v37 = vld [vmem:[#allocation13 + $0x1f8] sm:$0xff]  ;;  %v4639_v38 = vld [vmem:[#allocation13 + $0x1f0] sm:$0xff] }
 0x8b4   : > { %4356 = vmatpush.bf16.msrb.mxu2 %v10108_v46  ;;  %v10048_v46 = vor.u32 %v12020_v41, %v10045_v42  ;;  %v4637_v41 = vld [vmem:[#allocation13 + $0x1e0] sm:$0xff]  ;;  %v4636_v42 = vld [vmem:[#allocation13 + $0x1d8] sm:$0xff] }
 0x8b7   : > { %4357 = vmatmul.bf16.vlgmr.msrb.gmra.mxu2 %v14076_v18 }
 0x914   : > { %v3779_v47 = vpop.f32.mrf.mxu0 }
 0x915   : > { %v3780_v39 = vadd.f32 %v3779_v47, %v14070_v4  ;;  %v10120_v47 = vor.u32 %v12038_v44, %v10117_v45  ;;  %v4541_v44 = vld [vmem:[#allocation13 + $0x28] sm:$0xff] }
 0x916   : > { %v4561_v45 = vld [vmem:[#allocation13 + $0xc8] sm:$0xff] }
 0x91a   : > { %v3805_v48 = vpop.f32.mrf.mxu2 }
 0x91b   : > { %v3806_v4 = vadd.f32 %v3805_v48, %v14068_v2  ;;  %v10080_v2 = vor.u32 %v12028_v10, %v10077_v59  ;;  %v12036_v48 = vld [vmem:[#allocation12 + $0x284] sm:$0xf] }
 0x91c   : > { %v3781_v49 = vpop.f32.mrf.mxu0  ;;  %v4548_v10 = vld [vmem:[#allocation13 + $0x60] sm:$0xff] }
 0x91d   : > { %v10109_v49 = vld [vmem:[#allocation12 + $0x288] sm:$0xf0]  ;;  %v4621_v59 = vld [vmem:[#allocation13 + $0x160] sm:$0xff] }
 0x922   : > { %v3807_v23 = vpop.f32.mrf.mxu2 }
 0x923   : > { %v10112_v23 = vor.u32 %v12036_v48, %v10109_v49  ;;  %v4560_v48 = vld [vmem:[#allocation13 + $0xc0] sm:$0xff] }
 0x924   : > { %v4025_v53 = vpop.f32.mrf.mxu0  ;;  %v4613_v49 = vld [vmem:[#allocation13 + $0x120] sm:$0xff] }
 0x925   : > { %v4026_v54 = vadd.f32 %v4025_v53, %v4012_v22  ;;  %v10061_v22 = vld [vmem:[#allocation12 + $0x228] sm:$0xf0] }
 0x926   : > { %v10064_v30 = vor.u32 %v12024_v21, %v10061_v22  ;;  %v14100_v53 = vld [vmem:[%s14396_s4] sm:$0x3]  ;;  %v4544_v21 = vld [vmem:[#allocation13 + $0x40] sm:$0xff] }
 0x927   : > { %4075 = vmatpush.msrb.mxu3 %v4026_v54  ;;  %v4617_v22 = vld [vmem:[#allocation13 + $0x140] sm:$0xff] }
 0x928   : > { %10037 = vmatmul.msk.f32.vlgmr.msrb.gmra.mxu3 %vm3296_vm2, %v10036_v55 }
 0x929   : > { %4118 = vmatpush.msra.mxu3 %v3780_v39 }
 0x92a   : > { %v4051_v25 = vpop.f32.mrf.mxu2 }
 0x92b   : > { %4362 = vmatpush.bf16.msrb.mxu3 %v10104_v15  ;;  %v4052_v62 = vadd.f32 %v4051_v25, %v14074_v16  ;;  %v12026_v16 = vld [vmem:[#allocation12 + $0x234] sm:$0xf]  ;;  %v4437_v15 = vperm.slane %v14100_v53, 0 }
 0x92c   : > { %v4027_v1 = vpop.f32.mrf.mxu0  ;;  %v10072_v6 = vor.u32 %v12026_v16, %v10069_v17  ;;  %v4546_v16 = vld [vmem:[#allocation13 + $0x50] sm:$0xff] }
 0x92d   : > { %4095 = vmatpush.msrb.mxu0 %v4052_v62  ;;  %v4551_v1 = vld [vmem:[#allocation13 + $0x78] sm:$0xff]  ;;  %v4619_v17 = vld [vmem:[#allocation13 + $0x150] sm:$0xff] }
 0x92e   : > { %10038 = vmatmul.msk.f32.vlgmr.msrb.gmra.mxu0 %vm3296_vm2, %v10036_v55  ;;  %4568 = vmatpush.msra.mxu2 %v4551_v1  ;;  %v4629_v1 = vld [vmem:[#allocation13 + $0x1a0] sm:$0xff] }
 0x92f   : > { %4363 = vmatpush.bf16.msrb.mxu3 %v10096_v24  ;;  %4138 = vmatpush.msra.mxu0 %v3806_v4  ;;  %v4550_v4 = vld [vmem:[#allocation13 + $0x70] sm:$0xff] }
 0x930   : > { %10039 = vmatmul.msk.f32.vlgmr.msra.gmra.mxu3 %vm3296_vm2, %v3809_v7  ;;  %4569 = vmatpush.msra.mxu2 %v4550_v4  ;;  %v4628_v4 = vld [vmem:[#allocation13 + $0x198] sm:$0xff] }
 0x931   : > { %4375 = vmatpush.bf16.msrb.mxu0 %v10168_v3  ;;  %v4624_v3 = vld [vmem:[#allocation13 + $0x178] sm:$0xff] }
 0x932   : > { %v4053_v13 = vpop.f32.mrf.mxu2  ;;  %4570 = vmatpush.msra.mxu2 %v4549_v8  ;;  %v4627_v8 = vld [vmem:[#allocation13 + $0x190] sm:$0xff] }
 0x933   : > { %4364 = vmatpush.bf16.msrb.mxu3 %v10088_v9  ;;  %v4567_v9 = vld [vmem:[#allocation13 + $0xf8] sm:$0xff] }
 0x934   : > { %v4620_v13 = vld [vmem:[#allocation13 + $0x158] sm:$0xff]  ;;  %4571 = vmatpush.msra.mxu2 %v4548_v10  ;;  %v4552_v10 = vld [vmem:[#allocation13 + $0x80] sm:$0xff] }
 0x935   : > { %4376 = vmatpush.bf16.msrb.mxu0 %v10160_v11  ;;  %v4566_v11 = vld [vmem:[#allocation13 + $0xf0] sm:$0xff] }
 0x936   : > { %10040 = vmatmul.msk.f32.vlgmr.msra.gmra.mxu0 %vm3296_vm2, %v3809_v7  ;;  %v4623_v7 = vld [vmem:[#allocation13 + $0x170] sm:$0xff]  ;;  %4572 = vmatpush.msra.mxu2 %v4547_v52 }
 0x937   : > { %4365 = vmatpush.bf16.msrb.mxu3 %v10080_v2  ;;  %v4564_v2 = vld [vmem:[#allocation13 + $0xe0] sm:$0xff]  ;;  %v12066_v52 = vld [vmem:[#allocation15 + $0x74] sm:$0xf] }
 0x938   : > { %4573 = vmatpush.msra.mxu2 %v4546_v16  ;;  %v10299_v16 = vld [vmem:[#allocation15 + $0xf0] sm:$0xf] }
 0x939   : > { %4377 = vmatpush.bf16.msrb.mxu0 %v10152_v19  ;;  %v4563_v19 = vld [vmem:[#allocation13 + $0xd8] sm:$0xff] }
 0x93a   : > { %v4358_v29 = vpop.f32.mrf.mxu2  ;;  %4574 = vmatpush.msra.mxu2 %v4545_v20 }
 0x93b   : > { %4366 = vmatpush.bf16.msrb.mxu3 %v10072_v6  ;;  %v4359_v31 = vadd.f32 %v4358_v29, %v14080_v34  ;;  %v4562_v6 = vld [vmem:[#allocation13 + $0xd0] sm:$0xff]  ;;  %v4438_v29 = vperm.slane %v14100_v53, 1  ;;  %v4612_v53 = vld [vmem:[#allocation13 + $0x118] sm:$0xff] }
 0x93c   : > { %4575 = vmatpush.msra.mxu2 %v4544_v21  ;;  %v10227_v21 = vld [vmem:[#allocation15 + $0x60] sm:$0xf] }
 0x93d   : > { %4378 = vmatpush.bf16.msrb.mxu0 %v10144_v26  ;;  %4408 = vmatpush.msrb.mxu1 %v4359_v31  ;;  %v4543_v26 = vld [vmem:[#allocation13 + $0x38] sm:$0xff]  ;;  %v4542_v31 = vld [vmem:[#allocation13 + $0x30] sm:$0xff] }
 0x93e   : > { %10170 = vmatmul.msk.f32.vlgmr.msrb.gmra.mxu1 %vm3296_vm2, %v10169_v32  ;;  %4576 = vmatpush.msra.mxu2 %v4543_v26  ;;  %v12065_v26 = vld [vmem:[#allocation15 + $0x64] sm:$0xf0] }
 0x93f   : > { %4367 = vmatpush.bf16.msrb.mxu3 %v10064_v30 }
 0x940   : > { %4577 = vmatpush.msra.mxu2 %v4542_v31  ;;  %v10291_v31 = vld [vmem:[#allocation15 + $0xe0] sm:$0xf] }
 0x941   : > { %4379 = vmatpush.bf16.msrb.mxu0 %v10136_v36 }
 0x942   : > { %v4360_v34 = vpop.f32.mrf.mxu2  ;;  %4578 = vmatpush.msra.mxu2 %v4541_v44 }
 0x943   : > { %4368 = vmatpush.bf16.msrb.mxu3 %v10056_v40  ;;  %v4638_v40 = vld [vmem:[#allocation13 + $0x1e8] sm:$0xff] }
 0x944   : > { %v4614_v34 = vld [vmem:[#allocation13 + $0x128] sm:$0xff] }
 0x945   : > { %4380 = vmatpush.bf16.msrb.mxu0 %v10128_v43  ;;  %v4635_v43 = vld [vmem:[#allocation13 + $0x1d0] sm:$0xff] }
 0x947   : > { %4369 = vmatpush.bf16.msrb.mxu3 %v10048_v46  ;;  %v4634_v46 = vld [vmem:[#allocation13 + $0x1c8] sm:$0xff] }
 0x949   : > { %4381 = vmatpush.bf16.msrb.mxu0 %v10120_v47  ;;  %v4540_v47 = vld [vmem:[#allocation13 + $0x20] sm:$0xff] }
 0x94a   : > { %4370 = vmatmul.bf16.vlgmr.msrb.gmra.mxu3 %v14057_v5  ;;  %4579 = vmatpush.msra.mxu2 %v4540_v47 }
 0x94b   : > { %4588 = vmatpush.msra.mxu3 %v4567_v9  ;;  %v4626_v9 = vld [vmem:[#allocation13 + $0x188] sm:$0xff] }
 0x94d   : > { %4382 = vmatpush.bf16.msrb.mxu0 %v10112_v23  ;;  %4589 = vmatpush.msra.mxu3 %v4566_v11  ;;  %v4633_v23 = vld [vmem:[#allocation13 + $0x1c0] sm:$0xff]  ;;  %v10235_v11 = vld [vmem:[#allocation15 + $0x70] sm:$0xf] }
 0x94f   : > { %4590 = vmatpush.msra.mxu3 %v4565_v12  ;;  %v12067_v12 = vld [vmem:[#allocation15 + $0x74] sm:$0xf0] }
 0x950   : > { %4383 = vmatmul.bf16.vlgmr.msrb.gmra.mxu0 %v14076_v18 }
 0x951   : > { %4591 = vmatpush.msra.mxu3 %v4564_v2  ;;  %v10237_v2 = vld [vmem:[#allocation15 + $0x78] sm:$0xf0] }
 0x953   : > { %4592 = vmatpush.msra.mxu3 %v4563_v19  ;;  %v10240_v19 = vor.u32 %v12066_v52, %v10237_v2  ;;  %v10259_v2 = vld [vmem:[#allocation15 + $0xa0] sm:$0xf] }
 0x955   : > { %4593 = vmatpush.msra.mxu3 %v4562_v6  ;;  %v10301_v6 = vld [vmem:[#allocation15 + $0xf8] sm:$0xf0] }
 0x957   : > { %4594 = vmatpush.msra.mxu3 %v4561_v45  ;;  %v12079_v45 = vld [vmem:[#allocation15 + $0xd4] sm:$0xf0] }
 0x959   : > { %4595 = vmatpush.msra.mxu3 %v4560_v48 }
 0x9ab   : > { %v4077_v50 = vpop.f32.mrf.mxu3  ;;  %v14102_v54 = vpop.f32.mrf.mxu0 }
 0x9b3   : > { %v4120_v51 = vpop.f32.mrf.mxu3  ;;  %v4140_v5 = vpop.f32.mrf.mxu0 }
 0x9b4   : > { %v4121_v55 = vadd.f32 %v4120_v51, %v4077_v50  ;;  %v4141_v28 = vadd.f32 %v4140_v5, %v14102_v54  ;;  %v4539_v50 = vld [vmem:[#allocation13 + $0x18] sm:$0xff]  ;;  %v4537_v5 = vld [vmem:[#allocation13 + $0x8] sm:$0xff] }
 0x9b5   : > { %v4559_v51 = vld [vmem:[#allocation13 + $0xb8] sm:$0xff]  ;;  %4580 = vmatpush.msra.mxu2 %v4539_v50 }
 0x9b6   : > { %v4632_v54 = vld [vmem:[#allocation13 + $0x1b8] sm:$0xff]  ;;  %4596 = vmatpush.msra.mxu3 %v4559_v51 }
 0x9bb   : > { %v4410_v39 = vpop.f32.mrf.mxu1 }
 0x9bc   : > { %v4433_v56 = vadd.f32 %v4410_v39, %v4121_v55  ;;  %v4538_v55 = vld [vmem:[#allocation13 + $0x10] sm:$0xff] }
 0x9bd   : > { %v4611_v39 = vld [vmem:[#allocation13 + $0x110] sm:$0xff]  ;;  %4581 = vmatpush.msra.mxu2 %v4538_v55  ;;  %v12060_v55 = vld [vmem:[#allocation15 + $0x44] sm:$0xf] }
 0x9be   : > { %v4441_v57 = vadd.f32 %v4437_v15, %v4433_v56  ;;  %v4558_v15 = vld [vmem:[#allocation13 + $0xb0] sm:$0xff] }
 0x9bf   : > { %v4631_v56 = vld [vmem:[#allocation13 + $0x1b0] sm:$0xff]  ;;  %4597 = vmatpush.msra.mxu3 %v4558_v15  ;;  %4582 = vmatpush.msra.mxu2 %v4537_v5 }
 0x9c0   : > { %v4443_v60 = vmax.f32 %v4441_v57, 0.0 }
 0x9c2   : > { %4464 = vmatpush.msra.mxu0 %v4443_v60 }
 0x9c3   : > { %10172 = vmatmul.msk.f32.vlgmr.msra.gmra.mxu0 %vm3296_vm2, %v14107_v63 }
 0x9c4   : > { %4509 = vmatpush.msrb.mxu0 %v4443_v60 }
 0x9c6   : > { %4641 = vmatpush.msra.mxu0 %v4624_v3  ;;  %v4555_v3 = vld [vmem:[#allocation13 + $0x98] sm:$0xff] }
 0x9c8   : > { %4642 = vmatpush.msra.mxu0 %v4623_v7  ;;  %v4554_v7 = vld [vmem:[#allocation13 + $0x90] sm:$0xff] }
 0x9ca   : > { %4643 = vmatpush.msra.mxu0 %v4622_v58  ;;  %v4553_v58 = vld [vmem:[#allocation13 + $0x88] sm:$0xff] }
 0x9cb   : > { %10175 = vmatmul.msk.f32.vlgmr.msrb.gmra.mxu0 %vm3296_vm2, %v14112_v0 }
 0x9cc   : > { %4644 = vmatpush.msra.mxu0 %v4621_v59  ;;  %v4625_v59 = vld [vmem:[#allocation13 + $0x180] sm:$0xff] }
 0x9cd   : > { %v4371_v14 = vpop.f32.mrf.mxu3  ;;  %v4384_v18 = vpop.f32.mrf.mxu0 }
 0x9ce   : > { %v4385_v25 = vadd.f32 %v4384_v18, %v4371_v14  ;;  %4645 = vmatpush.msra.mxu0 %v4620_v13  ;;  %v4557_v14 = vld [vmem:[#allocation13 + $0xa8] sm:$0xff]  ;;  %v10236_v13 = vor.u32 %v12067_v12, %v10235_v11  ;;  %v12056_v12 = vld [vmem:[#allocation15 + $0x24] sm:$0xf] }
 0x9cf   : > { %v4610_v18 = vld [vmem:[#allocation13 + $0x108] sm:$0xff]  ;;  %4598 = vmatpush.msra.mxu3 %v4557_v14  ;;  %v12076_v14 = vld [vmem:[#allocation15 + $0xc4] sm:$0xf] }
 0x9d0   : > { %4428 = vmatpush.msra.mxu1 %v4385_v25  ;;  %4646 = vmatpush.msra.mxu0 %v4619_v17  ;;  %v12083_v17 = vld [vmem:[#allocation15 + $0xf4] sm:$0xf0]  ;;  %v12057_v11 = vld [vmem:[#allocation15 + $0x24] sm:$0xf0] }
 0x9d1   : > { %10171 = vmatmul.msk.f32.vlgmr.msra.gmra.mxu1 %vm3296_vm2, %v10169_v32  ;;  %v4615_v32 = vld [vmem:[#allocation13 + $0x130] sm:$0xff]  ;;  %v10300_v20 = vor.u32 %v12083_v17, %v10299_v16  ;;  %v12073_v16 = vld [vmem:[#allocation15 + $0xa4] sm:$0xf0] }
 0x9d2   : > { %4647 = vmatpush.msra.mxu0 %v4618_v61  ;;  %v12082_v61 = vld [vmem:[#allocation15 + $0xf4] sm:$0xf] }
 0x9d4   : > { %4648 = vmatpush.msra.mxu0 %v4617_v22  ;;  %v10304_v22 = vor.u32 %v12082_v61, %v10301_v6  ;;  %v10261_v61 = vld [vmem:[#allocation15 + $0xa8] sm:$0xf0] }
 0x9d5   : > { %v4373_v24 = vpop.f32.mrf.mxu3  ;;  %v4386_v62 = vpop.f32.mrf.mxu0 }
 0x9d6   : > { %4649 = vmatpush.msra.mxu0 %v4616_v27  ;;  %v4630_v24 = vld [vmem:[#allocation13 + $0x1a8] sm:$0xff]  ;;  %v4536_v62 = vld [vmem:[#allocation13] sm:$0xff] }
 0x9d7   : > { %4583 = vmatpush.msra.mxu2 %v4536_v62  ;;  %v12064_v27 = vld [vmem:[#allocation15 + $0x64] sm:$0xf]  ;;  %v12059_v62 = vld [vmem:[#allocation15 + $0x34] sm:$0xf0] }
 0x9d8   : > { %4650 = vmatpush.msra.mxu0 %v4615_v32  ;;  %v12081_v32 = vld [vmem:[#allocation15 + $0xe4] sm:$0xf0] }
 0x9d9   : > { %4779 = vmatpush.bf16.msrb.mxu2 %v10236_v13  ;;  %v10197_v13 = vld [vmem:[#allocation15 + $0x28] sm:$0xf0] }
 0x9da   : > { %4651 = vmatpush.msra.mxu0 %v4614_v34  ;;  %v12078_v34 = vld [vmem:[#allocation15 + $0xd4] sm:$0xf]  ;;  %v10200_v17 = vor.u32 %v12056_v12, %v10197_v13  ;;  %v10348_v13 = vld [vmem:[#allocation15 + $0x140] sm:$0xf] }
 0x9dc   : > { %4652 = vmatpush.msra.mxu0 %v4613_v49 }
 0x9de   : > { %4653 = vmatpush.msra.mxu0 %v4612_v53  ;;  %v10211_v53 = vld [vmem:[#allocation15 + $0x40] sm:$0xf] }
 0x9e0   : > { %4654 = vmatpush.msra.mxu0 %v4611_v39  ;;  %v10213_v39 = vld [vmem:[#allocation15 + $0x48] sm:$0xf0] }
 0x9e2   : > { %4655 = vmatpush.msra.mxu0 %v4610_v18  ;;  %v10277_v18 = vld [vmem:[#allocation15 + $0xc8] sm:$0xf0] }
 0xa40   : > { %v4466_v57 = vpop.f32.mrf.mxu0 }
 0xa48   : > { %v4511_v60 = vpop.f32.mrf.mxu0 }
 0xa49   : > { %v4534_v25 = vmax.f32 %v4466_v57, %v4511_v60  ;;  %v12077_v57 = vld [vmem:[#allocation15 + $0xc4] sm:$0xf0]  ;;  %v10216_v60 = vor.u32 %v12060_v55, %v10213_v39  ;;  %v10372_v39 = vld [vmem:[#allocation15 + $0x170] sm:$0xf] }
 0xa4b   : > { %4584 = vmatmul.f32.vlgmr.msra.gmra.mxu2 %v4534_v25 }
 0xa4e   : > { %v4430_v30 = vpop.f32.mrf.mxu1 }
 0xa4f   : > { %v4434_v33 = vadd.f32 %v4430_v30, %v4141_v28  ;;  %v10229_v28 = vld [vmem:[#allocation15 + $0x68] sm:$0xf0] }
 0xa50   : > { %v10232_v30 = vor.u32 %v12064_v27, %v10229_v28  ;;  %v10189_v28 = vld [vmem:[#allocation15 + $0x18] sm:$0xf0] }
 0xa51   : > { %v4442_v35 = vadd.f32 %v4438_v29, %v4434_v33  ;;  %v10228_v29 = vor.u32 %v12065_v26, %v10227_v21  ;;  %v12080_v33 = vld [vmem:[#allocation15 + $0xe4] sm:$0xf]  ;;  %v10187_v21 = vld [vmem:[#allocation15 + $0x10] sm:$0xf]  ;;  %v12054_v26 = vld [vmem:[#allocation15 + $0x14] sm:$0xf] }
 0xa53   : > { %v4444_v36 = vmax.f32 %v4442_v35, 0.0  ;;  %v10292_v35 = vor.u32 %v12081_v32, %v10291_v31  ;;  %4780 = vmatpush.bf16.msrb.mxu2 %v10228_v29  ;;  %v10251_v29 = vld [vmem:[#allocation15 + $0x90] sm:$0xf]  ;;  %v10192_v31 = vor.u32 %v12054_v26, %v10189_v28  ;;  %v12090_v26 = vld [vmem:[#allocation15 + $0x134] sm:$0xf] }
 0xa55   : > { %4484 = vmatpush.msrb.mxu1 %v4444_v36 }
 0xa56   : > { %10173 = vmatmul.msk.f32.vlgmr.msrb.gmra.mxu1 %vm3296_vm2, %v14107_v63  ;;  %v4556_v63 = vld [vmem:[#allocation13 + $0xa0] sm:$0xff] }
 0xa57   : > { %4529 = vmatpush.msra.mxu1 %v4444_v36  ;;  %4599 = vmatpush.msra.mxu3 %v4556_v63  ;;  %v10293_v36 = vld [vmem:[#allocation15 + $0xe8] sm:$0xf0]  ;;  %v12058_v63 = vld [vmem:[#allocation15 + $0x34] sm:$0xf] }
 0xa59   : > { %4661 = vmatpush.msrb.mxu1 %v4640_v37  ;;  %4600 = vmatpush.msra.mxu3 %v4555_v3  ;;  %v10219_v37 = vld [vmem:[#allocation15 + $0x50] sm:$0xf] }
 0xa5a   : > { %v10267_v3 = vld [vmem:[#allocation15 + $0xb0] sm:$0xf] }
 0xa5b   : > { %4662 = vmatpush.msrb.mxu1 %v4639_v38  ;;  %4601 = vmatpush.msra.mxu3 %v4554_v7  ;;  %v12063_v38 = vld [vmem:[#allocation15 + $0x54] sm:$0xf0] }
 0xa5c   : > { %v10220_v44 = vor.u32 %v12063_v38, %v10219_v37  ;;  %v10179_v37 = vld [vmem:[#allocation15] sm:$0xf]  ;;  %v12053_v38 = vld [vmem:[#allocation15 + $0x4] sm:$0xf0] }
 0xa5d   : > { %4663 = vmatpush.msrb.mxu1 %v4638_v40  ;;  %4602 = vmatpush.msra.mxu3 %v4553_v58  ;;  %v10296_v40 = vor.u32 %v12080_v33, %v10293_v36  ;;  %v12074_v58 = vld [vmem:[#allocation15 + $0xb4] sm:$0xf] }
 0xa5e   : > { %10176 = vmatmul.msk.f32.vlgmr.msra.gmra.mxu1 %vm3296_vm2, %v14112_v0  ;;  %v4609_v0 = vld [vmem:[#allocation13 + $0x100] sm:$0xff]  ;;  %4781 = vmatpush.bf16.msrb.mxu2 %v10220_v44  ;;  %v12070_v33 = vld [vmem:[#allocation15 + $0x94] sm:$0xf]  ;;  %v12069_v44 = vld [vmem:[#allocation15 + $0x84] sm:$0xf0] }
 0xa5f   : > { %4664 = vmatpush.msrb.mxu1 %v4637_v41  ;;  %4656 = vmatpush.msra.mxu0 %v4609_v0  ;;  %v12062_v41 = vld [vmem:[#allocation15 + $0x54] sm:$0xf] }
 0xa60   : > { %4657 = vmatmul.f32.vlgmr.msra.gmra.mxu0 %v4534_v25  ;;  %4603 = vmatpush.msra.mxu3 %v4552_v10  ;;  %v10280_v25 = vor.u32 %v12076_v14, %v10277_v18  ;;  %v10364_v18 = vld [vmem:[#allocation15 + $0x160] sm:$0xf] }
 0xa61   : > { %4665 = vmatpush.msrb.mxu1 %v4636_v42  ;;  %4903 = vmatpush.bf16.msrb.mxu0 %v10300_v20  ;;  %v10221_v42 = vld [vmem:[#allocation15 + $0x58] sm:$0xf0]  ;;  %v12072_v20 = vld [vmem:[#allocation15 + $0xa4] sm:$0xf] }
 0xa62   : > { %4792 = vmatpush.bf16.msrb.mxu3 %v10240_v19  ;;  %v10224_v47 = vor.u32 %v12062_v41, %v10221_v42  ;;  %v10260_v19 = vor.u32 %v12073_v16, %v10259_v2  ;;  %v10264_v6 = vor.u32 %v12072_v20, %v10261_v61  ;;  %v10180_v41 = vor.u32 %v12053_v38, %v10179_v37  ;;  %v10181_v42 = vld [vmem:[#allocation15 + $0x8] sm:$0xf0]  ;;  %v12093_v2 = vld [vmem:[#allocation15 + $0x144] sm:$0xf0]  ;;  %v12092_v16 = vld [vmem:[#allocation15 + $0x144] sm:$0xf] }
 0xa63   : > { %4666 = vmatpush.msrb.mxu1 %v4635_v43  ;;  %v10283_v43 = vld [vmem:[#allocation15 + $0xd0] sm:$0xf]  ;;  %v10349_v61 = vor.u32 %v12093_v2, %v10348_v13 }
 0xa64   : > { %v10284_v48 = vor.u32 %v12079_v45, %v10283_v43  ;;  %v10243_v43 = vld [vmem:[#allocation15 + $0x80] sm:$0xf] }
 0xa65   : > { %4667 = vmatpush.msrb.mxu1 %v4634_v46  ;;  %v10285_v46 = vld [vmem:[#allocation15 + $0xd8] sm:$0xf0]  ;;  %4904 = vmatpush.bf16.msrb.mxu0 %v10292_v35 }
 0xa66   : > { %4793 = vmatpush.bf16.msrb.mxu3 %v10232_v30  ;;  %v10288_v49 = vor.u32 %v12078_v34, %v10285_v46  ;;  %v12071_v30 = vld [vmem:[#allocation15 + $0x94] sm:$0xf0]  ;;  %v10253_v35 = vld [vmem:[#allocation15 + $0x98] sm:$0xf0]  ;;  %v10244_v34 = vor.u32 %v12069_v44, %v10243_v43  ;;  %v12068_v46 = vld [vmem:[#allocation15 + $0x84] sm:$0xf] }
 0xa67   : > { %4668 = vmatpush.msrb.mxu1 %v4633_v23  ;;  %v10252_v32 = vor.u32 %v12071_v30, %v10251_v29  ;;  %v10256_v36 = vor.u32 %v12070_v33, %v10253_v35  ;;  %v12089_v33 = vld [vmem:[#allocation15 + $0x124] sm:$0xf0]  ;;  %v12088_v35 = vld [vmem:[#allocation15 + $0x124] sm:$0xf]  ;;  %v10326_v43 = vld [vmem:[#allocation15 + $0x118] sm:$0xf0] }
 0xa69   : > { %4669 = vmatpush.msrb.mxu1 %v4632_v54  ;;  %4905 = vmatpush.bf16.msrb.mxu0 %v10284_v48  ;;  %v12061_v54 = vld [vmem:[#allocation15 + $0x44] sm:$0xf0] }
 0xa6a   : > { %4794 = vmatpush.bf16.msrb.mxu3 %v10224_v47  ;;  %v10212_v15 = vor.u32 %v12061_v54, %v10211_v53  ;;  %v10245_v47 = vld [vmem:[#allocation15 + $0x88] sm:$0xf0] }
 0xa6b   : > { %4670 = vmatpush.msrb.mxu1 %v4631_v56  ;;  %v10275_v56 = vld [vmem:[#allocation15 + $0xc0] sm:$0xf]  ;;  %v10248_v48 = vor.u32 %v12068_v46, %v10245_v47  ;;  %v12085_v46 = vld [vmem:[#allocation15 + $0x104] sm:$0xf0]  ;;  %v12084_v47 = vld [vmem:[#allocation15 + $0x104] sm:$0xf] }
 0xa6c   : > { %v10276_v5 = vor.u32 %v12077_v57, %v10275_v56  ;;  %4782 = vmatpush.bf16.msrb.mxu2 %v10212_v15  ;;  %v12099_v56 = vld [vmem:[#allocation15 + $0x174] sm:$0xf0]  ;;  %v12098_v57 = vld [vmem:[#allocation15 + $0x174] sm:$0xf] }
 0xa6d   : > { %4671 = vmatpush.msrb.mxu1 %v4630_v24  ;;  %v10203_v24 = vld [vmem:[#allocation15 + $0x30] sm:$0xf] }
 0xa6e   : > { %4795 = vmatpush.bf16.msrb.mxu3 %v10216_v60  ;;  %4906 = vmatpush.bf16.msrb.mxu0 %v10276_v5  ;;  %v10204_v0 = vor.u32 %v12059_v62, %v10203_v24  ;;  %v10374_v60 = vld [vmem:[#allocation15 + $0x178] sm:$0xf0]  ;;  %v10373_v5 = vor.u32 %v12099_v56, %v10372_v39  ;;  %v12096_v24 = vld [vmem:[#allocation15 + $0x164] sm:$0xf]  ;;  %v10366_v62 = vld [vmem:[#allocation15 + $0x168] sm:$0xf0] }
 0xa6f   : > { %4672 = vmatpush.msrb.mxu1 %v4629_v1  ;;  %v10205_v1 = vld [vmem:[#allocation15 + $0x38] sm:$0xf0]  ;;  %v10377_v14 = vor.u32 %v12098_v57, %v10374_v60  ;;  %v12112_v39 = vld [vmem:[#allocation18 + $0x64] sm:$0xf]  ;;  %v10435_v56 = vld [vmem:[#allocation18 + $0x68] sm:$0xf0] }
 0xa70   : > { %v10208_v7 = vor.u32 %v12058_v63, %v10205_v1  ;;  %4783 = vmatpush.bf16.msrb.mxu2 %v10204_v0  ;;  %v10305_v1 = vld [vmem:[%s14398_s29 + $0x4] sm:$0xf]  ;;  %v12128_v60 = vld [vmem:[#allocation18 + $0xe4] sm:$0xf] }
 0xa71   : > { %4673 = vmatpush.msrb.mxu1 %v4628_v4  ;;  %v12075_v4 = vld [vmem:[#allocation15 + $0xb4] sm:$0xf0] }
 0xa72   : > { %4796 = vmatpush.bf16.msrb.mxu3 %v10208_v7  ;;  %v10356_v7 = vld [vmem:[#allocation15 + $0x150] sm:$0xf] }
 0xa73   : > { %4674 = vmatpush.msrb.mxu1 %v4627_v8  ;;  %v10268_v8 = vor.u32 %v12075_v4, %v10267_v3  ;;  %v10369_v4 = vor.u32 %v12096_v24, %v10366_v62  ;;  %v10427_v24 = vld [vmem:[#allocation18 + $0x58] sm:$0xf0]  ;;  %v12126_v62 = vld [vmem:[#allocation18 + $0xd4] sm:$0xf] }
 0xa75   : > { %4675 = vmatpush.msrb.mxu1 %v4626_v9  ;;  %v10269_v9 = vld [vmem:[#allocation15 + $0xb8] sm:$0xf0]  ;;  %4907 = vmatpush.bf16.msrb.mxu0 %v10268_v8  ;;  %v12095_v8 = vld [vmem:[#allocation15 + $0x154] sm:$0xf0] }
 0xa76   : > { %v10272_v10 = vor.u32 %v12074_v58, %v10269_v9  ;;  %4797 = vmatpush.bf16.msrb.mxu3 %v10200_v17  ;;  %v12094_v58 = vld [vmem:[#allocation15 + $0x154] sm:$0xf]  ;;  %v10358_v9 = vld [vmem:[#allocation15 + $0x158] sm:$0xf0]  ;;  %v10357_v12 = vor.u32 %v12095_v8, %v10356_v7  ;;  %v10350_v17 = vld [vmem:[#allocation15 + $0x148] sm:$0xf0] }
 0xa77   : > { %4676 = vmatpush.msrb.mxu1 %v4625_v59  ;;  %v10195_v59 = vld [vmem:[#allocation15 + $0x20] sm:$0xf]  ;;  %v10483_v7 = vld [vmem:[#allocation18 + $0xc8] sm:$0xf0] }
 0xa78   : > { %v10196_v52 = vor.u32 %v12057_v11, %v10195_v59  ;;  %v4805_v11 = vld [vmem:[%s14398_s29] sm:$0xf] }
 0xa79   : > { %4916 = vmatpush.bf16.msra.mxu1 %v10304_v22  ;;  %4908 = vmatpush.bf16.msrb.mxu0 %v10260_v19  ;;  %v12055_v22 = vld [vmem:[#allocation15 + $0x14] sm:$0xf0] }
 0xa7a   : > { %4784 = vmatpush.bf16.msrb.mxu2 %v10196_v52  ;;  %v10188_v27 = vor.u32 %v12055_v22, %v10187_v21  ;;  %4798 = vmatpush.bf16.msrb.mxu3 %v10192_v31  ;;  %v10361_v52 = vor.u32 %v12094_v58, %v10358_v9  ;;  %v10340_v21 = vld [vmem:[#allocation15 + $0x130] sm:$0xf]  ;;  %v12091_v22 = vld [vmem:[#allocation15 + $0x134] sm:$0xf0] }
 0xa7b   : > { %v10341_v30 = vor.u32 %v12091_v22, %v10340_v21  ;;  %v12106_v9 = vld [vmem:[#allocation18 + $0x34] sm:$0xf]  ;;  %v10505_v22 = vld [vmem:[#allocation18 + $0xf0] sm:$0xf] }
 0xa7d   : > { %4917 = vmatpush.bf16.msra.mxu1 %v10296_v40  ;;  %4909 = vmatpush.bf16.msrb.mxu0 %v10252_v32  ;;  %v12052_v40 = vld [vmem:[#allocation15 + $0x4] sm:$0xf]  ;;  %v10332_v32 = vld [vmem:[#allocation15 + $0x120] sm:$0xf] }
 0xa7e   : > { %4785 = vmatpush.bf16.msrb.mxu2 %v10188_v27  ;;  %v10184_v45 = vor.u32 %v12052_v40, %v10181_v42  ;;  %v10342_v27 = vld [vmem:[#allocation15 + $0x138] sm:$0xf0]  ;;  %v10333_v37 = vor.u32 %v12089_v33, %v10332_v32  ;;  %v10324_v40 = vld [vmem:[#allocation15 + $0x110] sm:$0xf]  ;;  %v12086_v42 = vld [vmem:[#allocation15 + $0x114] sm:$0xf] }
 0xa7f   : > { %v10345_v31 = vor.u32 %v12090_v26, %v10342_v27  ;;  %v12131_v26 = vld [vmem:[#allocation18 + $0xf4] sm:$0xf0]  ;;  %v10378_v32 = vld [vmem:[%s14398_s29 + $0x8] sm:$0xf] }
 0xa80   : > { %4799 = vmatpush.bf16.msrb.mxu3 %v10184_v45  ;;  %v10329_v45 = vor.u32 %v12086_v42, %v10326_v43  ;;  %v12129_v42 = vld [vmem:[#allocation18 + $0xe4] sm:$0xf0] }
 0xa81   : > { %4918 = vmatpush.bf16.msra.mxu1 %v10288_v49  ;;  %4910 = vmatpush.bf16.msrb.mxu0 %v10244_v34  ;;  %v10316_v34 = vld [vmem:[#allocation15 + $0x100] sm:$0xf] }
 0xa82   : > { %4786 = vmatpush.bf16.msrb.mxu2 %v10180_v41  ;;  %v12087_v41 = vld [vmem:[#allocation15 + $0x114] sm:$0xf0] }
 0xa83   : > { %v10325_v44 = vor.u32 %v12087_v41, %v10324_v40 }
 0xa85   : > { %4919 = vmatpush.bf16.msra.mxu1 %v10280_v25  ;;  %v12097_v25 = vld [vmem:[#allocation15 + $0x164] sm:$0xf0] }
 0xa86   : > { %v10365_v3 = vor.u32 %v12097_v25, %v10364_v18  ;;  %v12110_v25 = vld [vmem:[#allocation18 + $0x54] sm:$0xf] }
 0xa89   : > { %4920 = vmatpush.bf16.msra.mxu1 %v10272_v10 }
 0xa8d   : > { %4921 = vmatpush.bf16.msra.mxu1 %v10264_v6  ;;  %v10353_v6 = vor.u32 %v12092_v16, %v10350_v17  ;;  %v12104_v16 = vld [vmem:[#allocation18 + $0x24] sm:$0xf]  ;;  %v10403_v17 = vld [vmem:[#allocation18 + $0x28] sm:$0xf0] }
 0xa8e   : > { %v10406_v21 = vor.u32 %v12104_v16, %v10403_v17  ;;  %v10409_v17 = vld [vmem:[#allocation18 + $0x30] sm:$0xf] }
 0xa91   : > { %4922 = vmatpush.bf16.msra.mxu1 %v10256_v36  ;;  %v10334_v36 = vld [vmem:[#allocation15 + $0x128] sm:$0xf0] }
 0xa92   : > { %v10337_v38 = vor.u32 %v12088_v35, %v10334_v36  ;;  %v10506_v35 = vor.u32 %v12131_v26, %v10505_v22  ;;  %v10433_v36 = vld [vmem:[#allocation18 + $0x60] sm:$0xf]  ;;  %v12140_v22 = vld [vmem:[#allocation18 + $0x144] sm:$0xf]  ;;  %v10547_v26 = vld [vmem:[#allocation18 + $0x148] sm:$0xf0] }
 0xa95   : > { %4923 = vmatpush.bf16.msra.mxu1 %v10248_v48  ;;  %v10318_v48 = vld [vmem:[#allocation15 + $0x108] sm:$0xf0] }
 0xad3   : > { %v4486_v23 = vpop.f32.mrf.mxu1 }
 0xadb   : > { %v4531_v50 = vpop.f32.mrf.mxu1 }
 0xadc   : > { %v4535_v51 = vmax.f32 %v4486_v23, %v4531_v50  ;;  %v4585_v50 = vpop.f32.mrf.mxu2 }
 0xadd   : > { %v4658_v23 = vpop.f32.mrf.mxu0 }
 0xade   : > { %4604 = vmatmul.f32.vlgmr.msra.gmra.mxu3 %v4535_v51  ;;  %4677 = vmatmul.f32.vlgmr.msrb.gmra.mxu1 %v4535_v51 }
 0xb5b   : > { %v4678_v49 = vpop.f32.mrf.mxu1 }
 0xb5c   : > { %v4679_v53 = vadd.f32 %v4678_v49, %v4658_v23  ;;  %v10317_v49 = vor.u32 %v12085_v46, %v10316_v34  ;;  %v10321_v23 = vor.u32 %v12084_v47, %v10318_v48  ;;  %v10387_v34 = vld [vmem:[#allocation18 + $0x8] sm:$0xf0]  ;;  %v12116_v46 = vld [vmem:[#allocation18 + $0x84] sm:$0xf]  ;;  %v12146_v48 = vld [vmem:[#allocation18 + $0x174] sm:$0xf] }
 0xb5d   : > { %v10451_v47 = vld [vmem:[#allocation18 + $0x88] sm:$0xf0] }
 0xb61   : > { %v4605_v51 = vpop.f32.mrf.mxu3 }
 0xb62   : > { %v4606_v54 = vadd.f32 %v4605_v51, %v4585_v50  ;;  %v12114_v50 = vld [vmem:[#allocation18 + $0x74] sm:$0xf]  ;;  %v10443_v51 = vld [vmem:[#allocation18 + $0x78] sm:$0xf0] }
 0xb64   : > { %v4681_v55 = vmax.f32 %v4606_v54, %v4679_v53  ;;  %v12130_v53 = vld [vmem:[#allocation18 + $0xf4] sm:$0xf]  ;;  %v10446_v54 = vor.u32 %v12114_v50, %v10443_v51  ;;  %v10635_v50 = vld [vmem:[#allocation18 + $0x1f8] sm:$0xf0] }
 0xb66   : > { %v14122_v15 = vpack.c.bf16 %v4681_v55, %v4681_v55  ;;  %v10507_v55 = vld [vmem:[#allocation18 + $0xf8] sm:$0xf0] }
 0xb67   : > { %v10510_v57 = vor.u32 %v12130_v53, %v10507_v55  ;;  %v12111_v55 = vld [vmem:[#allocation18 + $0x54] sm:$0xf0] }
 0xb68   : > { %4787 = vmatmul.bf16.vlgmr.msrb.gmra.mxu2 %v14122_v15  ;;  %4800 = vmatmul.bf16.vlgmr.msrb.gmra.mxu3 %v14122_v15 }
 0xb69   : > { %4911 = vmatmul.bf16.vlgmr.msrb.gmra.mxu0 %v14122_v15  ;;  %4924 = vmatmul.bf16.vlgmr.msra.gmra.mxu1 %v14122_v15 }
 0xbe6   : > { %v4912_v63 = vpop.f32.mrf.mxu0  ;;  %v4925_v0 = vpop.f32.mrf.mxu1 }
 0xbe7   : > { %10306 = vmatpush.msk.msra.mxu2 %vm4935_vm3, %v4912_v63  ;;  %10308 = vmatpush.msk.msra.mxu3 %vm4935_vm3, %v4925_v0  ;;  %v10491_v63 = vld [vmem:[#allocation18 + $0xd8] sm:$0xf0] }
 0xbe8   : > { %10307 = vmatmul.msk.f32.vlgmr.msra.gmra.mxu2 %vm4931_vm4, %v10305_v1  ;;  %10309 = vmatmul.msk.f32.vlgmr.msra.gmra.mxu3 %vm4931_vm4, %v10305_v1  ;;  %v10494_v0 = vor.u32 %v12126_v62, %v10491_v63  ;;  %v12108_v1 = vld [vmem:[#allocation18 + $0x44] sm:$0xf]  ;;  %v10627_v62 = vld [vmem:[#allocation18 + $0x1e8] sm:$0xf0] }
 0xbe9   : > { %5128 = vmatpush.bf16.msrb.mxu2 %v10373_v5  ;;  %5141 = vmatpush.bf16.msrb.mxu3 %v10377_v14  ;;  %v10499_v5 = vld [vmem:[#allocation18 + $0xe8] sm:$0xf0]  ;;  %v10438_v14 = vor.u32 %v12112_v39, %v10435_v56  ;;  %v10489_v39 = vld [vmem:[#allocation18 + $0xd0] sm:$0xf]  ;;  %v12127_v56 = vld [vmem:[#allocation18 + $0xd4] sm:$0xf0] }
 0xbea   : > { %v10502_v18 = vor.u32 %v12128_v60, %v10499_v5  ;;  %v10454_v60 = vor.u32 %v12116_v46, %v10451_v47  ;;  %v10457_v46 = vld [vmem:[#allocation18 + $0x90] sm:$0xf]  ;;  %v12119_v47 = vld [vmem:[#allocation18 + $0x94] sm:$0xf0] }
 0xbeb   : > { %v4788_v10 = vpop.f32.mrf.mxu2  ;;  %v4801_v59 = vpop.f32.mrf.mxu3 }
 0xbec   : > { %10310 = vmatpush.msk.msra.mxu0 %vm4935_vm3, %v4788_v10  ;;  %10312 = vmatpush.msk.msrb.mxu1 %vm4935_vm3, %v4801_v59  ;;  %v10411_v10 = vld [vmem:[#allocation18 + $0x38] sm:$0xf0]  ;;  %v12122_v59 = vld [vmem:[#allocation18 + $0xb4] sm:$0xf] }
 0xbed   : > { %5129 = vmatpush.bf16.msrb.mxu2 %v10365_v3  ;;  %5142 = vmatpush.bf16.msrb.mxu3 %v10369_v4  ;;  %v10419_v3 = vld [vmem:[#allocation18 + $0x48] sm:$0xf0]  ;;  %v12124_v4 = vld [vmem:[#allocation18 + $0xc4] sm:$0xf]  ;;  %v10414_v13 = vor.u32 %v12106_v9, %v10411_v10  ;;  %v12142_v10 = vld [vmem:[#allocation18 + $0x154] sm:$0xf] }
 0xbee   : > { %v4914_v19 = vpop.f32.mrf.mxu0  ;;  %v4927_v20 = vpop.f32.mrf.mxu1  ;;  %10311 = vmatmul.msk.f32.vlgmr.msra.gmra.mxu0 %vm4931_vm4, %v4805_v11  ;;  %10313 = vmatmul.msk.f32.vlgmr.msrb.gmra.mxu1 %vm4931_vm4, %v4805_v11  ;;  %v10422_v8 = vor.u32 %v12108_v1, %v10419_v3  ;;  %v10486_v58 = vor.u32 %v12124_v4, %v10483_v7  ;;  %v10475_v11 = vld [vmem:[#allocation18 + $0xb8] sm:$0xf0]  ;;  %v12109_v4 = vld [vmem:[#allocation18 + $0x44] sm:$0xf0]  ;;  %v10481_v7 = vld [vmem:[#allocation18 + $0xc0] sm:$0xf] }
 0xbef   : > { %v10478_v2 = vor.u32 %v12122_v59, %v10475_v11  ;;  %v12120_v19 = vld [vmem:[#allocation18 + $0xa4] sm:$0xf]  ;;  %v10467_v20 = vld [vmem:[#allocation18 + $0xa8] sm:$0xf0]  ;;  %v10555_v59 = vld [vmem:[#allocation18 + $0x158] sm:$0xf0] }
 0xbf0   : > { %v10470_v27 = vor.u32 %v12120_v19, %v10467_v20  ;;  %v12158_v11 = vld [vmem:[#allocation18 + $0x1d4] sm:$0xf]  ;;  %v12107_v19 = vld [vmem:[#allocation18 + $0x34] sm:$0xf0]  ;;  %v10473_v20 = vld [vmem:[#allocation18 + $0xb0] sm:$0xf] }
 0xbf1   : > { %5130 = vmatpush.bf16.msrb.mxu2 %v10357_v12  ;;  %5143 = vmatpush.bf16.msrb.mxu3 %v10361_v52 }
 0xbf3   : > { %v4790_v28 = vpop.f32.mrf.mxu2  ;;  %v4803_v29 = vpop.f32.mrf.mxu3 }
 0xbf4   : > { %v12102_v28 = vld [vmem:[#allocation18 + $0x14] sm:$0xf]  ;;  %v10395_v29 = vld [vmem:[#allocation18 + $0x18] sm:$0xf0] }
 0xbf5   : > { %5131 = vmatpush.bf16.msrb.mxu2 %v10349_v61  ;;  %5144 = vmatpush.bf16.msrb.mxu3 %v10353_v6  ;;  %v10441_v61 = vld [vmem:[#allocation18 + $0x70] sm:$0xf]  ;;  %v12115_v6 = vld [vmem:[#allocation18 + $0x74] sm:$0xf0]  ;;  %v10398_v43 = vor.u32 %v12102_v28, %v10395_v29  ;;  %v10611_v28 = vld [vmem:[#allocation18 + $0x1c8] sm:$0xf0]  ;;  %v10410_v29 = vor.u32 %v12107_v19, %v10409_v17 }
 0xbf6   : > { %v10442_v33 = vor.u32 %v12115_v6, %v10441_v61  ;;  %v12123_v61 = vld [vmem:[#allocation18 + $0xb4] sm:$0xf0]  ;;  %v10558_v6 = vor.u32 %v12142_v10, %v10555_v59  ;;  %v12134_v17 = vld [vmem:[#allocation18 + $0x114] sm:$0xf]  ;;  %v10523_v19 = vld [vmem:[#allocation18 + $0x118] sm:$0xf0] }
 0xbf7   : > { %v12143_v10 = vld [vmem:[#allocation18 + $0x154] sm:$0xf0] }
 0xbf9   : > { %5132 = vmatpush.bf16.msrb.mxu2 %v10341_v30  ;;  %5145 = vmatpush.bf16.msrb.mxu3 %v10345_v31  ;;  %v12118_v30 = vld [vmem:[#allocation18 + $0x94] sm:$0xf]  ;;  %v10459_v31 = vld [vmem:[#allocation18 + $0x98] sm:$0xf0] }
 0xbfd   : > { %5133 = vmatpush.bf16.msrb.mxu2 %v10333_v37  ;;  %5146 = vmatpush.bf16.msrb.mxu3 %v10337_v38  ;;  %v12113_v37 = vld [vmem:[#allocation18 + $0x64] sm:$0xf0]  ;;  %v10497_v38 = vld [vmem:[#allocation18 + $0xe0] sm:$0xf] }
 0xbfe   : > { %v10434_v51 = vor.u32 %v12113_v37, %v10433_v36  ;;  %v10498_v53 = vor.u32 %v12129_v42, %v10497_v38  ;;  %v10550_v36 = vor.u32 %v12140_v22, %v10547_v26  ;;  %v12138_v38 = vld [vmem:[#allocation18 + $0x134] sm:$0xf]  ;;  %v10603_v42 = vld [vmem:[#allocation18 + $0x1b8] sm:$0xf0]  ;;  %v12141_v22 = vld [vmem:[#allocation18 + $0x144] sm:$0xf0] }
 0xc01   : > { %5134 = vmatpush.bf16.msrb.mxu2 %v10325_v44  ;;  %5147 = vmatpush.bf16.msrb.mxu3 %v10329_v45  ;;  %v10462_v44 = vor.u32 %v12118_v30, %v10459_v31  ;;  %v12100_v45 = vld [vmem:[#allocation18 + $0x4] sm:$0xf]  ;;  %v10474_v30 = vor.u32 %v12123_v61, %v10473_v20  ;;  %v10401_v31 = vld [vmem:[#allocation18 + $0x20] sm:$0xf]  ;;  %v12150_v20 = vld [vmem:[#allocation18 + $0x194] sm:$0xf]  ;;  %v10526_v61 = vor.u32 %v12134_v17, %v10523_v19 }
 0xc02   : > { %v10698_v19 = vld [vmem:[#allocation18 + $0x260] sm:$0xf] }
 0xc05   : > { %5135 = vmatpush.bf16.msrb.mxu2 %v10317_v49  ;;  %5148 = vmatpush.bf16.msrb.mxu3 %v10321_v23  ;;  %v10571_v49 = vld [vmem:[#allocation18 + $0x178] sm:$0xf0]  ;;  %v12162_v23 = vld [vmem:[#allocation18 + $0x1f4] sm:$0xf] }
 0xc06   : > { %v10574_v5 = vor.u32 %v12146_v48, %v10571_v49 }
 0xc08   : > { %5136 = vmatmul.bf16.vlgmr.msrb.gmra.mxu2 %v14122_v15  ;;  %5149 = vmatmul.bf16.vlgmr.msrb.gmra.mxu3 %v14122_v15  ;;  %v10430_v15 = vor.u32 %v12110_v25, %v10427_v24  ;;  %v10563_v25 = vld [vmem:[#allocation18 + $0x168] sm:$0xf0]  ;;  %v12160_v24 = vld [vmem:[#allocation18 + $0x1e4] sm:$0xf] }
 0xc09   : > { %5437 = vmatpush.bf16.msra.mxu2 %v10446_v54  ;;  %5450 = vmatpush.bf16.msra.mxu3 %v10510_v57  ;;  %v10425_v54 = vld [vmem:[#allocation18 + $0x50] sm:$0xf]  ;;  %v10390_v57 = vor.u32 %v12100_v45, %v10387_v34  ;;  %v10630_v9 = vor.u32 %v12160_v24, %v10627_v62  ;;  %v12103_v34 = vld [vmem:[#allocation18 + $0x14] sm:$0xf0]  ;;  %v10561_v24 = vld [vmem:[#allocation18 + $0x160] sm:$0xf] }
 0xc0a   : > { %v10426_v63 = vor.u32 %v12111_v55, %v10425_v54  ;;  %v10393_v45 = vld [vmem:[#allocation18 + $0x10] sm:$0xf]  ;;  %v10449_v54 = vld [vmem:[#allocation18 + $0x80] sm:$0xf]  ;;  %v12117_v55 = vld [vmem:[#allocation18 + $0x84] sm:$0xf0] }
 0xc0b   : > { %v12145_v62 = vld [vmem:[#allocation18 + $0x164] sm:$0xf0] }
 0xc0d   : > { %5438 = vmatpush.bf16.msra.mxu2 %v10438_v14  ;;  %5451 = vmatpush.bf16.msra.mxu3 %v10502_v18  ;;  %v10638_v14 = vor.u32 %v12162_v23, %v10635_v50  ;;  %v12144_v18 = vld [vmem:[#allocation18 + $0x164] sm:$0xf]  ;;  %v10394_v23 = vor.u32 %v12103_v34, %v10393_v45  ;;  %v10458_v50 = vor.u32 %v12119_v47, %v10457_v46  ;;  %v10529_v45 = vld [vmem:[#allocation18 + $0x120] sm:$0xf]  ;;  %v12137_v34 = vld [vmem:[#allocation18 + $0x124] sm:$0xf0] }
 0xc0e   : > { %v10593_v46 = vld [vmem:[#allocation18 + $0x1a0] sm:$0xf]  ;;  %v10530_v47 = vor.u32 %v12137_v34, %v10529_v45 }
 0xc0f   : > { %v10666_v34 = vld [vmem:[#allocation18 + $0x220] sm:$0xf] }
 0xc11   : > { %5439 = vmatpush.bf16.msra.mxu2 %v10430_v15  ;;  %5452 = vmatpush.bf16.msra.mxu3 %v10494_v0  ;;  %v10490_v15 = vor.u32 %v12127_v56, %v10489_v39  ;;  %v10417_v0 = vld [vmem:[#allocation18 + $0x40] sm:$0xf]  ;;  %v10569_v39 = vld [vmem:[#allocation18 + $0x170] sm:$0xf]  ;;  %v12147_v56 = vld [vmem:[#allocation18 + $0x174] sm:$0xf0] }
 0xc15   : > { %5440 = vmatpush.bf16.msra.mxu2 %v10422_v8  ;;  %5453 = vmatpush.bf16.msra.mxu3 %v10486_v58  ;;  %v12125_v8 = vld [vmem:[#allocation18 + $0xc4] sm:$0xf0]  ;;  %v10566_v58 = vor.u32 %v12144_v18, %v10563_v25  ;;  %v10570_v18 = vor.u32 %v12147_v56, %v10569_v39  ;;  %v10513_v39 = vld [vmem:[#allocation18 + $0x100] sm:$0xf] }
 0xc16   : > { %v10482_v16 = vor.u32 %v12125_v8, %v10481_v7  ;;  %v12152_v7 = vld [vmem:[#allocation18 + $0x1a4] sm:$0xf]  ;;  %v12133_v56 = vld [vmem:[#allocation18 + $0x104] sm:$0xf0] }
 0xc19   : > { %5441 = vmatpush.bf16.msra.mxu2 %v10414_v13  ;;  %5454 = vmatpush.bf16.msra.mxu3 %v10478_v2  ;;  %v10619_v13 = vld [vmem:[#allocation18 + $0x1d8] sm:$0xf0]  ;;  %v10418_v2 = vor.u32 %v12109_v4, %v10417_v0  ;;  %v10562_v0 = vor.u32 %v12145_v62, %v10561_v24  ;;  %v10531_v4 = vld [vmem:[#allocation18 + $0x128] sm:$0xf0] }
 0xc1a   : > { %v5207_v24 = vld [vmem:[#allocation16] sm:$0x3] }
 0xc1d   : > { %5442 = vmatpush.bf16.msra.mxu2 %v10406_v21  ;;  %5455 = vmatpush.bf16.msra.mxu3 %v10470_v27  ;;  %v10622_v21 = vor.u32 %v12158_v11, %v10619_v13  ;;  %v12156_v27 = vld [vmem:[#allocation18 + $0x1c4] sm:$0xf]  ;;  %v10617_v13 = vld [vmem:[#allocation18 + $0x1d0] sm:$0xf] }
 0xc1e   : > { %v10614_v37 = vor.u32 %v12156_v27, %v10611_v28  ;;  %v10609_v28 = vld [vmem:[#allocation18 + $0x1c0] sm:$0xf] }
 0xc21   : > { %5443 = vmatpush.bf16.msra.mxu2 %v10398_v43  ;;  %5456 = vmatpush.bf16.msra.mxu3 %v10462_v44 }
 0xc25   : > { %5444 = vmatpush.bf16.msra.mxu2 %v10390_v57  ;;  %5457 = vmatpush.bf16.msra.mxu3 %v10454_v60  ;;  %v10633_v57 = vld [vmem:[#allocation18 + $0x1f0] sm:$0xf]  ;;  %v12163_v60 = vld [vmem:[#allocation18 + $0x1f4] sm:$0xf0] }
 0xc26   : > { %v10634_v25 = vor.u32 %v12163_v60, %v10633_v57  ;;  %v10577_v57 = vld [vmem:[#allocation18 + $0x180] sm:$0xf]  ;;  %v10514_v60 = vor.u32 %v12133_v56, %v10513_v39 }
 0xc27   : > { %v10650_v56 = vld [vmem:[#allocation18 + $0x200] sm:$0xf] }
 0xc29   : > { %5683 = vmatpush.bf16.msrb.mxu2 %v10574_v5  ;;  %5696 = vmatpush.bf16.msrb.mxu3 %v10638_v14  ;;  %v10450_v14 = vor.u32 %v12117_v55, %v10449_v54  ;;  %v12151_v54 = vld [vmem:[#allocation18 + $0x194] sm:$0xf0] }
 0xc2d   : > { %5684 = vmatpush.bf16.msrb.mxu2 %v10566_v58  ;;  %5697 = vmatpush.bf16.msrb.mxu3 %v10630_v9  ;;  %v10595_v58 = vld [vmem:[#allocation18 + $0x1a8] sm:$0xf0]  ;;  %v10553_v9 = vld [vmem:[#allocation18 + $0x150] sm:$0xf] }
 0xc2e   : > { %v10598_v59 = vor.u32 %v12152_v7, %v10595_v58  ;;  %v10554_v11 = vor.u32 %v12143_v10, %v10553_v9  ;;  %v10706_v9 = vld [vmem:[#allocation18 + $0x270] sm:$0xf]  ;;  %v12179_v10 = vld [vmem:[#allocation18 + $0x274] sm:$0xf0] }
 0xc31   : > { %5685 = vmatpush.bf16.msrb.mxu2 %v10558_v6  ;;  %5698 = vmatpush.bf16.msrb.mxu3 %v10622_v21  ;;  %v10587_v6 = vld [vmem:[#allocation18 + $0x198] sm:$0xf0]  ;;  %v10545_v21 = vld [vmem:[#allocation18 + $0x140] sm:$0xf] }
 0xc32   : > { %v10590_v26 = vor.u32 %v12150_v20, %v10587_v6  ;;  %v10546_v27 = vor.u32 %v12141_v22, %v10545_v21  ;;  %v12177_v20 = vld [vmem:[#allocation18 + $0x264] sm:$0xf0] }
 0xc33   : > { %v12193_v6 = vld [vmem:[#allocation18 + $0x2e4] sm:$0xf0]  ;;  %v10699_v21 = vor.u32 %v12177_v20, %v10698_v19  ;;  %v10772_v19 = vld [vmem:[#allocation18 + $0x2f8] sm:$0xf0] }
 0xc35   : > { %5686 = vmatpush.bf16.msrb.mxu2 %v10550_v36  ;;  %5699 = vmatpush.bf16.msrb.mxu3 %v10614_v37  ;;  %v10579_v36 = vld [vmem:[#allocation18 + $0x188] sm:$0xf0]  ;;  %v10537_v37 = vld [vmem:[#allocation18 + $0x130] sm:$0xf] }
 0xc6b   : > { %v14140_v12 = vpop.f32.mrf.mxu2  ;;  %v14142_v52 = vpop.f32.mrf.mxu3 }
 0xc8b   : > { %v5137_v40 = vpop.f32.mrf.mxu2  ;;  %v5150_v41 = vpop.f32.mrf.mxu3 }
 0xc8c   : > { %10379 = vmatpush.msk.msrb.mxu0 %vm4935_vm3, %v5137_v40  ;;  %10381 = vmatpush.msk.msra.mxu1 %vm4935_vm3, %v5150_v41  ;;  %v10539_v40 = vld [vmem:[#allocation18 + $0x138] sm:$0xf0]  ;;  %v12154_v41 = vld [vmem:[#allocation18 + $0x1b4] sm:$0xf] }
 0xc8d   : > { %10380 = vmatmul.msk.f32.vlgmr.msrb.gmra.mxu0 %vm4931_vm4, %v10378_v32  ;;  %10382 = vmatmul.msk.f32.vlgmr.msra.gmra.mxu1 %vm4931_vm4, %v10378_v32  ;;  %v12105_v32 = vld [vmem:[#allocation18 + $0x24] sm:$0xf0]  ;;  %v10542_v48 = vor.u32 %v12138_v38, %v10539_v40  ;;  %v10606_v49 = vor.u32 %v12154_v41, %v10603_v42  ;;  %v12139_v38 = vld [vmem:[#allocation18 + $0x134] sm:$0xf0]  ;;  %v10601_v42 = vld [vmem:[#allocation18 + $0x1b0] sm:$0xf] }
 0xc8e   : > { %5411 = vmatpush.bf16.msra.mxu0 %v10442_v33  ;;  %5424 = vmatpush.bf16.msrb.mxu1 %v10506_v35  ;;  %v10465_v33 = vld [vmem:[#allocation18 + $0xa0] sm:$0xf]  ;;  %v12121_v35 = vld [vmem:[#allocation18 + $0xa4] sm:$0xf0]  ;;  %v10402_v43 = vor.u32 %v12105_v32, %v10401_v31  ;;  %v12132_v31 = vld [vmem:[#allocation18 + $0x104] sm:$0xf]  ;;  %v10538_v41 = vor.u32 %v12139_v38, %v10537_v37 }
 0xc8f   : > { %v10466_v44 = vor.u32 %v12121_v35, %v10465_v33  ;;  %5687 = vmatpush.bf16.msrb.mxu2 %v10542_v48  ;;  %5700 = vmatpush.bf16.msrb.mxu3 %v10606_v49  ;;  %v10515_v32 = vld [vmem:[#allocation18 + $0x108] sm:$0xf0]  ;;  %v12148_v33 = vld [vmem:[#allocation18 + $0x184] sm:$0xf]  ;;  %v12153_v48 = vld [vmem:[#allocation18 + $0x1a4] sm:$0xf0] }
 0xc90   : > { %v10518_v35 = vor.u32 %v12132_v31, %v10515_v32  ;;  %v10582_v40 = vor.u32 %v12148_v33, %v10579_v36  ;;  %v10594_v49 = vor.u32 %v12153_v48, %v10593_v46  ;;  %v10682_v32 = vld [vmem:[#allocation18 + $0x240] sm:$0xf]  ;;  %v12173_v33 = vld [vmem:[#allocation18 + $0x244] sm:$0xf0] }
 0xc91   : > { %v12189_v36 = vld [vmem:[#allocation18 + $0x2c4] sm:$0xf0]  ;;  %v10683_v37 = vor.u32 %v12173_v33, %v10682_v32  ;;  %v12192_v32 = vld [vmem:[#allocation18 + $0x2e4] sm:$0xf]  ;;  %v10764_v33 = vld [vmem:[#allocation18 + $0x2e8] sm:$0xf0] }
 0xc92   : > { %5412 = vmatpush.bf16.msra.mxu0 %v10434_v51  ;;  %5425 = vmatpush.bf16.msrb.mxu1 %v10498_v53  ;;  %v10385_v51 = vld [vmem:[#allocation18] sm:$0xf]  ;;  %v12101_v53 = vld [vmem:[#allocation18 + $0x4] sm:$0xf0] }
 0xc93   : > { %v5139_v1 = vpop.f32.mrf.mxu2  ;;  %v5152_v3 = vpop.f32.mrf.mxu3  ;;  %v10386_v5 = vor.u32 %v12101_v53, %v10385_v51  ;;  %5701 = vmatpush.bf16.msrb.mxu3 %v10598_v59  ;;  %v10585_v51 = vld [vmem:[#allocation18 + $0x190] sm:$0xf]  ;;  %v12169_v46 = vld [vmem:[#allocation18 + $0x224] sm:$0xf0] }
 0xc94   : > { %v12136_v3 = vld [vmem:[#allocation18 + $0x124] sm:$0xf]  ;;  %v10586_v55 = vor.u32 %v12151_v54, %v10585_v51  ;;  %v10770_v59 = vld [vmem:[#allocation18 + $0x2f0] sm:$0xf]  ;;  %v12185_v48 = vld [vmem:[#allocation18 + $0x2a4] sm:$0xf0] }
 0xc95   : > { %v10534_v8 = vor.u32 %v12136_v3, %v10531_v4  ;;  %v12167_v51 = vld [vmem:[#allocation18 + $0x214] sm:$0xf0] }
 0xc96   : > { %5413 = vmatpush.bf16.msra.mxu0 %v10426_v63  ;;  %5426 = vmatpush.bf16.msrb.mxu1 %v10490_v15  ;;  %v10625_v63 = vld [vmem:[#allocation18 + $0x1e0] sm:$0xf]  ;;  %v12161_v15 = vld [vmem:[#allocation18 + $0x1e4] sm:$0xf0]  ;;  %v12183_v54 = vld [vmem:[#allocation18 + $0x294] sm:$0xf0] }
 0xc97   : > { %v10626_v1 = vor.u32 %v12161_v15, %v10625_v63  ;;  %5688 = vmatpush.bf16.msrb.mxu2 %v10534_v8  ;;  %5702 = vmatpush.bf16.msrb.mxu3 %v10590_v26  ;;  %v5209_v15 = vperm.slane %v5207_v24, 0  ;;  %v10690_v26 = vld [vmem:[#allocation18 + $0x250] sm:$0xf] }
 0xc9a   : > { %5414 = vmatpush.bf16.msra.mxu0 %v10418_v2  ;;  %5427 = vmatpush.bf16.msrb.mxu1 %v10482_v16  ;;  %v12159_v2 = vld [vmem:[#allocation18 + $0x1d4] sm:$0xf0] }
 0xc9b   : > { %v10618_v16 = vor.u32 %v12159_v2, %v10617_v13  ;;  %5689 = vmatpush.bf16.msrb.mxu2 %v10526_v61  ;;  %5703 = vmatpush.bf16.msrb.mxu3 %v10582_v40  ;;  %v10762_v61 = vld [vmem:[#allocation18 + $0x2e0] sm:$0xf]  ;;  %v10674_v40 = vld [vmem:[#allocation18 + $0x230] sm:$0xf] }
 0xc9c   : > { %v10763_v22 = vor.u32 %v12193_v6, %v10762_v61  ;;  %v12174_v6 = vld [vmem:[#allocation18 + $0x254] sm:$0xf] }
 0xc9e   : > { %5415 = vmatpush.bf16.msra.mxu0 %v10410_v29  ;;  %5428 = vmatpush.bf16.msrb.mxu1 %v10474_v30  ;;  %v12157_v29 = vld [vmem:[#allocation18 + $0x1c4] sm:$0xf0] }
 0xc9f   : > { %v10610_v30 = vor.u32 %v12157_v29, %v10609_v28  ;;  %5690 = vmatpush.bf16.msrb.mxu2 %v10518_v35  ;;  %v10754_v28 = vld [vmem:[#allocation18 + $0x2d0] sm:$0xf]  ;;  %v12191_v29 = vld [vmem:[#allocation18 + $0x2d4] sm:$0xf0]  ;;  %v10746_v35 = vld [vmem:[#allocation18 + $0x2c0] sm:$0xf] }
 0xca0   : > { %v10755_v31 = vor.u32 %v12191_v29, %v10754_v28  ;;  %v10747_v38 = vor.u32 %v12189_v36, %v10746_v35  ;;  %v5463_v29 = vld [vmem:[%s14399_s26] sm:$0xf]  ;;  %v12172_v35 = vld [vmem:[#allocation18 + $0x244] sm:$0xf] }
 0xca1   : > { %v10684_v36 = vld [vmem:[#allocation18 + $0x248] sm:$0xf0] }
 0xca2   : > { %5416 = vmatpush.bf16.msra.mxu0 %v10402_v43  ;;  %5429 = vmatpush.bf16.msrb.mxu1 %v10466_v44  ;;  %v12155_v43 = vld [vmem:[#allocation18 + $0x1b4] sm:$0xf0] }
 0xca3   : > { %v10602_v44 = vor.u32 %v12155_v43, %v10601_v42  ;;  %v10738_v42 = vld [vmem:[#allocation18 + $0x2b0] sm:$0xf]  ;;  %v12187_v43 = vld [vmem:[#allocation18 + $0x2b4] sm:$0xf0] }
 0xca4   : > { %v10739_v45 = vor.u32 %v12187_v43, %v10738_v42 }
 0xca6   : > { %5417 = vmatpush.bf16.msra.mxu0 %v10394_v23  ;;  %5430 = vmatpush.bf16.msrb.mxu1 %v10458_v50  ;;  %v10521_v23 = vld [vmem:[#allocation18 + $0x110] sm:$0xf]  ;;  %v12135_v50 = vld [vmem:[#allocation18 + $0x114] sm:$0xf0] }
 0xca7   : > { %v10522_v53 = vor.u32 %v12135_v50, %v10521_v23  ;;  %v10658_v50 = vld [vmem:[#allocation18 + $0x210] sm:$0xf] }
 0xcaa   : > { %5418 = vmatpush.bf16.msra.mxu0 %v10386_v5  ;;  %5431 = vmatpush.bf16.msrb.mxu1 %v10450_v14  ;;  %v12149_v5 = vld [vmem:[#allocation18 + $0x184] sm:$0xf0] }
 0xcab   : > { %v10578_v14 = vor.u32 %v12149_v5, %v10577_v57  ;;  %v12165_v57 = vld [vmem:[#allocation18 + $0x204] sm:$0xf0] }
 0xcac   : > { %v12181_v5 = vld [vmem:[#allocation18 + $0x284] sm:$0xf0] }
 0xcae   : > { %5657 = vmatpush.bf16.msrb.mxu0 %v10570_v18  ;;  %5670 = vmatpush.bf16.msra.mxu1 %v10634_v25  ;;  %v5008_v18 = vpop.f32.mrf.mxu0  ;;  %v5028_v25 = vpop.f32.mrf.mxu1 }
 0xcaf   : > { %v5009_v62 = vadd.f32 %v5008_v18, %v14140_v12  ;;  %v5029_v63 = vadd.f32 %v5028_v25, %v14142_v52  ;;  %v10707_v12 = vor.u32 %v12179_v10, %v10706_v9  ;;  %v10639_v10 = vld [vmem:[%s14399_s26 + $0x4] sm:$0xf] }
 0xcb2   : > { %5658 = vmatpush.bf16.msrb.mxu0 %v10562_v0  ;;  %5671 = vmatpush.bf16.msra.mxu1 %v10626_v1  ;;  %v5210_v0 = vperm.slane %v5207_v24, 1 }
 0xcb6   : > { %5659 = vmatpush.bf16.msrb.mxu0 %v10554_v11  ;;  %5672 = vmatpush.bf16.msra.mxu1 %v10618_v16  ;;  %v12195_v11 = vld [vmem:[#allocation18 + $0x2f4] sm:$0xf0] }
 0xcb7   : > { %v10771_v52 = vor.u32 %v12195_v11, %v10770_v59 }
 0xcba   : > { %5660 = vmatpush.bf16.msrb.mxu0 %v10546_v27  ;;  %5673 = vmatpush.bf16.msra.mxu1 %v10610_v30  ;;  %v12175_v27 = vld [vmem:[#allocation18 + $0x254] sm:$0xf0] }
 0xcbb   : > { %v10691_v30 = vor.u32 %v12175_v27, %v10690_v26 }
 0xcbe   : > { %5661 = vmatpush.bf16.msrb.mxu0 %v10538_v41  ;;  %5674 = vmatpush.bf16.msra.mxu1 %v10602_v44  ;;  %v12171_v41 = vld [vmem:[#allocation18 + $0x234] sm:$0xf0] }
 0xcbf   : > { %v10675_v44 = vor.u32 %v12171_v41, %v10674_v40  ;;  %v12190_v40 = vld [vmem:[#allocation18 + $0x2d4] sm:$0xf]  ;;  %v10756_v41 = vld [vmem:[#allocation18 + $0x2d8] sm:$0xf0] }
 0xcc2   : > { %5662 = vmatpush.bf16.msrb.mxu0 %v10530_v47  ;;  %5675 = vmatpush.bf16.msra.mxu1 %v10594_v49  ;;  %v10730_v47 = vld [vmem:[#allocation18 + $0x2a0] sm:$0xf]  ;;  %v10667_v49 = vor.u32 %v12169_v46, %v10666_v34  ;;  %v10759_v34 = vor.u32 %v12190_v40, %v10756_v41  ;;  %v10823_v40 = vld [vmem:[#allocation21 + $0x50] sm:$0xf]  ;;  %v12207_v41 = vld [vmem:[#allocation21 + $0x54] sm:$0xf0] }
 0xcc3   : > { %v10731_v23 = vor.u32 %v12185_v48, %v10730_v47  ;;  %v12188_v47 = vld [vmem:[#allocation18 + $0x2c4] sm:$0xf]  ;;  %v10748_v48 = vld [vmem:[#allocation18 + $0x2c8] sm:$0xf0] }
 0xcc6   : > { %5663 = vmatpush.bf16.msrb.mxu0 %v10522_v53  ;;  %5676 = vmatpush.bf16.msra.mxu1 %v10586_v55  ;;  %v10722_v53 = vld [vmem:[#allocation18 + $0x290] sm:$0xf]  ;;  %v10659_v55 = vor.u32 %v12167_v51, %v10658_v50  ;;  %v10751_v50 = vor.u32 %v12188_v47, %v10748_v48  ;;  %v12210_v51 = vld [vmem:[#allocation21 + $0x74] sm:$0xf]  ;;  %v12196_v47 = vld [vmem:[#allocation21 + $0x4] sm:$0xf] }
 0xcc7   : > { %v10723_v39 = vor.u32 %v12183_v54, %v10722_v53  ;;  %v10841_v53 = vld [vmem:[#allocation21 + $0x78] sm:$0xf0]  ;;  %v10785_v48 = vld [vmem:[#allocation21 + $0x8] sm:$0xf0] }
 0xcca   : > { %5664 = vmatpush.bf16.msrb.mxu0 %v10514_v60  ;;  %5677 = vmatpush.bf16.msra.mxu1 %v10578_v14  ;;  %v10714_v60 = vld [vmem:[#allocation18 + $0x280] sm:$0xf]  ;;  %v10651_v14 = vor.u32 %v12165_v57, %v10650_v56 }
 0xccb   : > { %v10715_v18 = vor.u32 %v12181_v5, %v10714_v60  ;;  %v12166_v60 = vld [vmem:[#allocation18 + $0x214] sm:$0xf]  ;;  %v10660_v5 = vld [vmem:[#allocation18 + $0x218] sm:$0xf0] }
 0xd0a   : > { %v5182_v1 = vpop.f32.mrf.mxu0  ;;  %v5202_v3 = vpop.f32.mrf.mxu1 }
 0xd0b   : > { %v5205_v4 = vadd.f32 %v5182_v1, %v5009_v62  ;;  %v5206_v7 = vadd.f32 %v5202_v3, %v5029_v63 }
 0xd0d   : > { %v5213_v8 = vadd.f32 %v5209_v15, %v5205_v4  ;;  %v5214_v58 = vadd.f32 %v5210_v0, %v5206_v7  ;;  %v12178_v4 = vld [vmem:[#allocation18 + $0x274] sm:$0xf]  ;;  %v10708_v7 = vld [vmem:[#allocation18 + $0x278] sm:$0xf0] }
 0xd0e   : > { %v10711_v59 = vor.u32 %v12178_v4, %v10708_v7  ;;  %v10652_v4 = vld [vmem:[#allocation18 + $0x208] sm:$0xf0] }
 0xd0f   : > { %v5215_v13 = vmax.f32 %v5213_v8, 0.0  ;;  %v5216_v2 = vmax.f32 %v5214_v58, 0.0 }
 0xd11   : > { %v14151_v16 = vpack.c.bf16 %v5215_v13, %v5215_v13  ;;  %v14153_v17 = vpack.c.bf16 %v5216_v2, %v5216_v2  ;;  %v12176_v13 = vld [vmem:[#allocation18 + $0x264] sm:$0xf]  ;;  %v10700_v2 = vld [vmem:[#allocation18 + $0x268] sm:$0xf0] }
 0xd13   : > { %5419 = vmatmul.bf16.vlgmr.msra.gmra.mxu0 %v14151_v16  ;;  %5432 = vmatmul.bf16.vlgmr.msrb.gmra.mxu1 %v14153_v17 }
 0xd14   : > { %5445 = vmatmul.bf16.vlgmr.msra.gmra.mxu2 %v14151_v16  ;;  %5458 = vmatmul.bf16.vlgmr.msra.gmra.mxu3 %v14153_v17 }
 0xd15   : > { %6002 = vmatpush.bf16.msra.mxu2 %v10707_v12  ;;  %6015 = vmatpush.bf16.msra.mxu3 %v10771_v52  ;;  %v10703_v12 = vor.u32 %v12176_v13, %v10700_v2  ;;  %v12194_v52 = vld [vmem:[#allocation18 + $0x2f4] sm:$0xf]  ;;  %v10724_v2 = vld [vmem:[#allocation18 + $0x298] sm:$0xf0] }
 0xd16   : > { %v10775_v28 = vor.u32 %v12194_v52, %v10772_v19  ;;  %v12182_v13 = vld [vmem:[#allocation18 + $0x294] sm:$0xf] }
 0xd19   : > { %6003 = vmatpush.bf16.msra.mxu2 %v10699_v21  ;;  %6016 = vmatpush.bf16.msra.mxu3 %v10763_v22  ;;  %v10692_v21 = vld [vmem:[#allocation18 + $0x258] sm:$0xf0] }
 0xd1d   : > { %6004 = vmatpush.bf16.msra.mxu2 %v10691_v30  ;;  %6017 = vmatpush.bf16.msra.mxu3 %v10755_v31  ;;  %v10695_v31 = vor.u32 %v12174_v6, %v10692_v21  ;;  %v12209_v6 = vld [vmem:[#allocation21 + $0x64] sm:$0xf0]  ;;  %v10727_v21 = vor.u32 %v12182_v13, %v10724_v2  ;;  %v10959_v13 = vld [vmem:[#allocation21 + $0x160] sm:$0xf] }
 0xd1e   : > { %v12241_v2 = vld [vmem:[#allocation21 + $0x164] sm:$0xf0] }
 0xd21   : > { %6005 = vmatpush.bf16.msra.mxu2 %v10683_v37  ;;  %6018 = vmatpush.bf16.msra.mxu3 %v10747_v38  ;;  %v10767_v37 = vor.u32 %v12192_v32, %v10764_v33  ;;  %v10687_v38 = vor.u32 %v12172_v35, %v10684_v36  ;;  %v12202_v32 = vld [vmem:[#allocation21 + $0x34] sm:$0xf]  ;;  %v10809_v33 = vld [vmem:[#allocation21 + $0x38] sm:$0xf0]  ;;  %v12200_v36 = vld [vmem:[#allocation21 + $0x24] sm:$0xf] }
 0xd22   : > { %v10812_v35 = vor.u32 %v12202_v32, %v10809_v33  ;;  %v12228_v32 = vld [vmem:[#allocation21 + $0x104] sm:$0xf]  ;;  %v10913_v33 = vld [vmem:[#allocation21 + $0x108] sm:$0xf0] }
 0xd23   : > { %5665 = vmatmul.bf16.vlgmr.msrb.gmra.mxu0 %v14151_v16  ;;  %5678 = vmatmul.bf16.vlgmr.msra.gmra.mxu1 %v14153_v17 }
 0xd24   : > { %5691 = vmatmul.bf16.vlgmr.msrb.gmra.mxu2 %v14151_v16  ;;  %5704 = vmatmul.bf16.vlgmr.msrb.gmra.mxu3 %v14153_v17 }
 0xd25   : > { %6006 = vmatpush.bf16.msra.mxu2 %v10675_v44  ;;  %6019 = vmatpush.bf16.msra.mxu3 %v10739_v45  ;;  %v12170_v44 = vld [vmem:[#allocation18 + $0x234] sm:$0xf]  ;;  %v10676_v45 = vld [vmem:[#allocation18 + $0x238] sm:$0xf0] }
 0xd26   : > { %v10679_v46 = vor.u32 %v12170_v44, %v10676_v45  ;;  %v10793_v44 = vld [vmem:[#allocation21 + $0x18] sm:$0xf0]  ;;  %v10815_v45 = vld [vmem:[#allocation21 + $0x40] sm:$0xf] }
 0xd29   : > { %6007 = vmatpush.bf16.msra.mxu2 %v10667_v49  ;;  %6020 = vmatpush.bf16.msra.mxu3 %v10731_v23  ;;  %v12168_v49 = vld [vmem:[#allocation18 + $0x224] sm:$0xf]  ;;  %v10668_v23 = vld [vmem:[#allocation18 + $0x228] sm:$0xf0] }
 0xd2a   : > { %v10671_v54 = vor.u32 %v12168_v49, %v10668_v23  ;;  %v10807_v49 = vld [vmem:[#allocation21 + $0x30] sm:$0xf]  ;;  %v12203_v23 = vld [vmem:[#allocation21 + $0x34] sm:$0xf0] }
 0xd2d   : > { %6008 = vmatpush.bf16.msra.mxu2 %v10659_v55  ;;  %6021 = vmatpush.bf16.msra.mxu3 %v10723_v39  ;;  %v12186_v55 = vld [vmem:[#allocation18 + $0x2b4] sm:$0xf]  ;;  %v10740_v39 = vld [vmem:[#allocation18 + $0x2b8] sm:$0xf0] }
 0xd31   : > { %6009 = vmatpush.bf16.msra.mxu2 %v10651_v14  ;;  %6022 = vmatpush.bf16.msra.mxu3 %v10715_v18  ;;  %v14176_v18 = vld [vmem:[%s14399_s26 + $0x8] sm:$0xf] }
 0xd34   : > { %6010 = vmatmul.bf16.vlgmr.msra.gmra.mxu2 %v14151_v16  ;;  %6023 = vmatmul.bf16.vlgmr.msra.gmra.mxu3 %v14153_v17 }
 0xd90   : > { %v5420_v25 = vpop.f32.mrf.mxu0  ;;  %v5433_v24 = vpop.f32.mrf.mxu1 }
 0xd91   : > { %v5434_v11 = vadd.f32 %v5433_v24, %v5420_v25  ;;  %v10844_v25 = vor.u32 %v12210_v51, %v10841_v53  ;;  %v10743_v24 = vor.u32 %v12186_v55, %v10740_v39  ;;  %v10808_v51 = vor.u32 %v12203_v23, %v10807_v49  ;;  %v10969_v53 = vld [vmem:[#allocation21 + $0x178] sm:$0xf0]  ;;  %v12201_v55 = vld [vmem:[#allocation21 + $0x24] sm:$0xf0] }
 0xd92   : > { %v14185_v49 = vld [vmem:[#allocation19] sm:$0x3] }
 0xd97   : > { %v5446_v62 = vpop.f32.mrf.mxu2  ;;  %v5459_v63 = vpop.f32.mrf.mxu3 }
 0xd98   : > { %v5422_v15 = vpop.f32.mrf.mxu0  ;;  %v5435_v0 = vpop.f32.mrf.mxu1  ;;  %v5460_v30 = vadd.f32 %v5459_v63, %v5446_v62  ;;  %v12208_v62 = vld [vmem:[#allocation21 + $0x64] sm:$0xf]  ;;  %v10833_v63 = vld [vmem:[#allocation21 + $0x68] sm:$0xf0] }
 0xd99   : > { %v10663_v15 = vor.u32 %v12166_v60, %v10660_v5  ;;  %v12184_v0 = vld [vmem:[#allocation18 + $0x2a4] sm:$0xf]  ;;  %v10836_v7 = vor.u32 %v12208_v62, %v10833_v63  ;;  %v10953_v63 = vld [vmem:[#allocation21 + $0x158] sm:$0xf0] }
 0xd9f   : > { %v5448_v1 = vpop.f32.mrf.mxu2  ;;  %v5461_v3 = vpop.f32.mrf.mxu3 }
 0xda0   : > { %v5666_v8 = vpop.f32.mrf.mxu0  ;;  %v5679_v58 = vpop.f32.mrf.mxu1  ;;  %v10732_v1 = vld [vmem:[#allocation18 + $0x2a8] sm:$0xf0]  ;;  %v12164_v3 = vld [vmem:[#allocation18 + $0x204] sm:$0xf] }
 0xda1   : > { %v5680_v9 = vadd.f32 %v5679_v58, %v5666_v8  ;;  %v10839_v8 = vld [vmem:[#allocation21 + $0x70] sm:$0xf]  ;;  %v12211_v58 = vld [vmem:[#allocation21 + $0x74] sm:$0xf0] }
 0xda2   : > { %v10840_v19 = vor.u32 %v12211_v58, %v10839_v8  ;;  %v12243_v58 = vld [vmem:[#allocation21 + $0x174] sm:$0xf0] }
 0xda3   : > { %10640 = vmatpush.msk.msra.mxu0 %vm4935_vm3, %v5680_v9  ;;  %v10735_v9 = vor.u32 %v12184_v0, %v10732_v1  ;;  %v12197_v0 = vld [vmem:[#allocation21 + $0x4] sm:$0xf0] }
 0xda4   : > { %10641 = vmatmul.msk.f32.vlgmr.msra.gmra.mxu0 %vm4931_vm4, %v10639_v10 }
 0xda5   : > { %10644 = vmatpush.msk.msrb.mxu0 %vm4935_vm3, %v5434_v11  ;;  %v10655_v11 = vor.u32 %v12164_v3, %v10652_v4  ;;  %v12236_v3 = vld [vmem:[#allocation21 + $0x144] sm:$0xf]  ;;  %v10945_v4 = vld [vmem:[#allocation21 + $0x148] sm:$0xf0] }
 0xda7   : > { %6028 = vmatpush.bf16.msra.mxu0 %v10711_v59  ;;  %v5692_v20 = vpop.f32.mrf.mxu2  ;;  %v5705_v61 = vpop.f32.mrf.mxu3  ;;  %v10825_v59 = vld [vmem:[#allocation21 + $0x58] sm:$0xf0] }
 0xda8   : > { %v5706_v22 = vadd.f32 %v5705_v61, %v5692_v20  ;;  %v5668_v26 = vpop.f32.mrf.mxu0  ;;  %v5681_v27 = vpop.f32.mrf.mxu1  ;;  %v10831_v61 = vld [vmem:[#allocation21 + $0x60] sm:$0xf] }
 0xda9   : > { %v10817_v26 = vld [vmem:[#allocation21 + $0x48] sm:$0xf0]  ;;  %v12180_v27 = vld [vmem:[#allocation18 + $0x284] sm:$0xf] }
 0xdaa   : > { %10642 = vmatpush.msk.msrb.mxu1 %vm4935_vm3, %v5706_v22  ;;  %v12204_v22 = vld [vmem:[#allocation21 + $0x44] sm:$0xf] }
 0xdab   : > { %6029 = vmatpush.bf16.msra.mxu0 %v10703_v12  ;;  %10643 = vmatmul.msk.f32.vlgmr.msrb.gmra.mxu1 %vm4931_vm4, %v10639_v10  ;;  %v12206_v10 = vld [vmem:[#allocation21 + $0x54] sm:$0xf] }
 0xdac   : > { %10646 = vmatpush.msk.msra.mxu1 %vm4935_vm3, %v5460_v30  ;;  %10645 = vmatmul.msk.f32.vlgmr.msrb.gmra.mxu0 %vm4931_vm4, %v5463_v29  ;;  %v10828_v20 = vor.u32 %v12206_v10, %v10825_v59  ;;  %v10820_v30 = vor.u32 %v12204_v22, %v10817_v26  ;;  %v12234_v59 = vld [vmem:[#allocation21 + $0x134] sm:$0xf] }
 0xdad   : > { %v12230_v26 = vld [vmem:[#allocation21 + $0x114] sm:$0xf] }
 0xdae   : > { %6041 = vmatpush.bf16.msrb.mxu1 %v10775_v28  ;;  %v10716_v28 = vld [vmem:[#allocation18 + $0x288] sm:$0xf0] }
 0xdaf   : > { %6030 = vmatpush.bf16.msra.mxu0 %v10695_v31  ;;  %v5694_v42 = vpop.f32.mrf.mxu2  ;;  %v5707_v43 = vpop.f32.mrf.mxu3  ;;  %v10719_v31 = vor.u32 %v12180_v27, %v10716_v28  ;;  %v10921_v27 = vld [vmem:[#allocation21 + $0x118] sm:$0xf0] }
 0xdb0   : > { %v12198_v42 = vld [vmem:[#allocation21 + $0x14] sm:$0xf]  ;;  %v10824_v43 = vor.u32 %v12207_v41, %v10823_v40  ;;  %v10924_v28 = vor.u32 %v12230_v26, %v10921_v27  ;;  %v10927_v40 = vld [vmem:[#allocation21 + $0x120] sm:$0xf]  ;;  %v12233_v41 = vld [vmem:[#allocation21 + $0x124] sm:$0xf0] }
 0xdb1   : > { %v10889_v26 = vld [vmem:[#allocation21 + $0xd8] sm:$0xf0] }
 0xdb2   : > { %6042 = vmatpush.bf16.msrb.mxu1 %v10767_v37  ;;  %v10801_v37 = vld [vmem:[#allocation21 + $0x28] sm:$0xf0] }
 0xdb3   : > { %6031 = vmatpush.bf16.msra.mxu0 %v10687_v38  ;;  %10647 = vmatmul.msk.f32.vlgmr.msra.gmra.mxu1 %vm4931_vm4, %v5463_v29  ;;  %v10832_v29 = vor.u32 %v12209_v6, %v10831_v61  ;;  %v10804_v38 = vor.u32 %v12200_v36, %v10801_v37  ;;  %v10951_v6 = vld [vmem:[#allocation21 + $0x150] sm:$0xf]  ;;  %v12235_v37 = vld [vmem:[#allocation21 + $0x134] sm:$0xf0] }
 0xdb4   : > { %v10935_v36 = vld [vmem:[#allocation21 + $0x130] sm:$0xf] }
 0xdb6   : > { %6043 = vmatpush.bf16.msrb.mxu1 %v10759_v34  ;;  %v10796_v34 = vor.u32 %v12198_v42, %v10793_v44  ;;  %v10928_v42 = vor.u32 %v12233_v41, %v10927_v40  ;;  %v12231_v44 = vld [vmem:[#allocation21 + $0x114] sm:$0xf0]  ;;  %v12265_v40 = vld [vmem:[#allocation21 + $0x224] sm:$0xf0] }
 0xdb7   : > { %6032 = vmatpush.bf16.msra.mxu0 %v10679_v46  ;;  %v6011_v56 = vpop.f32.mrf.mxu2  ;;  %v6024_v57 = vpop.f32.mrf.mxu3 }
 0xdb8   : > { %v6025_v14 = vadd.f32 %v6024_v57, %v6011_v56  ;;  %v12240_v56 = vld [vmem:[#allocation21 + $0x164] sm:$0xf]  ;;  %v10961_v57 = vld [vmem:[#allocation21 + $0x168] sm:$0xf0] }
 0xdb9   : > { %v10964_v5 = vor.u32 %v12240_v56, %v10961_v57  ;;  %v12275_v56 = vld [vmem:[#allocation21 + $0x274] sm:$0xf0] }
 0xdba   : > { %6044 = vmatpush.bf16.msrb.mxu1 %v10751_v50  ;;  %10777 = vmatpush.msk.msrb.mxu2 %vm4935_vm3, %v6025_v14  ;;  %v12242_v50 = vld [vmem:[#allocation21 + $0x174] sm:$0xf]  ;;  %v10791_v14 = vld [vmem:[#allocation21 + $0x10] sm:$0xf] }
 0xdbb   : > { %6033 = vmatpush.bf16.msra.mxu0 %v10671_v54  ;;  %10778 = vmatmul.msk.f32.vlgmr.msrb.gmra.mxu2 %vm4931_vm4, %v14176_v18  ;;  %v10799_v54 = vld [vmem:[#allocation21 + $0x20] sm:$0xf]  ;;  %v10972_v39 = vor.u32 %v12242_v50, %v10969_v53  ;;  %v6109_v50 = vperm.slane %v14185_v49, 0 }
 0xdbc   : > { %6337 = vmatpush.bf16.msra.mxu2 %v10844_v25  ;;  %v10800_v60 = vor.u32 %v12201_v55, %v10799_v54  ;;  %v12199_v25 = vld [vmem:[#allocation21 + $0x14] sm:$0xf0] }
 0xdbd   : > { %v10792_v62 = vor.u32 %v12199_v25, %v10791_v14  ;;  %v11095_v25 = vld [vmem:[#allocation21 + $0x260] sm:$0xf] }
 0xdbe   : > { %6045 = vmatpush.bf16.msrb.mxu1 %v10743_v24  ;;  %v12238_v24 = vld [vmem:[#allocation21 + $0x154] sm:$0xf] }
 0xdbf   : > { %6034 = vmatpush.bf16.msra.mxu0 %v10663_v15  ;;  %v6013_v12 = vpop.f32.mrf.mxu2  ;;  %v6026_v52 = vpop.f32.mrf.mxu3  ;;  %v10783_v15 = vld [vmem:[#allocation21] sm:$0xf]  ;;  %v10956_v1 = vor.u32 %v12238_v24, %v10953_v63  ;;  %v12273_v24 = vld [vmem:[#allocation21 + $0x264] sm:$0xf0]  ;;  %v10905_v63 = vld [vmem:[#allocation21 + $0xf8] sm:$0xf0] }
 0xdc0   : > { %6338 = vmatpush.bf16.msra.mxu2 %v10836_v7  ;;  %v10967_v7 = vld [vmem:[#allocation21 + $0x170] sm:$0xf]  ;;  %v10784_v8 = vor.u32 %v12197_v0, %v10783_v15  ;;  %v10960_v52 = vor.u32 %v12241_v2, %v10959_v13  ;;  %v11096_v15 = vor.u32 %v12273_v24, %v11095_v25  ;;  %v10895_v13 = vld [vmem:[#allocation21 + $0xe0] sm:$0xf]  ;;  %v12225_v2 = vld [vmem:[#allocation21 + $0xe4] sm:$0xf0] }
 0xdc1   : > { %v10968_v10 = vor.u32 %v12243_v58, %v10967_v7  ;;  %v12214_v25 = vld [vmem:[#allocation21 + $0x94] sm:$0xf]  ;;  %v10857_v24 = vld [vmem:[#allocation21 + $0x98] sm:$0xf0] }
 0xdc2   : > { %6046 = vmatpush.bf16.msrb.mxu1 %v10735_v9  ;;  %v10948_v9 = vor.u32 %v12236_v3, %v10945_v4  ;;  %v12271_v3 = vld [vmem:[#allocation21 + $0x254] sm:$0xf0]  ;;  %v10903_v4 = vld [vmem:[#allocation21 + $0xf0] sm:$0xf] }
 0xdc3   : > { %6035 = vmatpush.bf16.msra.mxu0 %v10655_v11  ;;  %v10937_v11 = vld [vmem:[#allocation21 + $0x138] sm:$0xf0] }
 0xdc4   : > { %6339 = vmatpush.bf16.msra.mxu2 %v10828_v20  ;;  %v10940_v12 = vor.u32 %v12234_v59, %v10937_v11  ;;  %v10929_v20 = vld [vmem:[#allocation21 + $0x128] sm:$0xf0] }
 0xdc5   : > { %v10897_v59 = vld [vmem:[#allocation21 + $0xe8] sm:$0xf0] }
 0xdc6   : > { %6047 = vmatpush.bf16.msrb.mxu1 %v10727_v21  ;;  %6036 = vmatmul.bf16.vlgmr.msra.gmra.mxu0 %v14151_v16  ;;  %v12205_v16 = vld [vmem:[#allocation21 + $0x44] sm:$0xf0]  ;;  %v12239_v21 = vld [vmem:[#allocation21 + $0x154] sm:$0xf0] }
 0xdc7   : > { %6311 = vmatpush.bf16.msrb.mxu0 %v10840_v19  ;;  %v10816_v46 = vor.u32 %v12205_v16, %v10815_v45  ;;  %v12232_v19 = vld [vmem:[#allocation21 + $0x124] sm:$0xf]  ;;  %v10952_v22 = vor.u32 %v12239_v21, %v10951_v6  ;;  %v10887_v6 = vld [vmem:[#allocation21 + $0xd0] sm:$0xf]  ;;  %v12223_v21 = vld [vmem:[#allocation21 + $0xd4] sm:$0xf0] }
 0xdc8   : > { %6340 = vmatpush.bf16.msra.mxu2 %v10820_v30  ;;  %v10932_v61 = vor.u32 %v12232_v19, %v10929_v20  ;;  %v12237_v30 = vld [vmem:[#allocation21 + $0x144] sm:$0xf0]  ;;  %v10896_v20 = vor.u32 %v12225_v2, %v10895_v13  ;;  %v11017_v2 = vld [vmem:[#allocation21 + $0x1d8] sm:$0xf0] }
 0xdc9   : > { %v12269_v19 = vld [vmem:[#allocation21 + $0x244] sm:$0xf0] }
 0xdca   : > { %6048 = vmatpush.bf16.msrb.mxu1 %v10719_v31 }
 0xdcb   : > { %6312 = vmatpush.bf16.msrb.mxu0 %v10832_v29  ;;  %v10943_v29 = vld [vmem:[#allocation21 + $0x140] sm:$0xf] }
 0xdcc   : > { %6341 = vmatpush.bf16.msra.mxu2 %v10812_v35  ;;  %v10944_v31 = vor.u32 %v12237_v30, %v10943_v29  ;;  %v10916_v35 = vor.u32 %v12228_v32, %v10913_v33  ;;  %v11071_v29 = vld [vmem:[#allocation21 + $0x230] sm:$0xf]  ;;  %v12267_v30 = vld [vmem:[#allocation21 + $0x234] sm:$0xf0]  ;;  %v12221_v33 = vld [vmem:[#allocation21 + $0xc4] sm:$0xf0] }
 0xdcd   : > { %6049 = vmatmul.bf16.vlgmr.msrb.gmra.mxu1 %v14153_v17  ;;  %v10788_v17 = vor.u32 %v12196_v47, %v10785_v48 }
 0xdcf   : > { %6313 = vmatpush.bf16.msrb.mxu0 %v10824_v43  ;;  %v10919_v43 = vld [vmem:[#allocation21 + $0x110] sm:$0xf] }
 0xdd0   : > { %6342 = vmatpush.bf16.msra.mxu2 %v10804_v38  ;;  %v10936_v38 = vor.u32 %v12235_v37, %v10935_v36  ;;  %v10920_v45 = vor.u32 %v12231_v44, %v10919_v43  ;;  %v10881_v36 = vld [vmem:[#allocation21 + $0xc8] sm:$0xf0]  ;;  %v11072_v37 = vor.u32 %v12267_v30, %v11071_v29  ;;  %v10871_v43 = vld [vmem:[#allocation21 + $0xb0] sm:$0xf]  ;;  %v12219_v44 = vld [vmem:[#allocation21 + $0xb4] sm:$0xf0] }
 0xdd1   : > { %v11001_v29 = vld [vmem:[#allocation21 + $0x1b8] sm:$0xf0] }
 0xdd3   : > { %6314 = vmatpush.bf16.msrb.mxu0 %v10816_v46  ;;  %v12229_v46 = vld [vmem:[#allocation21 + $0x104] sm:$0xf0] }
 0xdd4   : > { %6343 = vmatpush.bf16.msra.mxu2 %v10796_v34  ;;  %v10911_v34 = vld [vmem:[#allocation21 + $0x100] sm:$0xf] }
 0xdd5   : > { %v10912_v47 = vor.u32 %v12229_v46, %v10911_v34  ;;  %v11055_v46 = vld [vmem:[#allocation21 + $0x210] sm:$0xf] }
 0xdd7   : > { %6315 = vmatpush.bf16.msrb.mxu0 %v10808_v51 }
 0xdd8   : > { %6344 = vmatpush.bf16.msra.mxu2 %v10788_v17 }
 0xddb   : > { %6316 = vmatpush.bf16.msrb.mxu0 %v10800_v60 }
 0xddc   : > { %6583 = vmatpush.bf16.msrb.mxu2 %v10972_v39  ;;  %v11103_v39 = vld [vmem:[#allocation21 + $0x270] sm:$0xf] }
 0xddf   : > { %6317 = vmatpush.bf16.msrb.mxu0 %v10792_v62  ;;  %v12226_v62 = vld [vmem:[#allocation21 + $0xf4] sm:$0xf] }
 0xde0   : > { %6584 = vmatpush.bf16.msrb.mxu2 %v10964_v5  ;;  %v11104_v5 = vor.u32 %v12275_v56, %v11103_v39  ;;  %v10908_v58 = vor.u32 %v12226_v62, %v10905_v63  ;;  %v11047_v56 = vld [vmem:[#allocation21 + $0x200] sm:$0xf]  ;;  %v10860_v63 = vor.u32 %v12214_v25, %v10857_v24 }
 0xde3   : > { %6318 = vmatpush.bf16.msrb.mxu0 %v10784_v8 }
 0xde4   : > { %6585 = vmatpush.bf16.msrb.mxu2 %v10956_v1  ;;  %v11087_v1 = vld [vmem:[#allocation21 + $0x250] sm:$0xf] }
 0xde7   : > { %6557 = vmatpush.bf16.msra.mxu0 %v10968_v10  ;;  %v12227_v10 = vld [vmem:[#allocation21 + $0xf4] sm:$0xf0] }
 0xde8   : > { %6586 = vmatpush.bf16.msrb.mxu2 %v10948_v9  ;;  %v12224_v9 = vld [vmem:[#allocation21 + $0xe4] sm:$0xf]  ;;  %v10904_v11 = vor.u32 %v12227_v10, %v10903_v4  ;;  %v10855_v10 = vld [vmem:[#allocation21 + $0x90] sm:$0xf] }
 0xdea   : > { %6324 = vmatpush.bf16.msra.mxu1 %v10904_v11  ;;  %v12254_v11 = vld [vmem:[#allocation21 + $0x1d4] sm:$0xf] }
 0xdeb   : > { %6558 = vmatpush.bf16.msra.mxu0 %v10960_v52  ;;  %v11079_v52 = vld [vmem:[#allocation21 + $0x240] sm:$0xf] }
 0xdec   : > { %6587 = vmatpush.bf16.msrb.mxu2 %v10940_v12  ;;  %v11088_v12 = vor.u32 %v12271_v3, %v11087_v1  ;;  %v11080_v27 = vor.u32 %v12269_v19, %v11079_v52  ;;  %v12258_v1 = vld [vmem:[#allocation21 + $0x1f4] sm:$0xf]  ;;  %v11033_v3 = vld [vmem:[#allocation21 + $0x1f8] sm:$0xf0]  ;;  %v10847_v52 = vld [vmem:[#allocation21 + $0x80] sm:$0xf] }
 0xded   : > { %v12213_v19 = vld [vmem:[#allocation21 + $0x84] sm:$0xf0] }
 0xdee   : > { %6325 = vmatpush.bf16.msra.mxu1 %v10896_v20  ;;  %v12252_v20 = vld [vmem:[#allocation21 + $0x1c4] sm:$0xf] }
 0xdef   : > { %6559 = vmatpush.bf16.msra.mxu0 %v10952_v22  ;;  %v12222_v22 = vld [vmem:[#allocation21 + $0xd4] sm:$0xf] }
 0xdf0   : > { %6588 = vmatpush.bf16.msrb.mxu2 %v10932_v61  ;;  %v10900_v61 = vor.u32 %v12224_v9, %v10897_v59  ;;  %v10892_v32 = vor.u32 %v12222_v22, %v10889_v26  ;;  %v12215_v59 = vld [vmem:[#allocation21 + $0x94] sm:$0xf0] }
 0xdf1   : > { %v10856_v13 = vor.u32 %v12215_v59, %v10855_v10  ;;  %v12259_v22 = vld [vmem:[#allocation21 + $0x1f4] sm:$0xf0] }
 0xdf3   : > { %6560 = vmatpush.bf16.msra.mxu0 %v10944_v31  ;;  %v10888_v31 = vor.u32 %v12223_v21, %v10887_v6  ;;  %v11009_v6 = vld [vmem:[#allocation21 + $0x1c8] sm:$0xf0]  ;;  %v11031_v21 = vld [vmem:[#allocation21 + $0x1f0] sm:$0xf] }
 0xdf4   : > { %6589 = vmatpush.bf16.msrb.mxu2 %v10924_v28  ;;  %v11012_v26 = vor.u32 %v12252_v20, %v11009_v6  ;;  %v11143_v20 = vld [vmem:[#allocation21 + $0x2c0] sm:$0xf] }
 0xdf5   : > { %6326 = vmatpush.bf16.msra.mxu1 %v10888_v31  ;;  %v11023_v31 = vld [vmem:[#allocation21 + $0x1e0] sm:$0xf] }
 0xdf7   : > { %6561 = vmatpush.bf16.msra.mxu0 %v10936_v38  ;;  %v11063_v38 = vld [vmem:[#allocation21 + $0x220] sm:$0xf] }
 0xdf8   : > { %6590 = vmatpush.bf16.msrb.mxu2 %v10916_v35  ;;  %v12220_v35 = vld [vmem:[#allocation21 + $0xc4] sm:$0xf]  ;;  %v11064_v34 = vor.u32 %v12265_v40, %v11063_v38  ;;  %v12255_v38 = vld [vmem:[#allocation21 + $0x1d4] sm:$0xf0] }
 0xdfb   : > { %6562 = vmatpush.bf16.msra.mxu0 %v10928_v42  ;;  %v10884_v42 = vor.u32 %v12220_v35, %v10881_v36  ;;  %v10993_v35 = vld [vmem:[#allocation21 + $0x1a8] sm:$0xf0] }
 0xdff   : > { %6563 = vmatpush.bf16.msra.mxu0 %v10920_v45  ;;  %v12218_v45 = vld [vmem:[#allocation21 + $0xb4] sm:$0xf] }
 0xe03   : > { %6564 = vmatpush.bf16.msra.mxu0 %v10912_v47  ;;  %v12263_v47 = vld [vmem:[#allocation21 + $0x214] sm:$0xf0] }
 0xe04   : > { %v11056_v39 = vor.u32 %v12263_v47, %v11055_v46  ;;  %v10977_v46 = vld [vmem:[#allocation21 + $0x188] sm:$0xf0] }
 0xe21   : > { %v5737_v16 = vpop.f32.mrf.mxu0 }
 0xe28   : > { %v14183_v48 = vpop.f32.mrf.mxu1 }
 0xe29   : > { %v5786_v17 = vpop.f32.mrf.mxu0 }
 0xe2a   : > { %v5787_v23 = vadd.f32 %v5786_v17, %v5737_v16  ;;  %v10873_v16 = vld [vmem:[#allocation21 + $0xb8] sm:$0xf0]  ;;  %v10872_v17 = vor.u32 %v12219_v44, %v10871_v43  ;;  %v11007_v44 = vld [vmem:[#allocation21 + $0x1c0] sm:$0xf] }
 0xe30   : > { %v14188_v54 = vpop.f32.mrf.mxu1 }
 0xe3e   : > { %v6082_v51 = vpop.f32.mrf.mxu2 }
 0xe3f   : > { %v6105_v53 = vadd.f32 %v6082_v51, %v5787_v23  ;;  %v10876_v23 = vor.u32 %v12218_v45, %v10873_v16  ;;  %v12217_v51 = vld [vmem:[#allocation21 + $0xa4] sm:$0xf0] }
 0xe40   : > { %v12253_v45 = vld [vmem:[#allocation21 + $0x1c4] sm:$0xf0] }
 0xe41   : > { %v6113_v55 = vadd.f32 %v6109_v50, %v6105_v53  ;;  %v10863_v50 = vld [vmem:[#allocation21 + $0xa0] sm:$0xf]  ;;  %v12216_v53 = vld [vmem:[#allocation21 + $0xa4] sm:$0xf]  ;;  %v11008_v16 = vor.u32 %v12253_v45, %v11007_v44  ;;  %v12274_v44 = vld [vmem:[#allocation21 + $0x274] sm:$0xf] }
 0xe42   : > { %v11105_v45 = vld [vmem:[#allocation21 + $0x278] sm:$0xf0] }
 0xe43   : > { %v6037_v57 = vpop.f32.mrf.mxu0  ;;  %v6115_v60 = vmax.f32 %v6113_v55, 0.0  ;;  %v10865_v55 = vld [vmem:[#allocation21 + $0xa8] sm:$0xf0] }
 0xe45   : > { %v14190_v14 = vpack.c.bf16 %v6115_v60, %v6115_v60  ;;  %v10864_v60 = vor.u32 %v12217_v51, %v10863_v50  ;;  %v10991_v51 = vld [vmem:[#allocation21 + $0x1a0] sm:$0xf] }
 0xe47   : > { %6319 = vmatmul.bf16.vlgmr.msrb.gmra.mxu0 %v14190_v14  ;;  %6345 = vmatmul.bf16.vlgmr.msra.gmra.mxu2 %v14190_v14 }
 0xe48   : > { %6902 = vmatpush.bf16.msra.mxu2 %v11104_v5  ;;  %v10868_v5 = vor.u32 %v12216_v53, %v10865_v55  ;;  %v12249_v53 = vld [vmem:[#allocation21 + $0x1a4] sm:$0xf0] }
 0xe49   : > { %v10992_v55 = vor.u32 %v12249_v53, %v10991_v51  ;;  %v12290_v51 = vld [vmem:[#allocation21 + $0x2f4] sm:$0xf]  ;;  %v11169_v53 = vld [vmem:[#allocation21 + $0x2f8] sm:$0xf0] }
 0xe4a   : > { %v6050_v0 = vpop.f32.mrf.mxu1 }
 0xe4b   : > { %v6051_v7 = vadd.f32 %v6050_v0, %v6037_v57  ;;  %v6039_v8 = vpop.f32.mrf.mxu0  ;;  %v12261_v57 = vld [vmem:[#allocation21 + $0x204] sm:$0xf0]  ;;  %v10849_v0 = vld [vmem:[#allocation21 + $0x88] sm:$0xf0] }
 0xe4c   : > { %6903 = vmatpush.bf16.msra.mxu2 %v11096_v15  ;;  %v11048_v62 = vor.u32 %v12261_v57, %v11047_v56  ;;  %v12212_v15 = vld [vmem:[#allocation21 + $0x84] sm:$0xf]  ;;  %v12247_v56 = vld [vmem:[#allocation21 + $0x194] sm:$0xf0] }
 0xe4d   : > { %10779 = vmatpush.msk.msrb.mxu3 %vm4935_vm3, %v6051_v7  ;;  %v10852_v4 = vor.u32 %v12212_v15, %v10849_v0  ;;  %v11036_v7 = vor.u32 %v12258_v1, %v11033_v3  ;;  %v12256_v8 = vld [vmem:[#allocation21 + $0x1e4] sm:$0xf]  ;;  %v5807_v15 = vadd.f32 %v14188_v54, %v14183_v48  ;;  %v6110_v0 = vperm.slane %v14185_v49, 1  ;;  %v11151_v54 = vld [vmem:[#allocation21 + $0x2d0] sm:$0xf] }
 0xe4e   : > { %10780 = vmatmul.msk.f32.vlgmr.msrb.gmra.mxu3 %vm4931_vm4, %v14176_v18  ;;  %v10879_v18 = vld [vmem:[#allocation21 + $0xc0] sm:$0xf] }
 0xe4f   : > { %6350 = vmatpush.bf16.msra.mxu3 %v10908_v58  ;;  %v10880_v41 = vor.u32 %v12221_v33, %v10879_v18  ;;  %v11025_v58 = vld [vmem:[#allocation21 + $0x1e8] sm:$0xf0]  ;;  %v12248_v33 = vld [vmem:[#allocation21 + $0x1a4] sm:$0xf] }
 0xe50   : > { %6904 = vmatpush.bf16.msra.mxu2 %v11088_v12  ;;  %v11028_v9 = vor.u32 %v12256_v8, %v11025_v58  ;;  %v11020_v12 = vor.u32 %v12254_v11, %v11017_v2  ;;  %v10996_v36 = vor.u32 %v12248_v33, %v10993_v35  ;;  %v11167_v8 = vld [vmem:[#allocation21 + $0x2f0] sm:$0xf]  ;;  %v12291_v58 = vld [vmem:[#allocation21 + $0x2f4] sm:$0xf0]  ;;  %v12289_v2 = vld [vmem:[#allocation21 + $0x2e4] sm:$0xf0] }
 0xe51   : > { %6327 = vmatpush.bf16.msra.mxu1 %v10880_v41  ;;  %v12246_v41 = vld [vmem:[#allocation21 + $0x194] sm:$0xf]  ;;  %v11168_v59 = vor.u32 %v12291_v58, %v11167_v8  ;;  %v11111_v35 = vld [vmem:[#allocation21 + $0x280] sm:$0xf]  ;;  %v11153_v58 = vld [vmem:[#allocation21 + $0x2d8] sm:$0xf0] }
 0xe52   : > { %v6052_v28 = vpop.f32.mrf.mxu1  ;;  %v12286_v8 = vld [vmem:[#allocation21 + $0x2d4] sm:$0xf] }
 0xe53   : > { %6351 = vmatpush.bf16.msra.mxu3 %v10900_v61  ;;  %v10848_v61 = vor.u32 %v12213_v19, %v10847_v52  ;;  %v12250_v28 = vld [vmem:[#allocation21 + $0x1b4] sm:$0xf] }
 0xe54   : > { %6905 = vmatpush.bf16.msra.mxu2 %v11080_v27  ;;  %v11032_v27 = vor.u32 %v12259_v22, %v11031_v21  ;;  %v11004_v30 = vor.u32 %v12250_v28, %v11001_v29  ;;  %v11135_v22 = vld [vmem:[#allocation21 + $0x2b0] sm:$0xf]  ;;  %v11127_v28 = vld [vmem:[#allocation21 + $0x2a0] sm:$0xf]  ;;  %v12281_v29 = vld [vmem:[#allocation21 + $0x2a4] sm:$0xf0] }
 0xe55   : > { %6328 = vmatpush.bf16.msra.mxu1 %v10872_v17  ;;  %v10999_v17 = vld [vmem:[#allocation21 + $0x1b0] sm:$0xf] }
 0xe57   : > { %6352 = vmatpush.bf16.msra.mxu3 %v10892_v32  ;;  %6565 = vmatmul.bf16.vlgmr.msra.gmra.mxu0 %v14190_v14  ;;  %v12257_v32 = vld [vmem:[#allocation21 + $0x1e4] sm:$0xf0] }
 0xe58   : > { %6591 = vmatmul.bf16.vlgmr.msrb.gmra.mxu2 %v14190_v14  ;;  %v11024_v18 = vor.u32 %v12257_v32, %v11023_v31  ;;  %v11128_v31 = vor.u32 %v12281_v29, %v11127_v28  ;;  %v11119_v32 = vld [vmem:[#allocation21 + $0x290] sm:$0xf]  ;;  %v12262_v28 = vld [vmem:[#allocation21 + $0x214] sm:$0xf]  ;;  %v11057_v29 = vld [vmem:[#allocation21 + $0x218] sm:$0xf0] }
 0xe59   : > { %6906 = vmatpush.bf16.msra.mxu2 %v11072_v37  ;;  %6329 = vmatpush.bf16.msra.mxu1 %v10864_v60  ;;  %v11015_v37 = vld [vmem:[#allocation21 + $0x1d0] sm:$0xf]  ;;  %v10975_v60 = vld [vmem:[#allocation21 + $0x180] sm:$0xf] }
 0xe5a   : > { %v11016_v40 = vor.u32 %v12255_v38, %v11015_v37 }
 0xe5b   : > { %6353 = vmatpush.bf16.msra.mxu3 %v10884_v42  ;;  %v10985_v42 = vld [vmem:[#allocation21 + $0x198] sm:$0xf0] }
 0xe5c   : > { %v10988_v43 = vor.u32 %v12246_v41, %v10985_v42 }
 0xe5d   : > { %6907 = vmatpush.bf16.msra.mxu2 %v11064_v34  ;;  %6330 = vmatpush.bf16.msra.mxu1 %v10856_v13  ;;  %v12244_v34 = vld [vmem:[#allocation21 + $0x184] sm:$0xf]  ;;  %v11159_v13 = vld [vmem:[#allocation21 + $0x2e0] sm:$0xf] }
 0xe5e   : > { %v10980_v47 = vor.u32 %v12244_v34, %v10977_v46  ;;  %v11160_v49 = vor.u32 %v12289_v2, %v11159_v13  ;;  %v6610_v46 = vld [vmem:[#allocation22 + $0x4] sm:$0xf]  ;;  %v11156_v13 = vor.u32 %v12286_v8, %v11153_v58  ;;  %v11205_v8 = vld [vmem:[#allocation25 + $0x38] sm:$0xf0] }
 0xe5f   : > { %6354 = vmatpush.bf16.msra.mxu3 %v10876_v23  ;;  %v12251_v23 = vld [vmem:[#allocation21 + $0x1b4] sm:$0xf0]  ;;  %v12284_v2 = vld [vmem:[#allocation21 + $0x2c4] sm:$0xf] }
 0xe60   : > { %v11000_v50 = vor.u32 %v12251_v23, %v10999_v17  ;;  %v12272_v23 = vld [vmem:[#allocation21 + $0x264] sm:$0xf] }
 0xe61   : > { %6908 = vmatpush.bf16.msra.mxu2 %v11056_v39  ;;  %6331 = vmatpush.bf16.msra.mxu1 %v10848_v61  ;;  %v10983_v39 = vld [vmem:[#allocation21 + $0x190] sm:$0xf]  ;;  %v12285_v61 = vld [vmem:[#allocation21 + $0x2c4] sm:$0xf0] }
 0xe62   : > { %v10984_v57 = vor.u32 %v12247_v56, %v10983_v39  ;;  %v11144_v21 = vor.u32 %v12285_v61, %v11143_v20  ;;  %v11237_v20 = vld [vmem:[#allocation25 + $0x78] sm:$0xf0]  ;;  %v12282_v61 = vld [vmem:[#allocation21 + $0x2b4] sm:$0xf] }
 0xe63   : > { %6355 = vmatpush.bf16.msra.mxu3 %v10868_v5  ;;  %v12245_v5 = vld [vmem:[#allocation21 + $0x184] sm:$0xf0] }
 0xe64   : > { %v10976_v25 = vor.u32 %v12245_v5, %v10975_v60  ;;  %v11089_v60 = vld [vmem:[#allocation21 + $0x258] sm:$0xf0] }
 0xe65   : > { %6909 = vmatpush.bf16.msra.mxu2 %v11048_v62  ;;  %6570 = vmatpush.bf16.msrb.mxu1 %v11032_v27 }
 0xe67   : > { %6356 = vmatpush.bf16.msra.mxu3 %v10860_v63 }
 0xe68   : > { %6910 = vmatmul.bf16.vlgmr.msra.gmra.mxu2 %v14190_v14 }
 0xe69   : > { %6571 = vmatpush.bf16.msrb.mxu1 %v11024_v18  ;;  %v12279_v18 = vld [vmem:[#allocation21 + $0x294] sm:$0xf0] }
 0xe6a   : > { %v11120_v33 = vor.u32 %v12279_v18, %v11119_v32  ;;  %v12304_v18 = vld [vmem:[#allocation25 + $0x64] sm:$0xf] }
 0xe6b   : > { %6357 = vmatpush.bf16.msra.mxu3 %v10852_v4 }
 0xe6d   : > { %6572 = vmatpush.bf16.msrb.mxu1 %v11016_v40 }
 0xe6f   : > { %6596 = vmatpush.bf16.msrb.mxu3 %v11036_v7 }
 0xe71   : > { %6573 = vmatpush.bf16.msrb.mxu1 %v11008_v16 }
 0xe73   : > { %6597 = vmatpush.bf16.msrb.mxu3 %v11028_v9 }
 0xe75   : > { %6574 = vmatpush.bf16.msrb.mxu1 %v11000_v50  ;;  %v11097_v50 = vld [vmem:[#allocation21 + $0x268] sm:$0xf0] }
 0xe76   : > { %v11100_v39 = vor.u32 %v12272_v23, %v11097_v50  ;;  %v12305_v23 = vld [vmem:[#allocation25 + $0x64] sm:$0xf0]  ;;  %v12276_v50 = vld [vmem:[#allocation21 + $0x284] sm:$0xf] }
 0xe77   : > { %6598 = vmatpush.bf16.msrb.mxu3 %v11020_v12  ;;  %v12287_v12 = vld [vmem:[#allocation21 + $0x2d4] sm:$0xf0] }
 0xe78   : > { %v11152_v19 = vor.u32 %v12287_v12, %v11151_v54  ;;  %v12264_v54 = vld [vmem:[#allocation21 + $0x224] sm:$0xf]  ;;  %v11065_v12 = vld [vmem:[#allocation21 + $0x228] sm:$0xf0] }
 0xe79   : > { %6575 = vmatpush.bf16.msrb.mxu1 %v10992_v55 }
 0xe7b   : > { %6599 = vmatpush.bf16.msrb.mxu3 %v11012_v26  ;;  %v12283_v26 = vld [vmem:[#allocation21 + $0x2b4] sm:$0xf0] }
 0xe7c   : > { %v11136_v27 = vor.u32 %v12283_v26, %v11135_v22  ;;  %v11068_v22 = vor.u32 %v12264_v54, %v11065_v12  ;;  %v12294_v54 = vld [vmem:[#allocation25 + $0x14] sm:$0xf] }
 0xe7d   : > { %6576 = vmatpush.bf16.msrb.mxu1 %v10984_v57  ;;  %v12270_v57 = vld [vmem:[#allocation21 + $0x254] sm:$0xf] }
 0xe7f   : > { %6600 = vmatpush.bf16.msrb.mxu3 %v11004_v30 }
 0xe81   : > { %6577 = vmatpush.bf16.msrb.mxu1 %v10976_v25  ;;  %v11172_v25 = vor.u32 %v12290_v51, %v11169_v53  ;;  %v11113_v51 = vld [vmem:[#allocation21 + $0x288] sm:$0xf0] }
 0xe83   : > { %6601 = vmatpush.bf16.msrb.mxu3 %v10996_v36  ;;  %v12277_v36 = vld [vmem:[#allocation21 + $0x284] sm:$0xf0] }
 0xe84   : > { %v11112_v38 = vor.u32 %v12277_v36, %v11111_v35  ;;  %v12280_v35 = vld [vmem:[#allocation21 + $0x2a4] sm:$0xf]  ;;  %v11129_v36 = vld [vmem:[#allocation21 + $0x2a8] sm:$0xf0] }
 0xe87   : > { %6602 = vmatpush.bf16.msrb.mxu3 %v10988_v43 }
 0xe8b   : > { %6603 = vmatpush.bf16.msrb.mxu3 %v10980_v47  ;;  %v11108_v47 = vor.u32 %v12274_v44, %v11105_v45  ;;  %v12278_v44 = vld [vmem:[#allocation21 + $0x294] sm:$0xf]  ;;  %v11121_v45 = vld [vmem:[#allocation21 + $0x298] sm:$0xf0] }
 0xec4   : > { %v14200_v24 = vpop.f32.mrf.mxu0 }
 0xeca   : > { %v14202_v62 = vpop.f32.mrf.mxu2 }
 0xecc   : > { %v6322_v63 = vpop.f32.mrf.mxu0 }
 0xecd   : > { %v6363_v63 = vld [vmem:[#allocation22] sm:$0xf] }
 0xed1   : > { %v6102_v1 = vpop.f32.mrf.mxu3 }
 0xed2   : > { %v6106_v3 = vadd.f32 %v6102_v1, %v5807_v15  ;;  %v6348_v4 = vpop.f32.mrf.mxu2  ;;  %v12288_v15 = vld [vmem:[#allocation21 + $0x2e4] sm:$0xf]  ;;  %v11092_v1 = vor.u32 %v12270_v57, %v11089_v60 }
 0xed3   : > { %v11081_v4 = vld [vmem:[#allocation21 + $0x248] sm:$0xf0]  ;;  %v12302_v57 = vld [vmem:[#allocation25 + $0x54] sm:$0xf] }
 0xed4   : > { %v6114_v7 = vadd.f32 %v6110_v0, %v6106_v3  ;;  %v6566_v9 = vpop.f32.mrf.mxu0  ;;  %v11161_v0 = vld [vmem:[#allocation21 + $0x2e8] sm:$0xf0]  ;;  %v12268_v3 = vld [vmem:[#allocation21 + $0x244] sm:$0xf] }
 0xed6   : > { %v6116_v10 = vmax.f32 %v6114_v7, 0.0  ;;  %v11164_v7 = vor.u32 %v12288_v15, %v11161_v0  ;;  %v12300_v15 = vld [vmem:[#allocation25 + $0x44] sm:$0xf]  ;;  %v11213_v0 = vld [vmem:[#allocation25 + $0x48] sm:$0xf0] }
 0xed8   : > { %v14207_v11 = vpack.c.bf16 %v6116_v10, %v6116_v10  ;;  %v12266_v10 = vld [vmem:[#allocation21 + $0x234] sm:$0xf] }
 0xeda   : > { %6332 = vmatmul.bf16.vlgmr.msra.gmra.mxu1 %v14207_v11  ;;  %6358 = vmatmul.bf16.vlgmr.msra.gmra.mxu3 %v14207_v11 }
 0xedb   : > { %6915 = vmatpush.bf16.msra.mxu3 %v11168_v59  ;;  %v6592_v48 = vpop.f32.mrf.mxu2  ;;  %v11073_v59 = vld [vmem:[#allocation21 + $0x238] sm:$0xf0] }
 0xedc   : > { %v6568_v52 = vpop.f32.mrf.mxu0 }
 0xedf   : > { %6916 = vmatpush.bf16.msra.mxu3 %v11160_v49  ;;  %v11076_v49 = vor.u32 %v12266_v10, %v11073_v59  ;;  %v12296_v10 = vld [vmem:[#allocation25 + $0x24] sm:$0xf] }
 0xee3   : > { %6917 = vmatpush.bf16.msra.mxu3 %v11152_v19  ;;  %v6594_v6 = vpop.f32.mrf.mxu2  ;;  %v12306_v19 = vld [vmem:[#allocation25 + $0x74] sm:$0xf] }
 0xee4   : > { %v11137_v6 = vld [vmem:[#allocation21 + $0x2b8] sm:$0xf0] }
 0xee5   : > { %v11140_v32 = vor.u32 %v12282_v61, %v11137_v6  ;;  %v12292_v6 = vld [vmem:[#allocation25 + $0x4] sm:$0xf] }
 0xee7   : > { %6918 = vmatpush.bf16.msra.mxu3 %v11144_v21 }
 0xeea   : > { %6578 = vmatmul.bf16.vlgmr.msrb.gmra.mxu1 %v14207_v11  ;;  %6604 = vmatmul.bf16.vlgmr.msrb.gmra.mxu3 %v14207_v11 }
 0xeeb   : > { %6919 = vmatpush.bf16.msra.mxu3 %v11136_v27  ;;  %v14213_v30 = vpop.f32.mrf.mxu2  ;;  %v14227_v27 = vld [vmem:[#allocation22 + $0x8] sm:$0xf] }
 0xeef   : > { %6920 = vmatpush.bf16.msra.mxu3 %v11128_v31  ;;  %v11240_v31 = vor.u32 %v12306_v19, %v11237_v20  ;;  %v11179_v19 = vld [vmem:[#allocation25] sm:$0xf]  ;;  %v12293_v20 = vld [vmem:[#allocation25 + $0x4] sm:$0xf0] }
 0xef3   : > { %6921 = vmatpush.bf16.msra.mxu3 %v11120_v33  ;;  %v6913_v37 = vpop.f32.mrf.mxu2  ;;  %v11229_v33 = vld [vmem:[#allocation25 + $0x68] sm:$0xf0] }
 0xef4   : > { %v11060_v37 = vor.u32 %v12262_v28, %v11057_v29  ;;  %v12339_v28 = vld [vmem:[#allocation25 + $0x174] sm:$0xf0]  ;;  %v12338_v29 = vld [vmem:[#allocation25 + $0x174] sm:$0xf] }
 0xef7   : > { %6922 = vmatpush.bf16.msra.mxu3 %v11112_v38  ;;  %v12260_v38 = vld [vmem:[#allocation21 + $0x204] sm:$0xf] }
 0xefa   : > { %6923 = vmatmul.bf16.vlgmr.msra.gmra.mxu3 %v14207_v11 }
 0xf57   : > { %v6333_v40 = vpop.f32.mrf.mxu1 }
 0xf58   : > { %v6334_v17 = vadd.f32 %v6333_v40, %v14200_v24  ;;  %v11232_v40 = vor.u32 %v12304_v18, %v11229_v33 }
 0xf5d   : > { %v6359_v41 = vpop.f32.mrf.mxu3 }
 0xf5e   : > { %v6360_v24 = vadd.f32 %v6359_v41, %v14202_v62  ;;  %v11132_v41 = vor.u32 %v12280_v35, %v11129_v36  ;;  %v11355_v35 = vld [vmem:[#allocation25 + $0x160] sm:$0xf]  ;;  %v12337_v36 = vld [vmem:[#allocation25 + $0x164] sm:$0xf0] }
 0xf5f   : > { %v6335_v42 = vpop.f32.mrf.mxu1 }
 0xf60   : > { %v11235_v42 = vld [vmem:[#allocation25 + $0x70] sm:$0xf] }
 0xf65   : > { %v6361_v43 = vpop.f32.mrf.mxu3 }
 0xf66   : > { %v12307_v43 = vld [vmem:[#allocation25 + $0x74] sm:$0xf0] }
 0xf67   : > { %v6579_v16 = vpop.f32.mrf.mxu1 }
 0xf68   : > { %v6580_v34 = vadd.f32 %v6579_v16, %v6566_v9  ;;  %v11084_v9 = vor.u32 %v12268_v3, %v11081_v4  ;;  %v11216_v3 = vor.u32 %v12300_v15, %v11213_v0  ;;  %v12299_v4 = vld [vmem:[#allocation25 + $0x34] sm:$0xf0]  ;;  %v11325_v15 = vld [vmem:[#allocation25 + $0x128] sm:$0xf0] }
 0xf6a   : > { %11037 = vmatpush.msk.msrb.mxu0 %vm4935_vm3, %v6580_v34 }
 0xf6b   : > { %11038 = vmatmul.msk.f32.vlgmr.msrb.gmra.mxu0 %vm4931_vm4, %v6610_v46 }
 0xf6c   : > { %11041 = vmatpush.msk.msra.mxu0 %vm4935_vm3, %v6334_v17  ;;  %v11227_v17 = vld [vmem:[#allocation25 + $0x60] sm:$0xf] }
 0xf6d   : > { %v6605_v55 = vpop.f32.mrf.mxu3  ;;  %v11228_v53 = vor.u32 %v12305_v23, %v11227_v17  ;;  %v11341_v23 = vld [vmem:[#allocation25 + $0x148] sm:$0xf0] }
 0xf6e   : > { %6928 = vmatpush.bf16.msrb.mxu0 %v11108_v47  ;;  %v6606_v56 = vadd.f32 %v6605_v55, %v6592_v48  ;;  %v11145_v48 = vld [vmem:[#allocation21 + $0x2c8] sm:$0xf0]  ;;  %v11124_v47 = vor.u32 %v12278_v44, %v11121_v45  ;;  %v11116_v55 = vor.u32 %v12276_v50, %v11113_v51  ;;  %v11331_v51 = vld [vmem:[#allocation25 + $0x130] sm:$0xf] }
 0xf6f   : > { %v6581_v5 = vpop.f32.mrf.mxu1  ;;  %v11148_v52 = vor.u32 %v12284_v2, %v11145_v48  ;;  %v11187_v48 = vld [vmem:[#allocation25 + $0x10] sm:$0xf]  ;;  %v11349_v45 = vld [vmem:[#allocation25 + $0x158] sm:$0xf0] }
 0xf70   : > { %11039 = vmatpush.msk.msra.mxu1 %vm4935_vm3, %v6606_v56  ;;  %v12303_v56 = vld [vmem:[#allocation25 + $0x54] sm:$0xf0]  ;;  %v11221_v5 = vld [vmem:[#allocation25 + $0x58] sm:$0xf0] }
 0xf71   : > { %11040 = vmatmul.msk.f32.vlgmr.msra.gmra.mxu1 %vm4931_vm4, %v6610_v46  ;;  %v11236_v46 = vor.u32 %v12307_v43, %v11235_v42  ;;  %v12335_v42 = vld [vmem:[#allocation25 + $0x154] sm:$0xf0]  ;;  %v12334_v43 = vld [vmem:[#allocation25 + $0x154] sm:$0xf] }
 0xf72   : > { %6929 = vmatpush.bf16.msrb.mxu0 %v11100_v39  ;;  %11043 = vmatpush.msk.msrb.mxu1 %vm4935_vm3, %v6360_v24  ;;  %v11219_v39 = vld [vmem:[#allocation25 + $0x50] sm:$0xf]  ;;  %v12301_v24 = vld [vmem:[#allocation25 + $0x44] sm:$0xf0] }
 0xf73   : > { %11042 = vmatmul.msk.f32.vlgmr.msra.gmra.mxu0 %vm4931_vm4, %v6363_v63  ;;  %v11220_v60 = vor.u32 %v12303_v56, %v11219_v39  ;;  %v11333_v56 = vld [vmem:[#allocation25 + $0x138] sm:$0xf0] }
 0xf74   : > { %6941 = vmatpush.bf16.msra.mxu1 %v11172_v25  ;;  %v11211_v25 = vld [vmem:[#allocation25 + $0x40] sm:$0xf] }
 0xf75   : > { %v6607_v62 = vpop.f32.mrf.mxu3 }
 0xf76   : > { %6930 = vmatpush.bf16.msrb.mxu0 %v11092_v1  ;;  %v11212_v1 = vor.u32 %v12301_v24, %v11211_v25  ;;  %v11195_v62 = vld [vmem:[#allocation25 + $0x20] sm:$0xf]  ;;  %v12329_v25 = vld [vmem:[#allocation25 + $0x124] sm:$0xf0]  ;;  %v12328_v24 = vld [vmem:[#allocation25 + $0x124] sm:$0xf] }
 0xf77   : > { %v11328_v0 = vor.u32 %v12328_v24, %v11325_v15  ;;  %v12314_v24 = vld [vmem:[#allocation25 + $0xb4] sm:$0xf]  ;;  %v12312_v15 = vld [vmem:[#allocation25 + $0xa4] sm:$0xf] }
 0xf78   : > { %6942 = vmatpush.bf16.msra.mxu1 %v11164_v7  ;;  %v12298_v7 = vld [vmem:[#allocation25 + $0x34] sm:$0xf] }
 0xf79   : > { %11044 = vmatmul.msk.f32.vlgmr.msrb.gmra.mxu1 %vm4931_vm4, %v6363_v63  ;;  %v11224_v63 = vor.u32 %v12302_v57, %v11221_v5  ;;  %v11208_v58 = vor.u32 %v12298_v7, %v11205_v8  ;;  %v11323_v5 = vld [vmem:[#allocation25 + $0x120] sm:$0xf]  ;;  %v11317_v7 = vld [vmem:[#allocation25 + $0x118] sm:$0xf0] }
 0xf7a   : > { %6931 = vmatpush.bf16.msrb.mxu0 %v11084_v9  ;;  %v12297_v9 = vld [vmem:[#allocation25 + $0x24] sm:$0xf0] }
 0xf7b   : > { %v11196_v59 = vor.u32 %v12297_v9, %v11195_v62  ;;  %v11307_v9 = vld [vmem:[#allocation25 + $0x100] sm:$0xf] }
 0xf7c   : > { %6943 = vmatpush.bf16.msra.mxu1 %v11156_v13  ;;  %v11197_v13 = vld [vmem:[#allocation25 + $0x28] sm:$0xf0] }
 0xf7d   : > { %v6924_v21 = vpop.f32.mrf.mxu3  ;;  %v11200_v2 = vor.u32 %v12296_v10, %v11197_v13  ;;  %v12325_v10 = vld [vmem:[#allocation25 + $0x104] sm:$0xf0] }
 0xf7e   : > { %6932 = vmatpush.bf16.msrb.mxu0 %v11076_v49  ;;  %v6925_v26 = vadd.f32 %v6924_v21, %v14213_v30  ;;  %v11049_v30 = vld [vmem:[#allocation21 + $0x208] sm:$0xf0]  ;;  %v12295_v49 = vld [vmem:[#allocation25 + $0x14] sm:$0xf0]  ;;  %v11181_v21 = vld [vmem:[#allocation25 + $0x8] sm:$0xf0]  ;;  %v11308_v13 = vor.u32 %v12325_v10, %v11307_v9 }
 0xf7f   : > { %v11052_v34 = vor.u32 %v12260_v38, %v11049_v30  ;;  %v11188_v12 = vor.u32 %v12295_v49, %v11187_v48  ;;  %v11357_v38 = vld [vmem:[#allocation25 + $0x168] sm:$0xf0]  ;;  %v11356_v30 = vor.u32 %v12337_v36, %v11355_v35  ;;  %v11299_v49 = vld [vmem:[#allocation25 + $0xf0] sm:$0xf]  ;;  %v12309_v9 = vld [vmem:[#allocation25 + $0x84] sm:$0xf0] }
 0xf80   : > { %6944 = vmatpush.bf16.msra.mxu1 %v11148_v52  ;;  %11173 = vmatpush.msk.msrb.mxu2 %vm4935_vm3, %v6925_v26  ;;  %v11189_v52 = vld [vmem:[#allocation25 + $0x18] sm:$0xf0]  ;;  %v11180_v26 = vor.u32 %v12293_v20, %v11179_v19  ;;  %v12321_v19 = vld [vmem:[#allocation25 + $0xe4] sm:$0xf0]  ;;  %v12308_v10 = vld [vmem:[#allocation25 + $0x84] sm:$0xf] }
 0xf81   : > { %11174 = vmatmul.msk.f32.vlgmr.msrb.gmra.mxu2 %vm4931_vm4, %v14227_v27  ;;  %v11192_v61 = vor.u32 %v12294_v54, %v11189_v52  ;;  %v12323_v54 = vld [vmem:[#allocation25 + $0xf4] sm:$0xf0]  ;;  %v11291_v52 = vld [vmem:[#allocation25 + $0xe0] sm:$0xf] }
 0xf82   : > { %6933 = vmatpush.bf16.msrb.mxu0 %v11068_v22  ;;  %7237 = vmatpush.bf16.msra.mxu2 %v11240_v31  ;;  %v11363_v22 = vld [vmem:[#allocation25 + $0x170] sm:$0xf]  ;;  %v11365_v31 = vld [vmem:[#allocation25 + $0x178] sm:$0xf0] }
 0xf83   : > { %v11364_v18 = vor.u32 %v12339_v28, %v11363_v22  ;;  %v11368_v33 = vor.u32 %v12338_v29, %v11365_v31  ;;  %v12319_v22 = vld [vmem:[#allocation25 + $0xd4] sm:$0xf0] }
 0xf84   : > { %6945 = vmatpush.bf16.msra.mxu1 %v11140_v32  ;;  %v11184_v32 = vor.u32 %v12292_v6, %v11181_v21  ;;  %v11292_v6 = vor.u32 %v12321_v19, %v11291_v52  ;;  %v11283_v21 = vld [vmem:[#allocation25 + $0xd0] sm:$0xf]  ;;  %v11429_v52 = vld [vmem:[#allocation25 + $0x1f8] sm:$0xf0] }
 0xf85   : > { %v6926_v16 = vpop.f32.mrf.mxu3  ;;  %v11284_v31 = vor.u32 %v12319_v22, %v11283_v21  ;;  %v12352_v21 = vld [vmem:[#allocation25 + $0x1e4] sm:$0xf] }
 0xf86   : > { %6934 = vmatpush.bf16.msrb.mxu0 %v11060_v37  ;;  %7238 = vmatpush.bf16.msra.mxu2 %v11232_v40  ;;  %v12336_v37 = vld [vmem:[#allocation25 + $0x164] sm:$0xf]  ;;  %v11352_v16 = vor.u32 %v12334_v43, %v11349_v45  ;;  %v11259_v45 = vld [vmem:[#allocation25 + $0xa0] sm:$0xf] }
 0xf87   : > { %v11360_v40 = vor.u32 %v12336_v37, %v11357_v38 }
 0xf88   : > { %6946 = vmatpush.bf16.msra.mxu1 %v11132_v41  ;;  %v11347_v41 = vld [vmem:[#allocation25 + $0x150] sm:$0xf] }
 0xf89   : > { %v11348_v44 = vor.u32 %v12335_v42, %v11347_v41  ;;  %v12322_v42 = vld [vmem:[#allocation25 + $0xf4] sm:$0xf] }
 0xf8a   : > { %6935 = vmatpush.bf16.msrb.mxu0 %v11052_v34  ;;  %7239 = vmatpush.bf16.msra.mxu2 %v11224_v63  ;;  %v11339_v34 = vld [vmem:[#allocation25 + $0x140] sm:$0xf]  ;;  %v11324_v63 = vor.u32 %v12329_v25, %v11323_v5  ;;  %v11277_v5 = vld [vmem:[#allocation25 + $0xc8] sm:$0xf0] }
 0xf8c   : > { %6947 = vmatpush.bf16.msra.mxu1 %v11124_v47  ;;  %v12332_v47 = vld [vmem:[#allocation25 + $0x144] sm:$0xf] }
 0xf8d   : > { %6936 = vmatmul.bf16.vlgmr.msrb.gmra.mxu0 %v14190_v14  ;;  %v11203_v14 = vld [vmem:[#allocation25 + $0x30] sm:$0xf]  ;;  %v11344_v50 = vor.u32 %v12332_v47, %v11341_v23 }
 0xf8e   : > { %7211 = vmatpush.bf16.msra.mxu0 %v11236_v46  ;;  %7240 = vmatpush.bf16.msra.mxu2 %v11216_v3  ;;  %v12333_v46 = vld [vmem:[#allocation25 + $0x144] sm:$0xf0]  ;;  %v12327_v3 = vld [vmem:[#allocation25 + $0x114] sm:$0xf0] }
 0xf8f   : > { %v11340_v17 = vor.u32 %v12333_v46, %v11339_v34 }
 0xf90   : > { %6948 = vmatpush.bf16.msra.mxu1 %v11116_v55  ;;  %v12330_v55 = vld [vmem:[#allocation25 + $0x134] sm:$0xf] }
 0xf92   : > { %7212 = vmatpush.bf16.msra.mxu0 %v11228_v53  ;;  %7241 = vmatpush.bf16.msra.mxu2 %v11208_v58  ;;  %v12331_v53 = vld [vmem:[#allocation25 + $0x134] sm:$0xf0] }
 0xf93   : > { %6949 = vmatmul.bf16.vlgmr.msra.gmra.mxu1 %v14207_v11  ;;  %v11204_v11 = vor.u32 %v12299_v4, %v11203_v14  ;;  %v11332_v39 = vor.u32 %v12331_v53, %v11331_v51  ;;  %v12326_v14 = vld [vmem:[#allocation25 + $0x114] sm:$0xf]  ;;  %v11293_v51 = vld [vmem:[#allocation25 + $0xe8] sm:$0xf0] }
 0xf94   : > { %v11320_v58 = vor.u32 %v12326_v14, %v11317_v7  ;;  %v12311_v14 = vld [vmem:[#allocation25 + $0x94] sm:$0xf0] }
 0xf96   : > { %7213 = vmatpush.bf16.msra.mxu0 %v11220_v60  ;;  %7242 = vmatpush.bf16.msra.mxu2 %v11200_v2  ;;  %v11336_v60 = vor.u32 %v12330_v55, %v11333_v56  ;;  %v11309_v2 = vld [vmem:[#allocation25 + $0x108] sm:$0xf0]  ;;  %v12318_v55 = vld [vmem:[#allocation25 + $0xd4] sm:$0xf] }
 0xf9a   : > { %7214 = vmatpush.bf16.msra.mxu0 %v11212_v1  ;;  %7243 = vmatpush.bf16.msra.mxu2 %v11192_v61  ;;  %v11315_v1 = vld [vmem:[#allocation25 + $0x110] sm:$0xf]  ;;  %v14236_v61 = vld [vmem:[#allocation24] sm:$0x3] }
 0xf9b   : > { %v11316_v4 = vor.u32 %v12327_v3, %v11315_v1  ;;  %v7009_v28 = vperm.slane %v14236_v61, 0  ;;  %v11251_v3 = vld [vmem:[#allocation25 + $0x90] sm:$0xf] }
 0xf9c   : > { %v11252_v7 = vor.u32 %v12311_v14, %v11251_v3 }
 0xf9e   : > { %7215 = vmatpush.bf16.msra.mxu0 %v11204_v11  ;;  %7244 = vmatpush.bf16.msra.mxu2 %v11184_v32 }
 0xfa2   : > { %7216 = vmatpush.bf16.msra.mxu0 %v11196_v59  ;;  %7483 = vmatpush.bf16.msrb.mxu2 %v11368_v33  ;;  %v12324_v59 = vld [vmem:[#allocation25 + $0x104] sm:$0xf]  ;;  %v12317_v33 = vld [vmem:[#allocation25 + $0xc4] sm:$0xf0] }
 0xfa3   : > { %v11312_v48 = vor.u32 %v12324_v59, %v11309_v2  ;;  %v11427_v2 = vld [vmem:[#allocation25 + $0x1f0] sm:$0xf] }
 0xfa6   : > { %7217 = vmatpush.bf16.msra.mxu0 %v11188_v12  ;;  %7484 = vmatpush.bf16.msrb.mxu2 %v11360_v40  ;;  %v11300_v12 = vor.u32 %v12323_v54, %v11299_v49  ;;  %v12315_v40 = vld [vmem:[#allocation25 + $0xb4] sm:$0xf0] }
 0xfa8   : > { %7224 = vmatpush.bf16.msrb.mxu1 %v11300_v12  ;;  %v12354_v12 = vld [vmem:[#allocation25 + $0x1f4] sm:$0xf] }
 0xfa9   : > { %v11432_v19 = vor.u32 %v12354_v12, %v11429_v52  ;;  %v12368_v52 = vld [vmem:[#allocation25 + $0x264] sm:$0xf] }
 0xfaa   : > { %7218 = vmatpush.bf16.msra.mxu0 %v11180_v26  ;;  %7485 = vmatpush.bf16.msrb.mxu2 %v11352_v16  ;;  %v12313_v16 = vld [vmem:[#allocation25 + $0xa4] sm:$0xf0] }
 0xfac   : > { %7225 = vmatpush.bf16.msrb.mxu1 %v11292_v6  ;;  %v12353_v6 = vld [vmem:[#allocation25 + $0x1e4] sm:$0xf0] }
 0xfae   : > { %7457 = vmatpush.bf16.msrb.mxu0 %v11364_v18  ;;  %7486 = vmatpush.bf16.msrb.mxu2 %v11344_v50  ;;  %v11275_v18 = vld [vmem:[#allocation25 + $0xc0] sm:$0xf]  ;;  %v12320_v50 = vld [vmem:[#allocation25 + $0xe4] sm:$0xf] }
 0xfaf   : > { %v11276_v36 = vor.u32 %v12317_v33, %v11275_v18  ;;  %v11296_v53 = vor.u32 %v12320_v50, %v11293_v51  ;;  %v11413_v33 = vld [vmem:[#allocation25 + $0x1d8] sm:$0xf0]  ;;  %v11389_v51 = vld [vmem:[#allocation25 + $0x1a8] sm:$0xf0] }
 0xfb0   : > { %7226 = vmatpush.bf16.msrb.mxu1 %v11284_v31  ;;  %v12351_v31 = vld [vmem:[#allocation25 + $0x1d4] sm:$0xf0] }
 0xfb2   : > { %7458 = vmatpush.bf16.msrb.mxu0 %v11356_v30  ;;  %7487 = vmatpush.bf16.msrb.mxu2 %v11336_v60  ;;  %v11267_v30 = vld [vmem:[#allocation25 + $0xb0] sm:$0xf]  ;;  %v12316_v60 = vld [vmem:[#allocation25 + $0xc4] sm:$0xf] }
 0xfb3   : > { %v11268_v43 = vor.u32 %v12315_v40, %v11267_v30  ;;  %v11280_v25 = vor.u32 %v12316_v60, %v11277_v5  ;;  %v11405_v40 = vld [vmem:[#allocation25 + $0x1c8] sm:$0xf0] }
 0xfb4   : > { %7227 = vmatpush.bf16.msrb.mxu1 %v11276_v36  ;;  %v11403_v36 = vld [vmem:[#allocation25 + $0x1c0] sm:$0xf] }
 0xfb6   : > { %7459 = vmatpush.bf16.msrb.mxu0 %v11348_v44  ;;  %7488 = vmatpush.bf16.msrb.mxu2 %v11328_v0  ;;  %v11301_v44 = vld [vmem:[#allocation25 + $0xf8] sm:$0xf0]  ;;  %v11261_v0 = vld [vmem:[#allocation25 + $0xa8] sm:$0xf0] }
 0xfb7   : > { %v11304_v47 = vor.u32 %v12322_v42, %v11301_v44  ;;  %v11264_v1 = vor.u32 %v12312_v15, %v11261_v0  ;;  %v12347_v44 = vld [vmem:[#allocation25 + $0x1b4] sm:$0xf0]  ;;  %v11373_v15 = vld [vmem:[#allocation25 + $0x188] sm:$0xf0] }
 0xfb8   : > { %7228 = vmatpush.bf16.msrb.mxu1 %v11268_v43  ;;  %v11395_v43 = vld [vmem:[#allocation25 + $0x1b0] sm:$0xf] }
 0xfba   : > { %7460 = vmatpush.bf16.msrb.mxu0 %v11340_v17  ;;  %7489 = vmatpush.bf16.msrb.mxu2 %v11320_v58  ;;  %v11260_v17 = vor.u32 %v12313_v16, %v11259_v45  ;;  %v11243_v58 = vld [vmem:[#allocation25 + $0x80] sm:$0xf]  ;;  %v12346_v45 = vld [vmem:[#allocation25 + $0x1b4] sm:$0xf]  ;;  %v11396_v16 = vor.u32 %v12347_v44, %v11395_v43  ;;  %v11499_v44 = vld [vmem:[#allocation25 + $0x270] sm:$0xf] }
 0xfbb   : > { %v11244_v59 = vor.u32 %v12309_v9, %v11243_v58 }
 0xfbc   : > { %7229 = vmatpush.bf16.msrb.mxu1 %v11260_v17  ;;  %v12345_v17 = vld [vmem:[#allocation25 + $0x1a4] sm:$0xf0] }
 0xfbe   : > { %7461 = vmatpush.bf16.msrb.mxu0 %v11332_v39  ;;  %7490 = vmatpush.bf16.msrb.mxu2 %v11312_v48  ;;  %v11285_v39 = vld [vmem:[#allocation25 + $0xd8] sm:$0xf0]  ;;  %v12355_v48 = vld [vmem:[#allocation25 + $0x1f4] sm:$0xf0] }
 0xfbf   : > { %v11428_v54 = vor.u32 %v12355_v48, %v11427_v2 }
 0xfc0   : > { %7230 = vmatpush.bf16.msrb.mxu1 %v11252_v7 }
 0xfc2   : > { %7462 = vmatpush.bf16.msrb.mxu0 %v11324_v63  ;;  %v11269_v63 = vld [vmem:[#allocation25 + $0xb8] sm:$0xf0] }
 0xfc4   : > { %7231 = vmatpush.bf16.msrb.mxu1 %v11244_v59 }
 0xfc6   : > { %7463 = vmatpush.bf16.msrb.mxu0 %v11316_v4  ;;  %v12310_v4 = vld [vmem:[#allocation25 + $0x94] sm:$0xf] }
 0xfc8   : > { %7470 = vmatpush.bf16.msra.mxu1 %v11428_v54 }
 0xfca   : > { %7464 = vmatpush.bf16.msrb.mxu0 %v11308_v13  ;;  %v11245_v13 = vld [vmem:[#allocation25 + $0x88] sm:$0xf0] }
 0xfcb   : > { %v11248_v49 = vor.u32 %v12308_v10, %v11245_v13 }
 0xfe8   : > { %v6637_v11 = vpop.f32.mrf.mxu0 }
 0xfee   : > { %v6657_v57 = vpop.f32.mrf.mxu1 }
 0xff0   : > { %v6686_v20 = vpop.f32.mrf.mxu0 }
 0xff1   : > { %v6687_v26 = vadd.f32 %v6686_v20, %v6637_v11  ;;  %v11253_v11 = vld [vmem:[#allocation25 + $0x98] sm:$0xf0]  ;;  %v11419_v20 = vld [vmem:[#allocation25 + $0x1e0] sm:$0xf] }
 0xff2   : > { %v11420_v22 = vor.u32 %v12353_v6, %v11419_v20  ;;  %v7263_v20 = vld [vmem:[#allocation27] sm:$0xf]  ;;  %v12386_v6 = vld [vmem:[#allocation25 + $0x2f4] sm:$0xf] }
 0xff4   : > { %7471 = vmatpush.bf16.msra.mxu1 %v11420_v22 }
 0xff6   : > { %v6706_v8 = vpop.f32.mrf.mxu1 }
 0xff7   : > { %v14234_v62 = vadd.f32 %v6706_v8, %v6657_v57  ;;  %v11288_v57 = vor.u32 %v12318_v55, %v11285_v39  ;;  %v11256_v8 = vor.u32 %v12310_v4, %v11253_v11  ;;  %v12343_v55 = vld [vmem:[#allocation25 + $0x194] sm:$0xf0]  ;;  %v7010_v4 = vperm.slane %v14236_v61, 1  ;;  %v12370_v61 = vld [vmem:[#allocation25 + $0x274] sm:$0xf] }
0x1004   : > { %v6982_v29 = vpop.f32.mrf.mxu2 }
0x1005   : > { %v7005_v32 = vadd.f32 %v6982_v29, %v6687_v26  ;;  %v11421_v26 = vld [vmem:[#allocation25 + $0x1e8] sm:$0xf0]  ;;  %v11411_v29 = vld [vmem:[#allocation25 + $0x1d0] sm:$0xf] }
0x1006   : > { %v11412_v18 = vor.u32 %v12351_v31, %v11411_v29 }
0x1007   : > { %v7013_v35 = vadd.f32 %v7009_v28, %v7005_v32  ;;  %v11424_v28 = vor.u32 %v12352_v21, %v11421_v26  ;;  %v12350_v32 = vld [vmem:[#allocation25 + $0x1d4] sm:$0xf]  ;;  %v11565_v21 = vld [vmem:[#allocation25 + $0x2f8] sm:$0xf0] }
0x1008   : > { %7472 = vmatpush.bf16.msra.mxu1 %v11412_v18  ;;  %v12366_v26 = vld [vmem:[#allocation25 + $0x254] sm:$0xf]  ;;  %v11568_v31 = vor.u32 %v12386_v6, %v11565_v21  ;;  %v12384_v18 = vld [vmem:[#allocation25 + $0x2e4] sm:$0xf] }
0x1009   : > { %v7015_v37 = vmax.f32 %v7013_v35, 0.0  ;;  %v11416_v35 = vor.u32 %v12350_v32, %v11413_v33  ;;  %v11557_v33 = vld [vmem:[#allocation25 + $0x2e8] sm:$0xf0] }
0x100a   : > { %v6937_v38 = vpop.f32.mrf.mxu0 }
0x100b   : > { %v14239_v41 = vpack.c.bf16 %v7015_v37, %v7015_v37  ;;  %v12349_v37 = vld [vmem:[#allocation25 + $0x1c4] sm:$0xf0] }
0x100c   : > { %v11404_v30 = vor.u32 %v12349_v37, %v11403_v36  ;;  %v12364_v37 = vld [vmem:[#allocation25 + $0x244] sm:$0xf] }
0x100d   : > { %7219 = vmatmul.bf16.vlgmr.msra.gmra.mxu0 %v14239_v41  ;;  %7245 = vmatmul.bf16.vlgmr.msra.gmra.mxu2 %v14239_v41 }
0x100e   : > { %7473 = vmatpush.bf16.msra.mxu1 %v11404_v30  ;;  %v11560_v30 = vor.u32 %v12384_v18, %v11557_v33  ;;  %v12363_v18 = vld [vmem:[#allocation25 + $0x234] sm:$0xf0] }
0x1010   : > { %v6950_v34 = vpop.f32.mrf.mxu1 }
0x1011   : > { %v6951_v46 = vadd.f32 %v6950_v34, %v6937_v38  ;;  %v12348_v38 = vld [vmem:[#allocation25 + $0x1c4] sm:$0xf]  ;;  %v11397_v34 = vld [vmem:[#allocation25 + $0x1b8] sm:$0xf0] }
0x1012   : > { %v6939_v23 = vpop.f32.mrf.mxu0  ;;  %v11408_v42 = vor.u32 %v12348_v38, %v11405_v40  ;;  %7474 = vmatpush.bf16.msra.mxu1 %v11396_v16  ;;  %v11477_v38 = vld [vmem:[#allocation25 + $0x248] sm:$0xf0]  ;;  %v12382_v40 = vld [vmem:[#allocation25 + $0x2d4] sm:$0xf] }
0x1013   : > { %11175 = vmatpush.msk.msrb.mxu3 %vm4935_vm3, %v6951_v46  ;;  %v11400_v46 = vor.u32 %v12346_v45, %v11397_v34  ;;  %v12344_v23 = vld [vmem:[#allocation25 + $0x1a4] sm:$0xf]  ;;  %v11480_v43 = vor.u32 %v12364_v37, %v11477_v38  ;;  %v12371_v45 = vld [vmem:[#allocation25 + $0x274] sm:$0xf0]  ;;  %v12362_v16 = vld [vmem:[#allocation25 + $0x234] sm:$0xf] }
0x1014   : > { %11176 = vmatmul.msk.f32.vlgmr.msrb.gmra.mxu3 %vm4931_vm4, %v14227_v27  ;;  %v11272_v27 = vor.u32 %v12314_v24, %v11269_v63  ;;  %v11392_v39 = vor.u32 %v12344_v23, %v11389_v51  ;;  %v12341_v24 = vld [vmem:[#allocation25 + $0x184] sm:$0xf0]  ;;  %v12340_v63 = vld [vmem:[#allocation25 + $0x184] sm:$0xf]  ;;  %v11469_v34 = vld [vmem:[#allocation25 + $0x238] sm:$0xf0]  ;;  %v11500_v51 = vor.u32 %v12371_v45, %v11499_v44 }
0x1015   : > { %7250 = vmatpush.bf16.msra.mxu3 %v11304_v47  ;;  %v11387_v47 = vld [vmem:[#allocation25 + $0x1a0] sm:$0xf]  ;;  %v11541_v23 = vld [vmem:[#allocation25 + $0x2c8] sm:$0xf0]  ;;  %v12381_v38 = vld [vmem:[#allocation25 + $0x2c4] sm:$0xf0] }
0x1016   : > { %v11388_v50 = vor.u32 %v12345_v17, %v11387_v47  ;;  %v12380_v17 = vld [vmem:[#allocation25 + $0x2c4] sm:$0xf]  ;;  %v11539_v37 = vld [vmem:[#allocation25 + $0x2c0] sm:$0xf]  ;;  %v12361_v44 = vld [vmem:[#allocation25 + $0x224] sm:$0xf0] }
0x1017   : > { %v11540_v45 = vor.u32 %v12381_v38, %v11539_v37 }
0x1018   : > { %v6952_v56 = vpop.f32.mrf.mxu1  ;;  %7475 = vmatpush.bf16.msra.mxu1 %v11388_v50 }
0x1019   : > { %7251 = vmatpush.bf16.msra.mxu3 %v11296_v53  ;;  %v11379_v53 = vld [vmem:[#allocation25 + $0x190] sm:$0xf]  ;;  %v12342_v56 = vld [vmem:[#allocation25 + $0x194] sm:$0xf] }
0x101a   : > { %v11380_v60 = vor.u32 %v12343_v55, %v11379_v53  ;;  %v11472_v53 = vor.u32 %v12362_v16, %v11469_v34  ;;  %v11491_v55 = vld [vmem:[#allocation25 + $0x260] sm:$0xf]  ;;  %v11531_v34 = vld [vmem:[#allocation25 + $0x2b0] sm:$0xf] }
0x101c   : > { %7476 = vmatpush.bf16.msra.mxu1 %v11380_v60  ;;  %v11461_v60 = vld [vmem:[#allocation25 + $0x228] sm:$0xf0] }
0x101d   : > { %7252 = vmatpush.bf16.msra.mxu3 %v11288_v57  ;;  %7465 = vmatmul.bf16.vlgmr.msrb.gmra.mxu0 %v14239_v41  ;;  %v11381_v57 = vld [vmem:[#allocation25 + $0x198] sm:$0xf0] }
0x101e   : > { %7491 = vmatmul.bf16.vlgmr.msrb.gmra.mxu2 %v14239_v41  ;;  %v11384_v5 = vor.u32 %v12342_v56, %v11381_v57  ;;  %v12369_v56 = vld [vmem:[#allocation25 + $0x264] sm:$0xf0]  ;;  %v12360_v57 = vld [vmem:[#allocation25 + $0x224] sm:$0xf] }
0x1021   : > { %7253 = vmatpush.bf16.msra.mxu3 %v11280_v25  ;;  %v11371_v25 = vld [vmem:[#allocation25 + $0x180] sm:$0xf] }
0x1025   : > { %7254 = vmatpush.bf16.msra.mxu3 %v11272_v27  ;;  %v11372_v27 = vor.u32 %v12341_v24, %v11371_v25  ;;  %v11563_v25 = vld [vmem:[#allocation25 + $0x2f0] sm:$0xf]  ;;  %v7510_v24 = vld [vmem:[#allocation27 + $0x4] sm:$0xf] }
0x1027   : > { %7477 = vmatpush.bf16.msra.mxu1 %v11372_v27  ;;  %v12378_v27 = vld [vmem:[#allocation25 + $0x2b4] sm:$0xf] }
0x1029   : > { %7255 = vmatpush.bf16.msra.mxu3 %v11264_v1  ;;  %v11376_v1 = vor.u32 %v12340_v63, %v11373_v15  ;;  %v12387_v63 = vld [vmem:[#allocation25 + $0x2f4] sm:$0xf0]  ;;  %v11533_v15 = vld [vmem:[#allocation25 + $0x2b8] sm:$0xf0] }
0x102d   : > { %7256 = vmatpush.bf16.msra.mxu3 %v11256_v8 }
0x1031   : > { %7257 = vmatpush.bf16.msra.mxu3 %v11248_v49 }
0x1035   : > { %7496 = vmatpush.bf16.msrb.mxu3 %v11432_v19  ;;  %v11493_v19 = vld [vmem:[#allocation25 + $0x268] sm:$0xf0] }
0x1036   : > { %v11496_v22 = vor.u32 %v12368_v52, %v11493_v19  ;;  %v12365_v52 = vld [vmem:[#allocation25 + $0x244] sm:$0xf0]  ;;  %v12356_v19 = vld [vmem:[#allocation25 + $0x204] sm:$0xf] }
0x1039   : > { %7497 = vmatpush.bf16.msrb.mxu3 %v11424_v28  ;;  %v11485_v28 = vld [vmem:[#allocation25 + $0x258] sm:$0xf0] }
0x103a   : > { %v11488_v36 = vor.u32 %v12366_v26, %v11485_v28  ;;  %v12374_v26 = vld [vmem:[#allocation25 + $0x294] sm:$0xf]  ;;  %v11517_v28 = vld [vmem:[#allocation25 + $0x298] sm:$0xf0] }
0x103d   : > { %7498 = vmatpush.bf16.msrb.mxu3 %v11416_v35 }
0x1041   : > { %7499 = vmatpush.bf16.msrb.mxu3 %v11408_v42  ;;  %v11549_v42 = vld [vmem:[#allocation25 + $0x2d8] sm:$0xf0] }
0x1042   : > { %v11552_v47 = vor.u32 %v12382_v40, %v11549_v42  ;;  %v11509_v40 = vld [vmem:[#allocation25 + $0x288] sm:$0xf0] }
0x1045   : > { %7500 = vmatpush.bf16.msrb.mxu3 %v11400_v46 }
0x1049   : > { %7501 = vmatpush.bf16.msrb.mxu3 %v11392_v39 }
0x104d   : > { %7502 = vmatpush.bf16.msrb.mxu3 %v11384_v5  ;;  %v11544_v5 = vor.u32 %v12380_v17, %v11541_v23  ;;  %v11451_v17 = vld [vmem:[#allocation25 + $0x210] sm:$0xf]  ;;  %v12359_v23 = vld [vmem:[#allocation25 + $0x214] sm:$0xf0] }
0x1051   : > { %7503 = vmatpush.bf16.msrb.mxu3 %v11376_v1  ;;  %v11464_v1 = vor.u32 %v12360_v57, %v11461_v60  ;;  %v11515_v60 = vld [vmem:[#allocation25 + $0x290] sm:$0xf] }
0x108a   : > { %v7220_v0 = vpop.f32.mrf.mxu0 }
0x1090   : > { %v7246_v3 = vpop.f32.mrf.mxu2 }
0x1092   : > { %v7222_v14 = vpop.f32.mrf.mxu0 }
0x1093   : > { %v12367_v14 = vld [vmem:[#allocation25 + $0x254] sm:$0xf0] }
0x1097   : > { %v7002_v7 = vpop.f32.mrf.mxu3 }
0x1098   : > { %v7006_v11 = vadd.f32 %v7002_v7, %v14234_v62  ;;  %v7248_v8 = vpop.f32.mrf.mxu2  ;;  %v11501_v62 = vld [vmem:[#allocation25 + $0x278] sm:$0xf0] }
0x1099   : > { %v11504_v54 = vor.u32 %v12370_v61, %v11501_v62  ;;  %v11453_v7 = vld [vmem:[#allocation25 + $0x218] sm:$0xf0]  ;;  %v11564_v8 = vor.u32 %v12387_v63, %v11563_v25  ;;  %v11525_v61 = vld [vmem:[#allocation25 + $0x2a8] sm:$0xf0]  ;;  %v11507_v63 = vld [vmem:[#allocation25 + $0x280] sm:$0xf] }
0x109a   : > { %v7014_v58 = vadd.f32 %v7010_v4, %v7006_v11  ;;  %v7466_v9 = vpop.f32.mrf.mxu0  ;;  %v12358_v4 = vld [vmem:[#allocation25 + $0x214] sm:$0xf] }
0x109c   : > { %v7016_v10 = vmax.f32 %v7014_v58, 0.0  ;;  %v11536_v58 = vor.u32 %v12378_v27, %v11533_v15  ;;  %v12373_v27 = vld [vmem:[#allocation25 + $0x284] sm:$0xf0] }
0x109d   : > { %v11508_v15 = vor.u32 %v12373_v27, %v11507_v63  ;;  %v8109_v63 = vld [vmem:[#allocation31 + $0x1b0] sm:$0xff]  ;;  %v8023_v27 = vld [vmem:[#allocation31 + $0x48] sm:$0xff] }
0x109e   : > { %v14250_v59 = vpack.c.bf16 %v7016_v10, %v7016_v10 }
0x10a0   : > { %7232 = vmatmul.bf16.vlgmr.msrb.gmra.mxu1 %v14250_v59  ;;  %7258 = vmatmul.bf16.vlgmr.msra.gmra.mxu3 %v14250_v59 }
0x10a1   : > { %v14254_v13 = vpop.f32.mrf.mxu2 }
0x10a2   : > { %v7468_v2 = vpop.f32.mrf.mxu0 }
0x10a3   : > { %v12385_v2 = vld [vmem:[#allocation25 + $0x2e4] sm:$0xf0] }
0x10a9   : > { %v7494_v48 = vpop.f32.mrf.mxu2 }
0x10aa   : > { %v12376_v48 = vld [vmem:[#allocation25 + $0x2a4] sm:$0xf] }
0x10ab   : > { %v11528_v21 = vor.u32 %v12376_v48, %v11525_v61 }
0x10b0   : > { %7478 = vmatmul.bf16.vlgmr.msra.gmra.mxu1 %v14250_v59  ;;  %7504 = vmatmul.bf16.vlgmr.msrb.gmra.mxu3 %v14250_v59 }
0x111d   : > { %v7233_v49 = vpop.f32.mrf.mxu1 }
0x111e   : > { %v7234_v12 = vadd.f32 %v7233_v49, %v7220_v0  ;;  %v11492_v0 = vor.u32 %v12369_v56, %v11491_v55  ;;  %v11452_v55 = vor.u32 %v12359_v23, %v11451_v17  ;;  %v12357_v56 = vld [vmem:[#allocation25 + $0x204] sm:$0xf0]  ;;  %v8039_v17 = vld [vmem:[#allocation31 + $0xc8] sm:$0xff] }
0x111f   : > { %v8112_v23 = vld [vmem:[#allocation31 + $0x1c8] sm:$0xff] }
0x1120   : > { %11437 = vmatpush.msk.msra.mxu2 %vm4935_vm3, %v7234_v12  ;;  %v11475_v12 = vld [vmem:[#allocation25 + $0x240] sm:$0xf] }
0x1121   : > { %11438 = vmatmul.msk.f32.vlgmr.msra.gmra.mxu2 %vm4931_vm4, %v7263_v20 }
0x1122   : > { %7828 = vmatpush.bf16.msrb.mxu2 %v11504_v54  ;;  %v11456_v54 = vor.u32 %v12358_v4, %v11453_v7 }
0x1123   : > { %v7259_v29 = vpop.f32.mrf.mxu3 }
0x1124   : > { %v7260_v32 = vadd.f32 %v7259_v29, %v7246_v3  ;;  %v11483_v3 = vld [vmem:[#allocation25 + $0x250] sm:$0xf]  ;;  %v11476_v29 = vor.u32 %v12365_v52, %v11475_v12 }
0x1125   : > { %v7235_v35 = vpop.f32.mrf.mxu1  ;;  %v11484_v49 = vor.u32 %v12367_v14, %v11483_v3 }
0x1126   : > { %7829 = vmatpush.bf16.msrb.mxu2 %v11496_v22  ;;  %11439 = vmatpush.msk.msra.mxu3 %vm4935_vm3, %v7260_v32  ;;  %v11547_v22 = vld [vmem:[#allocation25 + $0x2d0] sm:$0xf] }
0x1127   : > { %11440 = vmatmul.msk.f32.vlgmr.msra.gmra.mxu3 %vm4931_vm4, %v7263_v20  ;;  %v11445_v20 = vld [vmem:[#allocation25 + $0x208] sm:$0xf0]  ;;  %v11467_v32 = vld [vmem:[#allocation25 + $0x230] sm:$0xf] }
0x1128   : > { %7841 = vmatpush.bf16.msrb.mxu3 %v11568_v31  ;;  %v11448_v31 = vor.u32 %v12356_v19, %v11445_v20  ;;  %v11468_v42 = vor.u32 %v12363_v18, %v11467_v32  ;;  %v8043_v32 = vld [vmem:[#allocation31 + $0xe8] sm:$0xff] }
0x1129   : > { %v8116_v18 = vld [vmem:[#allocation31 + $0x1e8] sm:$0xff] }
0x112a   : > { %7830 = vmatpush.bf16.msrb.mxu2 %v11488_v36  ;;  %v11520_v36 = vor.u32 %v12374_v26, %v11517_v28  ;;  %v8044_v26 = vld [vmem:[#allocation31 + $0xf0] sm:$0xff] }
0x112b   : > { %v7261_v46 = vpop.f32.mrf.mxu3  ;;  %v8117_v28 = vld [vmem:[#allocation31 + $0x1f0] sm:$0xff] }
0x112c   : > { %7842 = vmatpush.bf16.msrb.mxu3 %v11560_v30  ;;  %v12372_v30 = vld [vmem:[#allocation25 + $0x284] sm:$0xf]  ;;  %v12379_v46 = vld [vmem:[#allocation25 + $0x2b4] sm:$0xf0] }
0x112d   : > { %v7479_v50 = vpop.f32.mrf.mxu1  ;;  %v11512_v16 = vor.u32 %v12372_v30, %v11509_v40  ;;  %v8029_v30 = vld [vmem:[#allocation31 + $0x78] sm:$0xff] }
0x112e   : > { %7831 = vmatpush.bf16.msrb.mxu2 %v11480_v43  ;;  %v7480_v39 = vadd.f32 %v7479_v50, %v7466_v9  ;;  %v11555_v9 = vld [vmem:[#allocation25 + $0x2e0] sm:$0xf]  ;;  %v11532_v50 = vor.u32 %v12379_v46, %v11531_v34  ;;  %v8102_v40 = vld [vmem:[#allocation31 + $0x178] sm:$0xff] }
0x112f   : > { %v11556_v6 = vor.u32 %v12385_v2, %v11555_v9  ;;  %v11459_v43 = vld [vmem:[#allocation25 + $0x220] sm:$0xf]  ;;  %v7855_v9 = vld [vmem:[#allocation27 + $0x8] sm:$0xf] }
0x1130   : > { %7843 = vmatpush.bf16.msrb.mxu3 %v11552_v47  ;;  %11433 = vmatpush.msk.msra.mxu0 %vm4935_vm3, %v7480_v39  ;;  %v11460_v47 = vor.u32 %v12361_v44, %v11459_v43  ;;  %v11443_v39 = vld [vmem:[#allocation25 + $0x200] sm:$0xf]  ;;  %v8114_v43 = vld [vmem:[#allocation31 + $0x1d8] sm:$0xff] }
0x1131   : > { %11434 = vmatmul.msk.f32.vlgmr.msra.gmra.mxu0 %vm4931_vm4, %v7510_v24  ;;  %v11444_v25 = vor.u32 %v12357_v56, %v11443_v39  ;;  %v8028_v44 = vld [vmem:[#allocation31 + $0x70] sm:$0xff]  ;;  %v8027_v46 = vld [vmem:[#allocation31 + $0x68] sm:$0xff]  ;;  %v8025_v39 = vld [vmem:[#allocation31 + $0x58] sm:$0xff] }
0x1132   : > { %7802 = vmatpush.bf16.msrb.mxu0 %v11500_v51  ;;  %7832 = vmatpush.bf16.msrb.mxu2 %v11472_v53  ;;  %v11523_v51 = vld [vmem:[#allocation25 + $0x2a0] sm:$0xf]  ;;  %v12377_v53 = vld [vmem:[#allocation25 + $0x2a4] sm:$0xf0] }
0x1133   : > { %v7505_v11 = vpop.f32.mrf.mxu3  ;;  %v11524_v57 = vor.u32 %v12377_v53, %v11523_v51  ;;  %v8113_v34 = vld [vmem:[#allocation31 + $0x1d0] sm:$0xff]  ;;  %v8099_v51 = vld [vmem:[#allocation31 + $0x160] sm:$0xff]  ;;  %v8098_v56 = vld [vmem:[#allocation31 + $0x158] sm:$0xff] }
0x1134   : > { %7844 = vmatpush.bf16.msrb.mxu3 %v11544_v5  ;;  %v7506_v10 = vadd.f32 %v7505_v11, %v14254_v13  ;;  %v12383_v13 = vld [vmem:[#allocation25 + $0x2d4] sm:$0xf0] }
0x1135   : > { %v7481_v62 = vpop.f32.mrf.mxu1  ;;  %v11548_v35 = vor.u32 %v12383_v13, %v11547_v22  ;;  %v12375_v5 = vld [vmem:[#allocation25 + $0x294] sm:$0xf0]  ;;  %v8045_v22 = vld [vmem:[#allocation31 + $0xf8] sm:$0xff] }
0x1136   : > { %7803 = vmatpush.bf16.msrb.mxu0 %v11492_v0  ;;  %7833 = vmatpush.bf16.msrb.mxu2 %v11464_v1  ;;  %v8118_v13 = vld [vmem:[#allocation31 + $0x1f8] sm:$0xff]  ;;  %v8038_v53 = vld [vmem:[#allocation31 + $0xc0] sm:$0xff] }
0x1137   : > { %11435 = vmatpush.msk.msrb.mxu1 %vm4935_vm3, %v7506_v10 }
0x1138   : > { %7845 = vmatpush.bf16.msrb.mxu3 %v11536_v58  ;;  %11436 = vmatmul.msk.f32.vlgmr.msrb.gmra.mxu1 %vm4931_vm4, %v7510_v24  ;;  %v11516_v24 = vor.u32 %v12375_v5, %v11515_v60  ;;  %v8110_v60 = vld [vmem:[#allocation31 + $0x1b8] sm:$0xff]  ;;  %v8024_v5 = vld [vmem:[#allocation31 + $0x50] sm:$0xff] }
0x1139   : > { %7815 = vmatpush.bf16.msra.mxu1 %v11564_v8 }
0x113a   : > { %7804 = vmatpush.bf16.msrb.mxu0 %v11484_v49  ;;  %7834 = vmatpush.bf16.msrb.mxu2 %v11456_v54  ;;  %v7907_v49 = vld [vmem:[#allocation28] sm:$0x3] }
0x113b   : > { %v7507_v33 = vpop.f32.mrf.mxu3  ;;  %v7910_v54 = vperm.slane %v7907_v49, 1 }
0x113c   : > { %7846 = vmatpush.bf16.msrb.mxu3 %v11528_v21  ;;  %v7968_v21 = vld [vmem:[#allocation30 + $0x2] sm:$0x3] }
0x113d   : > { %7816 = vmatpush.bf16.msra.mxu1 %v11556_v6  ;;  %v7917_v6 = vld [vmem:[#allocation30] sm:$0x3] }
0x113e   : > { %7805 = vmatpush.bf16.msrb.mxu0 %v11476_v29  ;;  %7835 = vmatpush.bf16.msrb.mxu2 %v11448_v31  ;;  %v7909_v29 = vperm.slane %v7907_v49, 0  ;;  %v8091_v49 = vld [vmem:[#allocation31 + $0x120] sm:$0xff] }
0x1140   : > { %7847 = vmatpush.bf16.msrb.mxu3 %v11520_v36  ;;  %v8115_v36 = vld [vmem:[#allocation31 + $0x1e0] sm:$0xff] }
0x1141   : > { %7817 = vmatpush.bf16.msra.mxu1 %v11548_v35  ;;  %7836 = vmatmul.bf16.vlgmr.msrb.gmra.mxu2 %v14239_v41  ;;  %v8042_v35 = vld [vmem:[#allocation31 + $0xe0] sm:$0xff] }
0x1142   : > { %7806 = vmatpush.bf16.msrb.mxu0 %v11468_v42  ;;  %v8041_v42 = vld [vmem:[#allocation31 + $0xd8] sm:$0xff] }
0x1144   : > { %7848 = vmatpush.bf16.msrb.mxu3 %v11512_v16  ;;  %v8040_v16 = vld [vmem:[#allocation31 + $0xd0] sm:$0xff] }
0x1145   : > { %7818 = vmatpush.bf16.msra.mxu1 %v11540_v45  ;;  %v8101_v45 = vld [vmem:[#allocation31 + $0x170] sm:$0xff] }
0x1146   : > { %7807 = vmatpush.bf16.msrb.mxu0 %v11460_v47  ;;  %v8100_v47 = vld [vmem:[#allocation31 + $0x168] sm:$0xff] }
0x1147   : > { %7849 = vmatmul.bf16.vlgmr.msrb.gmra.mxu3 %v14250_v59 }
0x1149   : > { %7819 = vmatpush.bf16.msra.mxu1 %v11532_v50  ;;  %v8026_v50 = vld [vmem:[#allocation31 + $0x60] sm:$0xff] }
0x114a   : > { %7808 = vmatpush.bf16.msrb.mxu0 %v11452_v55  ;;  %v8111_v55 = vld [vmem:[#allocation31 + $0x1c0] sm:$0xff] }
0x114d   : > { %7820 = vmatpush.bf16.msra.mxu1 %v11524_v57  ;;  %v8037_v57 = vld [vmem:[#allocation31 + $0xb8] sm:$0xff] }
0x114e   : > { %7809 = vmatpush.bf16.msrb.mxu0 %v11444_v25  ;;  %v8097_v25 = vld [vmem:[#allocation31 + $0x150] sm:$0xff] }
0x1151   : > { %7821 = vmatpush.bf16.msra.mxu1 %v11516_v24  ;;  %7810 = vmatmul.bf16.vlgmr.msrb.gmra.mxu0 %v14239_v41  ;;  %v8036_v24 = vld [vmem:[#allocation31 + $0xb0] sm:$0xff] }
0x1155   : > { %7822 = vmatpush.bf16.msra.mxu1 %v11508_v15  ;;  %v8096_v15 = vld [vmem:[#allocation31 + $0x148] sm:$0xff] }
0x1158   : > { %7823 = vmatmul.bf16.vlgmr.msra.gmra.mxu1 %v14250_v59 }
0x11a4   : > { %v7586_v0 = vpop.f32.mrf.mxu2 }
0x11aa   : > { %v7606_v14 = vpop.f32.mrf.mxu3 }
0x11ae   : > { %v7537_v1 = vpop.f32.mrf.mxu0 }
0x11af   : > { %v7587_v3 = vadd.f32 %v7586_v0, %v7537_v1  ;;  %v8035_v0 = vld [vmem:[#allocation31 + $0xa8] sm:$0xff] }
0x11b0   : > { %v8108_v1 = vld [vmem:[#allocation31 + $0x1a8] sm:$0xff] }
0x11b5   : > { %v7557_v4 = vpop.f32.mrf.mxu1 }
0x11b6   : > { %v7607_v7 = vadd.f32 %v7606_v14, %v7557_v4  ;;  %v8095_v14 = vld [vmem:[#allocation31 + $0x140] sm:$0xff] }
0x11b7   : > { %v8034_v4 = vld [vmem:[#allocation31 + $0xa0] sm:$0xff] }
0x11c4   : > { %v7837_v11 = vpop.f32.mrf.mxu2 }
0x11ca   : > { %v7850_v8 = vpop.f32.mrf.mxu3 }
0x11cb   : > { %v7851_v58 = vadd.f32 %v7850_v8, %v7837_v11  ;;  %v8021_v11 = vld [vmem:[#allocation31 + $0x38] sm:$0xff] }
0x11cc   : > { %v7839_v10 = vpop.f32.mrf.mxu2  ;;  %v8094_v8 = vld [vmem:[#allocation31 + $0x138] sm:$0xff] }
0x11cd   : > { %11571 = vmatpush.msk.msrb.mxu1 %vm4935_vm3, %v7851_v58  ;;  %v8033_v58 = vld [vmem:[#allocation31 + $0x98] sm:$0xff]  ;;  %v8020_v10 = vld [vmem:[#allocation31 + $0x30] sm:$0xff] }
0x11ce   : > { %v7811_v2 = vpop.f32.mrf.mxu0  ;;  %11572 = vmatmul.msk.f32.vlgmr.msrb.gmra.mxu1 %vm4931_vm4, %v7855_v9 }
0x11d2   : > { %v7852_v41 = vpop.f32.mrf.mxu3 }
0x11d3   : > { %v8032_v41 = vld [vmem:[#allocation31 + $0x90] sm:$0xff] }
0x11d5   : > { %v7824_v48 = vpop.f32.mrf.mxu1 }
0x11d6   : > { %v7825_v61 = vadd.f32 %v7824_v48, %v7811_v2  ;;  %v7813_v59 = vpop.f32.mrf.mxu0  ;;  %v8093_v2 = vld [vmem:[#allocation31 + $0x130] sm:$0xff] }
0x11d7   : > { %v8105_v48 = vld [vmem:[#allocation31 + $0x190] sm:$0xff]  ;;  %v8092_v59 = vld [vmem:[#allocation31 + $0x128] sm:$0xff] }
0x11d8   : > { %11569 = vmatpush.msk.msra.mxu0 %vm4935_vm3, %v7825_v61  ;;  %v8019_v61 = vld [vmem:[#allocation31 + $0x28] sm:$0xff] }
0x11d9   : > { %11570 = vmatmul.msk.f32.vlgmr.msra.gmra.mxu0 %vm4931_vm4, %v7855_v9  ;;  %v8106_v9 = vld [vmem:[#allocation31 + $0x198] sm:$0xff] }
0x11dd   : > { %v7826_v62 = vpop.f32.mrf.mxu1 }
0x11de   : > { %v8018_v62 = vld [vmem:[#allocation31 + $0x20] sm:$0xff] }
0x124b   : > { %v7902_v12 = vpop.f32.mrf.mxu1 }
0x124c   : > { %v7906_v52 = vadd.f32 %v7902_v12, %v7607_v7  ;;  %v8107_v7 = vld [vmem:[#allocation31 + $0x1a0] sm:$0xff]  ;;  %v8090_v12 = vld [vmem:[#allocation31 + $0x118] sm:$0xff] }
0x124e   : > { %v7914_v19 = vadd.f32 %v7910_v54, %v7906_v52  ;;  %v8017_v54 = vld [vmem:[#allocation31 + $0x18] sm:$0xff]  ;;  %v8016_v52 = vld [vmem:[#allocation31 + $0x10] sm:$0xff] }
0x1250   : > { %v7916_v20 = vmax.f32 %v7914_v19, 0.0  ;;  %v8089_v19 = vld [vmem:[#allocation31 + $0x110] sm:$0xff] }
0x1252   : > { %11575 = vmatpush.msk.msra.mxu3 %vm4935_vm3, %v7916_v20  ;;  %11579 = vmatpush.msk.msra.mxu1 %vm4935_vm3, %v7916_v20  ;;  %v8015_v20 = vld [vmem:[#allocation31 + $0x8] sm:$0xff] }
0x1253   : > { %11576 = vmatmul.msk.f32.vlgmr.msra.gmra.mxu3 %vm4931_vm4, %v7917_v6  ;;  %11580 = vmatmul.msk.f32.vlgmr.msra.gmra.mxu1 %vm4931_vm4, %v7968_v21 }
0x1254   : > { %8066 = vmatpush.msrb.mxu3 %v8045_v22  ;;  %8139 = vmatpush.msrb.mxu1 %v8118_v13  ;;  %v8104_v22 = vld [vmem:[#allocation31 + $0x188] sm:$0xff]  ;;  %v8014_v13 = vld [vmem:[#allocation31] sm:$0xff] }
0x1256   : > { %v7882_v31 = vpop.f32.mrf.mxu0  ;;  %8067 = vmatpush.msrb.mxu3 %v8044_v26  ;;  %8140 = vmatpush.msrb.mxu1 %v8117_v28  ;;  %v8030_v26 = vld [vmem:[#allocation31 + $0x80] sm:$0xff] }
0x1257   : > { %v7905_v33 = vadd.f32 %v7882_v31, %v7587_v3  ;;  %v8022_v3 = vld [vmem:[#allocation31 + $0x40] sm:$0xff]  ;;  %v11639_v31 = vld [vmem:[#allocation33 + $0x70] sm:$0xf] }
0x1258   : > { %8068 = vmatpush.msrb.mxu3 %v8043_v32  ;;  %8141 = vmatpush.msrb.mxu1 %v8116_v18  ;;  %v8087_v28 = vld [vmem:[#allocation31 + $0x100] sm:$0xff]  ;;  %v12403_v32 = vld [vmem:[#allocation33 + $0x74] sm:$0xf0]  ;;  %v12402_v18 = vld [vmem:[#allocation33 + $0x74] sm:$0xf] }
0x1259   : > { %v7913_v37 = vadd.f32 %v7909_v29, %v7905_v33  ;;  %v8103_v29 = vld [vmem:[#allocation31 + $0x180] sm:$0xff]  ;;  %v11640_v33 = vor.u32 %v12403_v32, %v11639_v31 }
0x125a   : > { %8069 = vmatpush.msrb.mxu3 %v8042_v35  ;;  %8142 = vmatpush.msrb.mxu1 %v8115_v36  ;;  %v11641_v35 = vld [vmem:[#allocation33 + $0x78] sm:$0xf0]  ;;  %v11703_v36 = vld [vmem:[#allocation33 + $0xf0] sm:$0xf] }
0x125b   : > { %v7915_v38 = vmax.f32 %v7913_v37, 0.0  ;;  %v12419_v37 = vld [vmem:[#allocation33 + $0xf4] sm:$0xf0] }
0x125c   : > { %8070 = vmatpush.msrb.mxu3 %v8041_v42  ;;  %8143 = vmatpush.msrb.mxu1 %v8114_v43  ;;  %v11705_v42 = vld [vmem:[#allocation33 + $0xf8] sm:$0xf0]  ;;  %v11631_v43 = vld [vmem:[#allocation33 + $0x60] sm:$0xf] }
0x125d   : > { %11573 = vmatpush.msk.msra.mxu2 %vm4935_vm3, %v7915_v38  ;;  %11577 = vmatpush.msk.msrb.mxu0 %vm4935_vm3, %v7915_v38  ;;  %v11644_v38 = vor.u32 %v12402_v18, %v11641_v35  ;;  %v11599_v18 = vld [vmem:[#allocation33 + $0x20] sm:$0xf]  ;;  %v12392_v35 = vld [vmem:[#allocation33 + $0x24] sm:$0xf] }
0x125e   : > { %11574 = vmatmul.msk.f32.vlgmr.msra.gmra.mxu2 %vm4931_vm4, %v7917_v6  ;;  %11578 = vmatmul.msk.f32.vlgmr.msrb.gmra.mxu0 %vm4931_vm4, %v7968_v21  ;;  %v8031_v6 = vld [vmem:[#allocation31 + $0x88] sm:$0xff] }
0x125f   : > { %8046 = vmatpush.msrb.mxu2 %v8029_v30  ;;  %8119 = vmatpush.msra.mxu0 %v8102_v40  ;;  %v8088_v21 = vld [vmem:[#allocation31 + $0x108] sm:$0xff]  ;;  %v11704_v30 = vor.u32 %v12419_v37, %v11703_v36  ;;  %v12418_v40 = vld [vmem:[#allocation33 + $0xf4] sm:$0xf] }
0x1260   : > { %8071 = vmatpush.msrb.mxu3 %v8040_v16  ;;  %8144 = vmatpush.msrb.mxu1 %v8113_v34  ;;  %v12400_v16 = vld [vmem:[#allocation33 + $0x64] sm:$0xf]  ;;  %v11633_v34 = vld [vmem:[#allocation33 + $0x68] sm:$0xf0] }
0x1261   : > { %8047 = vmatpush.msrb.mxu2 %v8028_v44  ;;  %8120 = vmatpush.msra.mxu0 %v8101_v45  ;;  %v11708_v44 = vor.u32 %v12418_v40, %v11705_v42  ;;  %v12401_v45 = vld [vmem:[#allocation33 + $0x64] sm:$0xf0]  ;;  %v11601_v37 = vld [vmem:[#allocation33 + $0x28] sm:$0xf0] }
0x1262   : > { %8072 = vmatpush.msrb.mxu3 %v8039_v17  ;;  %8145 = vmatpush.msrb.mxu1 %v8112_v23  ;;  %v11695_v17 = vld [vmem:[#allocation33 + $0xe0] sm:$0xf]  ;;  %v12417_v23 = vld [vmem:[#allocation33 + $0xe4] sm:$0xf0]  ;;  %v11604_v40 = vor.u32 %v12392_v35, %v11601_v37 }
0x1263   : > { %8048 = vmatpush.msrb.mxu2 %v8027_v46  ;;  %8121 = vmatpush.msra.mxu0 %v8100_v47  ;;  %v11632_v46 = vor.u32 %v12401_v45, %v11631_v43  ;;  %v11636_v47 = vor.u32 %v12400_v16, %v11633_v34  ;;  %v12408_v43 = vld [vmem:[#allocation33 + $0xa4] sm:$0xf]  ;;  %v11591_v16 = vld [vmem:[#allocation33 + $0x10] sm:$0xf]  ;;  %v12391_v34 = vld [vmem:[#allocation33 + $0x14] sm:$0xf0] }
0x1264   : > { %8073 = vmatpush.msrb.mxu3 %v8038_v53  ;;  %8146 = vmatpush.msrb.mxu1 %v8111_v55  ;;  %v11697_v53 = vld [vmem:[#allocation33 + $0xe8] sm:$0xf0]  ;;  %v11623_v55 = vld [vmem:[#allocation33 + $0x50] sm:$0xf]  ;;  %v11752_v37 = vld [vmem:[#allocation33 + $0x140] sm:$0xf] }
0x1265   : > { %8049 = vmatpush.msrb.mxu2 %v8026_v50  ;;  %8122 = vmatpush.msra.mxu0 %v8099_v51  ;;  %v12416_v50 = vld [vmem:[#allocation33 + $0xe4] sm:$0xf]  ;;  %v11696_v51 = vor.u32 %v12417_v23, %v11695_v17  ;;  %v11593_v17 = vld [vmem:[#allocation33 + $0x18] sm:$0xf0]  ;;  %v11655_v23 = vld [vmem:[#allocation33 + $0x90] sm:$0xf] }
0x1266   : > { %8074 = vmatpush.msrb.mxu3 %v8037_v57  ;;  %8147 = vmatpush.msrb.mxu1 %v8110_v60  ;;  %v12398_v57 = vld [vmem:[#allocation33 + $0x54] sm:$0xf]  ;;  %v11625_v60 = vld [vmem:[#allocation33 + $0x58] sm:$0xf0] }
0x1267   : > { %8050 = vmatpush.msrb.mxu2 %v8025_v39  ;;  %8123 = vmatpush.msra.mxu0 %v8098_v56  ;;  %v12399_v39 = vld [vmem:[#allocation33 + $0x54] sm:$0xf0]  ;;  %v11700_v56 = vor.u32 %v12416_v50, %v11697_v53 }
0x1268   : > { %8075 = vmatpush.msrb.mxu3 %v8036_v24  ;;  %8148 = vmatpush.msrb.mxu1 %v8109_v63  ;;  %v12415_v24 = vld [vmem:[#allocation33 + $0xd4] sm:$0xf0]  ;;  %v12414_v63 = vld [vmem:[#allocation33 + $0xd4] sm:$0xf] }
0x1269   : > { %8051 = vmatpush.msrb.mxu2 %v8024_v5  ;;  %8124 = vmatpush.msra.mxu0 %v8097_v25  ;;  %v11687_v5 = vld [vmem:[#allocation33 + $0xd0] sm:$0xf]  ;;  %v11624_v25 = vor.u32 %v12399_v39, %v11623_v55  ;;  %v12407_v50 = vld [vmem:[#allocation33 + $0x94] sm:$0xf0]  ;;  %v12406_v55 = vld [vmem:[#allocation33 + $0x94] sm:$0xf] }
0x126a   : > { %8076 = vmatpush.msrb.mxu3 %v8035_v0  ;;  %8149 = vmatpush.msrb.mxu1 %v8108_v1  ;;  %v11688_v0 = vor.u32 %v12415_v24, %v11687_v5  ;;  %v11615_v1 = vld [vmem:[#allocation33 + $0x40] sm:$0xf]  ;;  %v11656_v53 = vor.u32 %v12407_v50, %v11655_v23  ;;  %v11657_v39 = vld [vmem:[#allocation33 + $0x98] sm:$0xf0]  ;;  %v12388_v5 = vld [vmem:[#allocation33 + $0x4] sm:$0xf] }
0x126b   : > { %8052 = vmatpush.msrb.mxu2 %v8023_v27  ;;  %8125 = vmatpush.msra.mxu0 %v8096_v15  ;;  %v11689_v27 = vld [vmem:[#allocation33 + $0xd8] sm:$0xf0]  ;;  %v11628_v15 = vor.u32 %v12398_v57, %v11625_v60  ;;  %v11583_v57 = vld [vmem:[#allocation33] sm:$0xf]  ;;  %v12389_v60 = vld [vmem:[#allocation33 + $0x4] sm:$0xf0] }
0x126c   : > { %8077 = vmatpush.msrb.mxu3 %v8034_v4  ;;  %8150 = vmatpush.msrb.mxu1 %v8107_v7  ;;  %v11692_v4 = vor.u32 %v12414_v63, %v11689_v27  ;;  %v11617_v7 = vld [vmem:[#allocation33 + $0x48] sm:$0xf0]  ;;  %v11647_v63 = vld [vmem:[#allocation33 + $0x80] sm:$0xf]  ;;  %v12405_v27 = vld [vmem:[#allocation33 + $0x84] sm:$0xf0] }
0x126d   : > { %8053 = vmatpush.msrb.mxu2 %v8022_v3  ;;  %8126 = vmatpush.msra.mxu0 %v8095_v14  ;;  %v12397_v3 = vld [vmem:[#allocation33 + $0x44] sm:$0xf0]  ;;  %v12396_v14 = vld [vmem:[#allocation33 + $0x44] sm:$0xf]  ;;  %v11585_v24 = vld [vmem:[#allocation33 + $0x8] sm:$0xf0] }
0x126e   : > { %8078 = vmatpush.msrb.mxu3 %v8033_v58  ;;  %8151 = vmatpush.msrb.mxu1 %v8106_v9  ;;  %v12412_v58 = vld [vmem:[#allocation33 + $0xc4] sm:$0xf]  ;;  %v11681_v9 = vld [vmem:[#allocation33 + $0xc8] sm:$0xf0] }
0x126f   : > { %8054 = vmatpush.msrb.mxu2 %v8021_v11  ;;  %8127 = vmatpush.msra.mxu0 %v8094_v8  ;;  %v11679_v11 = vld [vmem:[#allocation33 + $0xc0] sm:$0xf]  ;;  %v12413_v8 = vld [vmem:[#allocation33 + $0xc4] sm:$0xf0] }
0x1270   : > { %8079 = vmatpush.msrb.mxu3 %v8032_v41  ;;  %8152 = vmatpush.msrb.mxu1 %v8105_v48  ;;  %v11680_v41 = vor.u32 %v12413_v8, %v11679_v11  ;;  %v11607_v48 = vld [vmem:[#allocation33 + $0x30] sm:$0xf] }
0x1271   : > { %8055 = vmatpush.msrb.mxu2 %v8020_v10  ;;  %8128 = vmatpush.msra.mxu0 %v8093_v2  ;;  %v11616_v10 = vor.u32 %v12397_v3, %v11615_v1  ;;  %v11620_v2 = vor.u32 %v12396_v14, %v11617_v7  ;;  %v12404_v1 = vld [vmem:[#allocation33 + $0x84] sm:$0xf]  ;;  %v11649_v3 = vld [vmem:[#allocation33 + $0x88] sm:$0xf0] }
0x1272   : > { %8080 = vmatpush.msrb.mxu3 %v8031_v6  ;;  %8153 = vmatpush.msrb.mxu1 %v8104_v22  ;;  %v11652_v14 = vor.u32 %v12404_v1, %v11649_v3  ;;  %v12421_v1 = vld [vmem:[#allocation33 + $0x104] sm:$0xf0]  ;;  %v12420_v3 = vld [vmem:[#allocation33 + $0x104] sm:$0xf] }
0x1273   : > { %8056 = vmatpush.msrb.mxu2 %v8019_v61  ;;  %8129 = vmatpush.msra.mxu0 %v8092_v59  ;;  %v12395_v61 = vld [vmem:[#allocation33 + $0x34] sm:$0xf0]  ;;  %v12394_v59 = vld [vmem:[#allocation33 + $0x34] sm:$0xf] }
0x1274   : > { %8081 = vmatpush.msrb.mxu3 %v8030_v26  ;;  %8154 = vmatpush.msrb.mxu1 %v8103_v29 }
0x1275   : > { %8057 = vmatpush.msrb.mxu2 %v8018_v62  ;;  %8130 = vmatpush.msra.mxu0 %v8091_v49  ;;  %v11684_v62 = vor.u32 %v12412_v58, %v11681_v9  ;;  %v11609_v49 = vld [vmem:[#allocation33 + $0x38] sm:$0xf0] }
0x1276   : > { %8270 = vmatpush.bf16.msra.mxu3 %v11644_v38  ;;  %8394 = vmatpush.bf16.msra.mxu1 %v11708_v44  ;;  %v11612_v6 = vor.u32 %v12394_v59, %v11609_v49  ;;  %v11663_v38 = vld [vmem:[#allocation33 + $0xa0] sm:$0xf]  ;;  %v11665_v44 = vld [vmem:[#allocation33 + $0xa8] sm:$0xf0]  ;;  %v11778_v59 = vld [vmem:[#allocation33 + $0x178] sm:$0xf0] }
0x1277   : > { %8058 = vmatpush.msrb.mxu2 %v8017_v54  ;;  %8131 = vmatpush.msra.mxu0 %v8090_v12  ;;  %v11671_v54 = vld [vmem:[#allocation33 + $0xb0] sm:$0xf]  ;;  %v12411_v12 = vld [vmem:[#allocation33 + $0xb4] sm:$0xf0]  ;;  %v11668_v45 = vor.u32 %v12408_v43, %v11665_v44 }
0x1279   : > { %8059 = vmatpush.msrb.mxu2 %v8016_v52  ;;  %8132 = vmatpush.msra.mxu0 %v8089_v19  ;;  %v12410_v52 = vld [vmem:[#allocation33 + $0xb4] sm:$0xf]  ;;  %v11673_v19 = vld [vmem:[#allocation33 + $0xb8] sm:$0xf0] }
0x127a   : > { %8271 = vmatpush.bf16.msra.mxu3 %v11636_v47  ;;  %8395 = vmatpush.bf16.msra.mxu1 %v11700_v56  ;;  %v11592_v47 = vor.u32 %v12391_v34, %v11591_v16  ;;  %v11660_v56 = vor.u32 %v12406_v55, %v11657_v39  ;;  %v11744_v16 = vld [vmem:[#allocation33 + $0x130] sm:$0xf]  ;;  %v12427_v34 = vld [vmem:[#allocation33 + $0x134] sm:$0xf0]  ;;  %v12425_v55 = vld [vmem:[#allocation33 + $0x124] sm:$0xf0] }
0x127b   : > { %8060 = vmatpush.msrb.mxu2 %v8015_v20  ;;  %8133 = vmatpush.msra.mxu0 %v8088_v21  ;;  %v11608_v20 = vor.u32 %v12395_v61, %v11607_v48  ;;  %v11672_v21 = vor.u32 %v12411_v12, %v11671_v54  ;;  %v12435_v48 = vld [vmem:[#allocation33 + $0x174] sm:$0xf0]  ;;  %v12434_v61 = vld [vmem:[#allocation33 + $0x174] sm:$0xf]  ;;  %v11768_v54 = vld [vmem:[#allocation33 + $0x160] sm:$0xf]  ;;  %v11745_v50 = vor.u32 %v12427_v34, %v11744_v16 }
0x127c   : > { %v11781_v49 = vor.u32 %v12434_v61, %v11778_v59  ;;  %v12433_v12 = vld [vmem:[#allocation33 + $0x164] sm:$0xf0]  ;;  %v12424_v39 = vld [vmem:[#allocation33 + $0x124] sm:$0xf] }
0x127d   : > { %8061 = vmatpush.msrb.mxu2 %v8014_v13  ;;  %8134 = vmatpush.msra.mxu0 %v8087_v28  ;;  %v11676_v13 = vor.u32 %v12410_v52, %v11673_v19  ;;  %v12432_v52 = vld [vmem:[#allocation33 + $0x164] sm:$0xf]  ;;  %v11770_v19 = vld [vmem:[#allocation33 + $0x168] sm:$0xf0] }
0x127e   : > { %8272 = vmatpush.bf16.msra.mxu3 %v11628_v15  ;;  %8396 = vmatpush.bf16.msra.mxu1 %v11692_v4  ;;  %v11588_v15 = vor.u32 %v12388_v5, %v11585_v24  ;;  %v11728_v5 = vld [vmem:[#allocation33 + $0x110] sm:$0xf]  ;;  %v12422_v24 = vld [vmem:[#allocation33 + $0x114] sm:$0xf] }
0x127f   : > { %8257 = vmatpush.bf16.msra.mxu2 %v11640_v33  ;;  %8381 = vmatpush.bf16.msrb.mxu0 %v11704_v30  ;;  %v12393_v33 = vld [vmem:[#allocation33 + $0x24] sm:$0xf0] }
0x1280   : > { %v11600_v36 = vor.u32 %v12393_v33, %v11599_v18  ;;  %v12409_v30 = vld [vmem:[#allocation33 + $0xa4] sm:$0xf0] }
0x1281   : > { %v11664_v42 = vor.u32 %v12409_v30, %v11663_v38  ;;  %v8283_v33 = vld [vmem:[%s13555_s30] sm:$0x3]  ;;  %v12428_v30 = vld [vmem:[#allocation33 + $0x144] sm:$0xf] }
0x1282   : > { %8273 = vmatpush.bf16.msra.mxu3 %v11620_v2  ;;  %8397 = vmatpush.bf16.msra.mxu1 %v11684_v62  ;;  %v12429_v38 = vld [vmem:[#allocation33 + $0x144] sm:$0xf0] }
0x1283   : > { %8258 = vmatpush.bf16.msra.mxu2 %v11632_v46  ;;  %8382 = vmatpush.bf16.msrb.mxu0 %v11696_v51  ;;  %v12390_v46 = vld [vmem:[#allocation33 + $0x14] sm:$0xf]  ;;  %v11753_v44 = vor.u32 %v12429_v38, %v11752_v37 }
0x1284   : > { %v11596_v51 = vor.u32 %v12390_v46, %v11593_v17  ;;  %v12426_v46 = vld [vmem:[#allocation33 + $0x134] sm:$0xf] }
0x1286   : > { %8274 = vmatpush.bf16.msra.mxu3 %v11612_v6  ;;  %8398 = vmatpush.bf16.msra.mxu1 %v11676_v13  ;;  %v11773_v13 = vor.u32 %v12432_v52, %v11770_v19 }
0x1287   : > { %8259 = vmatpush.bf16.msra.mxu2 %v11624_v25  ;;  %8383 = vmatpush.bf16.msrb.mxu0 %v11688_v0  ;;  %v11584_v25 = vor.u32 %v12389_v60, %v11583_v57  ;;  %v11648_v0 = vor.u32 %v12405_v27, %v11647_v63  ;;  %v11730_v63 = vld [vmem:[#allocation33 + $0x118] sm:$0xf0] }
0x128a   : > { %8275 = vmatpush.bf16.msra.mxu3 %v11604_v40  ;;  %8399 = vmatpush.bf16.msra.mxu1 %v11668_v45  ;;  %v11754_v40 = vld [vmem:[#allocation33 + $0x148] sm:$0xf0] }
0x128b   : > { %8260 = vmatpush.bf16.msra.mxu2 %v11616_v10  ;;  %8384 = vmatpush.bf16.msrb.mxu0 %v11680_v41  ;;  %v11776_v41 = vld [vmem:[#allocation33 + $0x170] sm:$0xf]  ;;  %v11757_v45 = vor.u32 %v12428_v30, %v11754_v40 }
0x128c   : > { %v11777_v62 = vor.u32 %v12435_v48, %v11776_v41 }
0x128e   : > { %8276 = vmatpush.bf16.msra.mxu3 %v11596_v51  ;;  %8400 = vmatpush.bf16.msra.mxu1 %v11660_v56  ;;  %v11738_v56 = vld [vmem:[#allocation33 + $0x128] sm:$0xf0] }
0x128f   : > { %8261 = vmatpush.bf16.msra.mxu2 %v11608_v20  ;;  %8385 = vmatpush.bf16.msrb.mxu0 %v11672_v21  ;;  %v11709_v21 = vld [vmem:[%s13555_s30 + $0x2] sm:$0x3]  ;;  %v11741_v60 = vor.u32 %v12424_v39, %v11738_v56 }
0x1292   : > { %8277 = vmatpush.bf16.msra.mxu3 %v11588_v15  ;;  %8401 = vmatpush.bf16.msra.mxu1 %v11652_v14  ;;  %v11733_v15 = vor.u32 %v12422_v24, %v11730_v63  ;;  %v11722_v14 = vld [vmem:[#allocation33 + $0x108] sm:$0xf0] }
0x1293   : > { %8262 = vmatpush.bf16.msra.mxu2 %v11600_v36  ;;  %8386 = vmatpush.bf16.msrb.mxu0 %v11664_v42 }
0x1297   : > { %8263 = vmatpush.bf16.msra.mxu2 %v11592_v47  ;;  %8387 = vmatpush.bf16.msrb.mxu0 %v11656_v53  ;;  %v11746_v47 = vld [vmem:[#allocation33 + $0x138] sm:$0xf0]  ;;  %v11736_v53 = vld [vmem:[#allocation33 + $0x120] sm:$0xf] }
0x1298   : > { %v11749_v51 = vor.u32 %v12426_v46, %v11746_v47  ;;  %v11737_v57 = vor.u32 %v12425_v55, %v11736_v53 }
0x129b   : > { %8264 = vmatpush.bf16.msra.mxu2 %v11584_v25  ;;  %8388 = vmatpush.bf16.msrb.mxu0 %v11648_v0  ;;  %v12423_v25 = vld [vmem:[#allocation33 + $0x114] sm:$0xf0]  ;;  %v11720_v0 = vld [vmem:[#allocation33 + $0x100] sm:$0xf] }
0x129c   : > { %v11729_v27 = vor.u32 %v12423_v25, %v11728_v5 }
0x12d0   : > { %v8009_v22 = vpop.f32.mrf.mxu1 }
0x12d6   : > { %v7964_v26 = vpop.f32.mrf.mxu3 }
0x12d7   : > { %v8013_v28 = vmax.f32 %v7964_v26, %v8009_v22  ;;  %v11769_v22 = vor.u32 %v12433_v12, %v11768_v54  ;;  %v11760_v26 = vld [vmem:[#allocation33 + $0x150] sm:$0xf] }
0x12d9   : > { %8082 = vmatmul.f32.vlgmr.msrb.gmra.mxu3 %v8013_v28  ;;  %8155 = vmatmul.f32.vlgmr.msrb.gmra.mxu1 %v8013_v28  ;;  %v12431_v28 = vld [vmem:[#allocation33 + $0x154] sm:$0xf0] }
0x12da   : > { %v11761_v35 = vor.u32 %v12431_v28, %v11760_v26 }
0x12db   : > { %v7989_v29 = vpop.f32.mrf.mxu0 }
0x12e1   : > { %v7944_v31 = vpop.f32.mrf.mxu2 }
0x12e2   : > { %v8012_v32 = vmax.f32 %v7944_v31, %v7989_v29  ;;  %v12430_v29 = vld [vmem:[#allocation33 + $0x154] sm:$0xf]  ;;  %v11762_v31 = vld [vmem:[#allocation33 + $0x158] sm:$0xf0] }
0x12e3   : > { %v11765_v36 = vor.u32 %v12430_v29, %v11762_v31 }
0x12e4   : > { %8062 = vmatmul.f32.vlgmr.msrb.gmra.mxu2 %v8012_v32  ;;  %8135 = vmatmul.f32.vlgmr.msra.gmra.mxu0 %v8012_v32 }
0x1356   : > { %v8156_v4 = vpop.f32.mrf.mxu1 }
0x135c   : > { %v8083_v11 = vpop.f32.mrf.mxu3 }
0x1361   : > { %v8136_v7 = vpop.f32.mrf.mxu0 }
0x1362   : > { %v8157_v58 = vadd.f32 %v8156_v4, %v8136_v7  ;;  %v11721_v4 = vor.u32 %v12421_v1, %v11720_v0  ;;  %v11725_v7 = vor.u32 %v12420_v3, %v11722_v14 }
0x1367   : > { %v8063_v8 = vpop.f32.mrf.mxu2 }
0x1368   : > { %v8084_v9 = vadd.f32 %v8083_v11, %v8063_v8 }
0x136a   : > { %v8159_v10 = vmax.f32 %v8084_v9, %v8157_v58  ;;  %v11782_v58 = vld [vmem:[%s13555_s30 + $0x4] sm:$0x3] }
0x136c   : > { %v14283_v2 = vpack.c.bf16 %v8159_v10, %v8159_v10 }
0x136e   : > { %8265 = vmatmul.bf16.vlgmr.msra.gmra.mxu2 %v14283_v2  ;;  %8278 = vmatmul.bf16.vlgmr.msra.gmra.mxu3 %v14283_v2 }
0x136f   : > { %8389 = vmatmul.bf16.vlgmr.msrb.gmra.mxu0 %v14283_v2  ;;  %8402 = vmatmul.bf16.vlgmr.msra.gmra.mxu1 %v14283_v2 }
0x13ec   : > { %v8390_v20 = vpop.f32.mrf.mxu0  ;;  %v8403_v6 = vpop.f32.mrf.mxu1 }
0x13ed   : > { %11710 = vmatpush.msk.msrb.mxu2 %vm8413_vm5, %v8390_v20  ;;  %11712 = vmatpush.msk.msrb.mxu3 %vm8413_vm5, %v8403_v6 }
0x13ee   : > { %11711 = vmatmul.msk.f32.vlgmr.msrb.gmra.mxu2 %vm8409_vm6, %v11709_v21  ;;  %11713 = vmatmul.msk.f32.vlgmr.msrb.gmra.mxu3 %vm8409_vm6, %v11709_v21 }
0x13ef   : > { %8606 = vmatpush.bf16.msra.mxu2 %v11777_v62  ;;  %8619 = vmatpush.bf16.msra.mxu3 %v11781_v49 }
0x13f1   : > { %v8266_v32 = vpop.f32.mrf.mxu2  ;;  %v8279_v18 = vpop.f32.mrf.mxu3 }
0x13f2   : > { %11714 = vmatpush.msk.msra.mxu0 %vm8413_vm5, %v8266_v32  ;;  %11716 = vmatpush.msk.msrb.mxu1 %vm8413_vm5, %v8279_v18 }
0x13f3   : > { %8607 = vmatpush.bf16.msra.mxu2 %v11769_v22  ;;  %8620 = vmatpush.bf16.msra.mxu3 %v11773_v13 }
0x13f4   : > { %v8392_v42 = vpop.f32.mrf.mxu0  ;;  %v8405_v43 = vpop.f32.mrf.mxu1  ;;  %11717 = vmatmul.msk.f32.vlgmr.msrb.gmra.mxu1 %vm8409_vm6, %v8283_v33  ;;  %11715 = vmatmul.msk.f32.vlgmr.msra.gmra.mxu0 %vm8409_vm6, %v8283_v33 }
0x13f7   : > { %8608 = vmatpush.bf16.msra.mxu2 %v11761_v35  ;;  %8621 = vmatpush.bf16.msra.mxu3 %v11765_v36 }
0x13f9   : > { %v8268_v17 = vpop.f32.mrf.mxu2  ;;  %v8281_v23 = vpop.f32.mrf.mxu3 }
0x13fb   : > { %8609 = vmatpush.bf16.msra.mxu2 %v11753_v44  ;;  %8622 = vmatpush.bf16.msra.mxu3 %v11757_v45 }
0x13ff   : > { %8610 = vmatpush.bf16.msra.mxu2 %v11745_v50  ;;  %8623 = vmatpush.bf16.msra.mxu3 %v11749_v51 }
0x1403   : > { %8611 = vmatpush.bf16.msra.mxu2 %v11737_v57  ;;  %8624 = vmatpush.bf16.msra.mxu3 %v11741_v60 }
0x1407   : > { %8612 = vmatpush.bf16.msra.mxu2 %v11729_v27  ;;  %8625 = vmatpush.bf16.msra.mxu3 %v11733_v15 }
0x140b   : > { %8613 = vmatpush.bf16.msra.mxu2 %v11721_v4  ;;  %8626 = vmatpush.bf16.msra.mxu3 %v11725_v7 }
0x140e   : > { %8614 = vmatmul.bf16.vlgmr.msra.gmra.mxu2 %v14283_v2  ;;  %8627 = vmatmul.bf16.vlgmr.msra.gmra.mxu3 %v14283_v2  ;;  %v8685_v2 = vld [vmem:[#allocation34] sm:$0x3] }
0x140f   : > { %v8687_v54 = vperm.slane %v8685_v2, 0  ;;  %v8688_v12 = vperm.slane %v8685_v2, 1 }
0x1471   : > { %v8437_v11 = vpop.f32.mrf.mxu2  ;;  %v8457_v8 = vpop.f32.mrf.mxu3 }
0x1472   : > { %v8506_v61 = vpop.f32.mrf.mxu1  ;;  %v8486_v59 = vpop.f32.mrf.mxu0 }
0x1473   : > { %v8507_v62 = vadd.f32 %v8506_v61, %v8457_v8  ;;  %v8487_v49 = vadd.f32 %v8486_v59, %v8437_v11 }
0x1491   : > { %v8615_v9 = vpop.f32.mrf.mxu2  ;;  %v8628_v10 = vpop.f32.mrf.mxu3 }
0x1492   : > { %11783 = vmatpush.msk.msrb.mxu0 %vm8413_vm5, %v8615_v9  ;;  %11785 = vmatpush.msk.msra.mxu1 %vm8413_vm5, %v8628_v10 }
0x1493   : > { %11784 = vmatmul.msk.f32.vlgmr.msrb.gmra.mxu0 %vm8409_vm6, %v11782_v58  ;;  %11786 = vmatmul.msk.f32.vlgmr.msra.gmra.mxu1 %vm8409_vm6, %v11782_v58 }
0x1499   : > { %v8617_v41 = vpop.f32.mrf.mxu2  ;;  %v8630_v48 = vpop.f32.mrf.mxu3 }
0x1510   : > { %v8660_v52 = vpop.f32.mrf.mxu0  ;;  %v8680_v19 = vpop.f32.mrf.mxu1 }
0x1511   : > { %v8683_v20 = vadd.f32 %v8660_v52, %v8487_v49  ;;  %v8684_v6 = vadd.f32 %v8680_v19, %v8507_v62 }
0x1513   : > { %v8691_v21 = vadd.f32 %v8687_v54, %v8683_v20  ;;  %v8692_v22 = vadd.f32 %v8688_v12, %v8684_v6 }
0x1515   : > { %v8694_v13 = vmax.f32 %v8692_v22, 0.0  ;;  %v8693_v26 = vmax.f32 %v8691_v21, 0.0 }
0x1517   : > { %v8697_v28 = vrot.slane %v8694_v13, 6 }
0x1519   : > { %v8698_v29 = vsel %vm8413_vm5, %v8693_v26, %v8697_v28 }
0x151a   : > { %8700 = vst [vmem:[%s1448_s11] sm:$0xf] %v8698_v29 }
0x151b PF: > { %s95_s28 = sadd.s32 1, %s13311_s28  }
0x151c   : > { %p92_p3 = scmp.ge.s32.totalorder %s95_s28, 4  }
0x151e   :  { %94 = sbr.rel (!%p92_p3) target bundleno = 76 (0x4c), region = 361 }
0x1523   :  { %8722 = vsyncpa [#allocation3], 1 }
0x1524   :  { %8724 = vsyncpa [#allocation3 + $0x1], 1 }
0x1525   :  { %8725 = vsyncpa [#allocation5], 1 }
0x1526   :  { %8726 = vsyncpa [#allocation8], 1 }
0x1527   :  { %8727 = vsyncpa [#allocation11], 1 }
0x1528   :  { %8728 = vsyncpa [#allocation14], 1 }
0x1529   :  { %8729 = vsyncpa [#allocation17], 1 }
0x152a   :  { %8730 = vsyncpa [#allocation20], 1 }
0x152b   :  { %8731 = vsyncpa [#allocation23], 1 }
0x152c   :  { %8732 = vsyncpa [#allocation26], 1 }
0x152d   :  { %8733 = vsyncpa [#allocation29], 1 }
0x152e   :  { %8734 = vsyncpa [#allocation32], 1 }
0x152f   :  { %8735 = vsyncpa [#allocation35], 1 }

</bundles_post_ra>
